<compile_context>
chip_gen: v5e
topology: v5e:2x2
jax: 0.10.0
libtpu: 0.0.40
codegen_flags: <defaults>
</compile_context>

<pallas_src>
import functools

import jax
import jax.numpy as jnp
from jax import lax
from jax.experimental import pallas as pl
from jax.experimental.pallas import tpu as pltpu

LANES = 128  # channel axis padded to full lane width -> unmasked VMEM traffic


# ------------------------------ Pallas kernel -------------------------------


def _fused_cnn_kernel(x_ref, w1_ref, b1_ref, w2_ref, b2_ref, w3_ref, b3_ref,
                      w4_ref, b4_ref, o_ref, inpad_ref, actA_ref, actB_ref,
                      *, bb, H, W):
    """Whole 4-layer CNN for `bb` batch elements; activations never leave VMEM.

    x_ref    : (bb, H, W, 2)            NHWC input block
    w1_ref   : (9, 2, 128)              layer-1 tap weights (Cout padded to 128)
    w2_ref   : (9, 128, 128)            layer-2 tap weights (Cin/Cout padded)
    w3_ref   : (9, 128, 128)            layer-3 tap weights (Cin/Cout padded)
    w4_ref   : (128, 16)                1x1 conv weights   (Cin padded)
    b*_ref   : (1, C)                   padded biases
    o_ref    : (bb, 16, H*W)            NCHW-flat, lane-dense output block
    inpad_ref: (bb, H+2, W+2, 2)   VMEM zero-border scratch (layer-1 input)
    actA_ref : (bb, H+2, W+2, 128) VMEM zero-border scratch (layer-1 output)
    actB_ref : (bb, H+2, W+2, 128) VMEM zero-border scratch (layer-2 output)
    """

    def zero_border(ref):
        # Only the 1-pixel spatial border needs zeroing; the interior is fully
        # rewritten every step.  Done every step (not pl.when(program_id==0))
        # so it stays correct when a parallel grid is split across cores.
        b, hp, wp, c = ref.shape
        z_row = jnp.zeros((b, 1, wp, c), jnp.float32)
        z_col = jnp.zeros((b, hp, 1, c), jnp.float32)
        ref[:, 0:1, :, :] = z_row
        ref[:, hp - 1:hp, :, :] = z_row
        ref[:, :, 0:1, :] = z_col
        ref[:, :, wp - 1:wp, :] = z_col

    def conv3x3_relu(src_ref, w_ref, b_ref):
        # src_ref: (bb, H+2, W+2, Cin) padded activation with zero border.
        # 9-tap accumulation: three shifted window loads (one per kw), the kh
        # offsets are free slices of the loaded value -> no im2col relayout.
        cin = src_ref.shape[-1]
        acc = None
        for kw in range(3):
            x_kw = src_ref[:, :, kw:kw + W, :]                # (bb, H+2, W, cin)
            for kh in range(3):
                lhs = x_kw[:, kh:kh + H].reshape(bb * H * W, cin)
                part = jnp.dot(lhs, w_ref[kh * 3 + kw],
                               preferred_element_type=jnp.float32)
                acc = part if acc is None else acc + part
        return jnp.maximum(acc + b_ref[...], 0.0)             # (bb*H*W, Cout)

    zero_border(inpad_ref)
    zero_border(actA_ref)
    zero_border(actB_ref)

    # Layer 1: pad the 2-channel input in VMEM, conv -> 128-lane activation.
    inpad_ref[:, 1:H + 1, 1:W + 1, :] = x_ref[...]
    y1 = conv3x3_relu(inpad_ref, w1_ref, b1_ref)              # (bb*H*W, 128)
    actA_ref[:, 1:H + 1, 1:W + 1, :] = y1.reshape(bb, H, W, LANES)

    # Layer 2.
    y2 = conv3x3_relu(actA_ref, w2_ref, b2_ref)               # (bb*H*W, 128)
    actB_ref[:, 1:H + 1, 1:W + 1, :] = y2.reshape(bb, H, W, LANES)

    # Layer 3 (its output feeds only the 1x1 conv, so keep it as a value).
    y3 = conv3x3_relu(actB_ref, w3_ref, b3_ref)               # (bb*H*W, 128)

    # Layer 4: 1x1 conv == pointwise channel matmul, no ReLU.
    y4 = jnp.dot(y3, w4_ref[...], preferred_element_type=jnp.float32)
    y4 = (y4 + b4_ref[...]).reshape(bb, H * W, 16)

    # Lane-dense NCHW-flat store: (bb, 16, H*W) with H*W (256) on lanes.
    for b in range(bb):
        o_ref[b] = y4[b].T.astype(o_ref.dtype)


# --------------------------------- wrapper -----------------------------------


def _pick_batch_block(n):
    """Images per grid step: amortize per-step overhead (~0.35us) but keep
    >= 2 grid steps when possible so both v7x TensorCores get work."""
    for b in (8, 4, 2, 1):
        if n % b == 0 and n // b >= 2:
            return b
    for b in (8, 4, 2, 1):
        if n % b == 0:
            return b
    return 1


def ofdm_classifier_cnn_forward(x_nchw, params):
    """Forward pass. Input/output are NCHW to match the PyTorch module."""
    N, Cin, H, W = x_nchw.shape
    Cout = 16
    bb = _pick_batch_block(N)
    f32 = jnp.float32

    # Tiny layout conversion at the boundary; everything else stays in-kernel.
    x_nhwc = jnp.transpose(x_nchw, (0, 2, 3, 1)).astype(f32)

    # Weights kept HWIO (kh, kw, in, out); tap-major, channel-padded to 128
    # so in-kernel activations are lane-dense.  Padded rows/cols are zero, so
    # padded channels contribute nothing and padded outputs stay exactly zero.
    w1p = jnp.zeros((9, 2, LANES), f32).at[:, :, :32].set(
        params["w1"].astype(f32).reshape(9, 2, 32))
    w2p = jnp.zeros((9, LANES, LANES), f32).at[:, :32, :64].set(
        params["w2"].astype(f32).reshape(9, 32, 64))
    w3p = jnp.zeros((9, LANES, LANES), f32).at[:, :64, :32].set(
        params["w3"].astype(f32).reshape(9, 64, 32))
    w4p = jnp.zeros((LANES, Cout), f32).at[:32, :].set(params["w4"].astype(f32))
    b1p = jnp.zeros((1, LANES), f32).at[:, :32].set(params["b1"].astype(f32))
    b2p = jnp.zeros((1, LANES), f32).at[:, :64].set(params["b2"].astype(f32))
    b3p = jnp.zeros((1, LANES), f32).at[:, :32].set(params["b3"].astype(f32))
    b4p = params["b4"].astype(f32).reshape(1, Cout)

    kernel = functools.partial(_fused_cnn_kernel, bb=bb, H=H, W=W)

    def const_spec(a):
        # Whole array resident each grid step (constant block index).
        nd = a.ndim
        return pl.BlockSpec(a.shape, lambda n, _nd=nd: (0,) * _nd)

    out_flat = pl.pallas_call(
        kernel,
        out_shape=jax.ShapeDtypeStruct((N, Cout, H * W), f32),
        grid_spec=pltpu.PrefetchScalarGridSpec(
            num_scalar_prefetch=0,
            grid=(N // bb,),
            in_specs=[
                pl.BlockSpec((bb, H, W, Cin), lambda n: (n, 0, 0, 0)),
                const_spec(w1p), const_spec(b1p),
                const_spec(w2p), const_spec(b2p),
                const_spec(w3p), const_spec(b3p),
                const_spec(w4p), const_spec(b4p),
            ],
            out_specs=pl.BlockSpec((bb, Cout, H * W), lambda n: (n, 0, 0)),
            scratch_shapes=[
                pltpu.VMEM((bb, H + 2, W + 2, Cin), f32),     # layer-1 input pad
                pltpu.VMEM((bb, H + 2, W + 2, LANES), f32),   # layer-1 output
                pltpu.VMEM((bb, H + 2, W + 2, LANES), f32),   # layer-2 output
            ],
        ),
        compiler_params=pltpu.CompilerParams(
            dimension_semantics=("parallel",),
            vmem_limit_bytes=64 * 1024 * 1024),
    )(x_nhwc, w1p, b1p, w2p, b2p, w3p, b3p, w4p, b4p)

    # (N, Cout, H*W) -> (N, Cout, H, W): pure metadata reshape, NCHW output.
    return out_flat.reshape(N, Cout, H, W)


ofdm_classifier_cnn = jax.jit(ofdm_classifier_cnn_forward)


# --------------------------- pure-JAX reference ------------------------------


def _conv_ref(x_nhwc, w_hwio, b, relu):
    y = lax.conv_general_dilated(
        x_nhwc, w_hwio, window_strides=(1, 1), padding="SAME",
        dimension_numbers=("NHWC", "HWIO", "NHWC")) + b
    return jnp.maximum(y, 0.0) if relu else y


def reference_forward(x_nchw, params):
    x = jnp.transpose(x_nchw, (0, 2, 3, 1))
    x = _conv_ref(x, params["w1"], params["b1"], True)
    x = _conv_ref(x, params["w2"], params["b2"], True)
    x = _conv_ref(x, params["w3"], params["b3"], True)
    x = _conv_ref(x, params["w4"].reshape(1, 1, 32, 16), params["b4"], False)
    return jnp.transpose(x, (0, 3, 1, 2))


# --------------------------------- main --------------------------------------


def init_params(key):
    """Deterministic synthetic params (same shapes as the PyTorch module,
    stored HWIO instead of torch's OIHW)."""
    ks = jax.random.split(key, 8)

    def w_init(k, shape, fan_in):
        bound = 1.0 / jnp.sqrt(fan_in)
        return jax.random.uniform(k, shape, jnp.float32, -bound, bound)

    return {
        "w1": w_init(ks[0], (3, 3, 2, 32), 3 * 3 * 2),
        "b1": w_init(ks[1], (32,), 3 * 3 * 2),
        "w2": w_init(ks[2], (3, 3, 32, 64), 3 * 3 * 32),
        "b2": w_init(ks[3], (64,), 3 * 3 * 32),
        "w3": w_init(ks[4], (3, 3, 64, 32), 3 * 3 * 64),
        "b3": w_init(ks[5], (32,), 3 * 3 * 64),
        "w4": w_init(ks[6], (32, 16), 32),   # 1x1 conv weight as (Cin, Cout)
        "b4": w_init(ks[7], (16,), 32),
    }


if __name__ == "__main__":
    key = jax.random.PRNGKey(0)
    k_x, k_p = jax.random.split(key)

    # Small deterministic input: batch=2, 2 channels (I/Q), 16x16 grid (NCHW).
    x = jax.random.normal(k_x, (2, 2, 16, 16), jnp.float32)
    params = init_params(k_p)

    out = jax.block_until_ready(ofdm_classifier_cnn(x, params))
    assert out.shape == (2, 16, 16, 16), out.shape   # NCHW: (N, 16, H, W)

    ref = jax.block_until_ready(reference_forward(x, params))
    err = float(jnp.max(jnp.abs(out - ref)))
    assert err < 2e-3, f"mismatch vs reference: max abs err = {err}"

    print("KERNEL_OK")
</pallas_src>

<mosaic_0001>
module attributes {stable_mosaic.version = 11 : i64} {
  func.func @_fused_cnn_kernel(%arg0: i32, %arg1: memref<1x16x16x2xf32, #tpu.memory_space<vmem>>, %arg2: memref<9x2x128xf32, #tpu.memory_space<vmem>>, %arg3: memref<1x128xf32, #tpu.memory_space<vmem>>, %arg4: memref<9x128x128xf32, #tpu.memory_space<vmem>>, %arg5: memref<1x128xf32, #tpu.memory_space<vmem>>, %arg6: memref<9x128x128xf32, #tpu.memory_space<vmem>>, %arg7: memref<1x128xf32, #tpu.memory_space<vmem>>, %arg8: memref<128x16xf32, #tpu.memory_space<vmem>>, %arg9: memref<1x16xf32, #tpu.memory_space<vmem>>, %arg10: memref<1x16x256xf32, #tpu.memory_space<vmem>>, %arg11: memref<1x18x18x2xf32, #tpu.memory_space<vmem>>, %arg12: memref<1x18x18x128xf32, #tpu.memory_space<vmem>>, %arg13: memref<1x18x18x128xf32, #tpu.memory_space<vmem>>) attributes {dimension_semantics = [#tpu.dimension_semantics<parallel>], iteration_bounds = array<i64: 2>, scalar_prefetch = 0 : i64, scratch_operands = 3 : i64, tpu.core_type = #tpu.core_type<tc>, window_params = [{transform_indices = @transform_0, window_bounds = array<i64: 1, 16, 16, 2>}, {pipeline_mode = #tpu.pipeline_mode<synchronous>, transform_indices = @transform_1, window_bounds = array<i64: 9, 2, 128>}, {pipeline_mode = #tpu.pipeline_mode<synchronous>, transform_indices = @transform_2, window_bounds = array<i64: 1, 128>}, {pipeline_mode = #tpu.pipeline_mode<synchronous>, transform_indices = @transform_3, window_bounds = array<i64: 9, 128, 128>}, {pipeline_mode = #tpu.pipeline_mode<synchronous>, transform_indices = @transform_4, window_bounds = array<i64: 1, 128>}, {pipeline_mode = #tpu.pipeline_mode<synchronous>, transform_indices = @transform_5, window_bounds = array<i64: 9, 128, 128>}, {pipeline_mode = #tpu.pipeline_mode<synchronous>, transform_indices = @transform_6, window_bounds = array<i64: 1, 128>}, {pipeline_mode = #tpu.pipeline_mode<synchronous>, transform_indices = @transform_7, window_bounds = array<i64: 128, 16>}, {pipeline_mode = #tpu.pipeline_mode<synchronous>, transform_indices = @transform_8, window_bounds = array<i64: 1, 16>}, {transform_indices = @transform_9, window_bounds = array<i64: 1, 16, 256>}]} {
    %cst = arith.constant 0.000000e+00 : f32
    %0 = vector.broadcast %cst : f32 to vector<1x1x18x2xf32>
    %cst_0 = arith.constant 0.000000e+00 : f32
    %1 = vector.broadcast %cst_0 : f32 to vector<1x18x1x2xf32>
    %c0 = arith.constant 0 : index
    %c0_1 = arith.constant 0 : index
    %c0_2 = arith.constant 0 : index
    %c0_3 = arith.constant 0 : index
    %2 = vector.load %arg11[%c0, %c0_1, %c0_2, %c0_3] : memref<1x18x18x2xf32, #tpu.memory_space<vmem>>, vector<1x1x18x2xf32>
    tpu.vector_store %arg11[%c0, %c0_1, %c0_2, %c0_3], %0 {strides = array<i32>} : memref<1x18x18x2xf32, #tpu.memory_space<vmem>>, vector<1x1x18x2xf32>,
    %c0_4 = arith.constant 0 : index
    %c17 = arith.constant 17 : index
    %c0_5 = arith.constant 0 : index
    %c0_6 = arith.constant 0 : index
    %3 = vector.load %arg11[%c0_4, %c17, %c0_5, %c0_6] : memref<1x18x18x2xf32, #tpu.memory_space<vmem>>, vector<1x1x18x2xf32>
    tpu.vector_store %arg11[%c0_4, %c17, %c0_5, %c0_6], %0 {strides = array<i32>} : memref<1x18x18x2xf32, #tpu.memory_space<vmem>>, vector<1x1x18x2xf32>,
    %c0_7 = arith.constant 0 : index
    %c0_8 = arith.constant 0 : index
    %c0_9 = arith.constant 0 : index
    %c0_10 = arith.constant 0 : index
    %4 = vector.load %arg11[%c0_7, %c0_8, %c0_9, %c0_10] : memref<1x18x18x2xf32, #tpu.memory_space<vmem>>, vector<1x18x1x2xf32>
    tpu.vector_store %arg11[%c0_7, %c0_8, %c0_9, %c0_10], %1 {strides = array<i32>} : memref<1x18x18x2xf32, #tpu.memory_space<vmem>>, vector<1x18x1x2xf32>,
    %c0_11 = arith.constant 0 : index
    %c0_12 = arith.constant 0 : index
    %c17_13 = arith.constant 17 : index
    %c0_14 = arith.constant 0 : index
    %5 = vector.load %arg11[%c0_11, %c0_12, %c17_13, %c0_14] : memref<1x18x18x2xf32, #tpu.memory_space<vmem>>, vector<1x18x1x2xf32>
    tpu.vector_store %arg11[%c0_11, %c0_12, %c17_13, %c0_14], %1 {strides = array<i32>} : memref<1x18x18x2xf32, #tpu.memory_space<vmem>>, vector<1x18x1x2xf32>,
    %cst_15 = arith.constant 0.000000e+00 : f32
    %6 = vector.broadcast %cst_15 : f32 to vector<1x1x18x128xf32>
    %cst_16 = arith.constant 0.000000e+00 : f32
    %7 = vector.broadcast %cst_16 : f32 to vector<1x18x1x128xf32>
    %c0_17 = arith.constant 0 : index
    %c0_18 = arith.constant 0 : index
    %c0_19 = arith.constant 0 : index
    %c0_20 = arith.constant 0 : index
    %8 = vector.load %arg12[%c0_17, %c0_18, %c0_19, %c0_20] : memref<1x18x18x128xf32, #tpu.memory_space<vmem>>, vector<1x1x18x128xf32>
    tpu.vector_store %arg12[%c0_17, %c0_18, %c0_19, %c0_20], %6 {strides = array<i32>} : memref<1x18x18x128xf32, #tpu.memory_space<vmem>>, vector<1x1x18x128xf32>,
    %c0_21 = arith.constant 0 : index
    %c17_22 = arith.constant 17 : index
    %c0_23 = arith.constant 0 : index
    %c0_24 = arith.constant 0 : index
    %9 = vector.load %arg12[%c0_21, %c17_22, %c0_23, %c0_24] : memref<1x18x18x128xf32, #tpu.memory_space<vmem>>, vector<1x1x18x128xf32>
    tpu.vector_store %arg12[%c0_21, %c17_22, %c0_23, %c0_24], %6 {strides = array<i32>} : memref<1x18x18x128xf32, #tpu.memory_space<vmem>>, vector<1x1x18x128xf32>,
    %c0_25 = arith.constant 0 : index
    %c0_26 = arith.constant 0 : index
    %c0_27 = arith.constant 0 : index
    %c0_28 = arith.constant 0 : index
    %10 = vector.load %arg12[%c0_25, %c0_26, %c0_27, %c0_28] : memref<1x18x18x128xf32, #tpu.memory_space<vmem>>, vector<1x18x1x128xf32>
    tpu.vector_store %arg12[%c0_25, %c0_26, %c0_27, %c0_28], %7 {strides = array<i32>} : memref<1x18x18x128xf32, #tpu.memory_space<vmem>>, vector<1x18x1x128xf32>,
    %c0_29 = arith.constant 0 : index
    %c0_30 = arith.constant 0 : index
    %c17_31 = arith.constant 17 : index
    %c0_32 = arith.constant 0 : index
    %11 = vector.load %arg12[%c0_29, %c0_30, %c17_31, %c0_32] : memref<1x18x18x128xf32, #tpu.memory_space<vmem>>, vector<1x18x1x128xf32>
    tpu.vector_store %arg12[%c0_29, %c0_30, %c17_31, %c0_32], %7 {strides = array<i32>} : memref<1x18x18x128xf32, #tpu.memory_space<vmem>>, vector<1x18x1x128xf32>,
    %cst_33 = arith.constant 0.000000e+00 : f32
    %12 = vector.broadcast %cst_33 : f32 to vector<1x1x18x128xf32>
    %cst_34 = arith.constant 0.000000e+00 : f32
    %13 = vector.broadcast %cst_34 : f32 to vector<1x18x1x128xf32>
    %c0_35 = arith.constant 0 : index
    %c0_36 = arith.constant 0 : index
    %c0_37 = arith.constant 0 : index
    %c0_38 = arith.constant 0 : index
    %14 = vector.load %arg13[%c0_35, %c0_36, %c0_37, %c0_38] : memref<1x18x18x128xf32, #tpu.memory_space<vmem>>, vector<1x1x18x128xf32>
    tpu.vector_store %arg13[%c0_35, %c0_36, %c0_37, %c0_38], %12 {strides = array<i32>} : memref<1x18x18x128xf32, #tpu.memory_space<vmem>>, vector<1x1x18x128xf32>,
    %c0_39 = arith.constant 0 : index
    %c17_40 = arith.constant 17 : index
    %c0_41 = arith.constant 0 : index
    %c0_42 = arith.constant 0 : index
    %15 = vector.load %arg13[%c0_39, %c17_40, %c0_41, %c0_42] : memref<1x18x18x128xf32, #tpu.memory_space<vmem>>, vector<1x1x18x128xf32>
    tpu.vector_store %arg13[%c0_39, %c17_40, %c0_41, %c0_42], %12 {strides = array<i32>} : memref<1x18x18x128xf32, #tpu.memory_space<vmem>>, vector<1x1x18x128xf32>,
    %c0_43 = arith.constant 0 : index
    %c0_44 = arith.constant 0 : index
    %c0_45 = arith.constant 0 : index
    %c0_46 = arith.constant 0 : index
    %16 = vector.load %arg13[%c0_43, %c0_44, %c0_45, %c0_46] : memref<1x18x18x128xf32, #tpu.memory_space<vmem>>, vector<1x18x1x128xf32>
    tpu.vector_store %arg13[%c0_43, %c0_44, %c0_45, %c0_46], %13 {strides = array<i32>} : memref<1x18x18x128xf32, #tpu.memory_space<vmem>>, vector<1x18x1x128xf32>,
    %c0_47 = arith.constant 0 : index
    %c0_48 = arith.constant 0 : index
    %c17_49 = arith.constant 17 : index
    %c0_50 = arith.constant 0 : index
    %17 = vector.load %arg13[%c0_47, %c0_48, %c17_49, %c0_50] : memref<1x18x18x128xf32, #tpu.memory_space<vmem>>, vector<1x18x1x128xf32>
    tpu.vector_store %arg13[%c0_47, %c0_48, %c17_49, %c0_50], %13 {strides = array<i32>} : memref<1x18x18x128xf32, #tpu.memory_space<vmem>>, vector<1x18x1x128xf32>,
    %c0_51 = arith.constant 0 : index
    %c0_52 = arith.constant 0 : index
    %c0_53 = arith.constant 0 : index
    %c0_54 = arith.constant 0 : index
    %18 = vector.load %arg1[%c0_51, %c0_52, %c0_53, %c0_54] : memref<1x16x16x2xf32, #tpu.memory_space<vmem>>, vector<1x16x16x2xf32>
    %c0_55 = arith.constant 0 : index
    %c1 = arith.constant 1 : index
    %c1_56 = arith.constant 1 : index
    %c0_57 = arith.constant 0 : index
    %19 = vector.load %arg11[%c0_55, %c1, %c1_56, %c0_57] : memref<1x18x18x2xf32, #tpu.memory_space<vmem>>, vector<1x16x16x2xf32>
    tpu.vector_store %arg11[%c0_55, %c1, %c1_56, %c0_57], %18 {strides = array<i32>} : memref<1x18x18x2xf32, #tpu.memory_space<vmem>>, vector<1x16x16x2xf32>,
    %c0_58 = arith.constant 0 : index
    %c0_59 = arith.constant 0 : index
    %c0_60 = arith.constant 0 : index
    %c0_61 = arith.constant 0 : index
    %20 = vector.load %arg11[%c0_58, %c0_59, %c0_60, %c0_61] : memref<1x18x18x2xf32, #tpu.memory_space<vmem>>, vector<1x18x16x2xf32>
    %21 = vector.extract_strided_slice %20 {offsets = [0, 0, 0, 0], sizes = [1, 16, 16, 2], strides = [1, 1, 1, 1]} : vector<1x18x16x2xf32> to vector<1x16x16x2xf32>
    %22 = vector.shape_cast %21 : vector<1x16x16x2xf32> to vector<256x2xf32>
    %c0_62 = arith.constant 0 : index
    %c0_63 = arith.constant 0 : index
    %c0_64 = arith.constant 0 : index
    %23 = vector.load %arg2[%c0_62, %c0_63, %c0_64] : memref<9x2x128xf32, #tpu.memory_space<vmem>>, vector<1x2x128xf32>
    %24 = vector.shape_cast %23 : vector<1x2x128xf32> to vector<2x128xf32>
    %cst_65 = arith.constant dense<0.000000e+00> : vector<256x128xf32>
    %25 = tpu.matmul %22, %24, %cst_65 {dimension_numbers = #tpu.dot_dimension_numbers<[1], [0], [0], [1], [0, 0, 1, 1], [], []>} : vector<256x2xf32>, vector<2x128xf32>, vector<256x128xf32> -> vector<256x128xf32>
    %26 = vector.extract_strided_slice %20 {offsets = [0, 1, 0, 0], sizes = [1, 16, 16, 2], strides = [1, 1, 1, 1]} : vector<1x18x16x2xf32> to vector<1x16x16x2xf32>
    %27 = vector.shape_cast %26 : vector<1x16x16x2xf32> to vector<256x2xf32>
    %c3 = arith.constant 3 : index
    %c0_66 = arith.constant 0 : index
    %c0_67 = arith.constant 0 : index
    %28 = vector.load %arg2[%c3, %c0_66, %c0_67] : memref<9x2x128xf32, #tpu.memory_space<vmem>>, vector<1x2x128xf32>
    %29 = vector.shape_cast %28 : vector<1x2x128xf32> to vector<2x128xf32>
    %cst_68 = arith.constant dense<0.000000e+00> : vector<256x128xf32>
    %30 = tpu.matmul %27, %29, %cst_68 {dimension_numbers = #tpu.dot_dimension_numbers<[1], [0], [0], [1], [0, 0, 1, 1], [], []>} : vector<256x2xf32>, vector<2x128xf32>, vector<256x128xf32> -> vector<256x128xf32>
    %31 = arith.addf %25, %30 : vector<256x128xf32>
    %32 = vector.extract_strided_slice %20 {offsets = [0, 2, 0, 0], sizes = [1, 16, 16, 2], strides = [1, 1, 1, 1]} : vector<1x18x16x2xf32> to vector<1x16x16x2xf32>
    %33 = vector.shape_cast %32 : vector<1x16x16x2xf32> to vector<256x2xf32>
    %c6 = arith.constant 6 : index
    %c0_69 = arith.constant 0 : index
    %c0_70 = arith.constant 0 : index
    %34 = vector.load %arg2[%c6, %c0_69, %c0_70] : memref<9x2x128xf32, #tpu.memory_space<vmem>>, vector<1x2x128xf32>
    %35 = vector.shape_cast %34 : vector<1x2x128xf32> to vector<2x128xf32>
    %cst_71 = arith.constant dense<0.000000e+00> : vector<256x128xf32>
    %36 = tpu.matmul %33, %35, %cst_71 {dimension_numbers = #tpu.dot_dimension_numbers<[1], [0], [0], [1], [0, 0, 1, 1], [], []>} : vector<256x2xf32>, vector<2x128xf32>, vector<256x128xf32> -> vector<256x128xf32>
    %37 = arith.addf %31, %36 : vector<256x128xf32>
    %c0_72 = arith.constant 0 : index
    %c0_73 = arith.constant 0 : index
    %c1_74 = arith.constant 1 : index
    %c0_75 = arith.constant 0 : index
    %38 = vector.load %arg11[%c0_72, %c0_73, %c1_74, %c0_75] : memref<1x18x18x2xf32, #tpu.memory_space<vmem>>, vector<1x18x16x2xf32>
    %39 = vector.extract_strided_slice %38 {offsets = [0, 0, 0, 0], sizes = [1, 16, 16, 2], strides = [1, 1, 1, 1]} : vector<1x18x16x2xf32> to vector<1x16x16x2xf32>
    %40 = vector.shape_cast %39 : vector<1x16x16x2xf32> to vector<256x2xf32>
    %c1_76 = arith.constant 1 : index
    %c0_77 = arith.constant 0 : index
    %c0_78 = arith.constant 0 : index
    %41 = vector.load %arg2[%c1_76, %c0_77, %c0_78] : memref<9x2x128xf32, #tpu.memory_space<vmem>>, vector<1x2x128xf32>
    %42 = vector.shape_cast %41 : vector<1x2x128xf32> to vector<2x128xf32>
    %cst_79 = arith.constant dense<0.000000e+00> : vector<256x128xf32>
    %43 = tpu.matmul %40, %42, %cst_79 {dimension_numbers = #tpu.dot_dimension_numbers<[1], [0], [0], [1], [0, 0, 1, 1], [], []>} : vector<256x2xf32>, vector<2x128xf32>, vector<256x128xf32> -> vector<256x128xf32>
    %44 = arith.addf %37, %43 : vector<256x128xf32>
    %45 = vector.extract_strided_slice %38 {offsets = [0, 1, 0, 0], sizes = [1, 16, 16, 2], strides = [1, 1, 1, 1]} : vector<1x18x16x2xf32> to vector<1x16x16x2xf32>
    %46 = vector.shape_cast %45 : vector<1x16x16x2xf32> to vector<256x2xf32>
    %c4 = arith.constant 4 : index
    %c0_80 = arith.constant 0 : index
    %c0_81 = arith.constant 0 : index
    %47 = vector.load %arg2[%c4, %c0_80, %c0_81] : memref<9x2x128xf32, #tpu.memory_space<vmem>>, vector<1x2x128xf32>
    %48 = vector.shape_cast %47 : vector<1x2x128xf32> to vector<2x128xf32>
    %cst_82 = arith.constant dense<0.000000e+00> : vector<256x128xf32>
    %49 = tpu.matmul %46, %48, %cst_82 {dimension_numbers = #tpu.dot_dimension_numbers<[1], [0], [0], [1], [0, 0, 1, 1], [], []>} : vector<256x2xf32>, vector<2x128xf32>, vector<256x128xf32> -> vector<256x128xf32>
    %50 = arith.addf %44, %49 : vector<256x128xf32>
    %51 = vector.extract_strided_slice %38 {offsets = [0, 2, 0, 0], sizes = [1, 16, 16, 2], strides = [1, 1, 1, 1]} : vector<1x18x16x2xf32> to vector<1x16x16x2xf32>
    %52 = vector.shape_cast %51 : vector<1x16x16x2xf32> to vector<256x2xf32>
    %c7 = arith.constant 7 : index
    %c0_83 = arith.constant 0 : index
    %c0_84 = arith.constant 0 : index
    %53 = vector.load %arg2[%c7, %c0_83, %c0_84] : memref<9x2x128xf32, #tpu.memory_space<vmem>>, vector<1x2x128xf32>
    %54 = vector.shape_cast %53 : vector<1x2x128xf32> to vector<2x128xf32>
    %cst_85 = arith.constant dense<0.000000e+00> : vector<256x128xf32>
    %55 = tpu.matmul %52, %54, %cst_85 {dimension_numbers = #tpu.dot_dimension_numbers<[1], [0], [0], [1], [0, 0, 1, 1], [], []>} : vector<256x2xf32>, vector<2x128xf32>, vector<256x128xf32> -> vector<256x128xf32>
    %56 = arith.addf %50, %55 : vector<256x128xf32>
    %c0_86 = arith.constant 0 : index
    %c0_87 = arith.constant 0 : index
    %c2 = arith.constant 2 : index
    %c0_88 = arith.constant 0 : index
    %57 = vector.load %arg11[%c0_86, %c0_87, %c2, %c0_88] : memref<1x18x18x2xf32, #tpu.memory_space<vmem>>, vector<1x18x16x2xf32>
    %58 = vector.extract_strided_slice %57 {offsets = [0, 0, 0, 0], sizes = [1, 16, 16, 2], strides = [1, 1, 1, 1]} : vector<1x18x16x2xf32> to vector<1x16x16x2xf32>
    %59 = vector.shape_cast %58 : vector<1x16x16x2xf32> to vector<256x2xf32>
    %c2_89 = arith.constant 2 : index
    %c0_90 = arith.constant 0 : index
    %c0_91 = arith.constant 0 : index
    %60 = vector.load %arg2[%c2_89, %c0_90, %c0_91] : memref<9x2x128xf32, #tpu.memory_space<vmem>>, vector<1x2x128xf32>
    %61 = vector.shape_cast %60 : vector<1x2x128xf32> to vector<2x128xf32>
    %cst_92 = arith.constant dense<0.000000e+00> : vector<256x128xf32>
    %62 = tpu.matmul %59, %61, %cst_92 {dimension_numbers = #tpu.dot_dimension_numbers<[1], [0], [0], [1], [0, 0, 1, 1], [], []>} : vector<256x2xf32>, vector<2x128xf32>, vector<256x128xf32> -> vector<256x128xf32>
    %63 = arith.addf %56, %62 : vector<256x128xf32>
    %64 = vector.extract_strided_slice %57 {offsets = [0, 1, 0, 0], sizes = [1, 16, 16, 2], strides = [1, 1, 1, 1]} : vector<1x18x16x2xf32> to vector<1x16x16x2xf32>
    %65 = vector.shape_cast %64 : vector<1x16x16x2xf32> to vector<256x2xf32>
    %c5 = arith.constant 5 : index
    %c0_93 = arith.constant 0 : index
    %c0_94 = arith.constant 0 : index
    %66 = vector.load %arg2[%c5, %c0_93, %c0_94] : memref<9x2x128xf32, #tpu.memory_space<vmem>>, vector<1x2x128xf32>
    %67 = vector.shape_cast %66 : vector<1x2x128xf32> to vector<2x128xf32>
    %cst_95 = arith.constant dense<0.000000e+00> : vector<256x128xf32>
    %68 = tpu.matmul %65, %67, %cst_95 {dimension_numbers = #tpu.dot_dimension_numbers<[1], [0], [0], [1], [0, 0, 1, 1], [], []>} : vector<256x2xf32>, vector<2x128xf32>, vector<256x128xf32> -> vector<256x128xf32>
    %69 = arith.addf %63, %68 : vector<256x128xf32>
    %70 = vector.extract_strided_slice %57 {offsets = [0, 2, 0, 0], sizes = [1, 16, 16, 2], strides = [1, 1, 1, 1]} : vector<1x18x16x2xf32> to vector<1x16x16x2xf32>
    %71 = vector.shape_cast %70 : vector<1x16x16x2xf32> to vector<256x2xf32>
    %c8 = arith.constant 8 : index
    %c0_96 = arith.constant 0 : index
    %c0_97 = arith.constant 0 : index
    %72 = vector.load %arg2[%c8, %c0_96, %c0_97] : memref<9x2x128xf32, #tpu.memory_space<vmem>>, vector<1x2x128xf32>
    %73 = vector.shape_cast %72 : vector<1x2x128xf32> to vector<2x128xf32>
    %cst_98 = arith.constant dense<0.000000e+00> : vector<256x128xf32>
    %74 = tpu.matmul %71, %73, %cst_98 {dimension_numbers = #tpu.dot_dimension_numbers<[1], [0], [0], [1], [0, 0, 1, 1], [], []>} : vector<256x2xf32>, vector<2x128xf32>, vector<256x128xf32> -> vector<256x128xf32>
    %75 = arith.addf %69, %74 : vector<256x128xf32>
    %c0_99 = arith.constant 0 : index
    %c0_100 = arith.constant 0 : index
    %76 = vector.load %arg3[%c0_99, %c0_100] : memref<1x128xf32, #tpu.memory_space<vmem>>, vector<1x128xf32>
    %77 = vector.broadcast %76 : vector<1x128xf32> to vector<256x128xf32>
    %78 = arith.addf %75, %77 : vector<256x128xf32>
    %cst_101 = arith.constant 0.000000e+00 : f32
    %79 = vector.broadcast %cst_101 : f32 to vector<256x128xf32>
    %80 = arith.maximumf %78, %79 : vector<256x128xf32>
    %81 = vector.shape_cast %80 : vector<256x128xf32> to vector<1x16x16x128xf32>
    %c0_102 = arith.constant 0 : index
    %c1_103 = arith.constant 1 : index
    %c1_104 = arith.constant 1 : index
    %c0_105 = arith.constant 0 : index
    %82 = vector.load %arg12[%c0_102, %c1_103, %c1_104, %c0_105] : memref<1x18x18x128xf32, #tpu.memory_space<vmem>>, vector<1x16x16x128xf32>
    tpu.vector_store %arg12[%c0_102, %c1_103, %c1_104, %c0_105], %81 {strides = array<i32>} : memref<1x18x18x128xf32, #tpu.memory_space<vmem>>, vector<1x16x16x128xf32>,
    %c0_106 = arith.constant 0 : index
    %c0_107 = arith.constant 0 : index
    %c0_108 = arith.constant 0 : index
    %c0_109 = arith.constant 0 : index
    %83 = vector.load %arg12[%c0_106, %c0_107, %c0_108, %c0_109] : memref<1x18x18x128xf32, #tpu.memory_space<vmem>>, vector<1x18x16x128xf32>
    %84 = vector.extract_strided_slice %83 {offsets = [0, 0, 0, 0], sizes = [1, 16, 16, 128], strides = [1, 1, 1, 1]} : vector<1x18x16x128xf32> to vector<1x16x16x128xf32>
    %85 = vector.shape_cast %84 : vector<1x16x16x128xf32> to vector<256x128xf32>
    %c0_110 = arith.constant 0 : index
    %c0_111 = arith.constant 0 : index
    %c0_112 = arith.constant 0 : index
    %86 = vector.load %arg4[%c0_110, %c0_111, %c0_112] : memref<9x128x128xf32, #tpu.memory_space<vmem>>, vector<1x128x128xf32>
    %87 = vector.shape_cast %86 : vector<1x128x128xf32> to vector<128x128xf32>
    %cst_113 = arith.constant dense<0.000000e+00> : vector<256x128xf32>
    %88 = tpu.matmul %85, %87, %cst_113 {dimension_numbers = #tpu.dot_dimension_numbers<[1], [0], [0], [1], [0, 0, 1, 1], [], []>} : vector<256x128xf32>, vector<128x128xf32>, vector<256x128xf32> -> vector<256x128xf32>
    %89 = vector.extract_strided_slice %83 {offsets = [0, 1, 0, 0], sizes = [1, 16, 16, 128], strides = [1, 1, 1, 1]} : vector<1x18x16x128xf32> to vector<1x16x16x128xf32>
    %90 = vector.shape_cast %89 : vector<1x16x16x128xf32> to vector<256x128xf32>
    %c3_114 = arith.constant 3 : index
    %c0_115 = arith.constant 0 : index
    %c0_116 = arith.constant 0 : index
    %91 = vector.load %arg4[%c3_114, %c0_115, %c0_116] : memref<9x128x128xf32, #tpu.memory_space<vmem>>, vector<1x128x128xf32>
    %92 = vector.shape_cast %91 : vector<1x128x128xf32> to vector<128x128xf32>
    %cst_117 = arith.constant dense<0.000000e+00> : vector<256x128xf32>
    %93 = tpu.matmul %90, %92, %cst_117 {dimension_numbers = #tpu.dot_dimension_numbers<[1], [0], [0], [1], [0, 0, 1, 1], [], []>} : vector<256x128xf32>, vector<128x128xf32>, vector<256x128xf32> -> vector<256x128xf32>
    %94 = arith.addf %88, %93 : vector<256x128xf32>
    %95 = vector.extract_strided_slice %83 {offsets = [0, 2, 0, 0], sizes = [1, 16, 16, 128], strides = [1, 1, 1, 1]} : vector<1x18x16x128xf32> to vector<1x16x16x128xf32>
    %96 = vector.shape_cast %95 : vector<1x16x16x128xf32> to vector<256x128xf32>
    %c6_118 = arith.constant 6 : index
    %c0_119 = arith.constant 0 : index
    %c0_120 = arith.constant 0 : index
    %97 = vector.load %arg4[%c6_118, %c0_119, %c0_120] : memref<9x128x128xf32, #tpu.memory_space<vmem>>, vector<1x128x128xf32>
    %98 = vector.shape_cast %97 : vector<1x128x128xf32> to vector<128x128xf32>
    %cst_121 = arith.constant dense<0.000000e+00> : vector<256x128xf32>
    %99 = tpu.matmul %96, %98, %cst_121 {dimension_numbers = #tpu.dot_dimension_numbers<[1], [0], [0], [1], [0, 0, 1, 1], [], []>} : vector<256x128xf32>, vector<128x128xf32>, vector<256x128xf32> -> vector<256x128xf32>
    %100 = arith.addf %94, %99 : vector<256x128xf32>
    %c0_122 = arith.constant 0 : index
    %c0_123 = arith.constant 0 : index
    %c1_124 = arith.constant 1 : index
    %c0_125 = arith.constant 0 : index
    %101 = vector.load %arg12[%c0_122, %c0_123, %c1_124, %c0_125] : memref<1x18x18x128xf32, #tpu.memory_space<vmem>>, vector<1x18x16x128xf32>
    %102 = vector.extract_strided_slice %101 {offsets = [0, 0, 0, 0], sizes = [1, 16, 16, 128], strides = [1, 1, 1, 1]} : vector<1x18x16x128xf32> to vector<1x16x16x128xf32>
    %103 = vector.shape_cast %102 : vector<1x16x16x128xf32> to vector<256x128xf32>
    %c1_126 = arith.constant 1 : index
    %c0_127 = arith.constant 0 : index
    %c0_128 = arith.constant 0 : index
    %104 = vector.load %arg4[%c1_126, %c0_127, %c0_128] : memref<9x128x128xf32, #tpu.memory_space<vmem>>, vector<1x128x128xf32>
    %105 = vector.shape_cast %104 : vector<1x128x128xf32> to vector<128x128xf32>
    %cst_129 = arith.constant dense<0.000000e+00> : vector<256x128xf32>
    %106 = tpu.matmul %103, %105, %cst_129 {dimension_numbers = #tpu.dot_dimension_numbers<[1], [0], [0], [1], [0, 0, 1, 1], [], []>} : vector<256x128xf32>, vector<128x128xf32>, vector<256x128xf32> -> vector<256x128xf32>
    %107 = arith.addf %100, %106 : vector<256x128xf32>
    %108 = vector.extract_strided_slice %101 {offsets = [0, 1, 0, 0], sizes = [1, 16, 16, 128], strides = [1, 1, 1, 1]} : vector<1x18x16x128xf32> to vector<1x16x16x128xf32>
    %109 = vector.shape_cast %108 : vector<1x16x16x128xf32> to vector<256x128xf32>
    %c4_130 = arith.constant 4 : index
    %c0_131 = arith.constant 0 : index
    %c0_132 = arith.constant 0 : index
    %110 = vector.load %arg4[%c4_130, %c0_131, %c0_132] : memref<9x128x128xf32, #tpu.memory_space<vmem>>, vector<1x128x128xf32>
    %111 = vector.shape_cast %110 : vector<1x128x128xf32> to vector<128x128xf32>
    %cst_133 = arith.constant dense<0.000000e+00> : vector<256x128xf32>
    %112 = tpu.matmul %109, %111, %cst_133 {dimension_numbers = #tpu.dot_dimension_numbers<[1], [0], [0], [1], [0, 0, 1, 1], [], []>} : vector<256x128xf32>, vector<128x128xf32>, vector<256x128xf32> -> vector<256x128xf32>
    %113 = arith.addf %107, %112 : vector<256x128xf32>
    %114 = vector.extract_strided_slice %101 {offsets = [0, 2, 0, 0], sizes = [1, 16, 16, 128], strides = [1, 1, 1, 1]} : vector<1x18x16x128xf32> to vector<1x16x16x128xf32>
    %115 = vector.shape_cast %114 : vector<1x16x16x128xf32> to vector<256x128xf32>
    %c7_134 = arith.constant 7 : index
    %c0_135 = arith.constant 0 : index
    %c0_136 = arith.constant 0 : index
    %116 = vector.load %arg4[%c7_134, %c0_135, %c0_136] : memref<9x128x128xf32, #tpu.memory_space<vmem>>, vector<1x128x128xf32>
    %117 = vector.shape_cast %116 : vector<1x128x128xf32> to vector<128x128xf32>
    %cst_137 = arith.constant dense<0.000000e+00> : vector<256x128xf32>
    %118 = tpu.matmul %115, %117, %cst_137 {dimension_numbers = #tpu.dot_dimension_numbers<[1], [0], [0], [1], [0, 0, 1, 1], [], []>} : vector<256x128xf32>, vector<128x128xf32>, vector<256x128xf32> -> vector<256x128xf32>
    %119 = arith.addf %113, %118 : vector<256x128xf32>
    %c0_138 = arith.constant 0 : index
    %c0_139 = arith.constant 0 : index
    %c2_140 = arith.constant 2 : index
    %c0_141 = arith.constant 0 : index
    %120 = vector.load %arg12[%c0_138, %c0_139, %c2_140, %c0_141] : memref<1x18x18x128xf32, #tpu.memory_space<vmem>>, vector<1x18x16x128xf32>
    %121 = vector.extract_strided_slice %120 {offsets = [0, 0, 0, 0], sizes = [1, 16, 16, 128], strides = [1, 1, 1, 1]} : vector<1x18x16x128xf32> to vector<1x16x16x128xf32>
    %122 = vector.shape_cast %121 : vector<1x16x16x128xf32> to vector<256x128xf32>
    %c2_142 = arith.constant 2 : index
    %c0_143 = arith.constant 0 : index
    %c0_144 = arith.constant 0 : index
    %123 = vector.load %arg4[%c2_142, %c0_143, %c0_144] : memref<9x128x128xf32, #tpu.memory_space<vmem>>, vector<1x128x128xf32>
    %124 = vector.shape_cast %123 : vector<1x128x128xf32> to vector<128x128xf32>
    %cst_145 = arith.constant dense<0.000000e+00> : vector<256x128xf32>
    %125 = tpu.matmul %122, %124, %cst_145 {dimension_numbers = #tpu.dot_dimension_numbers<[1], [0], [0], [1], [0, 0, 1, 1], [], []>} : vector<256x128xf32>, vector<128x128xf32>, vector<256x128xf32> -> vector<256x128xf32>
    %126 = arith.addf %119, %125 : vector<256x128xf32>
    %127 = vector.extract_strided_slice %120 {offsets = [0, 1, 0, 0], sizes = [1, 16, 16, 128], strides = [1, 1, 1, 1]} : vector<1x18x16x128xf32> to vector<1x16x16x128xf32>
    %128 = vector.shape_cast %127 : vector<1x16x16x128xf32> to vector<256x128xf32>
    %c5_146 = arith.constant 5 : index
    %c0_147 = arith.constant 0 : index
    %c0_148 = arith.constant 0 : index
    %129 = vector.load %arg4[%c5_146, %c0_147, %c0_148] : memref<9x128x128xf32, #tpu.memory_space<vmem>>, vector<1x128x128xf32>
    %130 = vector.shape_cast %129 : vector<1x128x128xf32> to vector<128x128xf32>
    %cst_149 = arith.constant dense<0.000000e+00> : vector<256x128xf32>
    %131 = tpu.matmul %128, %130, %cst_149 {dimension_numbers = #tpu.dot_dimension_numbers<[1], [0], [0], [1], [0, 0, 1, 1], [], []>} : vector<256x128xf32>, vector<128x128xf32>, vector<256x128xf32> -> vector<256x128xf32>
    %132 = arith.addf %126, %131 : vector<256x128xf32>
    %133 = vector.extract_strided_slice %120 {offsets = [0, 2, 0, 0], sizes = [1, 16, 16, 128], strides = [1, 1, 1, 1]} : vector<1x18x16x128xf32> to vector<1x16x16x128xf32>
    %134 = vector.shape_cast %133 : vector<1x16x16x128xf32> to vector<256x128xf32>
    %c8_150 = arith.constant 8 : index
    %c0_151 = arith.constant 0 : index
    %c0_152 = arith.constant 0 : index
    %135 = vector.load %arg4[%c8_150, %c0_151, %c0_152] : memref<9x128x128xf32, #tpu.memory_space<vmem>>, vector<1x128x128xf32>
    %136 = vector.shape_cast %135 : vector<1x128x128xf32> to vector<128x128xf32>
    %cst_153 = arith.constant dense<0.000000e+00> : vector<256x128xf32>
    %137 = tpu.matmul %134, %136, %cst_153 {dimension_numbers = #tpu.dot_dimension_numbers<[1], [0], [0], [1], [0, 0, 1, 1], [], []>} : vector<256x128xf32>, vector<128x128xf32>, vector<256x128xf32> -> vector<256x128xf32>
    %138 = arith.addf %132, %137 : vector<256x128xf32>
    %c0_154 = arith.constant 0 : index
    %c0_155 = arith.constant 0 : index
    %139 = vector.load %arg5[%c0_154, %c0_155] : memref<1x128xf32, #tpu.memory_space<vmem>>, vector<1x128xf32>
    %140 = vector.broadcast %139 : vector<1x128xf32> to vector<256x128xf32>
    %141 = arith.addf %138, %140 : vector<256x128xf32>
    %cst_156 = arith.constant 0.000000e+00 : f32
    %142 = vector.broadcast %cst_156 : f32 to vector<256x128xf32>
    %143 = arith.maximumf %141, %142 : vector<256x128xf32>
    %144 = vector.shape_cast %143 : vector<256x128xf32> to vector<1x16x16x128xf32>
    %c0_157 = arith.constant 0 : index
    %c1_158 = arith.constant 1 : index
    %c1_159 = arith.constant 1 : index
    %c0_160 = arith.constant 0 : index
    %145 = vector.load %arg13[%c0_157, %c1_158, %c1_159, %c0_160] : memref<1x18x18x128xf32, #tpu.memory_space<vmem>>, vector<1x16x16x128xf32>
    tpu.vector_store %arg13[%c0_157, %c1_158, %c1_159, %c0_160], %144 {strides = array<i32>} : memref<1x18x18x128xf32, #tpu.memory_space<vmem>>, vector<1x16x16x128xf32>,
    %c0_161 = arith.constant 0 : index
    %c0_162 = arith.constant 0 : index
    %c0_163 = arith.constant 0 : index
    %c0_164 = arith.constant 0 : index
    %146 = vector.load %arg13[%c0_161, %c0_162, %c0_163, %c0_164] : memref<1x18x18x128xf32, #tpu.memory_space<vmem>>, vector<1x18x16x128xf32>
    %147 = vector.extract_strided_slice %146 {offsets = [0, 0, 0, 0], sizes = [1, 16, 16, 128], strides = [1, 1, 1, 1]} : vector<1x18x16x128xf32> to vector<1x16x16x128xf32>
    %148 = vector.shape_cast %147 : vector<1x16x16x128xf32> to vector<256x128xf32>
    %c0_165 = arith.constant 0 : index
    %c0_166 = arith.constant 0 : index
    %c0_167 = arith.constant 0 : index
    %149 = vector.load %arg6[%c0_165, %c0_166, %c0_167] : memref<9x128x128xf32, #tpu.memory_space<vmem>>, vector<1x128x128xf32>
    %150 = vector.shape_cast %149 : vector<1x128x128xf32> to vector<128x128xf32>
    %cst_168 = arith.constant dense<0.000000e+00> : vector<256x128xf32>
    %151 = tpu.matmul %148, %150, %cst_168 {dimension_numbers = #tpu.dot_dimension_numbers<[1], [0], [0], [1], [0, 0, 1, 1], [], []>} : vector<256x128xf32>, vector<128x128xf32>, vector<256x128xf32> -> vector<256x128xf32>
    %152 = vector.extract_strided_slice %146 {offsets = [0, 1, 0, 0], sizes = [1, 16, 16, 128], strides = [1, 1, 1, 1]} : vector<1x18x16x128xf32> to vector<1x16x16x128xf32>
    %153 = vector.shape_cast %152 : vector<1x16x16x128xf32> to vector<256x128xf32>
    %c3_169 = arith.constant 3 : index
    %c0_170 = arith.constant 0 : index
    %c0_171 = arith.constant 0 : index
    %154 = vector.load %arg6[%c3_169, %c0_170, %c0_171] : memref<9x128x128xf32, #tpu.memory_space<vmem>>, vector<1x128x128xf32>
    %155 = vector.shape_cast %154 : vector<1x128x128xf32> to vector<128x128xf32>
    %cst_172 = arith.constant dense<0.000000e+00> : vector<256x128xf32>
    %156 = tpu.matmul %153, %155, %cst_172 {dimension_numbers = #tpu.dot_dimension_numbers<[1], [0], [0], [1], [0, 0, 1, 1], [], []>} : vector<256x128xf32>, vector<128x128xf32>, vector<256x128xf32> -> vector<256x128xf32>
    %157 = arith.addf %151, %156 : vector<256x128xf32>
    %158 = vector.extract_strided_slice %146 {offsets = [0, 2, 0, 0], sizes = [1, 16, 16, 128], strides = [1, 1, 1, 1]} : vector<1x18x16x128xf32> to vector<1x16x16x128xf32>
    %159 = vector.shape_cast %158 : vector<1x16x16x128xf32> to vector<256x128xf32>
    %c6_173 = arith.constant 6 : index
    %c0_174 = arith.constant 0 : index
    %c0_175 = arith.constant 0 : index
    %160 = vector.load %arg6[%c6_173, %c0_174, %c0_175] : memref<9x128x128xf32, #tpu.memory_space<vmem>>, vector<1x128x128xf32>
    %161 = vector.shape_cast %160 : vector<1x128x128xf32> to vector<128x128xf32>
    %cst_176 = arith.constant dense<0.000000e+00> : vector<256x128xf32>
    %162 = tpu.matmul %159, %161, %cst_176 {dimension_numbers = #tpu.dot_dimension_numbers<[1], [0], [0], [1], [0, 0, 1, 1], [], []>} : vector<256x128xf32>, vector<128x128xf32>, vector<256x128xf32> -> vector<256x128xf32>
    %163 = arith.addf %157, %162 : vector<256x128xf32>
    %c0_177 = arith.constant 0 : index
    %c0_178 = arith.constant 0 : index
    %c1_179 = arith.constant 1 : index
    %c0_180 = arith.constant 0 : index
    %164 = vector.load %arg13[%c0_177, %c0_178, %c1_179, %c0_180] : memref<1x18x18x128xf32, #tpu.memory_space<vmem>>, vector<1x18x16x128xf32>
    %165 = vector.extract_strided_slice %164 {offsets = [0, 0, 0, 0], sizes = [1, 16, 16, 128], strides = [1, 1, 1, 1]} : vector<1x18x16x128xf32> to vector<1x16x16x128xf32>
    %166 = vector.shape_cast %165 : vector<1x16x16x128xf32> to vector<256x128xf32>
    %c1_181 = arith.constant 1 : index
    %c0_182 = arith.constant 0 : index
    %c0_183 = arith.constant 0 : index
    %167 = vector.load %arg6[%c1_181, %c0_182, %c0_183] : memref<9x128x128xf32, #tpu.memory_space<vmem>>, vector<1x128x128xf32>
    %168 = vector.shape_cast %167 : vector<1x128x128xf32> to vector<128x128xf32>
    %cst_184 = arith.constant dense<0.000000e+00> : vector<256x128xf32>
    %169 = tpu.matmul %166, %168, %cst_184 {dimension_numbers = #tpu.dot_dimension_numbers<[1], [0], [0], [1], [0, 0, 1, 1], [], []>} : vector<256x128xf32>, vector<128x128xf32>, vector<256x128xf32> -> vector<256x128xf32>
    %170 = arith.addf %163, %169 : vector<256x128xf32>
    %171 = vector.extract_strided_slice %164 {offsets = [0, 1, 0, 0], sizes = [1, 16, 16, 128], strides = [1, 1, 1, 1]} : vector<1x18x16x128xf32> to vector<1x16x16x128xf32>
    %172 = vector.shape_cast %171 : vector<1x16x16x128xf32> to vector<256x128xf32>
    %c4_185 = arith.constant 4 : index
    %c0_186 = arith.constant 0 : index
    %c0_187 = arith.constant 0 : index
    %173 = vector.load %arg6[%c4_185, %c0_186, %c0_187] : memref<9x128x128xf32, #tpu.memory_space<vmem>>, vector<1x128x128xf32>
    %174 = vector.shape_cast %173 : vector<1x128x128xf32> to vector<128x128xf32>
    %cst_188 = arith.constant dense<0.000000e+00> : vector<256x128xf32>
    %175 = tpu.matmul %172, %174, %cst_188 {dimension_numbers = #tpu.dot_dimension_numbers<[1], [0], [0], [1], [0, 0, 1, 1], [], []>} : vector<256x128xf32>, vector<128x128xf32>, vector<256x128xf32> -> vector<256x128xf32>
    %176 = arith.addf %170, %175 : vector<256x128xf32>
    %177 = vector.extract_strided_slice %164 {offsets = [0, 2, 0, 0], sizes = [1, 16, 16, 128], strides = [1, 1, 1, 1]} : vector<1x18x16x128xf32> to vector<1x16x16x128xf32>
    %178 = vector.shape_cast %177 : vector<1x16x16x128xf32> to vector<256x128xf32>
    %c7_189 = arith.constant 7 : index
    %c0_190 = arith.constant 0 : index
    %c0_191 = arith.constant 0 : index
    %179 = vector.load %arg6[%c7_189, %c0_190, %c0_191] : memref<9x128x128xf32, #tpu.memory_space<vmem>>, vector<1x128x128xf32>
    %180 = vector.shape_cast %179 : vector<1x128x128xf32> to vector<128x128xf32>
    %cst_192 = arith.constant dense<0.000000e+00> : vector<256x128xf32>
    %181 = tpu.matmul %178, %180, %cst_192 {dimension_numbers = #tpu.dot_dimension_numbers<[1], [0], [0], [1], [0, 0, 1, 1], [], []>} : vector<256x128xf32>, vector<128x128xf32>, vector<256x128xf32> -> vector<256x128xf32>
    %182 = arith.addf %176, %181 : vector<256x128xf32>
    %c0_193 = arith.constant 0 : index
    %c0_194 = arith.constant 0 : index
    %c2_195 = arith.constant 2 : index
    %c0_196 = arith.constant 0 : index
    %183 = vector.load %arg13[%c0_193, %c0_194, %c2_195, %c0_196] : memref<1x18x18x128xf32, #tpu.memory_space<vmem>>, vector<1x18x16x128xf32>
    %184 = vector.extract_strided_slice %183 {offsets = [0, 0, 0, 0], sizes = [1, 16, 16, 128], strides = [1, 1, 1, 1]} : vector<1x18x16x128xf32> to vector<1x16x16x128xf32>
    %185 = vector.shape_cast %184 : vector<1x16x16x128xf32> to vector<256x128xf32>
    %c2_197 = arith.constant 2 : index
    %c0_198 = arith.constant 0 : index
    %c0_199 = arith.constant 0 : index
    %186 = vector.load %arg6[%c2_197, %c0_198, %c0_199] : memref<9x128x128xf32, #tpu.memory_space<vmem>>, vector<1x128x128xf32>
    %187 = vector.shape_cast %186 : vector<1x128x128xf32> to vector<128x128xf32>
    %cst_200 = arith.constant dense<0.000000e+00> : vector<256x128xf32>
    %188 = tpu.matmul %185, %187, %cst_200 {dimension_numbers = #tpu.dot_dimension_numbers<[1], [0], [0], [1], [0, 0, 1, 1], [], []>} : vector<256x128xf32>, vector<128x128xf32>, vector<256x128xf32> -> vector<256x128xf32>
    %189 = arith.addf %182, %188 : vector<256x128xf32>
    %190 = vector.extract_strided_slice %183 {offsets = [0, 1, 0, 0], sizes = [1, 16, 16, 128], strides = [1, 1, 1, 1]} : vector<1x18x16x128xf32> to vector<1x16x16x128xf32>
    %191 = vector.shape_cast %190 : vector<1x16x16x128xf32> to vector<256x128xf32>
    %c5_201 = arith.constant 5 : index
    %c0_202 = arith.constant 0 : index
    %c0_203 = arith.constant 0 : index
    %192 = vector.load %arg6[%c5_201, %c0_202, %c0_203] : memref<9x128x128xf32, #tpu.memory_space<vmem>>, vector<1x128x128xf32>
    %193 = vector.shape_cast %192 : vector<1x128x128xf32> to vector<128x128xf32>
    %cst_204 = arith.constant dense<0.000000e+00> : vector<256x128xf32>
    %194 = tpu.matmul %191, %193, %cst_204 {dimension_numbers = #tpu.dot_dimension_numbers<[1], [0], [0], [1], [0, 0, 1, 1], [], []>} : vector<256x128xf32>, vector<128x128xf32>, vector<256x128xf32> -> vector<256x128xf32>
    %195 = arith.addf %189, %194 : vector<256x128xf32>
    %196 = vector.extract_strided_slice %183 {offsets = [0, 2, 0, 0], sizes = [1, 16, 16, 128], strides = [1, 1, 1, 1]} : vector<1x18x16x128xf32> to vector<1x16x16x128xf32>
    %197 = vector.shape_cast %196 : vector<1x16x16x128xf32> to vector<256x128xf32>
    %c8_205 = arith.constant 8 : index
    %c0_206 = arith.constant 0 : index
    %c0_207 = arith.constant 0 : index
    %198 = vector.load %arg6[%c8_205, %c0_206, %c0_207] : memref<9x128x128xf32, #tpu.memory_space<vmem>>, vector<1x128x128xf32>
    %199 = vector.shape_cast %198 : vector<1x128x128xf32> to vector<128x128xf32>
    %cst_208 = arith.constant dense<0.000000e+00> : vector<256x128xf32>
    %200 = tpu.matmul %197, %199, %cst_208 {dimension_numbers = #tpu.dot_dimension_numbers<[1], [0], [0], [1], [0, 0, 1, 1], [], []>} : vector<256x128xf32>, vector<128x128xf32>, vector<256x128xf32> -> vector<256x128xf32>
    %201 = arith.addf %195, %200 : vector<256x128xf32>
    %c0_209 = arith.constant 0 : index
    %c0_210 = arith.constant 0 : index
    %202 = vector.load %arg7[%c0_209, %c0_210] : memref<1x128xf32, #tpu.memory_space<vmem>>, vector<1x128xf32>
    %203 = vector.broadcast %202 : vector<1x128xf32> to vector<256x128xf32>
    %204 = arith.addf %201, %203 : vector<256x128xf32>
    %cst_211 = arith.constant 0.000000e+00 : f32
    %205 = vector.broadcast %cst_211 : f32 to vector<256x128xf32>
    %206 = arith.maximumf %204, %205 : vector<256x128xf32>
    %c0_212 = arith.constant 0 : index
    %c0_213 = arith.constant 0 : index
    %207 = vector.load %arg8[%c0_212, %c0_213] : memref<128x16xf32, #tpu.memory_space<vmem>>, vector<128x16xf32>
    %cst_214 = arith.constant dense<0.000000e+00> : vector<256x16xf32>
    %208 = tpu.matmul %206, %207, %cst_214 {dimension_numbers = #tpu.dot_dimension_numbers<[1], [0], [0], [1], [0, 0, 1, 1], [], []>} : vector<256x128xf32>, vector<128x16xf32>, vector<256x16xf32> -> vector<256x16xf32>
    %c0_215 = arith.constant 0 : index
    %c0_216 = arith.constant 0 : index
    %209 = vector.load %arg9[%c0_215, %c0_216] : memref<1x16xf32, #tpu.memory_space<vmem>>, vector<1x16xf32>
    %210 = vector.broadcast %209 : vector<1x16xf32> to vector<256x16xf32>
    %211 = arith.addf %208, %210 : vector<256x16xf32>
    %212 = vector.shape_cast %211 : vector<256x16xf32> to vector<1x256x16xf32>
    %213 = vector.shape_cast %212 : vector<1x256x16xf32> to vector<256x16xf32>
    %214 = tpu.transpose %213, [1, 0] : vector<256x16xf32> -> vector<16x256xf32>
    %c0_217 = arith.constant 0 : index
    %c0_218 = arith.constant 0 : index
    %c0_219 = arith.constant 0 : index
    %215 = vector.load %arg10[%c0_217, %c0_218, %c0_219] : memref<1x16x256xf32, #tpu.memory_space<vmem>>, vector<1x16x256xf32>
    %216 = vector.shape_cast %215 : vector<1x16x256xf32> to vector<16x256xf32>
    %217 = vector.shape_cast %214 : vector<16x256xf32> to vector<1x16x256xf32>
    tpu.vector_store %arg10[%c0_217, %c0_218, %c0_219], %217 {strides = array<i32>} : memref<1x16x256xf32, #tpu.memory_space<vmem>>, vector<1x16x256xf32>,
    return
  }
  func.func @transform_0(%arg0: i32) -> (i32, i32, i32, i32) {
    %c0_i32 = arith.constant 0 : i32
    %c0_i32_0 = arith.constant 0 : i32
    %c0_i32_1 = arith.constant 0 : i32
    %c0_i32_2 = arith.constant 0 : i32
    return %arg0, %c0_i32, %c0_i32_0, %c0_i32_1 : i32, i32, i32, i32
  }
  func.func @transform_1(%arg0: i32) -> (i32, i32, i32) {
    %c0_i32 = arith.constant 0 : i32
    %c0_i32_0 = arith.constant 0 : i32
    %c0_i32_1 = arith.constant 0 : i32
    %c0_i32_2 = arith.constant 0 : i32
    return %c0_i32, %c0_i32_0, %c0_i32_1 : i32, i32, i32
  }
  func.func @transform_2(%arg0: i32) -> (i32, i32) {
    %c0_i32 = arith.constant 0 : i32
    %c0_i32_0 = arith.constant 0 : i32
    %c0_i32_1 = arith.constant 0 : i32
    return %c0_i32, %c0_i32_0 : i32, i32
  }
  func.func @transform_3(%arg0: i32) -> (i32, i32, i32) {
    %c0_i32 = arith.constant 0 : i32
    %c0_i32_0 = arith.constant 0 : i32
    %c0_i32_1 = arith.constant 0 : i32
    %c0_i32_2 = arith.constant 0 : i32
    return %c0_i32, %c0_i32_0, %c0_i32_1 : i32, i32, i32
  }
  func.func @transform_4(%arg0: i32) -> (i32, i32) {
    %c0_i32 = arith.constant 0 : i32
    %c0_i32_0 = arith.constant 0 : i32
    %c0_i32_1 = arith.constant 0 : i32
    return %c0_i32, %c0_i32_0 : i32, i32
  }
  func.func @transform_5(%arg0: i32) -> (i32, i32, i32) {
    %c0_i32 = arith.constant 0 : i32
    %c0_i32_0 = arith.constant 0 : i32
    %c0_i32_1 = arith.constant 0 : i32
    %c0_i32_2 = arith.constant 0 : i32
    return %c0_i32, %c0_i32_0, %c0_i32_1 : i32, i32, i32
  }
  func.func @transform_6(%arg0: i32) -> (i32, i32) {
    %c0_i32 = arith.constant 0 : i32
    %c0_i32_0 = arith.constant 0 : i32
    %c0_i32_1 = arith.constant 0 : i32
    return %c0_i32, %c0_i32_0 : i32, i32
  }
  func.func @transform_7(%arg0: i32) -> (i32, i32) {
    %c0_i32 = arith.constant 0 : i32
    %c0_i32_0 = arith.constant 0 : i32
    %c0_i32_1 = arith.constant 0 : i32
    return %c0_i32, %c0_i32_0 : i32, i32
  }
  func.func @transform_8(%arg0: i32) -> (i32, i32) {
    %c0_i32 = arith.constant 0 : i32
    %c0_i32_0 = arith.constant 0 : i32
    %c0_i32_1 = arith.constant 0 : i32
    return %c0_i32, %c0_i32_0 : i32, i32
  }
  func.func @transform_9(%arg0: i32) -> (i32, i32, i32) {
    %c0_i32 = arith.constant 0 : i32
    %c0_i32_0 = arith.constant 0 : i32
    %c0_i32_1 = arith.constant 0 : i32
    return %arg0, %c0_i32, %c0_i32_0 : i32, i32, i32
  }
}

</mosaic_0001>

<bundles_post_ra>
// kernel: ofdm_classifier_cnn_forward.1
= control target key start
LH: loop header
LB: loop body
LE: loop exit
PB: predicated region body
PF: predicated region fallthrough
CT: control target
= control target key end

     0   :  { %s6482_s30 = smov 0   ;;  %s10735_s0 = inlined_call_operand.vmem [shape: f32[2,16,16,2], index: 0, kind: input, shape index: {}]   ;;  %s10736_s1 = inlined_call_operand.vmem [shape: f32[9,2,128], index: 1, kind: input, shape index: {}]   ;;  %s10737_s2 = inlined_call_operand.vmem [shape: f32[1,128], index: 2, kind: input, shape index: {}]   ;;  %s10738_s3 = inlined_call_operand.vmem [shape: f32[9,128,128], index: 3, kind: input, shape index: {}]   ;;  %s10739_s4 = inlined_call_operand.vmem [shape: f32[1,128], index: 4, kind: input, shape index: {}]   ;;  %s10740_s5 = inlined_call_operand.vmem [shape: f32[9,128,128], index: 5, kind: input, shape index: {}]   ;;  %s10741_s6 = inlined_call_operand.vmem [shape: f32[1,128], index: 6, kind: input, shape index: {}]   ;;  %s10742_s7 = inlined_call_operand.vmem [shape: f32[128,16], index: 7, kind: input, shape index: {}]   ;;  %s10743_s8 = inlined_call_operand.vmem [shape: f32[1,16], index: 8, kind: input, shape index: {}]   ;;  %s10744_s9 = inlined_call_operand.vmem [shape: f32[2,16,256], index: 9, kind: output, shape index: {}]  }
   0x1 LB: > { %s5776_s10 = sadd.s32 4294967295, %s6429_s30   ;;  %p5780_p0 = scmp.ge.s32.totalorder %s6429_s30, 1  ;;  %s6429_s30 = sphi %s6482_s30, %s19_s30  }
   0x2   : > { %p287_p1 = scmp.lt.s32.totalorder %s6429_s30, 3 }
   0x4   : > { %p288_p2 = pnand %p5780_p0, %p287_p1 }
   0x6   : > { %291 = sbr.rel (%p288_p2) target bundleno = 2528 (0x9e0), region = 56 }
   0xb   : > { %v5785_v0 = vld [vmem:[%s10736_s1 + $0x6] sm:$0x3]  ;;  %vm665_vm0 = vcmask 1041408   ;;  %v566_v1 = vld [vmem:[%s10736_s1] sm:$0x3]  ;;  %p323_p3 = scmp.lt.s32.totalorder %s5776_s10, 1 }
   0xc   : > { %5786 = vmatpush.msk.msra.mxu0 %vm665_vm0, %v5785_v0  ;;  %5819 = vmatpush.msk.msra.mxu1 %vm665_vm0, %v566_v1  ;;  %v5852_v2 = vld [vmem:[%s10736_s1 + $0xc] sm:$0x3]  ;;  %vm333_vm1 = vcmask 15360   ;;  %vm342_vm2 = vcmask 8192   ;;  %v6431_v3 = vmov 0.0   ;;  %vm336_vm3 = vcmask 9216  }
   0xd   : > { %5853 = vmatpush.msk.msra.mxu2 %vm665_vm0, %v5852_v2  ;;  %s11285_s10 = smov (!%p323_p3, %s5776_s10), 1  ;;  %344 = vst.msk [vmem:[#allocation2 + $0x18] sm:$0x1] %vm342_vm2, %v6431_v3  ;;  %v5920_v6 = vld [vmem:[%s10736_s1 + $0x8] sm:$0x3] }
   0xe   : > { %334 = vst.msk [vmem:[#allocation2] sm:$0xff] %vm333_vm1, %v6431_v3  ;;  %s6348_s17 = sshll.u32 %s11285_s10, 8  ;;  %v5886_v7 = vld [vmem:[%s10736_s1 + $0x2] sm:$0x3]  ;;  %5921 = vmatpush.msk.msrb.mxu0 %vm665_vm0, %v5920_v6  ;;  %v5954_v60 = vld [vmem:[%s10736_s1 + $0xe] sm:$0x3] }
   0xf   : > { %335 = vst.msk [vmem:[#allocation2 + $0x8] sm:$0xff] %vm333_vm1, %v6431_v3  ;;  %s6514_s20 = scalar_lea.vmem %s10735_s0, %s6348_s17  ;;  %5887 = vmatpush.msk.msra.mxu3 %vm665_vm0, %v5886_v7  ;;  %5955 = vmatpush.msk.msrb.mxu1 %vm665_vm0, %v5954_v60  ;;  %s6349_s26 = sshll.u32 %s11285_s10, 5 }
  0x10   : > { %339 = vst.msk [vmem:[#allocation2 + $0x198] sm:$0xff] %vm333_vm1, %v6431_v3  ;;  %v465_v4 = vld [vmem:[%s6514_s20] sm:$0xff]  ;;  %v467_v10 = vld [vmem:[%s6514_s20 + $0x10] sm:$0xff]  ;;  %v466_v11 = vld [vmem:[%s6514_s20 + $0x8] sm:$0xff]  ;;  %s332_s29 = scalar_lea.vmem %s10744_s9, %s6349_s26 }
  0x11   : > { %340 = vst.msk [vmem:[#allocation2 + $0x1a0] sm:$0xff] %vm333_vm1, %v6431_v3  ;;  %v468_v12 = vld [vmem:[%s6514_s20 + $0x18] sm:$0xff]  ;;  %v469_v14 = vld [vmem:[%s6514_s20 + $0x20] sm:$0xff]  ;;  %v470_v15 = vld [vmem:[%s6514_s20 + $0x28] sm:$0xff] }
  0x12   : > { %498 = vst.msk [vmem:[#allocation2 + $0x19] sm:$0xff] %vm333_vm1, %v465_v4  ;;  %v471_v16 = vld [vmem:[%s6514_s20 + $0x30] sm:$0xff]  ;;  %v472_v18 = vld [vmem:[%s6514_s20 + $0x38] sm:$0xff]  ;;  %v473_v22 = vld [vmem:[%s6514_s20 + $0x40] sm:$0xff] }
  0x13   : > { %345 = vst.msk [vmem:[#allocation2 + $0x30] sm:$0x1] %vm342_vm2, %v6431_v3  ;;  %v474_v25 = vld [vmem:[%s6514_s20 + $0x48] sm:$0xff]  ;;  %v475_v28 = vld [vmem:[%s6514_s20 + $0x50] sm:$0xff]  ;;  %v476_v31 = vld [vmem:[%s6514_s20 + $0x58] sm:$0xff] }
  0x14   : > { %346 = vst.msk [vmem:[#allocation2 + $0x48] sm:$0x1] %vm342_vm2, %v6431_v3  ;;  %v477_v34 = vld [vmem:[%s6514_s20 + $0x60] sm:$0xff]  ;;  %v478_v37 = vld [vmem:[%s6514_s20 + $0x68] sm:$0xff]  ;;  %v479_v40 = vld [vmem:[%s6514_s20 + $0x70] sm:$0xff] }
  0x15   : > { %347 = vst.msk [vmem:[#allocation2 + $0x60] sm:$0x1] %vm342_vm2, %v6431_v3  ;;  %v480_v43 = vld [vmem:[%s6514_s20 + $0x78] sm:$0xff]  ;;  %v481_v46 = vld [vmem:[%s6514_s20 + $0x80] sm:$0xff]  ;;  %v482_v49 = vld [vmem:[%s6514_s20 + $0x88] sm:$0xff] }
  0x16   : > { %348 = vst.msk [vmem:[#allocation2 + $0x78] sm:$0x1] %vm342_vm2, %v6431_v3  ;;  %v1060_v8 = vld [vmem:[#allocation2 + $0x1] sm:$0xff]  ;;  %v483_v52 = vld [vmem:[%s6514_s20 + $0x90] sm:$0xff]  ;;  %v484_v55 = vld [vmem:[%s6514_s20 + $0x98] sm:$0xff] }
  0x17   : > { %349 = vst.msk [vmem:[#allocation2 + $0x90] sm:$0x1] %vm342_vm2, %v6431_v3  ;;  %5888 = vmatmul.msk.f32.vlgmr.msra.gmra.mxu3 %vm333_vm1, %v1060_v8  ;;  %v531_v13 = vld [vmem:[#allocation2 + $0x8] sm:$0xff]  ;;  %v485_v58 = vld [vmem:[%s6514_s20 + $0xa0] sm:$0xff] }
  0x18   : > { %350 = vst.msk [vmem:[#allocation2 + $0xa8] sm:$0x1] %vm342_vm2, %v6431_v3  ;;  %v486_v62 = vld [vmem:[%s6514_s20 + $0xa8] sm:$0xff] }
  0x19   : > { %v6534_v5 = vld [vmem:[#allocation2 + $0x18] sm:$0xff]  ;;  %351 = vst.msk [vmem:[#allocation2 + $0xc0] sm:$0x1] %vm342_vm2, %v6431_v3 }
  0x1a   : > { %5787 = vmatmul.msk.f32.vlgmr.msra.gmra.mxu0 %vm333_vm1, %v6534_v5  ;;  %352 = vst.msk [vmem:[#allocation2 + $0xd8] sm:$0x1] %vm342_vm2, %v6431_v3  ;;  %v6714_v23 = vld [vmem:[#allocation2 + $0x19] sm:$0xff] }
  0x1b   : > { %353 = vst.msk [vmem:[#allocation2 + $0xf0] sm:$0x1] %vm342_vm2, %v6431_v3 }
  0x1c   : > { %354 = vst.msk [vmem:[#allocation2 + $0x108] sm:$0x1] %vm342_vm2, %v6431_v3 }
  0x1d   : > { %355 = vst.msk [vmem:[#allocation2 + $0x120] sm:$0x1] %vm342_vm2, %v6431_v3 }
  0x1e   : > { %356 = vst.msk [vmem:[#allocation2 + $0x138] sm:$0x1] %vm342_vm2, %v6431_v3 }
  0x1f   : > { %357 = vst.msk [vmem:[#allocation2 + $0x150] sm:$0x1] %vm342_vm2, %v6431_v3 }
  0x20   : > { %358 = vst.msk [vmem:[#allocation2 + $0x168] sm:$0x1] %vm342_vm2, %v6431_v3 }
  0x21   : > { %359 = vst.msk [vmem:[#allocation2 + $0x180] sm:$0x1] %vm342_vm2, %v6431_v3 }
  0x22   : > { %362 = vst.msk [vmem:[#allocation2 + $0x29] sm:$0x1] %vm342_vm2, %v6431_v3 }
  0x23   : > { %363 = vst.msk [vmem:[#allocation2 + $0x41] sm:$0x1] %vm342_vm2, %v6431_v3 }
  0x24   : > { %364 = vst.msk [vmem:[#allocation2 + $0x59] sm:$0x1] %vm342_vm2, %v6431_v3 }
  0x25   : > { %365 = vst.msk [vmem:[#allocation2 + $0x71] sm:$0x1] %vm342_vm2, %v6431_v3 }
  0x26   : > { %366 = vst.msk [vmem:[#allocation2 + $0x89] sm:$0x1] %vm342_vm2, %v6431_v3 }
  0x27   : > { %367 = vst.msk [vmem:[#allocation2 + $0xa1] sm:$0x1] %vm342_vm2, %v6431_v3 }
  0x28   : > { %368 = vst.msk [vmem:[#allocation2 + $0xb9] sm:$0x1] %vm342_vm2, %v6431_v3 }
  0x29   : > { %369 = vst.msk [vmem:[#allocation2 + $0xd1] sm:$0x1] %vm342_vm2, %v6431_v3 }
  0x2a   : > { %370 = vst.msk [vmem:[#allocation2 + $0xe9] sm:$0x1] %vm342_vm2, %v6431_v3 }
  0x2b   : > { %371 = vst.msk [vmem:[#allocation2 + $0x101] sm:$0x1] %vm342_vm2, %v6431_v3 }
  0x2c   : > { %372 = vst.msk [vmem:[#allocation2 + $0x119] sm:$0x1] %vm342_vm2, %v6431_v3 }
  0x2d   : > { %373 = vst.msk [vmem:[#allocation2 + $0x131] sm:$0x1] %vm342_vm2, %v6431_v3 }
  0x2e   : > { %374 = vst.msk [vmem:[#allocation2 + $0x149] sm:$0x1] %vm342_vm2, %v6431_v3 }
  0x2f   : > { %375 = vst.msk [vmem:[#allocation2 + $0x161] sm:$0x1] %vm342_vm2, %v6431_v3 }
  0x30   : > { %376 = vst.msk [vmem:[#allocation2 + $0x179] sm:$0x1] %vm342_vm2, %v6431_v3 }
  0x31   : > { %377 = vst.msk [vmem:[#allocation2 + $0x191] sm:$0x1] %vm342_vm2, %v6431_v3 }
  0x32   : > { %379 = vst [vmem:[#allocation3] sm:$0xff] %v6431_v3 }
  0x33   : > { %380 = vst [vmem:[#allocation3 + $0x8] sm:$0xff] %v6431_v3 }
  0x34   : > { %381 = vst [vmem:[#allocation3 + $0x10] sm:$0x3] %v6431_v3 }
  0x35   : > { %383 = vst [vmem:[#allocation3 + $0x198] sm:$0xff] %v6431_v3 }
  0x36   : > { %384 = vst [vmem:[#allocation3 + $0x1a0] sm:$0xff] %v6431_v3 }
  0x37   : > { %385 = vst [vmem:[#allocation3 + $0x1a8] sm:$0x3] %v6431_v3 }
  0x38   : > { %387 = vst [vmem:[#allocation3 + $0x18] sm:$0x1] %v6431_v3 }
  0x39   : > { %388 = vst [vmem:[#allocation3 + $0x30] sm:$0x1] %v6431_v3 }
  0x3a   : > { %389 = vst [vmem:[#allocation3 + $0x48] sm:$0x1] %v6431_v3 }
  0x3b   : > { %390 = vst [vmem:[#allocation3 + $0x60] sm:$0x1] %v6431_v3 }
  0x3c   : > { %391 = vst [vmem:[#allocation3 + $0x78] sm:$0x1] %v6431_v3 }
  0x3d   : > { %392 = vst [vmem:[#allocation3 + $0x90] sm:$0x1] %v6431_v3 }
  0x3e   : > { %393 = vst [vmem:[#allocation3 + $0xa8] sm:$0x1] %v6431_v3 }
  0x3f   : > { %394 = vst [vmem:[#allocation3 + $0xc0] sm:$0x1] %v6431_v3 }
  0x40   : > { %395 = vst [vmem:[#allocation3 + $0xd8] sm:$0x1] %v6431_v3 }
  0x41   : > { %396 = vst [vmem:[#allocation3 + $0xf0] sm:$0x1] %v6431_v3 }
  0x42   : > { %397 = vst [vmem:[#allocation3 + $0x108] sm:$0x1] %v6431_v3 }
  0x43   : > { %398 = vst [vmem:[#allocation3 + $0x120] sm:$0x1] %v6431_v3 }
  0x44   : > { %399 = vst [vmem:[#allocation3 + $0x138] sm:$0x1] %v6431_v3 }
  0x45   : > { %400 = vst [vmem:[#allocation3 + $0x150] sm:$0x1] %v6431_v3 }
  0x46   : > { %401 = vst [vmem:[#allocation3 + $0x168] sm:$0x1] %v6431_v3 }
  0x47   : > { %402 = vst [vmem:[#allocation3 + $0x180] sm:$0x1] %v6431_v3 }
  0x48   : > { %405 = vst [vmem:[#allocation3 + $0x29] sm:$0x1] %v6431_v3 }
  0x49   : > { %406 = vst [vmem:[#allocation3 + $0x41] sm:$0x1] %v6431_v3 }
  0x4a   : > { %407 = vst [vmem:[#allocation3 + $0x59] sm:$0x1] %v6431_v3 }
  0x4b   : > { %408 = vst [vmem:[#allocation3 + $0x71] sm:$0x1] %v6431_v3 }
  0x4c   : > { %409 = vst [vmem:[#allocation3 + $0x89] sm:$0x1] %v6431_v3 }
  0x4d   : > { %410 = vst [vmem:[#allocation3 + $0xa1] sm:$0x1] %v6431_v3 }
  0x4e   : > { %411 = vst [vmem:[#allocation3 + $0xb9] sm:$0x1] %v6431_v3 }
  0x4f   : > { %412 = vst [vmem:[#allocation3 + $0xd1] sm:$0x1] %v6431_v3 }
  0x50   : > { %413 = vst [vmem:[#allocation3 + $0xe9] sm:$0x1] %v6431_v3 }
  0x51   : > { %414 = vst [vmem:[#allocation3 + $0x101] sm:$0x1] %v6431_v3 }
  0x52   : > { %415 = vst [vmem:[#allocation3 + $0x119] sm:$0x1] %v6431_v3 }
  0x53   : > { %416 = vst [vmem:[#allocation3 + $0x131] sm:$0x1] %v6431_v3 }
  0x54   : > { %417 = vst [vmem:[#allocation3 + $0x149] sm:$0x1] %v6431_v3 }
  0x55   : > { %418 = vst [vmem:[#allocation3 + $0x161] sm:$0x1] %v6431_v3 }
  0x56   : > { %419 = vst [vmem:[#allocation3 + $0x179] sm:$0x1] %v6431_v3 }
  0x57   : > { %420 = vst [vmem:[#allocation3 + $0x191] sm:$0x1] %v6431_v3 }
  0x58   : > { %422 = vst [vmem:[#allocation4] sm:$0xff] %v6431_v3 }
  0x59   : > { %423 = vst [vmem:[#allocation4 + $0x8] sm:$0xff] %v6431_v3 }
  0x5a   : > { %424 = vst [vmem:[#allocation4 + $0x10] sm:$0x3] %v6431_v3 }
  0x5b   : > { %426 = vst [vmem:[#allocation4 + $0x198] sm:$0xff] %v6431_v3 }
  0x5c   : > { %427 = vst [vmem:[#allocation4 + $0x1a0] sm:$0xff] %v6431_v3 }
  0x5d   : > { %428 = vst [vmem:[#allocation4 + $0x1a8] sm:$0x3] %v6431_v3 }
  0x5e   : > { %430 = vst [vmem:[#allocation4 + $0x18] sm:$0x1] %v6431_v3 }
  0x5f   : > { %431 = vst [vmem:[#allocation4 + $0x30] sm:$0x1] %v6431_v3 }
  0x60   : > { %432 = vst [vmem:[#allocation4 + $0x48] sm:$0x1] %v6431_v3 }
  0x61   : > { %433 = vst [vmem:[#allocation4 + $0x60] sm:$0x1] %v6431_v3 }
  0x62   : > { %434 = vst [vmem:[#allocation4 + $0x78] sm:$0x1] %v6431_v3 }
  0x63   : > { %435 = vst [vmem:[#allocation4 + $0x90] sm:$0x1] %v6431_v3 }
  0x64   : > { %436 = vst [vmem:[#allocation4 + $0xa8] sm:$0x1] %v6431_v3 }
  0x65   : > { %437 = vst [vmem:[#allocation4 + $0xc0] sm:$0x1] %v6431_v3 }
  0x66   : > { %438 = vst [vmem:[#allocation4 + $0xd8] sm:$0x1] %v6431_v3 }
  0x67   : > { %439 = vst [vmem:[#allocation4 + $0xf0] sm:$0x1] %v6431_v3 }
  0x68   : > { %440 = vst [vmem:[#allocation4 + $0x108] sm:$0x1] %v6431_v3 }
  0x69   : > { %441 = vst [vmem:[#allocation4 + $0x120] sm:$0x1] %v6431_v3 }
  0x6a   : > { %442 = vst [vmem:[#allocation4 + $0x138] sm:$0x1] %v6431_v3 }
  0x6b   : > { %443 = vst [vmem:[#allocation4 + $0x150] sm:$0x1] %v6431_v3 }
  0x6c   : > { %444 = vst [vmem:[#allocation4 + $0x168] sm:$0x1] %v6431_v3 }
  0x6d   : > { %445 = vst [vmem:[#allocation4 + $0x180] sm:$0x1] %v6431_v3 }
  0x6e   : > { %448 = vst [vmem:[#allocation4 + $0x29] sm:$0x1] %v6431_v3 }
  0x6f   : > { %449 = vst [vmem:[#allocation4 + $0x41] sm:$0x1] %v6431_v3 }
  0x70   : > { %450 = vst [vmem:[#allocation4 + $0x59] sm:$0x1] %v6431_v3 }
  0x71   : > { %451 = vst [vmem:[#allocation4 + $0x71] sm:$0x1] %v6431_v3 }
  0x72   : > { %452 = vst [vmem:[#allocation4 + $0x89] sm:$0x1] %v6431_v3 }
  0x73   : > { %453 = vst [vmem:[#allocation4 + $0xa1] sm:$0x1] %v6431_v3 }
  0x74   : > { %454 = vst [vmem:[#allocation4 + $0xb9] sm:$0x1] %v6431_v3 }
  0x75   : > { %455 = vst [vmem:[#allocation4 + $0xd1] sm:$0x1] %v6431_v3 }
  0x76   : > { %456 = vst [vmem:[#allocation4 + $0xe9] sm:$0x1] %v6431_v3 }
  0x77   : > { %457 = vst [vmem:[#allocation4 + $0x101] sm:$0x1] %v6431_v3 }
  0x78   : > { %458 = vst [vmem:[#allocation4 + $0x119] sm:$0x1] %v6431_v3 }
  0x79   : > { %459 = vst [vmem:[#allocation4 + $0x131] sm:$0x1] %v6431_v3 }
  0x7a   : > { %460 = vst [vmem:[#allocation4 + $0x149] sm:$0x1] %v6431_v3 }
  0x7b   : > { %461 = vst [vmem:[#allocation4 + $0x161] sm:$0x1] %v6431_v3 }
  0x7c   : > { %462 = vst [vmem:[#allocation4 + $0x179] sm:$0x1] %v6431_v3 }
  0x7d   : > { %463 = vst [vmem:[#allocation4 + $0x191] sm:$0x1] %v6431_v3 }
  0x7e   : > { %343 = vst.msk [vmem:[#allocation2] sm:$0x1] %vm342_vm2, %v6431_v3 }
  0x7f   : > { %360 = vst.msk [vmem:[#allocation2 + $0x198] sm:$0x1] %vm342_vm2, %v6431_v3 }
  0x80   : > { %386 = vst [vmem:[#allocation3] sm:$0x1] %v6431_v3 }
  0x81   : > { %403 = vst [vmem:[#allocation3 + $0x198] sm:$0x1] %v6431_v3 }
  0x82   : > { %404 = vst [vmem:[#allocation3 + $0x11] sm:$0x1] %v6431_v3 }
  0x83   : > { %421 = vst [vmem:[#allocation3 + $0x1a9] sm:$0x1] %v6431_v3 }
  0x84   : > { %429 = vst [vmem:[#allocation4] sm:$0x1] %v6431_v3 }
  0x85   : > { %v530_v9 = vld [vmem:[#allocation2] sm:$0xff]  ;;  %446 = vst [vmem:[#allocation4 + $0x198] sm:$0x1] %v6431_v3 }
  0x86   : > { %5820 = vmatmul.msk.f32.vlgmr.msra.gmra.mxu1 %vm333_vm1, %v530_v9  ;;  %447 = vst [vmem:[#allocation4 + $0x11] sm:$0x1] %v6431_v3  ;;  %v488_v9 = vld [vmem:[%s6514_s20 + $0xb8] sm:$0xff] }
  0x87   : > { %464 = vst [vmem:[#allocation4 + $0x1a9] sm:$0x1] %v6431_v3 }
  0x88   : > { %500 = vst.msk [vmem:[#allocation2 + $0x31] sm:$0xff] %vm333_vm1, %v467_v10 }
  0x89   : > { %499 = vst.msk [vmem:[#allocation2 + $0x21] sm:$0xff] %vm333_vm1, %v466_v11 }
  0x8a   : > { %501 = vst.msk [vmem:[#allocation2 + $0x39] sm:$0xff] %vm333_vm1, %v468_v12 }
  0x8b   : > { %337 = vst.msk [vmem:[#allocation2 + $0x10] sm:$0x3] %vm336_vm3, %v6431_v3 }
  0x8c   : > { %341 = vst.msk [vmem:[#allocation2 + $0x1a8] sm:$0x3] %vm336_vm3, %v6431_v3 }
  0x8d   : > { %361 = vst.msk [vmem:[#allocation2 + $0x11] sm:$0x1] %vm342_vm2, %v6431_v3 }
  0x8e   : > { %5821 = vmatmul.msk.f32.gmra.mxu1 %vm333_vm1, %v531_v13  ;;  %378 = vst.msk [vmem:[#allocation2 + $0x1a9] sm:$0x1] %vm342_vm2, %v6431_v3  ;;  %v487_v3 = vld [vmem:[%s6514_s20 + $0xb0] sm:$0xff] }
  0x8f   : > { %v534_v17 = vld [vmem:[#allocation2 + $0x30] sm:$0xff]  ;;  %502 = vst.msk [vmem:[#allocation2 + $0x49] sm:$0xff] %vm333_vm1, %v469_v14 }
  0x90   : > { %5854 = vmatmul.msk.f32.vlgmr.msra.gmra.mxu2 %vm333_vm1, %v534_v17  ;;  %v533_v19 = vld [vmem:[#allocation2 + $0x20] sm:$0xff]  ;;  %503 = vst.msk [vmem:[#allocation2 + $0x51] sm:$0xff] %vm333_vm1, %v470_v15  ;;  %v6732_v29 = vld [vmem:[#allocation2 + $0x31] sm:$0xff] }
  0x91   : > { %5788 = vmatmul.msk.f32.gmra.mxu0 %vm333_vm1, %v533_v19  ;;  %504 = vst.msk [vmem:[#allocation2 + $0x61] sm:$0xff] %vm333_vm1, %v471_v16  ;;  %v535_v21 = vld [vmem:[#allocation2 + $0x38] sm:$0xff]  ;;  %v6723_v26 = vld [vmem:[#allocation2 + $0x21] sm:$0xff] }
  0x92   : > { %v1061_v20 = vld [vmem:[#allocation2 + $0x9] sm:$0xff]  ;;  %505 = vst.msk [vmem:[#allocation2 + $0x69] sm:$0xff] %vm333_vm1, %v472_v18  ;;  %v6741_v32 = vld [vmem:[#allocation2 + $0x39] sm:$0xff] }
  0x93   : > { %5889 = vmatmul.msk.f32.gmra.mxu3 %vm333_vm1, %v1061_v20  ;;  %506 = vst.msk [vmem:[#allocation2 + $0x79] sm:$0xff] %vm333_vm1, %v473_v22 }
  0x94   : > { %507 = vst.msk [vmem:[#allocation2 + $0x81] sm:$0xff] %vm333_vm1, %v474_v25 }
  0x95   : > { %508 = vst.msk [vmem:[#allocation2 + $0x91] sm:$0xff] %vm333_vm1, %v475_v28 }
  0x96   : > { %5822 = vmatmul.msk.f32.gmra.mxu1 %vm333_vm1, %v6534_v5  ;;  %v536_v24 = vld [vmem:[#allocation2 + $0x48] sm:$0xff]  ;;  %509 = vst.msk [vmem:[#allocation2 + $0x99] sm:$0xff] %vm333_vm1, %v476_v31 }
  0x97   : > { %v537_v27 = vld [vmem:[#allocation2 + $0x50] sm:$0xff]  ;;  %510 = vst.msk [vmem:[#allocation2 + $0xa9] sm:$0xff] %vm333_vm1, %v477_v34  ;;  %v686_v1 = vpop.f32.mrf.mxu0 }
  0x98   : > { %5855 = vmatmul.msk.f32.gmra.mxu2 %vm333_vm1, %v535_v21  ;;  %v538_v30 = vld [vmem:[#allocation2 + $0x60] sm:$0xff]  ;;  %v6750_v35 = vld [vmem:[#allocation2 + $0x49] sm:$0xff]  ;;  %v6759_v38 = vld [vmem:[#allocation2 + $0x51] sm:$0xff]  ;;  %511 = vst.msk [vmem:[#allocation2 + $0xb1] sm:$0xff] %vm333_vm1, %v478_v37 }
  0x99   : > { %5789 = vmatmul.msk.f32.gmra.mxu0 %vm333_vm1, %v534_v17  ;;  %v539_v33 = vld [vmem:[#allocation2 + $0x68] sm:$0xff]  ;;  %512 = vst.msk [vmem:[#allocation2 + $0xc1] sm:$0xff] %vm333_vm1, %v479_v40 }
  0x9a   : > { %v540_v36 = vld [vmem:[#allocation2 + $0x78] sm:$0xff]  ;;  %v6768_v41 = vld [vmem:[#allocation2 + $0x61] sm:$0xff]  ;;  %v6777_v44 = vld [vmem:[#allocation2 + $0x69] sm:$0xff]  ;;  %513 = vst.msk [vmem:[#allocation2 + $0xc9] sm:$0xff] %vm333_vm1, %v480_v43  ;;  %v1214_v6 = vpop.f32.mrf.mxu3 }
  0x9b   : > { %5890 = vmatmul.msk.f32.gmra.mxu3 %vm333_vm1, %v6714_v23  ;;  %v541_v39 = vld [vmem:[#allocation2 + $0x80] sm:$0xff]  ;;  %514 = vst.msk [vmem:[#allocation2 + $0xd9] sm:$0xff] %vm333_vm1, %v481_v46 }
  0x9c   : > { %v542_v42 = vld [vmem:[#allocation2 + $0x90] sm:$0xff]  ;;  %v6786_v47 = vld [vmem:[#allocation2 + $0x79] sm:$0xff]  ;;  %v6795_v50 = vld [vmem:[#allocation2 + $0x81] sm:$0xff]  ;;  %515 = vst.msk [vmem:[#allocation2 + $0xe1] sm:$0xff] %vm333_vm1, %v482_v49 }
  0x9d   : > { %v543_v45 = vld [vmem:[#allocation2 + $0x98] sm:$0xff]  ;;  %516 = vst.msk [vmem:[#allocation2 + $0xf1] sm:$0xff] %vm333_vm1, %v483_v52 }
  0x9e   : > { %5823 = vmatmul.msk.f32.gmra.mxu1 %vm333_vm1, %v533_v19  ;;  %v544_v48 = vld [vmem:[#allocation2 + $0xa8] sm:$0xff]  ;;  %v6804_v53 = vld [vmem:[#allocation2 + $0x91] sm:$0xff]  ;;  %v6813_v56 = vld [vmem:[#allocation2 + $0x99] sm:$0xff]  ;;  %517 = vst.msk [vmem:[#allocation2 + $0xf9] sm:$0xff] %vm333_vm1, %v484_v55 }
  0x9f   : > { %v545_v51 = vld [vmem:[#allocation2 + $0xb0] sm:$0xff]  ;;  %518 = vst.msk [vmem:[#allocation2 + $0x109] sm:$0xff] %vm333_vm1, %v485_v58  ;;  %v489_v19 = vld [vmem:[%s6514_s20 + $0xc0] sm:$0xff] }
  0xa0   : > { %5856 = vmatmul.msk.f32.gmra.mxu2 %vm333_vm1, %v536_v24  ;;  %v546_v54 = vld [vmem:[#allocation2 + $0xc0] sm:$0xff]  ;;  %v6822_v59 = vld [vmem:[#allocation2 + $0xa9] sm:$0xff]  ;;  %v6835_v63 = vld [vmem:[#allocation2 + $0xb1] sm:$0xff]  ;;  %519 = vst.msk [vmem:[#allocation2 + $0x111] sm:$0xff] %vm333_vm1, %v486_v62 }
  0xa1   : > { %5790 = vmatmul.msk.f32.gmra.mxu0 %vm333_vm1, %v535_v21  ;;  %v547_v57 = vld [vmem:[#allocation2 + $0xc8] sm:$0xff]  ;;  %520 = vst.msk [vmem:[#allocation2 + $0x121] sm:$0xff] %vm333_vm1, %v487_v3  ;;  %v492_v62 = vld [vmem:[%s6514_s20 + $0xd8] sm:$0xff] }
  0xa2   : > { %v548_v61 = vld [vmem:[#allocation2 + $0xd8] sm:$0xff]  ;;  %v6844_v4 = vld [vmem:[#allocation2 + $0xc1] sm:$0xff]  ;;  %v6853_v10 = vld [vmem:[#allocation2 + $0xc9] sm:$0xff]  ;;  %521 = vst.msk [vmem:[#allocation2 + $0x129] sm:$0xff] %vm333_vm1, %v488_v9 }
  0xa3   : > { %5891 = vmatmul.msk.f32.gmra.mxu3 %vm333_vm1, %v6723_v26  ;;  %v549_v2 = vld [vmem:[#allocation2 + $0xe0] sm:$0xff]  ;;  %522 = vst.msk [vmem:[#allocation2 + $0x139] sm:$0xff] %vm333_vm1, %v489_v19 }
  0xa4   : > { %v550_v7 = vld [vmem:[#allocation2 + $0xf0] sm:$0xff]  ;;  %v6864_v20 = vld [vmem:[#allocation2 + $0xd9] sm:$0xff]  ;;  %v6875_v34 = vld [vmem:[#allocation2 + $0xe1] sm:$0xff]  ;;  %525 = vst.msk [vmem:[#allocation2 + $0x159] sm:$0xff] %vm333_vm1, %v492_v62 }
  0xa5   : > { %v551_v15 = vld [vmem:[#allocation2 + $0xf8] sm:$0xff] }
  0xa6   : > { %5824 = vmatmul.msk.f32.gmra.mxu1 %vm333_vm1, %v534_v17  ;;  %v6886_v49 = vld [vmem:[#allocation2 + $0xf1] sm:$0xff] }
  0xa8   : > { %5857 = vmatmul.msk.f32.gmra.mxu2 %vm333_vm1, %v537_v27 }
  0xa9   : > { %5791 = vmatmul.msk.f32.gmra.mxu0 %vm333_vm1, %v536_v24  ;;  %v6941_v62 = vld [vmem:[#allocation2 + $0x129] sm:$0xff] }
  0xab   : > { %5892 = vmatmul.msk.f32.gmra.mxu3 %vm333_vm1, %v6732_v29 }
  0xae   : > { %5825 = vmatmul.msk.f32.gmra.mxu1 %vm333_vm1, %v535_v21 }
  0xb0   : > { %5858 = vmatmul.msk.f32.gmra.mxu2 %vm333_vm1, %v538_v30 }
  0xb1   : > { %5792 = vmatmul.msk.f32.gmra.mxu0 %vm333_vm1, %v537_v27 }
  0xb3   : > { %5893 = vmatmul.msk.f32.gmra.mxu3 %vm333_vm1, %v6741_v32 }
  0xb6   : > { %5826 = vmatmul.msk.f32.gmra.mxu1 %vm333_vm1, %v536_v24 }
  0xb8   : > { %5859 = vmatmul.msk.f32.gmra.mxu2 %vm333_vm1, %v539_v33 }
  0xb9   : > { %5793 = vmatmul.msk.f32.gmra.mxu0 %vm333_vm1, %v538_v30 }
  0xbb   : > { %5894 = vmatmul.msk.f32.gmra.mxu3 %vm333_vm1, %v6750_v35 }
  0xbe   : > { %5827 = vmatmul.msk.f32.gmra.mxu1 %vm333_vm1, %v537_v27  ;;  %v552_v27 = vld [vmem:[#allocation2 + $0x108] sm:$0xff] }
  0xc0   : > { %5860 = vmatmul.msk.f32.gmra.mxu2 %vm333_vm1, %v540_v36 }
  0xc1   : > { %5794 = vmatmul.msk.f32.gmra.mxu0 %vm333_vm1, %v539_v33 }
  0xc3   : > { %5895 = vmatmul.msk.f32.gmra.mxu3 %vm333_vm1, %v6759_v38 }
  0xc6   : > { %5828 = vmatmul.msk.f32.gmra.mxu1 %vm333_vm1, %v538_v30 }
  0xc8   : > { %5861 = vmatmul.msk.f32.gmra.mxu2 %vm333_vm1, %v541_v39 }
  0xc9   : > { %5795 = vmatmul.msk.f32.gmra.mxu0 %vm333_vm1, %v540_v36 }
  0xcb   : > { %5896 = vmatmul.msk.f32.gmra.mxu3 %vm333_vm1, %v6768_v41 }
  0xce   : > { %5829 = vmatmul.msk.f32.gmra.mxu1 %vm333_vm1, %v539_v33  ;;  %v490_v33 = vld [vmem:[%s6514_s20 + $0xc8] sm:$0xff] }
  0xcf   : > { %523 = vst.msk [vmem:[#allocation2 + $0x141] sm:$0xff] %vm333_vm1, %v490_v33 }
  0xd0   : > { %5862 = vmatmul.msk.f32.gmra.mxu2 %vm333_vm1, %v542_v42 }
  0xd1   : > { %5796 = vmatmul.msk.f32.gmra.mxu0 %vm333_vm1, %v541_v39 }
  0xd3   : > { %5897 = vmatmul.msk.f32.gmra.mxu3 %vm333_vm1, %v6777_v44 }
  0xd6   : > { %5830 = vmatmul.msk.f32.gmra.mxu1 %vm333_vm1, %v540_v36 }
  0xd8   : > { %5863 = vmatmul.msk.f32.gmra.mxu2 %vm333_vm1, %v543_v45 }
  0xd9   : > { %5797 = vmatmul.msk.f32.gmra.mxu0 %vm333_vm1, %v542_v42 }
  0xdb   : > { %5898 = vmatmul.msk.f32.gmra.mxu3 %vm333_vm1, %v6786_v47 }
  0xde   : > { %5831 = vmatmul.msk.f32.gmra.mxu1 %vm333_vm1, %v541_v39 }
  0xe0   : > { %5864 = vmatmul.msk.f32.gmra.mxu2 %vm333_vm1, %v544_v48 }
  0xe1   : > { %5798 = vmatmul.msk.f32.gmra.mxu0 %vm333_vm1, %v543_v45 }
  0xe3   : > { %5899 = vmatmul.msk.f32.gmra.mxu3 %vm333_vm1, %v6795_v50 }
  0xe6   : > { %5832 = vmatmul.msk.f32.gmra.mxu1 %vm333_vm1, %v542_v42  ;;  %v553_v42 = vld [vmem:[#allocation2 + $0x110] sm:$0xff] }
  0xe8   : > { %5865 = vmatmul.msk.f32.gmra.mxu2 %vm333_vm1, %v545_v51 }
  0xe9   : > { %5799 = vmatmul.msk.f32.gmra.mxu0 %vm333_vm1, %v544_v48 }
  0xeb   : > { %5900 = vmatmul.msk.f32.gmra.mxu3 %vm333_vm1, %v6804_v53 }
  0xee   : > { %5833 = vmatmul.msk.f32.gmra.mxu1 %vm333_vm1, %v543_v45 }
  0xf0   : > { %5866 = vmatmul.msk.f32.gmra.mxu2 %vm333_vm1, %v546_v54 }
  0xf1   : > { %5800 = vmatmul.msk.f32.gmra.mxu0 %vm333_vm1, %v545_v51 }
  0xf3   : > { %5901 = vmatmul.msk.f32.gmra.mxu3 %vm333_vm1, %v6813_v56 }
  0xf6   : > { %5834 = vmatmul.msk.f32.gmra.mxu1 %vm333_vm1, %v544_v48  ;;  %v491_v48 = vld [vmem:[%s6514_s20 + $0xd0] sm:$0xff] }
  0xf7   : > { %524 = vst.msk [vmem:[#allocation2 + $0x151] sm:$0xff] %vm333_vm1, %v491_v48 }
  0xf8   : > { %5867 = vmatmul.msk.f32.gmra.mxu2 %vm333_vm1, %v547_v57 }
  0xf9   : > { %5801 = vmatmul.msk.f32.gmra.mxu0 %vm333_vm1, %v546_v54 }
  0xfb   : > { %5902 = vmatmul.msk.f32.gmra.mxu3 %vm333_vm1, %v6822_v59 }
  0xfe   : > { %5835 = vmatmul.msk.f32.gmra.mxu1 %vm333_vm1, %v545_v51 }
 0x100   : > { %5868 = vmatmul.msk.f32.gmra.mxu2 %vm333_vm1, %v548_v61 }
 0x101   : > { %5802 = vmatmul.msk.f32.gmra.mxu0 %vm333_vm1, %v547_v57 }
 0x103   : > { %5903 = vmatmul.msk.f32.gmra.mxu3 %vm333_vm1, %v6835_v63  ;;  %v808_v0 = vpop.f32.mrf.mxu1 }
 0x104   : > { %v809_v11 = vadd.f32 %v808_v0, %v686_v1  ;;  %v6897_v0 = vld [vmem:[#allocation2 + $0xf9] sm:$0xff] }
 0x106   : > { %5836 = vmatmul.msk.f32.gmra.mxu1 %vm333_vm1, %v546_v54 }
 0x108   : > { %5869 = vmatmul.msk.f32.gmra.mxu2 %vm333_vm1, %v549_v2 }
 0x109   : > { %5803 = vmatmul.msk.f32.gmra.mxu0 %vm333_vm1, %v548_v61 }
 0x10b   : > { %5904 = vmatmul.msk.f32.gmra.mxu3 %vm333_vm1, %v6844_v4  ;;  %v811_v5 = vpop.f32.mrf.mxu1 }
 0x10e   : > { %v689_v8 = vpop.f32.mrf.mxu0  ;;  %5837 = vmatmul.msk.f32.gmra.mxu1 %vm333_vm1, %v547_v57  ;;  %v554_v57 = vld [vmem:[#allocation2 + $0x120] sm:$0xff] }
 0x10f   : > { %v812_v21 = vadd.f32 %v811_v5, %v689_v8 }
 0x110   : > { %5870 = vmatmul.msk.f32.gmra.mxu2 %vm333_vm1, %v550_v7 }
 0x111   : > { %5804 = vmatmul.msk.f32.gmra.mxu0 %vm333_vm1, %v549_v2 }
 0x113   : > { %v932_v12 = vpop.f32.mrf.mxu2  ;;  %5905 = vmatmul.msk.f32.gmra.mxu3 %vm333_vm1, %v6853_v10  ;;  %v814_v13 = vpop.f32.mrf.mxu1 }
 0x114   : > { %v1028_v14 = vadd.f32 %v932_v12, %v809_v11  ;;  %v493_v11 = vld [vmem:[%s6514_s20 + $0xe0] sm:$0xff]  ;;  %v6908_v12 = vld [vmem:[#allocation2 + $0x109] sm:$0xff] }
 0x115   : > { %526 = vst.msk [vmem:[#allocation2 + $0x169] sm:$0xff] %vm333_vm1, %v493_v11 }
 0x116   : > { %v6859_v16 = vadd.f32 %v1214_v6, %v1028_v14  ;;  %v692_v17 = vpop.f32.mrf.mxu0  ;;  %v1217_v18 = vpop.f32.mrf.mxu3  ;;  %5838 = vmatmul.msk.f32.gmra.mxu1 %vm333_vm1, %v548_v61  ;;  %v555_v6 = vld [vmem:[#allocation2 + $0x128] sm:$0xff] }
 0x117   : > { %v815_v36 = vadd.f32 %v814_v13, %v692_v17 }
 0x118   : > { %5871 = vmatmul.msk.f32.gmra.mxu2 %vm333_vm1, %v551_v15 }
 0x119   : > { %5805 = vmatmul.msk.f32.gmra.mxu0 %vm333_vm1, %v550_v7 }
 0x11b   : > { %v935_v22 = vpop.f32.mrf.mxu2  ;;  %5906 = vmatmul.msk.f32.gmra.mxu3 %vm333_vm1, %v6864_v20  ;;  %v817_v24 = vpop.f32.mrf.mxu1 }
 0x11c   : > { %v1029_v25 = vadd.f32 %v935_v22, %v812_v21 }
 0x11e   : > { %v6870_v28 = vadd.f32 %v1217_v18, %v1029_v25  ;;  %v695_v30 = vpop.f32.mrf.mxu0  ;;  %v1220_v31 = vpop.f32.mrf.mxu3  ;;  %5839 = vmatmul.msk.f32.gmra.mxu1 %vm333_vm1, %v549_v2  ;;  %v556_v18 = vld [vmem:[#allocation2 + $0x138] sm:$0xff] }
 0x11f   : > { %v818_v51 = vadd.f32 %v817_v24, %v695_v30  ;;  %v494_v24 = vld [vmem:[%s6514_s20 + $0xe8] sm:$0xff]  ;;  %v6919_v25 = vld [vmem:[#allocation2 + $0x111] sm:$0xff] }
 0x120   : > { %5872 = vmatmul.msk.f32.gmra.mxu2 %vm333_vm1, %v552_v27  ;;  %527 = vst.msk [vmem:[#allocation2 + $0x171] sm:$0xff] %vm333_vm1, %v494_v24 }
 0x121   : > { %5806 = vmatmul.msk.f32.gmra.mxu0 %vm333_vm1, %v551_v15 }
 0x123   : > { %v938_v37 = vpop.f32.mrf.mxu2  ;;  %5907 = vmatmul.msk.f32.gmra.mxu3 %vm333_vm1, %v6875_v34  ;;  %v820_v39 = vpop.f32.mrf.mxu1 }
 0x124   : > { %v1030_v40 = vadd.f32 %v938_v37, %v815_v36  ;;  %v557_v36 = vld [vmem:[#allocation2 + $0x140] sm:$0xff] }
 0x126   : > { %v6881_v43 = vadd.f32 %v1220_v31, %v1030_v40  ;;  %v698_v45 = vpop.f32.mrf.mxu0  ;;  %v1223_v46 = vpop.f32.mrf.mxu3  ;;  %5840 = vmatmul.msk.f32.gmra.mxu1 %vm333_vm1, %v550_v7 }
 0x127   : > { %v821_v1 = vadd.f32 %v820_v39, %v698_v45  ;;  %v6930_v45 = vld [vmem:[#allocation2 + $0x121] sm:$0xff] }
 0x128   : > { %5873 = vmatmul.msk.f32.gmra.mxu2 %vm333_vm1, %v553_v42 }
 0x129   : > { %5807 = vmatmul.msk.f32.gmra.mxu0 %vm333_vm1, %v552_v27 }
 0x12b   : > { %v941_v52 = vpop.f32.mrf.mxu2  ;;  %5908 = vmatmul.msk.f32.gmra.mxu3 %vm333_vm1, %v6886_v49  ;;  %v823_v54 = vpop.f32.mrf.mxu1 }
 0x12c   : > { %v1031_v55 = vadd.f32 %v941_v52, %v818_v51 }
 0x12e   : > { %v6892_v58 = vadd.f32 %v1223_v46, %v1031_v55  ;;  %v701_v60 = vpop.f32.mrf.mxu0  ;;  %v1226_v61 = vpop.f32.mrf.mxu3  ;;  %5841 = vmatmul.msk.f32.gmra.mxu1 %vm333_vm1, %v551_v15 }
 0x12f   : > { %v824_v13 = vadd.f32 %v823_v54, %v701_v60  ;;  %v558_v54 = vld [vmem:[#allocation2 + $0x150] sm:$0xff] }
 0x130   : > { %5874 = vmatmul.msk.f32.gmra.mxu2 %vm333_vm1, %v554_v57 }
 0x131   : > { %5808 = vmatmul.msk.f32.gmra.mxu0 %vm333_vm1, %v553_v42 }
 0x133   : > { %v944_v2 = vpop.f32.mrf.mxu2  ;;  %5909 = vmatmul.msk.f32.gmra.mxu3 %vm333_vm1, %v6897_v0  ;;  %v826_v3 = vpop.f32.mrf.mxu1 }
 0x134   : > { %v1032_v5 = vadd.f32 %v944_v2, %v821_v1 }
 0x136   : > { %v6903_v7 = vadd.f32 %v1226_v61, %v1032_v5  ;;  %v704_v8 = vpop.f32.mrf.mxu0  ;;  %v1229_v9 = vpop.f32.mrf.mxu3  ;;  %5842 = vmatmul.msk.f32.gmra.mxu1 %vm333_vm1, %v552_v27  ;;  %v496_v61 = vld [vmem:[%s6514_s20 + $0xf8] sm:$0xff] }
 0x137   : > { %v827_v27 = vadd.f32 %v826_v3, %v704_v8  ;;  %529 = vst.msk [vmem:[#allocation2 + $0x189] sm:$0xff] %vm333_vm1, %v496_v61  ;;  %v559_v8 = vld [vmem:[#allocation2 + $0x158] sm:$0xff] }
 0x138   : > { %5875 = vmatmul.msk.f32.gmra.mxu2 %vm333_vm1, %v555_v6 }
 0x139   : > { %5809 = vmatmul.msk.f32.gmra.mxu0 %vm333_vm1, %v554_v57 }
 0x13b   : > { %v947_v14 = vpop.f32.mrf.mxu2  ;;  %5910 = vmatmul.msk.f32.gmra.mxu3 %vm333_vm1, %v6908_v12  ;;  %v829_v15 = vpop.f32.mrf.mxu1 }
 0x13c   : > { %v1033_v17 = vadd.f32 %v947_v14, %v824_v13  ;;  %v6951_v13 = vld [vmem:[#allocation2 + $0x139] sm:$0xff] }
 0x13e   : > { %v6914_v19 = vadd.f32 %v1229_v9, %v1033_v17  ;;  %v707_v21 = vpop.f32.mrf.mxu0  ;;  %v1232_v22 = vpop.f32.mrf.mxu3  ;;  %5843 = vmatmul.msk.f32.gmra.mxu1 %vm333_vm1, %v553_v42  ;;  %v495_v42 = vld [vmem:[%s6514_s20 + $0xf0] sm:$0xff] }
 0x13f   : > { %528 = vst.msk [vmem:[#allocation2 + $0x181] sm:$0xff] %vm333_vm1, %v495_v42  ;;  %v830_v46 = vadd.f32 %v829_v15, %v707_v21  ;;  %v561_v42 = vld [vmem:[#allocation2 + $0x170] sm:$0xff] }
 0x140   : > { %5876 = vmatmul.msk.f32.gmra.mxu2 %vm333_vm1, %v556_v18 }
 0x141   : > { %5810 = vmatmul.msk.f32.gmra.mxu0 %vm333_vm1, %v555_v6 }
 0x143   : > { %v950_v30 = vpop.f32.mrf.mxu2  ;;  %5911 = vmatmul.msk.f32.gmra.mxu3 %vm333_vm1, %v6919_v25  ;;  %v832_v31 = vpop.f32.mrf.mxu1 }
 0x144   : > { %v1034_v33 = vadd.f32 %v950_v30, %v827_v27 }
 0x146   : > { %v6925_v37 = vadd.f32 %v1232_v22, %v1034_v33  ;;  %v710_v39 = vpop.f32.mrf.mxu0  ;;  %v1235_v40 = vpop.f32.mrf.mxu3  ;;  %5844 = vmatmul.msk.f32.gmra.mxu1 %vm333_vm1, %v554_v57  ;;  %v560_v22 = vld [vmem:[#allocation2 + $0x168] sm:$0xff] }
 0x147   : > { %v833_v1 = vadd.f32 %v832_v31, %v710_v39 }
 0x148   : > { %5877 = vmatmul.msk.f32.gmra.mxu2 %vm333_vm1, %v557_v36 }
 0x149   : > { %5811 = vmatmul.msk.f32.gmra.mxu0 %vm333_vm1, %v556_v18 }
 0x14b   : > { %v953_v48 = vpop.f32.mrf.mxu2  ;;  %5912 = vmatmul.msk.f32.gmra.mxu3 %vm333_vm1, %v6930_v45  ;;  %v835_v51 = vpop.f32.mrf.mxu1 }
 0x14c   : > { %v1035_v52 = vadd.f32 %v953_v48, %v830_v46 }
 0x14e   : > { %v6936_v55 = vadd.f32 %v1235_v40, %v1035_v52  ;;  %v713_v57 = vpop.f32.mrf.mxu0  ;;  %v1238_v60 = vpop.f32.mrf.mxu3  ;;  %5845 = vmatmul.msk.f32.gmra.mxu1 %vm333_vm1, %v555_v6  ;;  %v6973_v52 = vld [vmem:[#allocation2 + $0x151] sm:$0xff] }
 0x14f   : > { %v836_v14 = vadd.f32 %v835_v51, %v713_v57  ;;  %v6022_v57 = vld [vmem:[%s10736_s1 + $0xa] sm:$0x3] }
 0x150   : > { %5878 = vmatmul.msk.f32.gmra.mxu2 %vm333_vm1, %v558_v54  ;;  %6023 = vmatpush.msk.msrb.mxu3 %vm665_vm0, %v6022_v57  ;;  %v564_v57 = vld [vmem:[#allocation2 + $0x198] sm:$0xff] }
 0x151   : > { %5812 = vmatmul.msk.f32.gmra.mxu0 %vm333_vm1, %v557_v36 }
 0x153   : > { %v956_v2 = vpop.f32.mrf.mxu2  ;;  %5913 = vmatmul.msk.f32.gmra.mxu3 %vm333_vm1, %v6941_v62  ;;  %v838_v3 = vpop.f32.mrf.mxu1 }
 0x154   : > { %v1036_v5 = vadd.f32 %v956_v2, %v833_v1  ;;  %v562_v2 = vld [vmem:[#allocation2 + $0x180] sm:$0xff] }
 0x156   : > { %v6947_v9 = vadd.f32 %v1238_v60, %v1036_v5  ;;  %v716_v6 = vpop.f32.mrf.mxu0  ;;  %v1241_v11 = vpop.f32.mrf.mxu3  ;;  %5846 = vmatmul.msk.f32.gmra.mxu1 %vm333_vm1, %v556_v18  ;;  %v6960_v18 = vld [vmem:[#allocation2 + $0x141] sm:$0xff] }
 0x157   : > { %v839_v31 = vadd.f32 %v838_v3, %v716_v6 }
 0x158   : > { %5879 = vmatmul.msk.f32.gmra.mxu2 %vm333_vm1, %v559_v8 }
 0x159   : > { %5813 = vmatmul.msk.f32.gmra.mxu0 %vm333_vm1, %v558_v54 }
 0x15b   : > { %v959_v15 = vpop.f32.mrf.mxu2  ;;  %5914 = vmatmul.msk.f32.gmra.mxu3 %vm333_vm1, %v6951_v13  ;;  %v841_v17 = vpop.f32.mrf.mxu1 }
 0x15c   : > { %v1037_v21 = vadd.f32 %v959_v15, %v836_v14  ;;  %v6056_v14 = vld [vmem:[%s10736_s1 + $0x10] sm:$0x3] }
 0x15d   : > { %6057 = vmatpush.msk.msra.mxu0 %vm665_vm0, %v6056_v14  ;;  %v565_v14 = vld [vmem:[#allocation2 + $0x1a0] sm:$0xff] }
 0x15e   : > { %v6956_v24 = vadd.f32 %v1241_v11, %v1037_v21  ;;  %v719_v27 = vpop.f32.mrf.mxu0  ;;  %v1244_v30 = vpop.f32.mrf.mxu3  ;;  %5847 = vmatmul.msk.f32.gmra.mxu1 %vm333_vm1, %v557_v36  ;;  %v5988_v36 = vld [vmem:[%s10736_s1 + $0x4] sm:$0x3]  ;;  %v6986_v11 = vld [vmem:[#allocation2 + $0x159] sm:$0xff] }
 0x15f   : > { %5989 = vmatpush.msk.msrb.mxu2 %vm665_vm0, %v5988_v36  ;;  %v842_v60 = vadd.f32 %v841_v17, %v719_v27 }
 0x160   : > { %5880 = vmatmul.msk.f32.gmra.mxu2 %vm333_vm1, %v560_v22 }
 0x161   : > { %5814 = vmatmul.msk.f32.gmra.mxu0 %vm333_vm1, %v559_v8 }
 0x163   : > { %v962_v33 = vpop.f32.mrf.mxu2  ;;  %5915 = vmatmul.msk.f32.gmra.mxu3 %vm333_vm1, %v6960_v18  ;;  %v844_v39 = vpop.f32.mrf.mxu1 }
 0x164   : > { %v1038_v40 = vadd.f32 %v962_v33, %v839_v31 }
 0x166   : > { %v6965_v46 = vadd.f32 %v1244_v30, %v1038_v40  ;;  %v722_v48 = vpop.f32.mrf.mxu0  ;;  %v1247_v51 = vpop.f32.mrf.mxu3  ;;  %5848 = vmatmul.msk.f32.gmra.mxu1 %vm333_vm1, %v558_v54  ;;  %v6999_v40 = vld [vmem:[#allocation2 + $0x169] sm:$0xff] }
 0x167   : > { %v845_v15 = vadd.f32 %v844_v39, %v722_v48 }
 0x168   : > { %5881 = vmatmul.msk.f32.gmra.mxu2 %vm333_vm1, %v561_v42 }
 0x169   : > { %5815 = vmatmul.msk.f32.gmra.mxu0 %vm333_vm1, %v560_v22 }
 0x16b   : > { %v965_v54 = vpop.f32.mrf.mxu2  ;;  %5916 = vmatmul.msk.f32.gmra.mxu3 %vm333_vm1, %v6973_v52  ;;  %v847_v61 = vpop.f32.mrf.mxu1 }
 0x16c   : > { %v1039_v1 = vadd.f32 %v965_v54, %v842_v60 }
 0x16e   : > { %v6982_v3 = vadd.f32 %v1247_v51, %v1039_v1  ;;  %v725_v5 = vpop.f32.mrf.mxu0  ;;  %v1250_v6 = vpop.f32.mrf.mxu3  ;;  %5849 = vmatmul.msk.f32.gmra.mxu1 %vm333_vm1, %v559_v8  ;;  %v563_v8 = vld [vmem:[#allocation2 + $0x188] sm:$0xff] }
 0x16f   : > { %v848_v39 = vadd.f32 %v847_v61, %v725_v5 }
 0x170   : > { %5882 = vmatmul.msk.f32.gmra.mxu2 %vm333_vm1, %v562_v2 }
 0x171   : > { %5816 = vmatmul.msk.f32.gmra.mxu0 %vm333_vm1, %v561_v42 }
 0x173   : > { %v968_v17 = vpop.f32.mrf.mxu2  ;;  %5917 = vmatmul.msk.f32.gmra.mxu3 %vm333_vm1, %v6986_v11  ;;  %v850_v21 = vpop.f32.mrf.mxu1 }
 0x174   : > { %v1040_v27 = vadd.f32 %v968_v17, %v845_v15 }
 0x176   : > { %v6995_v30 = vadd.f32 %v1250_v6, %v1040_v27  ;;  %v728_v31 = vpop.f32.mrf.mxu0  ;;  %v1253_v33 = vpop.f32.mrf.mxu3  ;;  %5850 = vmatmul.msk.f32.gmra.mxu1 %vm333_vm1, %v560_v22  ;;  %v7008_v22 = vld [vmem:[#allocation2 + $0x171] sm:$0xff] }
 0x177   : > { %v851_v61 = vadd.f32 %v850_v21, %v728_v31 }
 0x178   : > { %5883 = vmatmul.msk.f32.gmra.mxu2 %vm333_vm1, %v563_v8 }
 0x179   : > { %5817 = vmatmul.msk.f32.gmra.mxu0 %vm333_vm1, %v562_v2 }
 0x17b   : > { %v971_v48 = vpop.f32.mrf.mxu2  ;;  %5918 = vmatmul.msk.f32.gmra.mxu3 %vm333_vm1, %v6999_v40  ;;  %v853_v51 = vpop.f32.mrf.mxu1 }
 0x17c   : > { %v1041_v36 = vadd.f32 %v971_v48, %v848_v39  ;;  %v1654_v39 = vld [vmem:[#allocation2 + $0x2] sm:$0xff] }
 0x17e   : > { %v7004_v60 = vadd.f32 %v1253_v33, %v1041_v36  ;;  %v731_v54 = vpop.f32.mrf.mxu0  ;;  %v1256_v1 = vpop.f32.mrf.mxu3  ;;  %5851 = vmatmul.msk.f32.gmra.mxu1 %vm333_vm1, %v561_v42  ;;  %v1656_v42 = vld [vmem:[#allocation2 + $0x1a] sm:$0xff] }
 0x17f   : > { %v854_v21 = vadd.f32 %v853_v51, %v731_v54 }
 0x180   : > { %5884 = vmatmul.msk.f32.gmra.mxu2 %vm333_vm1, %v564_v57 }
 0x181   : > { %5818 = vmatmul.msk.f32.gmra.mxu0 %vm333_vm1, %v563_v8 }
 0x183   : > { %v974_v2 = vpop.f32.mrf.mxu2  ;;  %5919 = vmatmul.msk.f32.gmra.mxu3 %vm333_vm1, %v7008_v22  ;;  %v856_v5 = vpop.f32.mrf.mxu1 }
 0x184   : > { %v1042_v6 = vadd.f32 %v974_v2, %v851_v61  ;;  %v1655_v2 = vld [vmem:[#allocation2 + $0xa] sm:$0xff] }
 0x186   : > { %v7013_v15 = vadd.f32 %v1256_v1, %v1042_v6  ;;  %v734_v17 = vpop.f32.mrf.mxu0  ;;  %v1259_v27 = vpop.f32.mrf.mxu3  ;;  %5956 = vmatmul.msk.f32.vlgmr.msrb.gmra.mxu1 %vm333_vm1, %v6732_v29  ;;  %v1657_v1 = vld [vmem:[#allocation2 + $0x22] sm:$0xff] }
 0x188   : > { %5885 = vmatmul.msk.f32.gmra.mxu2 %vm333_vm1, %v565_v14 }
 0x189   : > { %5922 = vmatmul.msk.f32.vlgmr.msrb.gmra.mxu0 %vm333_vm1, %v6714_v23  ;;  %v857_v23 = vadd.f32 %v856_v5, %v734_v17 }
 0x18b   : > { %v977_v8 = vpop.f32.mrf.mxu2  ;;  %6024 = vmatmul.msk.f32.vlgmr.msrb.gmra.mxu3 %vm333_vm1, %v1656_v42  ;;  %v859_v31 = vpop.f32.mrf.mxu1 }
 0x18c   : > { %v1043_v33 = vadd.f32 %v977_v8, %v854_v21  ;;  %v7034_v21 = vld [vmem:[#allocation2 + $0x32] sm:$0xff] }
 0x18e   : > { %v7021_v48 = vadd.f32 %v1259_v27, %v1043_v33  ;;  %v737_v36 = vpop.f32.mrf.mxu0  ;;  %v1262_v57 = vpop.f32.mrf.mxu3  ;;  %5957 = vmatmul.msk.f32.gmra.mxu1 %vm333_vm1, %v6741_v32 }
 0x190   : > { %10808 = vst [vmem:[#allocation5_spill] sm:$0xff] %v7021_v48  ;;  %5990 = vmatmul.msk.f32.vlgmr.msrb.gmra.mxu2 %vm333_vm1, %v1654_v39  ;;  %v6091_v48 = vld [vmem:[%s10738_s3 + $0x188] sm:$0xff] }
 0x191   : > { %5923 = vmatmul.msk.f32.gmra.mxu0 %vm333_vm1, %v6723_v26  ;;  %v860_v26 = vadd.f32 %v859_v31, %v737_v36 }
 0x193   : > { %v980_v51 = vpop.f32.mrf.mxu2  ;;  %6025 = vmatmul.msk.f32.gmra.mxu3 %vm333_vm1, %v1657_v1  ;;  %v862_v54 = vpop.f32.mrf.mxu1 }
 0x194   : > { %v1044_v61 = vadd.f32 %v980_v51, %v857_v23  ;;  %v7045_v23 = vld [vmem:[#allocation2 + $0x3a] sm:$0xff] }
 0x196   : > { %v7029_v6 = vadd.f32 %v1262_v57, %v1044_v61  ;;  %v740_v14 = vpop.f32.mrf.mxu0  ;;  %v1265_v27 = vpop.f32.mrf.mxu3  ;;  %5958 = vmatmul.msk.f32.gmra.mxu1 %vm333_vm1, %v6750_v35 }
 0x198   : > { %10809 = vst [vmem:[#allocation6_spill] sm:$0xff] %v7029_v6  ;;  %5991 = vmatmul.msk.f32.gmra.mxu2 %vm333_vm1, %v1655_v2 }
 0x199   : > { %5924 = vmatmul.msk.f32.gmra.mxu0 %vm333_vm1, %v6732_v29  ;;  %v863_v29 = vadd.f32 %v862_v54, %v740_v14 }
 0x19b   : > { %v983_v5 = vpop.f32.mrf.mxu2  ;;  %6026 = vmatmul.msk.f32.gmra.mxu3 %vm333_vm1, %v7034_v21  ;;  %v865_v17 = vpop.f32.mrf.mxu1 }
 0x19c   : > { %v1045_v8 = vadd.f32 %v983_v5, %v860_v26 }
 0x19e   : > { %v7040_v33 = vadd.f32 %v1265_v27, %v1045_v8  ;;  %v743_v39 = vpop.f32.mrf.mxu0  ;;  %v1268_v57 = vpop.f32.mrf.mxu3  ;;  %5959 = vmatmul.msk.f32.gmra.mxu1 %vm333_vm1, %v6759_v38 }
 0x1a0   : > { %10810 = vst [vmem:[#allocation7_spill] sm:$0xff] %v7040_v33  ;;  %5992 = vmatmul.msk.f32.gmra.mxu2 %vm333_vm1, %v1656_v42  ;;  %v7056_v42 = vld [vmem:[#allocation2 + $0x4a] sm:$0xff] }
 0x1a1   : > { %5925 = vmatmul.msk.f32.gmra.mxu0 %vm333_vm1, %v6741_v32  ;;  %v866_v32 = vadd.f32 %v865_v17, %v743_v39 }
 0x1a3   : > { %v986_v31 = vpop.f32.mrf.mxu2  ;;  %6027 = vmatmul.msk.f32.gmra.mxu3 %vm333_vm1, %v7045_v23  ;;  %v868_v36 = vpop.f32.mrf.mxu1 }
 0x1a4   : > { %v1046_v51 = vadd.f32 %v986_v31, %v863_v29 }
 0x1a6   : > { %v7051_v61 = vadd.f32 %v1268_v57, %v1046_v51  ;;  %v746_v2 = vpop.f32.mrf.mxu0  ;;  %v1271_v27 = vpop.f32.mrf.mxu3  ;;  %5960 = vmatmul.msk.f32.gmra.mxu1 %vm333_vm1, %v6768_v41 }
 0x1a8   : > { %10811 = vst [vmem:[#allocation8_spill] sm:$0xff] %v7051_v61  ;;  %5993 = vmatmul.msk.f32.gmra.mxu2 %vm333_vm1, %v1657_v1  ;;  %v7068_v1 = vld [vmem:[#allocation2 + $0x52] sm:$0xff] }
 0x1a9   : > { %5926 = vmatmul.msk.f32.gmra.mxu0 %vm333_vm1, %v6750_v35  ;;  %v869_v35 = vadd.f32 %v868_v36, %v746_v2 }
 0x1ab   : > { %v989_v54 = vpop.f32.mrf.mxu2  ;;  %6028 = vmatmul.msk.f32.gmra.mxu3 %vm333_vm1, %v7056_v42  ;;  %v871_v14 = vpop.f32.mrf.mxu1 }
 0x1ac   : > { %v1047_v26 = vadd.f32 %v989_v54, %v866_v32  ;;  %v7080_v32 = vld [vmem:[#allocation2 + $0x62] sm:$0xff] }
 0x1ae   : > { %v7062_v5 = vadd.f32 %v1271_v27, %v1047_v26  ;;  %v749_v8 = vpop.f32.mrf.mxu0  ;;  %v1274_v57 = vpop.f32.mrf.mxu3  ;;  %5961 = vmatmul.msk.f32.gmra.mxu1 %vm333_vm1, %v6777_v44 }
 0x1b0   : > { %10812 = vst [vmem:[#allocation9_spill] sm:$0xff] %v7062_v5  ;;  %5994 = vmatmul.msk.f32.gmra.mxu2 %vm333_vm1, %v7034_v21 }
 0x1b1   : > { %5927 = vmatmul.msk.f32.gmra.mxu0 %vm333_vm1, %v6759_v38  ;;  %v872_v38 = vadd.f32 %v871_v14, %v749_v8 }
 0x1b3   : > { %v992_v17 = vpop.f32.mrf.mxu2  ;;  %6029 = vmatmul.msk.f32.gmra.mxu3 %vm333_vm1, %v7068_v1  ;;  %v874_v39 = vpop.f32.mrf.mxu1 }
 0x1b4   : > { %v1048_v29 = vadd.f32 %v992_v17, %v869_v35  ;;  %v7092_v17 = vld [vmem:[#allocation2 + $0x6a] sm:$0xff] }
 0x1b6   : > { %v7074_v31 = vadd.f32 %v1274_v57, %v1048_v29  ;;  %v752_v51 = vpop.f32.mrf.mxu0  ;;  %v1277_v27 = vpop.f32.mrf.mxu3  ;;  %5962 = vmatmul.msk.f32.gmra.mxu1 %vm333_vm1, %v6786_v47 }
 0x1b8   : > { %10813 = vst [vmem:[#allocation10_spill] sm:$0xff] %v7074_v31  ;;  %5995 = vmatmul.msk.f32.gmra.mxu2 %vm333_vm1, %v7045_v23 }
 0x1b9   : > { %5928 = vmatmul.msk.f32.gmra.mxu0 %vm333_vm1, %v6768_v41  ;;  %v875_v41 = vadd.f32 %v874_v39, %v752_v51 }
 0x1bb   : > { %v995_v36 = vpop.f32.mrf.mxu2  ;;  %6030 = vmatmul.msk.f32.gmra.mxu3 %vm333_vm1, %v7080_v32  ;;  %v877_v2 = vpop.f32.mrf.mxu1 }
 0x1bc   : > { %v1049_v54 = vadd.f32 %v995_v36, %v872_v38 }
 0x1be   : > { %v7086_v26 = vadd.f32 %v1277_v27, %v1049_v54  ;;  %v755_v57 = vpop.f32.mrf.mxu0  ;;  %v1280_v35 = vpop.f32.mrf.mxu3  ;;  %5963 = vmatmul.msk.f32.gmra.mxu1 %vm333_vm1, %v6795_v50  ;;  %v7104_v54 = vld [vmem:[#allocation2 + $0x7a] sm:$0xff] }
 0x1c0   : > { %10814 = vst [vmem:[#allocation11_spill] sm:$0xff] %v7086_v26  ;;  %5996 = vmatmul.msk.f32.gmra.mxu2 %vm333_vm1, %v7056_v42 }
 0x1c1   : > { %5929 = vmatmul.msk.f32.gmra.mxu0 %vm333_vm1, %v6777_v44  ;;  %v878_v44 = vadd.f32 %v877_v2, %v755_v57 }
 0x1c3   : > { %v998_v14 = vpop.f32.mrf.mxu2  ;;  %6031 = vmatmul.msk.f32.gmra.mxu3 %vm333_vm1, %v7092_v17  ;;  %v880_v8 = vpop.f32.mrf.mxu1 }
 0x1c4   : > { %v1050_v29 = vadd.f32 %v998_v14, %v875_v41 }
 0x1c6   : > { %v7098_v27 = vadd.f32 %v1280_v35, %v1050_v29  ;;  %v758_v38 = vpop.f32.mrf.mxu0  ;;  %v1283_v36 = vpop.f32.mrf.mxu3  ;;  %5964 = vmatmul.msk.f32.gmra.mxu1 %vm333_vm1, %v6804_v53 }
 0x1c8   : > { %10815 = vst [vmem:[#allocation12_spill] sm:$0xff] %v7098_v27  ;;  %5997 = vmatmul.msk.f32.gmra.mxu2 %vm333_vm1, %v7068_v1  ;;  %v7116_v27 = vld [vmem:[#allocation2 + $0x82] sm:$0xff] }
 0x1c9   : > { %5930 = vmatmul.msk.f32.gmra.mxu0 %vm333_vm1, %v6786_v47  ;;  %v881_v47 = vadd.f32 %v880_v8, %v758_v38 }
 0x1cb   : > { %v1001_v39 = vpop.f32.mrf.mxu2  ;;  %6032 = vmatmul.msk.f32.gmra.mxu3 %vm333_vm1, %v7104_v54  ;;  %v883_v51 = vpop.f32.mrf.mxu1 }
 0x1cc   : > { %v1051_v35 = vadd.f32 %v1001_v39, %v878_v44 }
 0x1ce   : > { %v7110_v41 = vadd.f32 %v1283_v36, %v1051_v35  ;;  %v761_v14 = vpop.f32.mrf.mxu0  ;;  %v1286_v29 = vpop.f32.mrf.mxu3  ;;  %5965 = vmatmul.msk.f32.gmra.mxu1 %vm333_vm1, %v6813_v56 }
 0x1d0   : > { %10816 = vst [vmem:[#allocation13_spill] sm:$0xff] %v7110_v41  ;;  %5998 = vmatmul.msk.f32.gmra.mxu2 %vm333_vm1, %v7080_v32  ;;  %v7128_v41 = vld [vmem:[#allocation2 + $0x92] sm:$0xff] }
 0x1d1   : > { %5931 = vmatmul.msk.f32.gmra.mxu0 %vm333_vm1, %v6795_v50  ;;  %v884_v50 = vadd.f32 %v883_v51, %v761_v14 }
 0x1d3   : > { %v1004_v2 = vpop.f32.mrf.mxu2  ;;  %6033 = vmatmul.msk.f32.gmra.mxu3 %vm333_vm1, %v7116_v27  ;;  %v886_v57 = vpop.f32.mrf.mxu1 }
 0x1d4   : > { %v1052_v36 = vadd.f32 %v1004_v2, %v881_v47 }
 0x1d6   : > { %v7122_v44 = vadd.f32 %v1286_v29, %v1052_v36  ;;  %v764_v39 = vpop.f32.mrf.mxu0  ;;  %v1289_v35 = vpop.f32.mrf.mxu3  ;;  %5966 = vmatmul.msk.f32.gmra.mxu1 %vm333_vm1, %v6822_v59 }
 0x1d8   : > { %10817 = vst [vmem:[#allocation14_spill] sm:$0xff] %v7122_v44  ;;  %5999 = vmatmul.msk.f32.gmra.mxu2 %vm333_vm1, %v7092_v17  ;;  %v7140_v44 = vld [vmem:[#allocation2 + $0x9a] sm:$0xff] }
 0x1d9   : > { %5932 = vmatmul.msk.f32.gmra.mxu0 %vm333_vm1, %v6804_v53  ;;  %v887_v53 = vadd.f32 %v886_v57, %v764_v39 }
 0x1db   : > { %v1007_v8 = vpop.f32.mrf.mxu2  ;;  %6034 = vmatmul.msk.f32.gmra.mxu3 %vm333_vm1, %v7128_v41  ;;  %v889_v38 = vpop.f32.mrf.mxu1 }
 0x1dc   : > { %v1053_v29 = vadd.f32 %v1007_v8, %v884_v50 }
 0x1de   : > { %v7134_v47 = vadd.f32 %v1289_v35, %v1053_v29  ;;  %v767_v2 = vpop.f32.mrf.mxu0  ;;  %v1292_v36 = vpop.f32.mrf.mxu3  ;;  %5967 = vmatmul.msk.f32.gmra.mxu1 %vm333_vm1, %v6835_v63 }
 0x1e0   : > { %10818 = vst [vmem:[#allocation15_spill] sm:$0xff] %v7134_v47  ;;  %6000 = vmatmul.msk.f32.gmra.mxu2 %vm333_vm1, %v7104_v54  ;;  %v7152_v47 = vld [vmem:[#allocation2 + $0xaa] sm:$0xff] }
 0x1e1   : > { %5933 = vmatmul.msk.f32.gmra.mxu0 %vm333_vm1, %v6813_v56  ;;  %v890_v56 = vadd.f32 %v889_v38, %v767_v2 }
 0x1e3   : > { %v1010_v51 = vpop.f32.mrf.mxu2  ;;  %6035 = vmatmul.msk.f32.gmra.mxu3 %vm333_vm1, %v7140_v44  ;;  %v892_v14 = vpop.f32.mrf.mxu1 }
 0x1e4   : > { %v1054_v35 = vadd.f32 %v1010_v51, %v887_v53 }
 0x1e6   : > { %v7146_v50 = vadd.f32 %v1292_v36, %v1054_v35  ;;  %v770_v8 = vpop.f32.mrf.mxu0  ;;  %v1295_v29 = vpop.f32.mrf.mxu3  ;;  %5968 = vmatmul.msk.f32.gmra.mxu1 %vm333_vm1, %v6844_v4 }
 0x1e8   : > { %10819 = vst [vmem:[#allocation16_spill] sm:$0xff] %v7146_v50  ;;  %6001 = vmatmul.msk.f32.gmra.mxu2 %vm333_vm1, %v7116_v27  ;;  %v7164_v50 = vld [vmem:[#allocation2 + $0xb2] sm:$0xff] }
 0x1e9   : > { %5934 = vmatmul.msk.f32.gmra.mxu0 %vm333_vm1, %v6822_v59  ;;  %v893_v59 = vadd.f32 %v892_v14, %v770_v8 }
 0x1eb   : > { %v1013_v57 = vpop.f32.mrf.mxu2  ;;  %6036 = vmatmul.msk.f32.gmra.mxu3 %vm333_vm1, %v7152_v47  ;;  %v895_v39 = vpop.f32.mrf.mxu1 }
 0x1ec   : > { %v1055_v36 = vadd.f32 %v1013_v57, %v890_v56 }
 0x1ee   : > { %v7158_v53 = vadd.f32 %v1295_v29, %v1055_v36  ;;  %v773_v51 = vpop.f32.mrf.mxu0  ;;  %v1298_v35 = vpop.f32.mrf.mxu3  ;;  %5969 = vmatmul.msk.f32.gmra.mxu1 %vm333_vm1, %v6853_v10 }
 0x1f0   : > { %10820 = vst [vmem:[#allocation17_spill] sm:$0xff] %v7158_v53  ;;  %6002 = vmatmul.msk.f32.gmra.mxu2 %vm333_vm1, %v7128_v41  ;;  %v7176_v53 = vld [vmem:[#allocation2 + $0xc2] sm:$0xff] }
 0x1f1   : > { %5935 = vmatmul.msk.f32.gmra.mxu0 %vm333_vm1, %v6835_v63  ;;  %v896_v63 = vadd.f32 %v895_v39, %v773_v51 }
 0x1f3   : > { %v1016_v38 = vpop.f32.mrf.mxu2  ;;  %6037 = vmatmul.msk.f32.gmra.mxu3 %vm333_vm1, %v7164_v50  ;;  %v898_v2 = vpop.f32.mrf.mxu1 }
 0x1f4   : > { %v1056_v29 = vadd.f32 %v1016_v38, %v893_v59  ;;  %v6105_v59 = vld [vmem:[%s10738_s3 + $0x1f8] sm:$0xff] }
 0x1f5   : > { %2418 = vmatpush.msra.mxu1 %v6105_v59 }
 0x1f6   : > { %v7170_v56 = vadd.f32 %v1298_v35, %v1056_v29  ;;  %v776_v57 = vpop.f32.mrf.mxu0  ;;  %v1301_v36 = vpop.f32.mrf.mxu3  ;;  %5970 = vmatmul.msk.f32.gmra.mxu1 %vm333_vm1, %v6864_v20 }
 0x1f7   : > { %v899_v39 = vadd.f32 %v898_v2, %v776_v57 }
 0x1f8   : > { %10821 = vst [vmem:[#allocation18_spill] sm:$0xff] %v7170_v56  ;;  %6003 = vmatmul.msk.f32.gmra.mxu2 %vm333_vm1, %v7140_v44 }
 0x1f9   : > { %5936 = vmatmul.msk.f32.gmra.mxu0 %vm333_vm1, %v6844_v4  ;;  %v7191_v4 = vld [vmem:[#allocation2 + $0xca] sm:$0xff] }
 0x1fb   : > { %v1019_v14 = vpop.f32.mrf.mxu2  ;;  %6038 = vmatmul.msk.f32.gmra.mxu3 %vm333_vm1, %v7176_v53  ;;  %v901_v8 = vpop.f32.mrf.mxu1 }
 0x1fc   : > { %v1057_v35 = vadd.f32 %v1019_v14, %v896_v63 }
 0x1fe   : > { %v7185_v38 = vadd.f32 %v1301_v36, %v1057_v35  ;;  %v779_v29 = vpop.f32.mrf.mxu0  ;;  %v1304_v56 = vpop.f32.mrf.mxu3  ;;  %5971 = vmatmul.msk.f32.gmra.mxu1 %vm333_vm1, %v6875_v34 }
 0x1ff   : > { %v902_v57 = vadd.f32 %v901_v8, %v779_v29  ;;  %v7220_v8 = vld [vmem:[#allocation2 + $0xe2] sm:$0xff] }
 0x200   : > { %10822 = vst [vmem:[#allocation19_spill] sm:$0xff] %v7185_v38  ;;  %6004 = vmatmul.msk.f32.gmra.mxu2 %vm333_vm1, %v7152_v47 }
 0x201   : > { %5937 = vmatmul.msk.f32.gmra.mxu0 %vm333_vm1, %v6853_v10  ;;  %v7204_v10 = vld [vmem:[#allocation2 + $0xda] sm:$0xff] }
 0x203   : > { %v1022_v51 = vpop.f32.mrf.mxu2  ;;  %6039 = vmatmul.msk.f32.gmra.mxu3 %vm333_vm1, %v7191_v4  ;;  %v1526_v36 = vpop.f32.mrf.mxu1 }
 0x204   : > { %v1058_v63 = vadd.f32 %v1022_v51, %v899_v39 }
 0x206   : > { %v7197_v14 = vadd.f32 %v1304_v56, %v1058_v63  ;;  %v1307_v35 = vpop.f32.mrf.mxu3  ;;  %v1370_v59 = vpop.f32.mrf.mxu0  ;;  %5972 = vmatmul.msk.f32.gmra.mxu1 %vm333_vm1, %v6886_v49 }
 0x207   : > { %v1466_v38 = vadd.f32 %v1370_v59, %v6859_v16  ;;  %v6104_v16 = vld [vmem:[%s10738_s3 + $0x1f0] sm:$0xff] }
 0x208   : > { %10823 = vst [vmem:[#allocation20_spill] sm:$0xff] %v7197_v14  ;;  %6005 = vmatmul.msk.f32.gmra.mxu2 %vm333_vm1, %v7164_v50  ;;  %2419 = vmatpush.msra.mxu1 %v6104_v16 }
 0x209   : > { %v1622_v2 = vadd.f32 %v1526_v36, %v1466_v38  ;;  %5938 = vmatmul.msk.f32.gmra.mxu0 %vm333_vm1, %v6864_v20 }
 0x20b   : > { %v1025_v39 = vpop.f32.mrf.mxu2  ;;  %6040 = vmatmul.msk.f32.gmra.mxu3 %vm333_vm1, %v7204_v10  ;;  %v1529_v56 = vpop.f32.mrf.mxu1 }
 0x20c   : > { %v1059_v51 = vadd.f32 %v1025_v39, %v902_v57 }
 0x20e   : > { %v7213_v63 = vadd.f32 %v1307_v35, %v1059_v51  ;;  %v1373_v59 = vpop.f32.mrf.mxu0  ;;  %v1964_v14 = vpop.f32.mrf.mxu3  ;;  %5973 = vmatmul.msk.f32.gmra.mxu1 %vm333_vm1, %v6897_v0 }
 0x20f   : > { %v1467_v20 = vadd.f32 %v1373_v59, %v6870_v28  ;;  %v6103_v59 = vld [vmem:[%s10738_s3 + $0x1e8] sm:$0xff] }
 0x210   : > { %10824 = vst [vmem:[#allocation21_spill] sm:$0xff] %v7213_v63  ;;  %6006 = vmatmul.msk.f32.gmra.mxu2 %vm333_vm1, %v7176_v53  ;;  %2420 = vmatpush.msra.mxu1 %v6103_v59 }
 0x211   : > { %v1623_v38 = vadd.f32 %v1529_v56, %v1467_v20  ;;  %5939 = vmatmul.msk.f32.gmra.mxu0 %vm333_vm1, %v6875_v34  ;;  %v7233_v56 = vld [vmem:[#allocation2 + $0xf2] sm:$0xff] }
 0x213   : > { %v1808_v29 = vpop.f32.mrf.mxu2  ;;  %6041 = vmatmul.msk.f32.gmra.mxu3 %vm333_vm1, %v7220_v8  ;;  %v1532_v36 = vpop.f32.mrf.mxu1 }
 0x214   : > { %v1904_v35 = vadd.f32 %v1808_v29, %v1622_v2 }
 0x216   : > { %v7226_v57 = vadd.f32 %v1964_v14, %v1904_v35  ;;  %v1376_v39 = vpop.f32.mrf.mxu0  ;;  %v1967_v51 = vpop.f32.mrf.mxu3  ;;  %5974 = vmatmul.msk.f32.gmra.mxu1 %vm333_vm1, %v6908_v12 }
 0x217   : > { %v1468_v28 = vadd.f32 %v1376_v39, %v6881_v43 }
 0x218   : > { %6007 = vmatmul.msk.f32.gmra.mxu2 %vm333_vm1, %v7191_v4 }
 0x219   : > { %v1624_v34 = vadd.f32 %v1532_v36, %v1468_v28  ;;  %5940 = vmatmul.msk.f32.gmra.mxu0 %vm333_vm1, %v6886_v49  ;;  %v7249_v36 = vld [vmem:[#allocation2 + $0xfa] sm:$0xff] }
 0x21b   : > { %v1811_v16 = vpop.f32.mrf.mxu2  ;;  %6042 = vmatmul.msk.f32.gmra.mxu3 %vm333_vm1, %v7233_v56  ;;  %v1535_v14 = vpop.f32.mrf.mxu1 }
 0x21c   : > { %v1905_v2 = vadd.f32 %v1811_v16, %v1623_v38 }
 0x21e   : > { %v7242_v43 = vadd.f32 %v1967_v51, %v1905_v2  ;;  %v1379_v20 = vpop.f32.mrf.mxu0  ;;  %v1970_v29 = vpop.f32.mrf.mxu3  ;;  %5975 = vmatmul.msk.f32.gmra.mxu1 %vm333_vm1, %v6919_v25 }
 0x21f   : > { %v1469_v49 = vadd.f32 %v1379_v20, %v6892_v58 }
 0x220   : > { %6008 = vmatmul.msk.f32.gmra.mxu2 %vm333_vm1, %v7204_v10 }
 0x221   : > { %v1625_v38 = vadd.f32 %v1535_v14, %v1469_v49  ;;  %5941 = vmatmul.msk.f32.gmra.mxu0 %vm333_vm1, %v6897_v0  ;;  %v7262_v14 = vld [vmem:[#allocation2 + $0x10a] sm:$0xff] }
 0x223   : > { %v1814_v35 = vpop.f32.mrf.mxu2  ;;  %6043 = vmatmul.msk.f32.gmra.mxu3 %vm333_vm1, %v7249_v36  ;;  %v1538_v39 = vpop.f32.mrf.mxu1 }
 0x224   : > { %v1906_v51 = vadd.f32 %v1814_v35, %v1624_v34 }
 0x226   : > { %v7255_v28 = vadd.f32 %v1970_v29, %v1906_v51  ;;  %v1382_v16 = vpop.f32.mrf.mxu0  ;;  %v1973_v2 = vpop.f32.mrf.mxu3  ;;  %5976 = vmatmul.msk.f32.gmra.mxu1 %vm333_vm1, %v6930_v45  ;;  %v6102_v29 = vld [vmem:[%s10738_s3 + $0x1e0] sm:$0xff] }
 0x227   : > { %v1470_v58 = vadd.f32 %v1382_v16, %v6903_v7  ;;  %2421 = vmatpush.msra.mxu1 %v6102_v29 }
 0x228   : > { %6009 = vmatmul.msk.f32.gmra.mxu2 %vm333_vm1, %v7220_v8 }
 0x229   : > { %v1626_v0 = vadd.f32 %v1538_v39, %v1470_v58  ;;  %5942 = vmatmul.msk.f32.gmra.mxu0 %vm333_vm1, %v6908_v12  ;;  %v7278_v39 = vld [vmem:[#allocation2 + $0x112] sm:$0xff] }
 0x22b   : > { %v1817_v59 = vpop.f32.mrf.mxu2  ;;  %6044 = vmatmul.msk.f32.gmra.mxu3 %vm333_vm1, %v7262_v14  ;;  %v1541_v34 = vpop.f32.mrf.mxu1 }
 0x22c   : > { %v1907_v20 = vadd.f32 %v1817_v59, %v1625_v38 }
 0x22e   : > { %v7271_v7 = vadd.f32 %v1973_v2, %v1907_v20  ;;  %v1385_v49 = vpop.f32.mrf.mxu0  ;;  %v1976_v35 = vpop.f32.mrf.mxu3  ;;  %5977 = vmatmul.msk.f32.gmra.mxu1 %vm333_vm1, %v6941_v62 }
 0x22f   : > { %v1471_v12 = vadd.f32 %v1385_v49, %v6914_v19  ;;  %v6101_v49 = vld [vmem:[%s10738_s3 + $0x1d8] sm:$0xff] }
 0x230   : > { %6010 = vmatmul.msk.f32.gmra.mxu2 %vm333_vm1, %v7233_v56  ;;  %2422 = vmatpush.msra.mxu1 %v6101_v49 }
 0x231   : > { %v1627_v38 = vadd.f32 %v1541_v34, %v1471_v12  ;;  %5943 = vmatmul.msk.f32.gmra.mxu0 %vm333_vm1, %v6919_v25  ;;  %v7291_v34 = vld [vmem:[#allocation2 + $0x122] sm:$0xff] }
 0x233   : > { %v1820_v51 = vpop.f32.mrf.mxu2  ;;  %6045 = vmatmul.msk.f32.gmra.mxu3 %vm333_vm1, %v7278_v39  ;;  %v1544_v2 = vpop.f32.mrf.mxu1 }
 0x234   : > { %v1908_v16 = vadd.f32 %v1820_v51, %v1626_v0 }
 0x236   : > { %v7284_v58 = vadd.f32 %v1976_v35, %v1908_v16  ;;  %v1388_v59 = vpop.f32.mrf.mxu0  ;;  %5978 = vmatmul.msk.f32.gmra.mxu1 %vm333_vm1, %v6951_v13  ;;  %v1979_v20 = vpop.f32.mrf.mxu3 }
 0x237   : > { %v1472_v19 = vadd.f32 %v1388_v59, %v6925_v37 }
 0x238   : > { %6011 = vmatmul.msk.f32.gmra.mxu2 %vm333_vm1, %v7249_v36 }
 0x239   : > { %v1628_v25 = vadd.f32 %v1544_v2, %v1472_v19  ;;  %5944 = vmatmul.msk.f32.gmra.mxu0 %vm333_vm1, %v6930_v45  ;;  %v7307_v45 = vld [vmem:[#allocation2 + $0x12a] sm:$0xff] }
 0x23b   : > { %v1823_v0 = vpop.f32.mrf.mxu2  ;;  %6046 = vmatmul.msk.f32.gmra.mxu3 %vm333_vm1, %v7291_v34  ;;  %v1547_v12 = vpop.f32.mrf.mxu1 }
 0x23c   : > { %v1909_v29 = vadd.f32 %v1823_v0, %v1627_v38 }
 0x23e   : > { %v7300_v37 = vadd.f32 %v1979_v20, %v1909_v29  ;;  %v1391_v35 = vpop.f32.mrf.mxu0  ;;  %5979 = vmatmul.msk.f32.gmra.mxu1 %vm333_vm1, %v6960_v18  ;;  %v1982_v38 = vpop.f32.mrf.mxu3  ;;  %v6100_v29 = vld [vmem:[%s10738_s3 + $0x1d0] sm:$0xff] }
 0x23f   : > { %v1473_v51 = vadd.f32 %v1391_v35, %v6936_v55  ;;  %v7321_v55 = vld [vmem:[#allocation2 + $0x13a] sm:$0xff]  ;;  %2423 = vmatpush.msra.mxu1 %v6100_v29 }
 0x240   : > { %6012 = vmatmul.msk.f32.gmra.mxu2 %vm333_vm1, %v7262_v14 }
 0x241   : > { %v1629_v16 = vadd.f32 %v1547_v12, %v1473_v51  ;;  %5945 = vmatmul.msk.f32.gmra.mxu0 %vm333_vm1, %v6941_v62  ;;  %v7350_v51 = vld [vmem:[#allocation2 + $0x152] sm:$0xff] }
 0x243   : > { %v1826_v2 = vpop.f32.mrf.mxu2  ;;  %6047 = vmatmul.msk.f32.gmra.mxu3 %vm333_vm1, %v7307_v45  ;;  %v7453_v5 = vpop.f32.mrf.mxu1 }
 0x244   : > { %v1910_v59 = vadd.f32 %v1826_v2, %v1628_v25 }
 0x246   : > { %v7313_v19 = vadd.f32 %v1982_v38, %v1910_v59  ;;  %v7315_v20 = vpop.f32.mrf.mxu0  ;;  %5980 = vmatmul.msk.f32.gmra.mxu1 %vm333_vm1, %v6973_v52  ;;  %v1985_v0 = vpop.f32.mrf.mxu3  ;;  %v7376_v59 = vld [vmem:[#allocation2 + $0x16a] sm:$0xff] }
 0x248   : > { %6013 = vmatmul.msk.f32.gmra.mxu2 %vm333_vm1, %v7278_v39 }
 0x249   : > { %5946 = vmatmul.msk.f32.gmra.mxu0 %vm333_vm1, %v6951_v13  ;;  %v7338_v13 = vld [vmem:[#allocation2 + $0x142] sm:$0xff] }
 0x24b   : > { %v1829_v62 = vpop.f32.mrf.mxu2  ;;  %6048 = vmatmul.msk.f32.gmra.mxu3 %vm333_vm1, %v7321_v55 }
 0x24c   : > { %v1911_v25 = vadd.f32 %v1829_v62, %v1629_v16  ;;  %v7365_v16 = vld [vmem:[#allocation2 + $0x15a] sm:$0xff] }
 0x24d   : > { %v6098_v62 = vld [vmem:[%s10738_s3 + $0x1c0] sm:$0xff] }
 0x24e   : > { %v7330_v49 = vadd.f32 %v1985_v0, %v1911_v25  ;;  %v7332_v35 = vpop.f32.mrf.mxu0  ;;  %5981 = vmatmul.msk.f32.gmra.mxu1 %vm333_vm1, %v6986_v11  ;;  %v7390_v25 = vld [vmem:[#allocation2 + $0x172] sm:$0xff] }
 0x250   : > { %6014 = vmatmul.msk.f32.gmra.mxu2 %vm333_vm1, %v7291_v34 }
 0x251   : > { %5947 = vmatmul.msk.f32.gmra.mxu0 %vm333_vm1, %v6960_v18  ;;  %v6099_v18 = vld [vmem:[%s10738_s3 + $0x1c8] sm:$0xff] }
 0x252   : > { %2424 = vmatpush.msra.mxu1 %v6099_v18  ;;  %v7401_v18 = vld [vmem:[#allocation2 + $0x182] sm:$0xff] }
 0x253   : > { %6049 = vmatmul.msk.f32.gmra.mxu3 %vm333_vm1, %v7338_v13  ;;  %v7435_v26 = vpop.f32.mrf.mxu2 }
 0x254   : > { %2425 = vmatpush.msra.mxu1 %v6098_v62  ;;  %v1095_v62 = vld [vmem:[#allocation2 + $0x1a1] sm:$0xff] }
 0x256   : > { %v7344_v12 = vpop.f32.mrf.mxu0  ;;  %5982 = vmatmul.msk.f32.gmra.mxu1 %vm333_vm1, %v6999_v40 }
 0x258   : > { %6015 = vmatmul.msk.f32.gmra.mxu2 %vm333_vm1, %v7307_v45 }
 0x259   : > { %5948 = vmatmul.msk.f32.gmra.mxu0 %vm333_vm1, %v6973_v52  ;;  %v1092_v52 = vld [vmem:[#allocation2 + $0x181] sm:$0xff] }
 0x25b   : > { %6050 = vmatmul.msk.f32.gmra.mxu3 %vm333_vm1, %v7350_v51 }
 0x25e   : > { %v7359_v38 = vpop.f32.mrf.mxu0  ;;  %5983 = vmatmul.msk.f32.gmra.mxu1 %vm333_vm1, %v7008_v22 }
 0x260   : > { %6016 = vmatmul.msk.f32.gmra.mxu2 %vm333_vm1, %v7321_v55 }
 0x261   : > { %5949 = vmatmul.msk.f32.gmra.mxu0 %vm333_vm1, %v6986_v11  ;;  %v1093_v11 = vld [vmem:[#allocation2 + $0x189] sm:$0xff] }
 0x263   : > { %6051 = vmatmul.msk.f32.gmra.mxu3 %vm333_vm1, %v7365_v16 }
 0x266   : > { %v7371_v2 = vpop.f32.mrf.mxu0  ;;  %5984 = vmatmul.msk.f32.gmra.mxu1 %vm333_vm1, %v1092_v52 }
 0x268   : > { %6017 = vmatmul.msk.f32.gmra.mxu2 %vm333_vm1, %v7338_v13 }
 0x269   : > { %5950 = vmatmul.msk.f32.gmra.mxu0 %vm333_vm1, %v6999_v40  ;;  %v1094_v40 = vld [vmem:[#allocation2 + $0x199] sm:$0xff] }
 0x26b   : > { %6052 = vmatmul.msk.f32.gmra.mxu3 %vm333_vm1, %v7376_v59 }
 0x26e   : > { %v7385_v0 = vpop.f32.mrf.mxu0  ;;  %5985 = vmatmul.msk.f32.gmra.mxu1 %vm333_vm1, %v1093_v11 }
 0x270   : > { %6018 = vmatmul.msk.f32.gmra.mxu2 %vm333_vm1, %v7350_v51 }
 0x271   : > { %5951 = vmatmul.msk.f32.gmra.mxu0 %vm333_vm1, %v7008_v22  ;;  %v6097_v22 = vld [vmem:[%s10738_s3 + $0x1b8] sm:$0xff] }
 0x272   : > { %2426 = vmatpush.msra.mxu1 %v6097_v22  ;;  %v2400_v22 = vld [vmem:[%s10738_s3 + $0x78] sm:$0xff] }
 0x273   : > { %6053 = vmatmul.msk.f32.gmra.mxu3 %vm333_vm1, %v7390_v25  ;;  %2531 = vmatpush.msra.mxu2 %v2400_v22  ;;  %v2399_v22 = vld [vmem:[%s10738_s3 + $0x70] sm:$0xff] }
 0x275   : > { %2532 = vmatpush.msra.mxu2 %v2399_v22 }
 0x276   : > { %v7396_v29 = vpop.f32.mrf.mxu0  ;;  %5986 = vmatmul.msk.f32.gmra.mxu1 %vm333_vm1, %v1094_v40  ;;  %v7414_v40 = vld [vmem:[#allocation2 + $0x18a] sm:$0xff] }
 0x277   : > { %10826 = vst [vmem:[#allocation23_spill] sm:$0xff] %v7414_v40 }
 0x278   : > { %6019 = vmatmul.msk.f32.gmra.mxu2 %vm333_vm1, %v7365_v16 }
 0x279   : > { %5952 = vmatmul.msk.f32.gmra.mxu0 %vm333_vm1, %v1092_v52 }
 0x27b   : > { %6054 = vmatmul.msk.f32.gmra.mxu3 %vm333_vm1, %v7401_v18 }
 0x27e   : > { %v7409_v63 = vpop.f32.mrf.mxu0  ;;  %5987 = vmatmul.msk.f32.gmra.mxu1 %vm333_vm1, %v1095_v62 }
 0x27f   : > { %10825 = vst [vmem:[#allocation22_spill] sm:$0xff] %v7409_v63 }
 0x280   : > { %6020 = vmatmul.msk.f32.gmra.mxu2 %vm333_vm1, %v7376_v59 }
 0x281   : > { %5953 = vmatmul.msk.f32.gmra.mxu0 %vm333_vm1, %v1093_v11  ;;  %v6096_v11 = vld [vmem:[%s10738_s3 + $0x1b0] sm:$0xff] }
 0x282   : > { %2427 = vmatpush.msra.mxu1 %v6096_v11 }
 0x283   : > { %6055 = vmatmul.msk.f32.gmra.mxu3 %vm333_vm1, %v7414_v40 }
 0x286   : > { %v7419_v52 = vpop.f32.mrf.mxu0 }
 0x287   : > { %10827 = vst [vmem:[#allocation24_spill] sm:$0xff] %v7419_v52 }
 0x288   : > { %6021 = vmatmul.msk.f32.gmra.mxu2 %vm333_vm1, %v7390_v25 }
 0x289   : > { %6058 = vmatmul.msk.f32.vlgmr.msra.gmra.mxu0 %vm333_vm1, %v7034_v21  ;;  %v6095_v21 = vld [vmem:[%s10738_s3 + $0x1a8] sm:$0xff] }
 0x28a   : > { %2428 = vmatpush.msra.mxu1 %v6095_v21  ;;  %v6094_v21 = vld [vmem:[%s10738_s3 + $0x1a0] sm:$0xff] }
 0x28c   : > { %2429 = vmatpush.msra.mxu1 %v6094_v21  ;;  %v7484_v21 = vpop.f32.mrf.mxu3 }
 0x28e   : > { %v7431_v62 = vpop.f32.mrf.mxu0 }
 0x28f   : > { %10828 = vst [vmem:[#allocation25_spill] sm:$0xff] %v7431_v62 }
 0x291   : > { %6059 = vmatmul.msk.f32.gmra.mxu0 %vm333_vm1, %v7045_v23  ;;  %v7449_v23 = vpop.f32.mrf.mxu2 }
 0x294   : > { %v7497_v62 = vpop.f32.mrf.mxu3 }
 0x296   : > { %v7437_v31 = vpop.f32.mrf.mxu0 }
 0x297   : > { %10829 = vst [vmem:[#allocation26_spill] sm:$0xff] %v7437_v31 }
 0x299   : > { %6060 = vmatmul.msk.f32.gmra.mxu0 %vm333_vm1, %v7056_v42  ;;  %v2398_v42 = vld [vmem:[%s10738_s3 + $0x68] sm:$0xff]  ;;  %v7462_v22 = vpop.f32.mrf.mxu2 }
 0x29a   : > { %2533 = vmatpush.msra.mxu2 %v2398_v42 }
 0x29e   : > { %v7447_v11 = vpop.f32.mrf.mxu0 }
 0x29f   : > { %10830 = vst [vmem:[#allocation27_spill] sm:$0xff] %v7447_v11 }
 0x2a1   : > { %6061 = vmatmul.msk.f32.gmra.mxu0 %vm333_vm1, %v7068_v1  ;;  %v7467_v1 = vpop.f32.mrf.mxu1 }
 0x2a6   : > { %v7455_v31 = vpop.f32.mrf.mxu0 }
 0x2a7   : > { %10831 = vst [vmem:[#allocation28_spill] sm:$0xff] %v7455_v31  ;;  %v7473_v31 = vpop.f32.mrf.mxu2 }
 0x2a9   : > { %6062 = vmatmul.msk.f32.gmra.mxu0 %vm333_vm1, %v7080_v32  ;;  %v2397_v32 = vld [vmem:[%s10738_s3 + $0x60] sm:$0xff]  ;;  %v7480_v61 = vpop.f32.mrf.mxu1 }
 0x2aa   : > { %2534 = vmatpush.msra.mxu2 %v2397_v32 }
 0x2ae   : > { %v7469_v11 = vpop.f32.mrf.mxu0 }
 0x2af   : > { %10832 = vst [vmem:[#allocation29_spill] sm:$0xff] %v7469_v11  ;;  %v7489_v11 = vpop.f32.mrf.mxu2 }
 0x2b1   : > { %6063 = vmatmul.msk.f32.gmra.mxu0 %vm333_vm1, %v7092_v17  ;;  %v6093_v17 = vld [vmem:[%s10738_s3 + $0x198] sm:$0xff]  ;;  %v7495_v32 = vpop.f32.mrf.mxu1 }
 0x2b2   : > { %2430 = vmatpush.msra.mxu1 %v6093_v17 }
 0x2b6   : > { %v7475_v42 = vpop.f32.mrf.mxu0 }
 0x2b7   : > { %10833 = vst [vmem:[#allocation30_spill] sm:$0xff] %v7475_v42  ;;  %v7504_v52 = vpop.f32.mrf.mxu2 }
 0x2b9   : > { %6064 = vmatmul.msk.f32.gmra.mxu0 %vm333_vm1, %v7104_v54  ;;  %v2396_v54 = vld [vmem:[%s10738_s3 + $0x58] sm:$0xff]  ;;  %v7508_v17 = vpop.f32.mrf.mxu1 }
 0x2ba   : > { %2535 = vmatpush.msra.mxu2 %v2396_v54 }
 0x2be   : > { %v7491_v42 = vpop.f32.mrf.mxu0 }
 0x2bf   : > { %10834 = vst [vmem:[#allocation31_spill] sm:$0xff] %v7491_v42  ;;  %v7519_v54 = vpop.f32.mrf.mxu2 }
 0x2c0   : > { %10837 = vst [vmem:[#allocation34_spill] sm:$0xff] %v7519_v54 }
 0x2c1   : > { %6065 = vmatmul.msk.f32.gmra.mxu0 %vm333_vm1, %v7116_v27  ;;  %v6092_v27 = vld [vmem:[%s10738_s3 + $0x190] sm:$0xff]  ;;  %v7521_v6 = vpop.f32.mrf.mxu1 }
 0x2c2   : > { %2431 = vmatpush.msra.mxu1 %v6092_v27  ;;  %v2394_v27 = vld [vmem:[%s10738_s3 + $0x48] sm:$0xff] }
 0x2c4   : > { %2432 = vmatpush.msra.mxu1 %v6091_v48  ;;  %v2389_v48 = vld [vmem:[%s10738_s3 + $0x20] sm:$0xff] }
 0x2c6   : > { %v7499_v33 = vpop.f32.mrf.mxu0 }
 0x2c7   : > { %10835 = vst [vmem:[#allocation32_spill] sm:$0xff] %v7499_v33  ;;  %v7515_v33 = vpop.f32.mrf.mxu3 }
 0x2c9   : > { %6066 = vmatmul.msk.f32.gmra.mxu0 %vm333_vm1, %v7128_v41  ;;  %v2395_v41 = vld [vmem:[%s10738_s3 + $0x50] sm:$0xff] }
 0x2ca   : > { %2536 = vmatpush.msra.mxu2 %v2395_v41  ;;  %v2392_v41 = vld [vmem:[%s10738_s3 + $0x38] sm:$0xff] }
 0x2cc   : > { %2537 = vmatpush.msra.mxu2 %v2394_v27  ;;  %v2390_v27 = vld [vmem:[%s10738_s3 + $0x28] sm:$0xff] }
 0x2ce   : > { %v7513_v42 = vpop.f32.mrf.mxu0 }
 0x2cf   : > { %10836 = vst [vmem:[#allocation33_spill] sm:$0xff] %v7513_v42  ;;  %v7531_v42 = vpop.f32.mrf.mxu3 }
 0x2d1   : > { %6067 = vmatmul.msk.f32.gmra.mxu0 %vm333_vm1, %v7140_v44  ;;  %v2393_v44 = vld [vmem:[%s10738_s3 + $0x40] sm:$0xff] }
 0x2d2   : > { %2538 = vmatpush.msra.mxu2 %v2393_v44  ;;  %v7554_v44 = vpop.f32.mrf.mxu1 }
 0x2d3   : > { %10841 = vst [vmem:[#allocation38_spill] sm:$0xff] %v7554_v44 }
 0x2d4   : > { %2539 = vmatpush.msra.mxu2 %v2392_v41 }
 0x2d6   : > { %v7523_v63 = vpop.f32.mrf.mxu0 }
 0x2d7   : > { %10838 = vst [vmem:[#allocation35_spill] sm:$0xff] %v7523_v63  ;;  %v7538_v63 = vpop.f32.mrf.mxu2  ;;  %v7561_v41 = vpop.f32.mrf.mxu3 }
 0x2d8   : > { %10839 = vst [vmem:[#allocation36_spill] sm:$0xff] %v7538_v63 }
 0x2d9   : > { %6068 = vmatmul.msk.f32.gmra.mxu0 %vm333_vm1, %v7152_v47  ;;  %v2391_v47 = vld [vmem:[%s10738_s3 + $0x30] sm:$0xff] }
 0x2da   : > { %2540 = vmatpush.msra.mxu2 %v2391_v47 }
 0x2dc   : > { %2541 = vmatpush.msra.mxu2 %v2390_v27  ;;  %v2386_v27 = vld [vmem:[%s10738_s3 + $0x8] sm:$0xff] }
 0x2de   : > { %v7546_v40 = vpop.f32.mrf.mxu0  ;;  %2542 = vmatpush.msra.mxu2 %v2389_v48  ;;  %v7578_v48 = vpop.f32.mrf.mxu1 }
 0x2df   : > { %10840 = vst [vmem:[#allocation37_spill] sm:$0xff] %v7546_v40  ;;  %v2388_v40 = vld [vmem:[%s10738_s3 + $0x18] sm:$0xff]  ;;  %v7566_v63 = vpop.f32.mrf.mxu2  ;;  %v7589_v54 = vpop.f32.mrf.mxu3 }
 0x2e0   : > { %2543 = vmatpush.msra.mxu2 %v2388_v40  ;;  %10842 = vst [vmem:[#allocation39_spill] sm:$0xff] %v7566_v63  ;;  %v2385_v40 = vld [vmem:[%s10738_s3] sm:$0xff] }
 0x2e1   : > { %6069 = vmatmul.msk.f32.gmra.mxu0 %vm333_vm1, %v7164_v50  ;;  %v2387_v50 = vld [vmem:[%s10738_s3 + $0x10] sm:$0xff]  ;;  %10844 = vst [vmem:[#allocation41_spill] sm:$0xff] %v7578_v48  ;;  %v6090_v63 = vld [vmem:[%s10738_s3 + $0x180] sm:$0xff] }
 0x2e2   : > { %2544 = vmatpush.msra.mxu2 %v2387_v50  ;;  %v6121_v50 = vld [vmem:[%s10738_s3 + $0x378] sm:$0xff]  ;;  %2433 = vmatpush.msra.mxu1 %v6090_v63  ;;  %v6118_v48 = vld [vmem:[%s10738_s3 + $0x360] sm:$0xff] }
 0x2e3   : > { %2661 = vmatpush.msra.mxu3 %v6121_v50  ;;  %v6363_v50 = vld [vmem:[#allocation3 + $0x8] sm:$0xff] }
 0x2e4   : > { %2545 = vmatpush.msra.mxu2 %v2386_v27  ;;  %v6120_v27 = vld [vmem:[%s10738_s3 + $0x370] sm:$0xff] }
 0x2e5   : > { %2662 = vmatpush.msra.mxu3 %v6120_v27  ;;  %v6116_v27 = vld [vmem:[%s10738_s3 + $0x350] sm:$0xff] }
 0x2e6   : > { %v7568_v47 = vpop.f32.mrf.mxu0  ;;  %2546 = vmatpush.msra.mxu2 %v2385_v40  ;;  %v6119_v40 = vld [vmem:[%s10738_s3 + $0x368] sm:$0xff]  ;;  %v7606_v63 = vpop.f32.mrf.mxu1 }
 0x2e7   : > { %10843 = vst [vmem:[#allocation40_spill] sm:$0xff] %v7568_v47  ;;  %v2349_v47 = vld [vmem:[#allocation3] sm:$0xff]  ;;  %2663 = vmatpush.msra.mxu3 %v6119_v40  ;;  %v6153_v40 = vld [vmem:[%s10738_s3 + $0x278] sm:$0xff] }
 0x2e8   : > { %2547 = vmatmul.f32.vlgmr.msra.gmra.mxu2 %v2349_v47  ;;  %v7599_v47 = vpop.f32.mrf.mxu2  ;;  %10847 = vst [vmem:[#allocation44_spill] sm:$0xff] %v7606_v63  ;;  %3021 = vmatpush.msrb.mxu1 %v6153_v40 }
 0x2e9   : > { %6070 = vmatmul.msk.f32.gmra.mxu0 %vm333_vm1, %v7176_v53  ;;  %10846 = vst [vmem:[#allocation43_spill] sm:$0xff] %v7599_v47  ;;  %2664 = vmatpush.msra.mxu3 %v6118_v48  ;;  %v6137_v47 = vld [vmem:[%s10738_s3 + $0xf8] sm:$0xff]  ;;  %v6115_v48 = vld [vmem:[%s10738_s3 + $0x348] sm:$0xff] }
 0x2ea   : > { %2859 = vmatpush.msrb.mxu0 %v6137_v47  ;;  %v6113_v47 = vld [vmem:[%s10738_s3 + $0x338] sm:$0xff] }
 0x2ee   : > { %v7591_v53 = vpop.f32.mrf.mxu0  ;;  %v7640_v40 = vpop.f32.mrf.mxu1 }
 0x2ef   : > { %10845 = vst [vmem:[#allocation42_spill] sm:$0xff] %v7591_v53  ;;  %v6117_v53 = vld [vmem:[%s10738_s3 + $0x358] sm:$0xff] }
 0x2f0   : > { %2550 = vmatmul.f32.gmra.mxu2 %v6363_v50  ;;  %2665 = vmatpush.msra.mxu3 %v6117_v53  ;;  %v7625_v53 = vpop.f32.mrf.mxu3  ;;  %v6114_v50 = vld [vmem:[%s10738_s3 + $0x340] sm:$0xff]  ;;  %10851 = vst [vmem:[#allocation48_spill] sm:$0xff] %v7640_v40 }
 0x2f1   : > { %6071 = vmatmul.msk.f32.gmra.mxu0 %vm333_vm1, %v7191_v4  ;;  %10849 = vst [vmem:[#allocation46_spill] sm:$0xff] %v7625_v53 }
 0x2f2   : > { %2666 = vmatpush.msra.mxu3 %v6116_v27  ;;  %v6112_v27 = vld [vmem:[%s10738_s3 + $0x330] sm:$0xff] }
 0x2f4   : > { %2667 = vmatpush.msra.mxu3 %v6115_v48  ;;  %v6110_v48 = vld [vmem:[%s10738_s3 + $0x320] sm:$0xff] }
 0x2f6   : > { %v7617_v4 = vpop.f32.mrf.mxu0  ;;  %2668 = vmatpush.msra.mxu3 %v6114_v50  ;;  %v7677_v40 = vpop.f32.mrf.mxu1 }
 0x2f7   : > { %10848 = vst [vmem:[#allocation45_spill] sm:$0xff] %v7617_v4  ;;  %v7632_v4 = vpop.f32.mrf.mxu2 }
 0x2f8   : > { %10850 = vst [vmem:[#allocation47_spill] sm:$0xff] %v7632_v4  ;;  %2669 = vmatpush.msra.mxu3 %v6113_v47  ;;  %v7650_v50 = vpop.f32.mrf.mxu3  ;;  %v6108_v4 = vld [vmem:[%s10738_s3 + $0x310] sm:$0xff] }
 0x2f9   : > { %6072 = vmatmul.msk.f32.gmra.mxu0 %vm333_vm1, %v7204_v10  ;;  %v6111_v10 = vld [vmem:[%s10738_s3 + $0x328] sm:$0xff]  ;;  %10853 = vst [vmem:[#allocation50_spill] sm:$0xff] %v7650_v50  ;;  %v6106_v50 = vld [vmem:[%s10738_s3 + $0x300] sm:$0xff] }
 0x2fa   : > { %2670 = vmatpush.msra.mxu3 %v6112_v27  ;;  %v7662_v27 = vld [vmem:[%s10737_s2] ss:$0 sm:$0xff] }
 0x2fc   : > { %2671 = vmatpush.msra.mxu3 %v6111_v10 }
 0x2fe   : > { %v7642_v63 = vpop.f32.mrf.mxu0  ;;  %2672 = vmatpush.msra.mxu3 %v6110_v48  ;;  %v6107_v48 = vld [vmem:[%s10738_s3 + $0x308] sm:$0xff] }
 0x2ff   : > { %10852 = vst [vmem:[#allocation49_spill] sm:$0xff] %v7642_v63  ;;  %v7654_v47 = vpop.f32.mrf.mxu2  ;;  %v6109_v63 = vld [vmem:[%s10738_s3 + $0x318] sm:$0xff] }
 0x300   : > { %10854 = vst [vmem:[#allocation51_spill] sm:$0xff] %v7654_v47  ;;  %2673 = vmatpush.msra.mxu3 %v6109_v63  ;;  %v6152_v47 = vld [vmem:[%s10738_s3 + $0x270] sm:$0xff] }
 0x301   : > { %6073 = vmatmul.msk.f32.gmra.mxu0 %vm333_vm1, %v7220_v8  ;;  %v6136_v8 = vld [vmem:[%s10738_s3 + $0xf0] sm:$0xff]  ;;  %3022 = vmatpush.msrb.mxu1 %v6152_v47 }
 0x302   : > { %2860 = vmatpush.msrb.mxu0 %v6136_v8  ;;  %2674 = vmatpush.msra.mxu3 %v6108_v4  ;;  %v7687_v8 = vpop.f32.mrf.mxu3 }
 0x304   : > { %2675 = vmatpush.msra.mxu3 %v6107_v48 }
 0x306   : > { %v2120_v10 = vpop.f32.mrf.mxu0  ;;  %2676 = vmatpush.msra.mxu3 %v6106_v50 }
 0x307   : > { %v2216_v63 = vadd.f32 %v2120_v10, %v7226_v57  ;;  %v7692_v57 = vpop.f32.mrf.mxu2 }
 0x308   : > { %10855 = vst [vmem:[#allocation52_spill] sm:$0xff] %v7692_v57 }
 0x309   : > { %v7683_v53 = vadd.f32 %v7662_v27, %v2216_v63  ;;  %6074 = vmatmul.msk.f32.gmra.mxu0 %vm333_vm1, %v7233_v56  ;;  %v7700_v56 = vpop.f32.mrf.mxu1 }
 0x30a   : > { %v7703_v50 = vpop.f32.mrf.mxu3 }
 0x30b   : > { %v10746_v44 = vmax.f32 %v7683_v53, 0.0 }
 0x30d   : > { %2317 = vst [vmem:[#allocation3 + $0x19] sm:$0xff] %v10746_v44 }
 0x30e   : > { %v2123_v4 = vpop.f32.mrf.mxu0 }
 0x30f   : > { %v2217_v47 = vadd.f32 %v2123_v4, %v7242_v43  ;;  %v6135_v43 = vld [vmem:[%s10738_s3 + $0xe8] sm:$0xff]  ;;  %v7714_v44 = vpop.f32.mrf.mxu2 }
 0x310   : > { %2861 = vmatpush.msrb.mxu0 %v6135_v43  ;;  %10857 = vst [vmem:[#allocation54_spill] sm:$0xff] %v7714_v44 }
 0x311   : > { %v7696_v10 = vadd.f32 %v7662_v27, %v2217_v47  ;;  %6075 = vmatmul.msk.f32.gmra.mxu0 %vm333_vm1, %v7249_v36  ;;  %v6151_v36 = vld [vmem:[%s10738_s3 + $0x268] sm:$0xff] }
 0x312   : > { %3023 = vmatpush.msrb.mxu1 %v6151_v36 }
 0x313   : > { %10856 = vst [vmem:[#allocation53_spill] sm:$0xff] %v7696_v10  ;;  %v10748_v48 = vmax.f32 %v7696_v10, 0.0 }
 0x314   : > { %v2351_v63 = vld [vmem:[#allocation3 + $0x18] sm:$0xff] }
 0x315   : > { %2318 = vst [vmem:[#allocation3 + $0x21] sm:$0xff] %v10748_v48  ;;  %2434 = vmatmul.f32.vlgmr.msra.gmra.mxu1 %v2351_v63  ;;  %2553 = vmatmul.f32.gmra.mxu2 %v2351_v63  ;;  %v7722_v48 = vpop.f32.mrf.mxu1 }
 0x316   : > { %v2126_v4 = vpop.f32.mrf.mxu0 }
 0x317   : > { %v2218_v47 = vadd.f32 %v2126_v4, %v7255_v28  ;;  %v7726_v4 = vpop.f32.mrf.mxu3 }
 0x319   : > { %v7717_v10 = vadd.f32 %v7662_v27, %v2218_v47  ;;  %6076 = vmatmul.msk.f32.gmra.mxu0 %vm333_vm1, %v7262_v14  ;;  %v7734_v14 = vpop.f32.mrf.mxu2 }
 0x31b   : > { %v10749_v63 = vmax.f32 %v7717_v10, 0.0 }
 0x31c   : > { %v2352_v43 = vld [vmem:[#allocation3 + $0x20] sm:$0xff] }
 0x31d   : > { %2319 = vst [vmem:[#allocation3 + $0x31] sm:$0xff] %v10749_v63  ;;  %2437 = vmatmul.f32.gmra.mxu1 %v2352_v43  ;;  %2556 = vmatmul.f32.gmra.mxu2 %v2352_v43  ;;  %v7742_v43 = vpop.f32.mrf.mxu1 }
 0x31e   : > { %v2129_v28 = vpop.f32.mrf.mxu0 }
 0x31f   : > { %v2219_v36 = vadd.f32 %v2129_v28, %v7271_v7  ;;  %v6134_v7 = vld [vmem:[%s10738_s3 + $0xe0] sm:$0xff]  ;;  %v7748_v63 = vpop.f32.mrf.mxu3 }
 0x320   : > { %2862 = vmatpush.msrb.mxu0 %v6134_v7 }
 0x321   : > { %v7730_v47 = vadd.f32 %v7662_v27, %v2219_v36  ;;  %6077 = vmatmul.msk.f32.gmra.mxu0 %vm333_vm1, %v7278_v39  ;;  %v6150_v39 = vld [vmem:[%s10738_s3 + $0x260] sm:$0xff] }
 0x322   : > { %3024 = vmatpush.msrb.mxu1 %v6150_v39 }
 0x323   : > { %10858 = vst [vmem:[#allocation55_spill] sm:$0xff] %v7730_v47  ;;  %v10750_v44 = vmax.f32 %v7730_v47, 0.0 }
 0x324   : > { %v2353_v57 = vld [vmem:[#allocation3 + $0x30] sm:$0xff] }
 0x325   : > { %2320 = vst [vmem:[#allocation3 + $0x39] sm:$0xff] %v10750_v44  ;;  %2440 = vmatmul.f32.gmra.mxu1 %v2353_v57  ;;  %2559 = vmatmul.f32.gmra.mxu2 %v2353_v57  ;;  %v7761_v39 = vpop.f32.mrf.mxu1 }
 0x326   : > { %2677 = vmatmul.f32.vlgmr.msra.gmra.mxu3 %v2353_v57  ;;  %v2132_v28 = vpop.f32.mrf.mxu0  ;;  %v7756_v57 = vpop.f32.mrf.mxu2 }
 0x327   : > { %v2220_v36 = vadd.f32 %v2132_v28, %v7284_v58  ;;  %10860 = vst [vmem:[#allocation57_spill] sm:$0xff] %v7756_v57 }
 0x329   : > { %v7751_v44 = vadd.f32 %v7662_v27, %v2220_v36  ;;  %6078 = vmatmul.msk.f32.gmra.mxu0 %vm333_vm1, %v7291_v34  ;;  %v7768_v34 = vpop.f32.mrf.mxu3 }
 0x32b   : > { %10859 = vst [vmem:[#allocation56_spill] sm:$0xff] %v7751_v44  ;;  %v10754_v47 = vmax.f32 %v7751_v44, 0.0 }
 0x32c   : > { %v2354_v7 = vld [vmem:[#allocation3 + $0x38] sm:$0xff] }
 0x32d   : > { %2321 = vst [vmem:[#allocation3 + $0x49] sm:$0xff] %v10754_v47  ;;  %2443 = vmatmul.f32.gmra.mxu1 %v2354_v7  ;;  %2562 = vmatmul.f32.gmra.mxu2 %v2354_v7  ;;  %v7787_v47 = vpop.f32.mrf.mxu1 }
 0x32e   : > { %2680 = vmatmul.f32.gmra.mxu3 %v2354_v7  ;;  %v2135_v58 = vpop.f32.mrf.mxu0  ;;  %v7776_v7 = vpop.f32.mrf.mxu2 }
 0x32f   : > { %v2221_v28 = vadd.f32 %v2135_v58, %v7300_v37  ;;  %v6133_v37 = vld [vmem:[%s10738_s3 + $0xd8] sm:$0xff]  ;;  %10862 = vst [vmem:[#allocation59_spill] sm:$0xff] %v7776_v7 }
 0x330   : > { %2863 = vmatpush.msrb.mxu0 %v6133_v37 }
 0x331   : > { %v7764_v36 = vadd.f32 %v7662_v27, %v2221_v28  ;;  %6079 = vmatmul.msk.f32.gmra.mxu0 %vm333_vm1, %v7307_v45  ;;  %v6149_v45 = vld [vmem:[%s10738_s3 + $0x258] sm:$0xff]  ;;  %v7792_v7 = vpop.f32.mrf.mxu3 }
 0x332   : > { %3025 = vmatpush.msrb.mxu1 %v6149_v45 }
 0x333   : > { %10861 = vst [vmem:[#allocation58_spill] sm:$0xff] %v7764_v36  ;;  %v10753_v57 = vmax.f32 %v7764_v36, 0.0 }
 0x334   : > { %v2355_v44 = vld [vmem:[#allocation3 + $0x48] sm:$0xff] }
 0x335   : > { %2322 = vst [vmem:[#allocation3 + $0x51] sm:$0xff] %v10753_v57  ;;  %2446 = vmatmul.f32.gmra.mxu1 %v2355_v44  ;;  %2565 = vmatmul.f32.gmra.mxu2 %v2355_v44 }
 0x336   : > { %2683 = vmatmul.f32.gmra.mxu3 %v2355_v44  ;;  %v2138_v58 = vpop.f32.mrf.mxu0  ;;  %v1474_v44 = vadd.f32 %v7315_v20, %v6947_v9  ;;  %v7798_v45 = vpop.f32.mrf.mxu2 }
 0x337   : > { %v2222_v28 = vadd.f32 %v2138_v58, %v7313_v19 }
 0x338   : > { %v1630_v58 = vadd.f32 %v7453_v5, %v1474_v44 }
 0x339   : > { %v7783_v57 = vadd.f32 %v7662_v27, %v2222_v28  ;;  %6080 = vmatmul.msk.f32.gmra.mxu0 %vm333_vm1, %v7321_v55  ;;  %v1475_v28 = vadd.f32 %v7332_v35, %v6956_v24  ;;  %v6148_v24 = vld [vmem:[%s10738_s3 + $0x250] sm:$0xff]  ;;  %v7821_v44 = vpop.f32.mrf.mxu3 }
 0x33a   : > { %v1912_v9 = vadd.f32 %v7435_v26, %v1630_v58  ;;  %v6132_v26 = vld [vmem:[%s10738_s3 + $0xd0] sm:$0xff]  ;;  %3026 = vmatpush.msrb.mxu1 %v6148_v24 }
 0x33b   : > { %v10756_v37 = vmax.f32 %v7783_v57, 0.0  ;;  %2864 = vmatpush.msrb.mxu0 %v6132_v26  ;;  %v1631_v35 = vadd.f32 %v7467_v1, %v1475_v28 }
 0x33c   : > { %v2356_v36 = vld [vmem:[#allocation3 + $0x50] sm:$0xff] }
 0x33d   : > { %2323 = vst [vmem:[#allocation3 + $0x61] sm:$0xff] %v10756_v37  ;;  %2449 = vmatmul.f32.gmra.mxu1 %v2356_v36  ;;  %2568 = vmatmul.f32.gmra.mxu2 %v2356_v36  ;;  %v7809_v37 = vpop.f32.mrf.mxu1 }
 0x33e   : > { %2686 = vmatmul.f32.gmra.mxu3 %v2356_v36  ;;  %v2141_v19 = vpop.f32.mrf.mxu0 }
 0x33f   : > { %v2223_v55 = vadd.f32 %v2141_v19, %v7330_v49  ;;  %v2068_v49 = vadd.f32 %v7484_v21, %v1912_v9  ;;  %v1913_v19 = vadd.f32 %v7449_v23, %v1631_v35  ;;  %v1476_v9 = vadd.f32 %v7344_v12, %v6965_v46 }
 0x341   : > { %v7802_v20 = vadd.f32 %v7662_v27, %v2223_v55  ;;  %6081 = vmatmul.msk.f32.gmra.mxu0 %vm333_vm1, %v7338_v13  ;;  %v7829_v55 = vpop.f32.mrf.mxu2  ;;  %v2069_v28 = vadd.f32 %v7497_v62, %v1913_v19  ;;  %v7841_v46 = vpop.f32.mrf.mxu3  ;;  %v1477_v62 = vadd.f32 %v7359_v38, %v6982_v3  ;;  %v6147_v3 = vld [vmem:[%s10738_s3 + $0x248] sm:$0xff] }
 0x342   : > { %3027 = vmatpush.msrb.mxu1 %v6147_v3 }
 0x343   : > { %v10765_v36 = vmax.f32 %v7802_v20, 0.0  ;;  %v1633_v38 = vadd.f32 %v7495_v32, %v1477_v62  ;;  %v6128_v62 = vld [vmem:[%s10738_s3 + $0xb0] sm:$0xff] }
 0x344   : > { %v2357_v5 = vld [vmem:[#allocation3 + $0x60] sm:$0xff] }
 0x345   : > { %2324 = vst [vmem:[#allocation3 + $0x69] sm:$0xff] %v10765_v36  ;;  %2452 = vmatmul.f32.gmra.mxu1 %v2357_v5  ;;  %2571 = vmatmul.f32.gmra.mxu2 %v2357_v5  ;;  %v7837_v23 = vpop.f32.mrf.mxu1 }
 0x346   : > { %2689 = vmatmul.f32.gmra.mxu3 %v2357_v5  ;;  %v2144_v13 = vpop.f32.mrf.mxu0 }
 0x347   : > { %v2224_v21 = vadd.f32 %v2144_v13, %v2068_v49 }
 0x349   : > { %v7825_v58 = vadd.f32 %v7662_v27, %v2224_v21  ;;  %6082 = vmatmul.msk.f32.gmra.mxu0 %vm333_vm1, %v7350_v51  ;;  %v1632_v51 = vadd.f32 %v7480_v61, %v1476_v9  ;;  %v7851_v35 = vpop.f32.mrf.mxu2  ;;  %v1915_v9 = vadd.f32 %v7473_v31, %v1633_v38  ;;  %v6130_v31 = vld [vmem:[%s10738_s3 + $0xc0] sm:$0xff]  ;;  %v6127_v38 = vld [vmem:[%s10738_s3 + $0xa8] sm:$0xff] }
 0x34b   : > { %v10764_v5 = vmax.f32 %v7825_v58, 0.0  ;;  %v1914_v13 = vadd.f32 %v7462_v22, %v1632_v51  ;;  %v6131_v22 = vld [vmem:[%s10738_s3 + $0xc8] sm:$0xff] }
 0x34c   : > { %v2358_v1 = vld [vmem:[#allocation3 + $0x68] sm:$0xff]  ;;  %2865 = vmatpush.msrb.mxu0 %v6131_v22 }
 0x34d   : > { %2325 = vst [vmem:[#allocation3 + $0x79] sm:$0xff] %v10764_v5  ;;  %2455 = vmatmul.f32.gmra.mxu1 %v2358_v1  ;;  %2574 = vmatmul.f32.gmra.mxu2 %v2358_v1  ;;  %v2070_v61 = vadd.f32 %v7515_v33, %v1914_v13  ;;  %v7863_v33 = vpop.f32.mrf.mxu1 }
 0x34e   : > { %2692 = vmatmul.f32.gmra.mxu3 %v2358_v1  ;;  %v2147_v49 = vpop.f32.mrf.mxu0  ;;  %2866 = vmatpush.msrb.mxu0 %v6130_v31 }
 0x34f   : > { %v2225_v26 = vadd.f32 %v2147_v49, %v2069_v28  ;;  %v1478_v28 = vadd.f32 %v7371_v2, %v6995_v30  ;;  %v7873_v49 = vpop.f32.mrf.mxu3  ;;  %v6129_v30 = vld [vmem:[%s10738_s3 + $0xb8] sm:$0xff] }
 0x350   : > { %2867 = vmatpush.msrb.mxu0 %v6129_v30  ;;  %v1480_v30 = vadd.f32 %v7396_v29, %v7013_v15  ;;  %v6122_v15 = vld [vmem:[%s10738_s3 + $0x80] sm:$0xff] }
 0x351   : > { %v7844_v12 = vadd.f32 %v7662_v27, %v2225_v26  ;;  %6083 = vmatmul.msk.f32.gmra.mxu0 %vm333_vm1, %v7365_v16  ;;  %v2071_v26 = vadd.f32 %v7531_v42, %v1915_v9  ;;  %v7885_v2 = vpop.f32.mrf.mxu2  ;;  %v1634_v42 = vadd.f32 %v7508_v17, %v1478_v28  ;;  %v1479_v17 = vadd.f32 %v7385_v0, %v7004_v60  ;;  %v6126_v60 = vld [vmem:[%s10738_s3 + $0xa0] sm:$0xff]  ;;  %v6125_v28 = vld [vmem:[%s10738_s3 + $0x98] sm:$0xff] }
 0x352   : > { %2868 = vmatpush.msrb.mxu0 %v6128_v62  ;;  %v10863_v62 = vld [vmem:[#allocation38_spill] sm:$0xff] }
 0x353   : > { %v10762_v24 = vmax.f32 %v7844_v12, 0.0 }
 0x354   : > { %v2359_v21 = vld [vmem:[#allocation3 + $0x78] sm:$0xff]  ;;  %2869 = vmatpush.msrb.mxu0 %v6127_v38  ;;  %v10864_v38 = vld [vmem:[#allocation34_spill] sm:$0xff] }
 0x355   : > { %2326 = vst [vmem:[#allocation3 + $0x81] sm:$0xff] %v10762_v24  ;;  %2458 = vmatmul.f32.gmra.mxu1 %v2359_v21  ;;  %2577 = vmatmul.f32.gmra.mxu2 %v2359_v21  ;;  %v7897_v22 = vpop.f32.mrf.mxu1 }
 0x356   : > { %2695 = vmatmul.f32.gmra.mxu3 %v2359_v21  ;;  %v2150_v16 = vpop.f32.mrf.mxu0  ;;  %v1916_v21 = vadd.f32 %v7489_v11, %v1634_v42  ;;  %2870 = vmatpush.msrb.mxu0 %v6126_v60  ;;  %v10865_v60 = vld [vmem:[#allocation23_spill] sm:$0xff] }
 0x357   : > { %v2226_v19 = vadd.f32 %v2150_v16, %v2070_v61 }
 0x358   : > { %v2072_v11 = vadd.f32 %v7561_v41, %v1916_v21  ;;  %v1635_v41 = vadd.f32 %v7521_v6, %v1479_v17  ;;  %v6124_v6 = vld [vmem:[%s10738_s3 + $0x90] sm:$0xff]  ;;  %2871 = vmatpush.msrb.mxu0 %v6125_v28  ;;  %v1636_v21 = vadd.f32 %v10863_v62, %v1480_v30 }
 0x359   : > { %v7867_v1 = vadd.f32 %v7662_v27, %v2226_v19  ;;  %6084 = vmatmul.msk.f32.gmra.mxu0 %vm333_vm1, %v7376_v59  ;;  %v7906_v19 = vpop.f32.mrf.mxu3 }
 0x35a   : > { %2872 = vmatpush.msrb.mxu0 %v6124_v6  ;;  %v10868_v6 = vld [vmem:[#allocation46_spill] sm:$0xff] }
 0x35b   : > { %v10761_v51 = vmax.f32 %v7867_v1, 0.0 }
 0x35c   : > { %v2360_v32 = vld [vmem:[#allocation3 + $0x80] sm:$0xff] }
 0x35d   : > { %2327 = vst [vmem:[#allocation3 + $0x91] sm:$0xff] %v10761_v51  ;;  %2461 = vmatmul.f32.gmra.mxu1 %v2360_v32  ;;  %2580 = vmatmul.f32.gmra.mxu2 %v2360_v32  ;;  %v7934_v42 = vpop.f32.mrf.mxu1 }
 0x35e   : > { %2698 = vmatmul.f32.gmra.mxu3 %v2360_v32  ;;  %v2153_v59 = vpop.f32.mrf.mxu0  ;;  %v7920_v32 = vpop.f32.mrf.mxu2 }
 0x35f   : > { %v2227_v13 = vadd.f32 %v2153_v59, %v2071_v26  ;;  %v1917_v26 = vadd.f32 %v7504_v52, %v1635_v41  ;;  %v6123_v52 = vld [vmem:[%s10738_s3 + $0x88] sm:$0xff]  ;;  %v10867_v41 = vld [vmem:[#allocation22_spill] sm:$0xff] }
 0x360   : > { %2873 = vmatpush.msrb.mxu0 %v6123_v52 }
 0x361   : > { %v7893_v61 = vadd.f32 %v7662_v27, %v2227_v13  ;;  %6085 = vmatmul.msk.f32.gmra.mxu0 %vm333_vm1, %v7390_v25  ;;  %v6146_v25 = vld [vmem:[%s10738_s3 + $0x240] sm:$0xff]  ;;  %v7946_v17 = vpop.f32.mrf.mxu3 }
 0x362   : > { %3028 = vmatpush.msrb.mxu1 %v6146_v25  ;;  %2874 = vmatpush.msrb.mxu0 %v6122_v15  ;;  %v10866_v25 = vld [vmem:[#allocation5_spill] sm:$0xff]  ;;  %v6145_v15 = vld [vmem:[%s10738_s3 + $0x238] sm:$0xff] }
 0x363   : > { %v10760_v16 = vmax.f32 %v7893_v61, 0.0 }
 0x364   : > { %v2361_v3 = vld [vmem:[#allocation3 + $0x90] sm:$0xff]  ;;  %3029 = vmatpush.msrb.mxu1 %v6145_v15 }
 0x365   : > { %2328 = vst [vmem:[#allocation3 + $0x99] sm:$0xff] %v10760_v16  ;;  %2464 = vmatmul.f32.gmra.mxu1 %v2361_v3  ;;  %2583 = vmatmul.f32.gmra.mxu2 %v2361_v3  ;;  %v1689_v15 = vld [vmem:[#allocation2 + $0x1a2] sm:$0xff] }
 0x366   : > { %2701 = vmatmul.f32.gmra.mxu3 %v2361_v3  ;;  %v2156_v0 = vpop.f32.mrf.mxu0 }
 0x367   : > { %v2228_v9 = vadd.f32 %v2156_v0, %v2072_v11  ;;  %v7954_v0 = vpop.f32.mrf.mxu2 }
 0x369   : > { %v7924_v31 = vadd.f32 %v7662_v27, %v2228_v9  ;;  %6086 = vmatmul.msk.f32.gmra.mxu0 %vm333_vm1, %v7401_v18  ;;  %v2073_v18 = vadd.f32 %v7589_v54, %v1917_v26  ;;  %v1918_v54 = vadd.f32 %v10864_v38, %v1636_v21  ;;  %v1481_v9 = vadd.f32 %v10867_v41, %v10866_v25  ;;  %v10871_v25 = vld [vmem:[#allocation6_spill] sm:$0xff]  ;;  %v10872_v41 = vld [vmem:[#allocation24_spill] sm:$0xff] }
 0x36b   : > { %v10758_v59 = vmax.f32 %v7924_v31, 0.0  ;;  %v2074_v30 = vadd.f32 %v10868_v6, %v1918_v54  ;;  %v7969_v54 = vpop.f32.mrf.mxu3 }
 0x36c   : > { %v2362_v13 = vld [vmem:[#allocation3 + $0x98] sm:$0xff] }
 0x36d   : > { %2329 = vst [vmem:[#allocation3 + $0xa9] sm:$0xff] %v10758_v59  ;;  %2467 = vmatmul.f32.gmra.mxu1 %v2362_v13  ;;  %2586 = vmatmul.f32.gmra.mxu2 %v2362_v13 }
 0x36e   : > { %2704 = vmatmul.f32.gmra.mxu3 %v2362_v13  ;;  %v2159_v29 = vpop.f32.mrf.mxu0  ;;  %v7962_v13 = vpop.f32.mrf.mxu1 }
 0x36f   : > { %v2229_v3 = vadd.f32 %v2159_v29, %v2073_v18  ;;  %v1688_v18 = vld [vmem:[#allocation2 + $0x19a] sm:$0xff]  ;;  %v10869_v29 = vld [vmem:[#allocation41_spill] sm:$0xff] }
 0x370   : > { %v1637_v62 = vadd.f32 %v10869_v29, %v1481_v9  ;;  %v10873_v9 = vld [vmem:[#allocation50_spill] sm:$0xff]  ;;  %v10874_v29 = vld [vmem:[#allocation44_spill] sm:$0xff] }
 0x371   : > { %v7950_v11 = vadd.f32 %v7662_v27, %v2229_v3  ;;  %6087 = vmatmul.msk.f32.gmra.mxu0 %vm333_vm1, %v10865_v60  ;;  %v10870_v3 = vld [vmem:[#allocation36_spill] sm:$0xff] }
 0x372   : > { %v1919_v38 = vadd.f32 %v10870_v3, %v1637_v62  ;;  %v10875_v3 = vld [vmem:[#allocation39_spill] sm:$0xff] }
 0x373   : > { %v10757_v28 = vmax.f32 %v7950_v11, 0.0  ;;  %v7993_v16 = vpop.f32.mrf.mxu3 }
 0x374   : > { %v2363_v26 = vld [vmem:[#allocation3 + $0xa8] sm:$0xff] }
 0x375   : > { %2330 = vst [vmem:[#allocation3 + $0xb1] sm:$0xff] %v10757_v28  ;;  %2470 = vmatmul.f32.gmra.mxu1 %v2363_v26  ;;  %2589 = vmatmul.f32.gmra.mxu2 %v2363_v26  ;;  %v7978_v28 = vpop.f32.mrf.mxu2 }
 0x376   : > { %2707 = vmatmul.f32.gmra.mxu3 %v2363_v26  ;;  %v2162_v52 = vpop.f32.mrf.mxu0  ;;  %v1482_v26 = vadd.f32 %v10872_v41, %v10871_v25 }
 0x377   : > { %v2230_v21 = vadd.f32 %v2162_v52, %v2074_v30  ;;  %v2075_v30 = vadd.f32 %v10873_v9, %v1919_v38  ;;  %v10877_v38 = vld [vmem:[#allocation7_spill] sm:$0xff]  ;;  %v10878_v9 = vld [vmem:[#allocation25_spill] sm:$0xff] }
 0x379   : > { %v7972_v60 = vadd.f32 %v7662_v27, %v2230_v21  ;;  %6088 = vmatmul.msk.f32.gmra.mxu0 %vm333_vm1, %v1688_v18  ;;  %v1638_v18 = vadd.f32 %v10874_v29, %v1482_v26  ;;  %v7984_v21 = vpop.f32.mrf.mxu1  ;;  %v6144_v29 = vld [vmem:[%s10738_s3 + $0x230] sm:$0xff] }
 0x37a   : > { %3030 = vmatpush.msrb.mxu1 %v6144_v29  ;;  %v10884_v29 = vld [vmem:[#allocation47_spill] sm:$0xff] }
 0x37b   : > { %v10759_v6 = vmax.f32 %v7972_v60, 0.0  ;;  %v1920_v25 = vadd.f32 %v10875_v3, %v1638_v18  ;;  %v10880_v18 = vld [vmem:[#allocation48_spill] sm:$0xff]  ;;  %v10881_v3 = vld [vmem:[#allocation43_spill] sm:$0xff] }
 0x37c   : > { %v2364_v59 = vld [vmem:[#allocation3 + $0xb0] sm:$0xff] }
 0x37d   : > { %2331 = vst [vmem:[#allocation3 + $0xc1] sm:$0xff] %v10759_v6  ;;  %2473 = vmatmul.f32.gmra.mxu1 %v2364_v59  ;;  %2592 = vmatmul.f32.gmra.mxu2 %v2364_v59  ;;  %v1483_v6 = vadd.f32 %v10878_v9, %v10877_v38  ;;  %v7996_v24 = vpop.f32.mrf.mxu2  ;;  %v2076_v26 = vadd.f32 %v7687_v8, %v1920_v25 }
 0x37e   : > { %2710 = vmatmul.f32.gmra.mxu3 %v2364_v59  ;;  %v2165_v52 = vpop.f32.mrf.mxu0  ;;  %10879 = vst [vmem:[#allocation34_spill] sm:$0xff] %v7996_v24 }
 0x37f   : > { %v2231_v62 = vadd.f32 %v2165_v52, %v2075_v30  ;;  %v6169_v30 = vld [vmem:[%s10738_s3 + $0x3f8] sm:$0xff] }
 0x380   : > { %3183 = vmatpush.msrb.mxu2 %v6169_v30 }
 0x381   : > { %v7988_v41 = vadd.f32 %v7662_v27, %v2231_v62  ;;  %6089 = vmatmul.msk.f32.gmra.mxu0 %vm333_vm1, %v1689_v15  ;;  %v2806_v15 = vld [vmem:[#allocation3 + $0x1] sm:$0xff]  ;;  %v1639_v62 = vadd.f32 %v10880_v18, %v1483_v6  ;;  %v8012_v9 = vpop.f32.mrf.mxu1 }
 0x383   : > { %10876 = vst [vmem:[#allocation38_spill] sm:$0xff] %v7988_v41  ;;  %v10763_v59 = vmax.f32 %v7988_v41, 0.0  ;;  %v1921_v25 = vadd.f32 %v10881_v3, %v1639_v62  ;;  %v8018_v41 = vpop.f32.mrf.mxu3  ;;  %v10887_v3 = vld [vmem:[#allocation27_spill] sm:$0xff] }
 0x384   : > { %v2365_v51 = vld [vmem:[#allocation3 + $0xc0] sm:$0xff] }
 0x385   : > { %2332 = vst [vmem:[#allocation3 + $0xc9] sm:$0xff] %v10763_v59  ;;  %2476 = vmatmul.f32.gmra.mxu1 %v2365_v51  ;;  %2595 = vmatmul.f32.gmra.mxu2 %v2365_v51  ;;  %v10883_v59 = vld [vmem:[#allocation26_spill] sm:$0xff]  ;;  %v2077_v24 = vadd.f32 %v7703_v50, %v1921_v25 }
 0x386   : > { %2713 = vmatmul.f32.gmra.mxu3 %v2365_v51  ;;  %v2168_v52 = vpop.f32.mrf.mxu0  ;;  %v10882_v51 = vld [vmem:[#allocation8_spill] sm:$0xff] }
 0x387   : > { %v2232_v8 = vadd.f32 %v2168_v52, %v2076_v26  ;;  %v1484_v5 = vadd.f32 %v10883_v59, %v10882_v51  ;;  %v8022_v26 = vpop.f32.mrf.mxu2  ;;  %v2807_v52 = vld [vmem:[#allocation3 + $0x9] sm:$0xff] }
 0x389   : > { %v8010_v38 = vadd.f32 %v7662_v27, %v2232_v8  ;;  %2875 = vmatmul.f32.vlgmr.msrb.gmra.mxu0 %v2806_v15  ;;  %v1640_v15 = vadd.f32 %v7677_v40, %v1484_v5  ;;  %v10886_v8 = vld [vmem:[#allocation9_spill] sm:$0xff] }
 0x38a   : > { %v1485_v25 = vadd.f32 %v10887_v3, %v10886_v8  ;;  %v6168_v40 = vld [vmem:[%s10738_s3 + $0x3f0] sm:$0xff]  ;;  %v10890_v8 = vmax.f32 %v7683_v53, 0.0 }
 0x38b   : > { %v10767_v30 = vmax.f32 %v8010_v38, 0.0  ;;  %v1922_v18 = vadd.f32 %v10884_v29, %v1640_v15  ;;  %3184 = vmatpush.msrb.mxu2 %v6168_v40  ;;  %v10892_v40 = vld [vmem:[#allocation28_spill] sm:$0xff] }
 0x38c   : > { %v2366_v36 = vld [vmem:[#allocation3 + $0xc8] sm:$0xff] }
 0x38d   : > { %2333 = vst [vmem:[#allocation3 + $0xd9] sm:$0xff] %v10767_v30  ;;  %2479 = vmatmul.f32.gmra.mxu1 %v2366_v36  ;;  %2598 = vmatmul.f32.gmra.mxu2 %v2366_v36  ;;  %v2078_v30 = vadd.f32 %v7726_v4, %v1922_v18 }
 0x38e   : > { %2716 = vmatmul.f32.gmra.mxu3 %v2366_v36  ;;  %v2171_v6 = vpop.f32.mrf.mxu0 }
 0x38f   : > { %v2233_v59 = vadd.f32 %v2171_v6, %v2077_v24  ;;  %v6143_v24 = vld [vmem:[%s10738_s3 + $0x228] sm:$0xff]  ;;  %v1641_v6 = vadd.f32 %v7700_v56, %v1485_v25 }
 0x390   : > { %3031 = vmatpush.msrb.mxu1 %v6143_v24 }
 0x391   : > { %v8027_v62 = vadd.f32 %v7662_v27, %v2233_v59  ;;  %2878 = vmatmul.f32.gmra.mxu0 %v2807_v52  ;;  %v8044_v52 = vpop.f32.mrf.mxu3  ;;  %v10888_v59 = vld [vmem:[#allocation51_spill] sm:$0xff] }
 0x392   : > { %v8029_v50 = vpop.f32.mrf.mxu1  ;;  %v1923_v29 = vadd.f32 %v10888_v59, %v1641_v6 }
 0x393   : > { %10885 = vst [vmem:[#allocation23_spill] sm:$0xff] %v8029_v50  ;;  %v10768_v36 = vmax.f32 %v8027_v62, 0.0  ;;  %v10898_v50 = vld [vmem:[#allocation29_spill] sm:$0xff] }
 0x394   : > { %v2367_v51 = vld [vmem:[#allocation3 + $0xd8] sm:$0xff] }
 0x395   : > { %2334 = vst [vmem:[#allocation3 + $0xe1] sm:$0xff] %v10768_v36  ;;  %2482 = vmatmul.f32.gmra.mxu1 %v2367_v51  ;;  %2601 = vmatmul.f32.gmra.mxu2 %v2367_v51 }
 0x396   : > { %2719 = vmatmul.f32.gmra.mxu3 %v2367_v51  ;;  %v2174_v5 = vpop.f32.mrf.mxu0  ;;  %v10891_v51 = vld [vmem:[#allocation10_spill] sm:$0xff] }
 0x397   : > { %v2234_v4 = vadd.f32 %v2174_v5, %v2078_v30  ;;  %v1486_v36 = vadd.f32 %v10892_v40, %v10891_v51  ;;  %v2079_v30 = vadd.f32 %v7748_v63, %v1923_v29  ;;  %v10895_v63 = vld [vmem:[#allocation53_spill] sm:$0xff] }
 0x398   : > { %v8046_v15 = vpop.f32.mrf.mxu2  ;;  %v10896_v29 = vmax.f32 %v10895_v63, 0.0 }
 0x399   : > { %v8050_v18 = vadd.f32 %v7662_v27, %v2234_v4  ;;  %2881 = vmatmul.f32.gmra.mxu0 %v10890_v8  ;;  %v1642_v24 = vadd.f32 %v7722_v48, %v1486_v36  ;;  %v10893_v4 = vld [vmem:[#allocation52_spill] sm:$0xff]  ;;  %v8064_v8 = vpop.f32.mrf.mxu3 }
 0x39a   : > { %v2438_v3 = vpop.f32.mrf.mxu1 }
 0x39b   : > { %10889 = vst [vmem:[#allocation5_spill] sm:$0xff] %v8050_v18  ;;  %v10769_v56 = vmax.f32 %v8050_v18, 0.0  ;;  %v1924_v59 = vadd.f32 %v10893_v4, %v1642_v24 }
 0x39c   : > { %v2368_v25 = vld [vmem:[#allocation3 + $0xe0] sm:$0xff] }
 0x39d   : > { %2335 = vst [vmem:[#allocation3 + $0xf1] sm:$0xff] %v10769_v56  ;;  %2485 = vmatmul.f32.gmra.mxu1 %v2368_v25  ;;  %2604 = vmatmul.f32.gmra.mxu2 %v2368_v25  ;;  %v10897_v56 = vld [vmem:[#allocation11_spill] sm:$0xff]  ;;  %v2080_v36 = vadd.f32 %v7768_v34, %v1924_v59 }
 0x39e   : > { %2722 = vmatmul.f32.gmra.mxu3 %v2368_v25  ;;  %v2177_v5 = vpop.f32.mrf.mxu0  ;;  %v1487_v25 = vadd.f32 %v10898_v50, %v10897_v56  ;;  %v6142_v50 = vld [vmem:[%s10738_s3 + $0x220] sm:$0xff] }
 0x39f   : > { %v2235_v53 = vadd.f32 %v2177_v5, %v2079_v30  ;;  %v6167_v30 = vld [vmem:[%s10738_s3 + $0x3e8] sm:$0xff]  ;;  %3032 = vmatpush.msrb.mxu1 %v6142_v50 }
 0x3a0   : > { %v8061_v6 = vpop.f32.mrf.mxu2  ;;  %3185 = vmatpush.msrb.mxu2 %v6167_v30  ;;  %v1643_v56 = vadd.f32 %v7742_v43, %v1487_v25  ;;  %v10902_v30 = vld [vmem:[#allocation12_spill] sm:$0xff] }
 0x3a1   : > { %v8067_v51 = vadd.f32 %v7662_v27, %v2235_v53  ;;  %2884 = vmatmul.f32.gmra.mxu0 %v10896_v29  ;;  %v10899_v53 = vld [vmem:[#allocation54_spill] sm:$0xff]  ;;  %v10901_v29 = vmax.f32 %v7717_v10, 0.0 }
 0x3a2   : > { %v2441_v40 = vpop.f32.mrf.mxu1  ;;  %v1925_v4 = vadd.f32 %v10899_v53, %v1643_v56  ;;  %v2552_v56 = vadd.f32 %v8022_v26, %v2438_v3 }
 0x3a3   : > { %10894 = vst [vmem:[#allocation22_spill] sm:$0xff] %v8067_v51  ;;  %v10771_v18 = vmax.f32 %v8067_v51, 0.0 }
 0x3a4   : > { %v2369_v48 = vld [vmem:[#allocation3 + $0xf0] sm:$0xff] }
 0x3a5   : > { %2336 = vst [vmem:[#allocation3 + $0xf9] sm:$0xff] %v10771_v18  ;;  %2488 = vmatmul.f32.gmra.mxu1 %v2369_v48  ;;  %2607 = vmatmul.f32.gmra.mxu2 %v2369_v48  ;;  %v10903_v18 = vld [vmem:[#allocation30_spill] sm:$0xff] }
 0x3a6   : > { %2725 = vmatmul.f32.gmra.mxu3 %v2369_v48  ;;  %v2180_v5 = vpop.f32.mrf.mxu0  ;;  %v1488_v51 = vadd.f32 %v10903_v18, %v10902_v30 }
 0x3a7   : > { %v2236_v24 = vadd.f32 %v2180_v5, %v2080_v36  ;;  %v2081_v36 = vadd.f32 %v7792_v7, %v1925_v4  ;;  %v10904_v4 = vld [vmem:[#allocation55_spill] sm:$0xff] }
 0x3a8   : > { %v8084_v34 = vpop.f32.mrf.mxu2  ;;  %v1644_v50 = vadd.f32 %v7761_v39, %v1488_v51 }
 0x3a9   : > { %v8088_v59 = vadd.f32 %v7662_v27, %v2236_v24  ;;  %v8090_v63 = vpop.f32.mrf.mxu3  ;;  %2887 = vmatmul.f32.gmra.mxu0 %v10901_v29  ;;  %v10905_v29 = vmax.f32 %v10904_v4, 0.0  ;;  %v10909_v4 = vld [vmem:[#allocation56_spill] sm:$0xff] }
 0x3aa   : > { %10900 = vst [vmem:[#allocation46_spill] sm:$0xff] %v8090_v63  ;;  %v2444_v48 = vpop.f32.mrf.mxu1  ;;  %v1926_v18 = vadd.f32 %v7734_v14, %v1644_v50  ;;  %v10907_v63 = vld [vmem:[#allocation31_spill] sm:$0xff] }
 0x3ab   : > { %v10773_v43 = vmax.f32 %v8088_v59, 0.0  ;;  %v6166_v14 = vld [vmem:[%s10738_s3 + $0x3e0] sm:$0xff] }
 0x3ac   : > { %v2370_v25 = vld [vmem:[#allocation3 + $0xf8] sm:$0xff]  ;;  %v2082_v3 = vadd.f32 %v7821_v44, %v1926_v18  ;;  %3186 = vmatpush.msrb.mxu2 %v6166_v14  ;;  %v2555_v44 = vadd.f32 %v8046_v15, %v2441_v40 }
 0x3ad   : > { %2337 = vst [vmem:[#allocation3 + $0x109] sm:$0xff] %v10773_v43  ;;  %2491 = vmatmul.f32.gmra.mxu1 %v2370_v25  ;;  %2610 = vmatmul.f32.gmra.mxu2 %v2370_v25  ;;  %v10906_v43 = vld [vmem:[#allocation13_spill] sm:$0xff] }
 0x3ae   : > { %2728 = vmatmul.f32.gmra.mxu3 %v2370_v25  ;;  %v2183_v5 = vpop.f32.mrf.mxu0  ;;  %v1489_v39 = vadd.f32 %v10907_v63, %v10906_v43  ;;  %v6141_v63 = vld [vmem:[%s10738_s3 + $0x218] sm:$0xff] }
 0x3af   : > { %v2237_v10 = vadd.f32 %v2183_v5, %v2081_v36  ;;  %3033 = vmatpush.msrb.mxu1 %v6141_v63 }
 0x3b0   : > { %v8102_v24 = vpop.f32.mrf.mxu2  ;;  %v1645_v43 = vadd.f32 %v7787_v47, %v1489_v39  ;;  %v10912_v47 = vld [vmem:[#allocation32_spill] sm:$0xff] }
 0x3b1   : > { %v8106_v53 = vadd.f32 %v7662_v27, %v2237_v10  ;;  %v2681_v7 = vpop.f32.mrf.mxu3  ;;  %2890 = vmatmul.f32.gmra.mxu0 %v10905_v29  ;;  %v10908_v10 = vld [vmem:[#allocation57_spill] sm:$0xff]  ;;  %v10910_v29 = vmax.f32 %v10909_v4, 0.0 }
 0x3b2   : > { %v8110_v30 = vadd.f32 %v2681_v7, %v2552_v56  ;;  %v2447_v25 = vpop.f32.mrf.mxu1  ;;  %v1927_v56 = vadd.f32 %v10908_v10, %v1645_v43 }
 0x3b3   : > { %v10774_v51 = vmax.f32 %v8106_v53, 0.0 }
 0x3b4   : > { %v2371_v26 = vld [vmem:[#allocation3 + $0x108] sm:$0xff]  ;;  %v2083_v40 = vadd.f32 %v7841_v46, %v1927_v56 }
 0x3b5   : > { %2338 = vst [vmem:[#allocation3 + $0x111] sm:$0xff] %v10774_v51  ;;  %2494 = vmatmul.f32.gmra.mxu1 %v2371_v26  ;;  %2613 = vmatmul.f32.gmra.mxu2 %v2371_v26  ;;  %v10911_v51 = vld [vmem:[#allocation14_spill] sm:$0xff] }
 0x3b6   : > { %2731 = vmatmul.f32.gmra.mxu3 %v2371_v26  ;;  %v2186_v36 = vpop.f32.mrf.mxu0  ;;  %v1490_v39 = vadd.f32 %v10912_v47, %v10911_v51  ;;  %v10913_v51 = vld [vmem:[#allocation59_spill] sm:$0xff]  ;;  %v10914_v56 = vld [vmem:[#allocation58_spill] sm:$0xff] }
 0x3b7   : > { %v2238_v5 = vadd.f32 %v2186_v36, %v2082_v3  ;;  %v10915_v4 = vmax.f32 %v10914_v56, 0.0  ;;  %v10918_v56 = vmax.f32 %v7783_v57, 0.0 }
 0x3b8   : > { %v8126_v50 = vpop.f32.mrf.mxu2  ;;  %v1646_v63 = vadd.f32 %v7809_v37, %v1490_v39 }
 0x3b9   : > { %v8130_v18 = vadd.f32 %v7662_v27, %v2238_v5  ;;  %v2684_v7 = vpop.f32.mrf.mxu3  ;;  %2893 = vmatmul.f32.gmra.mxu0 %v10910_v29  ;;  %v2558_v5 = vadd.f32 %v8061_v6, %v2444_v48 }
 0x3ba   : > { %v8134_v26 = vadd.f32 %v2684_v7, %v2555_v44  ;;  %v2450_v14 = vpop.f32.mrf.mxu1  ;;  %v1928_v10 = vadd.f32 %v10913_v51, %v1646_v63 }
 0x3bb   : > { %v10775_v3 = vmax.f32 %v8130_v18, 0.0 }
 0x3bc   : > { %v2372_v15 = vld [vmem:[#allocation3 + $0x110] sm:$0xff]  ;;  %v2084_v48 = vadd.f32 %v7873_v49, %v1928_v10  ;;  %v2561_v49 = vadd.f32 %v8084_v34, %v2447_v25 }
 0x3bd   : > { %2339 = vst [vmem:[#allocation3 + $0x121] sm:$0xff] %v10775_v3  ;;  %2497 = vmatmul.f32.gmra.mxu1 %v2372_v15  ;;  %2616 = vmatmul.f32.gmra.mxu2 %v2372_v15  ;;  %v10917_v3 = vld [vmem:[#allocation33_spill] sm:$0xff] }
 0x3be   : > { %2734 = vmatmul.f32.gmra.mxu3 %v2372_v15  ;;  %v2189_v36 = vpop.f32.mrf.mxu0  ;;  %v10916_v15 = vld [vmem:[#allocation15_spill] sm:$0xff] }
 0x3bf   : > { %v2239_v43 = vadd.f32 %v2189_v36, %v2083_v40  ;;  %v1491_v37 = vadd.f32 %v10917_v3, %v10916_v15  ;;  %v6165_v40 = vld [vmem:[%s10738_s3 + $0x3d8] sm:$0xff]  ;;  %v6140_v3 = vld [vmem:[%s10738_s3 + $0x210] sm:$0xff] }
 0x3c0   : > { %v8144_v44 = vpop.f32.mrf.mxu2  ;;  %3187 = vmatpush.msrb.mxu2 %v6165_v40  ;;  %3034 = vmatpush.msrb.mxu1 %v6140_v3  ;;  %v10920_v40 = vld [vmem:[#allocation35_spill] sm:$0xff] }
 0x3c1   : > { %v8148_v7 = vadd.f32 %v7662_v27, %v2239_v43  ;;  %v2687_v46 = vpop.f32.mrf.mxu3  ;;  %2896 = vmatmul.f32.gmra.mxu0 %v10915_v4  ;;  %v1647_v63 = vadd.f32 %v7837_v23, %v1491_v37 }
 0x3c2   : > { %v8152_v29 = vadd.f32 %v2687_v46, %v2558_v5  ;;  %v2453_v47 = vpop.f32.mrf.mxu1 }
 0x3c3   : > { %v2307_v39 = vmax.f32 %v8148_v7, 0.0  ;;  %v1929_v51 = vadd.f32 %v7798_v45, %v1647_v63  ;;  %v6211_v7 = vld [vmem:[%s10738_s3 + $0x448] sm:$0xff] }
 0x3c4   : > { %v2373_v6 = vld [vmem:[#allocation3 + $0x120] sm:$0xff] }
 0x3c5   : > { %2340 = vst [vmem:[#allocation3 + $0x129] sm:$0xff] %v2307_v39  ;;  %2500 = vmatmul.f32.gmra.mxu1 %v2373_v6  ;;  %2619 = vmatmul.f32.gmra.mxu2 %v2373_v6  ;;  %v2085_v34 = vadd.f32 %v7906_v19, %v1929_v51  ;;  %v10921_v19 = vmax.f32 %v7802_v20, 0.0  ;;  %v6164_v20 = vld [vmem:[%s10738_s3 + $0x3d0] sm:$0xff] }
 0x3c6   : > { %2737 = vmatmul.f32.gmra.mxu3 %v2373_v6  ;;  %v2192_v36 = vpop.f32.mrf.mxu0  ;;  %v10919_v6 = vld [vmem:[#allocation16_spill] sm:$0xff]  ;;  %3188 = vmatpush.msrb.mxu2 %v6164_v20 }
 0x3c7   : > { %v2240_v43 = vadd.f32 %v2192_v36, %v2084_v48  ;;  %v1492_v23 = vadd.f32 %v10920_v40, %v10919_v6  ;;  %v2564_v36 = vadd.f32 %v8102_v24, %v2450_v14  ;;  %v6159_v20 = vld [vmem:[%s10738_s3 + $0x3a8] sm:$0xff] }
 0x3c8   : > { %v8168_v5 = vpop.f32.mrf.mxu2 }
 0x3c9   : > { %v2276_v10 = vadd.f32 %v7662_v27, %v2240_v43  ;;  %v2690_v46 = vpop.f32.mrf.mxu3  ;;  %2899 = vmatmul.f32.gmra.mxu0 %v10918_v56  ;;  %v1648_v57 = vadd.f32 %v7863_v33, %v1492_v23  ;;  %v10923_v56 = vld [vmem:[#allocation37_spill] sm:$0xff]  ;;  %v6139_v23 = vld [vmem:[%s10738_s3 + $0x208] sm:$0xff] }
 0x3ca   : > { %v8174_v4 = vadd.f32 %v2690_v46, %v2561_v49  ;;  %v2456_v15 = vpop.f32.mrf.mxu1  ;;  %v10922_v46 = vld [vmem:[#allocation17_spill] sm:$0xff]  ;;  %3035 = vmatpush.msrb.mxu1 %v6139_v23  ;;  %v8247_v23 = vld [vmem:[%s10737_s2] ss:$0 sm:$0xff] }
 0x3cb   : > { %v8178_v37 = vmax.f32 %v2276_v10, 0.0  ;;  %v1930_v63 = vadd.f32 %v7829_v55, %v1648_v57  ;;  %v1493_v33 = vadd.f32 %v10923_v56, %v10922_v46  ;;  %v6163_v55 = vld [vmem:[%s10738_s3 + $0x3c8] sm:$0xff] }
 0x3cc   : > { %v2374_v48 = vld [vmem:[#allocation3 + $0x128] sm:$0xff]  ;;  %3189 = vmatpush.msrb.mxu2 %v6163_v55  ;;  %v10926_v46 = vld [vmem:[#allocation40_spill] sm:$0xff] }
 0x3cd   : > { %2341 = vst [vmem:[#allocation3 + $0x139] sm:$0xff] %v8178_v37  ;;  %2503 = vmatmul.f32.gmra.mxu1 %v2374_v48  ;;  %2622 = vmatmul.f32.gmra.mxu2 %v2374_v48  ;;  %v2086_v14 = vadd.f32 %v7946_v17, %v1930_v63  ;;  %v1649_v17 = vadd.f32 %v7897_v22, %v1493_v33 }
 0x3ce   : > { %2740 = vmatmul.f32.gmra.mxu3 %v2374_v48  ;;  %v2195_v45 = vpop.f32.mrf.mxu0 }
 0x3cf   : > { %v2241_v25 = vadd.f32 %v2195_v45, %v2085_v34  ;;  %v6162_v34 = vld [vmem:[%s10738_s3 + $0x3c0] sm:$0xff]  ;;  %v2567_v45 = vadd.f32 %v8126_v50, %v2453_v47 }
 0x3d0   : > { %v8184_v3 = vpop.f32.mrf.mxu2  ;;  %3190 = vmatpush.msrb.mxu2 %v6162_v34 }
 0x3d1   : > { %v2277_v43 = vadd.f32 %v7662_v27, %v2241_v25  ;;  %v2693_v49 = vpop.f32.mrf.mxu3  ;;  %2902 = vmatmul.f32.gmra.mxu0 %v10921_v19  ;;  %v1931_v25 = vadd.f32 %v7851_v35, %v1649_v17  ;;  %v10925_v19 = vld [vmem:[#allocation18_spill] sm:$0xff] }
 0x3d2   : > { %v8190_v51 = vadd.f32 %v2693_v49, %v2564_v36  ;;  %v8192_v10 = vpop.f32.mrf.mxu1  ;;  %v1494_v56 = vadd.f32 %v10926_v46, %v10925_v19  ;;  %v6161_v35 = vld [vmem:[%s10738_s3 + $0x3b8] sm:$0xff]  ;;  %v6156_v19 = vld [vmem:[%s10738_s3 + $0x390] sm:$0xff] }
 0x3d3   : > { %v8196_v6 = vmax.f32 %v2277_v43, 0.0  ;;  %v10924_v43 = vmax.f32 %v7825_v58, 0.0  ;;  %v6160_v58 = vld [vmem:[%s10738_s3 + $0x3b0] sm:$0xff]  ;;  %3191 = vmatpush.msrb.mxu2 %v6161_v35 }
 0x3d4   : > { %v2375_v24 = vld [vmem:[#allocation3 + $0x138] sm:$0xff] }
 0x3d5   : > { %2342 = vst [vmem:[#allocation3 + $0x141] sm:$0xff] %v8196_v6  ;;  %2506 = vmatmul.f32.gmra.mxu1 %v2375_v24  ;;  %2625 = vmatmul.f32.gmra.mxu2 %v2375_v24 }
 0x3d6   : > { %2743 = vmatmul.f32.gmra.mxu3 %v2375_v24  ;;  %v2198_v40 = vpop.f32.mrf.mxu0  ;;  %v1650_v24 = vadd.f32 %v7934_v42, %v1494_v56  ;;  %3192 = vmatpush.msrb.mxu2 %v6160_v58  ;;  %v6138_v56 = vld [vmem:[%s10738_s3 + $0x200] sm:$0xff]  ;;  %v2573_v58 = vadd.f32 %v8168_v5, %v8192_v10  ;;  %v6184_v5 = vld [vmem:[%s10738_s3 + $0x170] sm:$0xff] }
 0x3d7   : > { %v2242_v48 = vadd.f32 %v2198_v40, %v2086_v14  ;;  %3036 = vmatpush.msrb.mxu1 %v6138_v56  ;;  %v10932_v10 = vld [vmem:[#allocation45_spill] sm:$0xff] }
 0x3d8   : > { %v8214_v57 = vpop.f32.mrf.mxu2  ;;  %v1932_v40 = vadd.f32 %v7885_v2, %v1650_v24  ;;  %3193 = vmatpush.msrb.mxu2 %v6159_v20  ;;  %v10928_v2 = vld [vmem:[#allocation19_spill] sm:$0xff]  ;;  %v10930_v20 = vmax.f32 %v7867_v1, 0.0 }
 0x3d9   : > { %v2278_v36 = vadd.f32 %v7662_v27, %v2242_v48  ;;  %v2696_v63 = vpop.f32.mrf.mxu3  ;;  %2905 = vmatmul.f32.gmra.mxu0 %v10924_v43  ;;  %v2087_v27 = vadd.f32 %v7969_v54, %v1931_v25  ;;  %v2570_v54 = vadd.f32 %v8144_v44, %v2456_v15  ;;  %v10927_v48 = vmax.f32 %v7844_v12, 0.0  ;;  %v6158_v44 = vld [vmem:[%s10738_s3 + $0x3a0] sm:$0xff]  ;;  %v6157_v12 = vld [vmem:[%s10738_s3 + $0x398] sm:$0xff] }
 0x3da   : > { %v8220_v22 = vadd.f32 %v2696_v63, %v2567_v45  ;;  %v8222_v49 = vpop.f32.mrf.mxu1  ;;  %v10929_v45 = vld [vmem:[#allocation42_spill] sm:$0xff]  ;;  %3194 = vmatpush.msrb.mxu2 %v6158_v44  ;;  %v2088_v43 = vadd.f32 %v7993_v16, %v1932_v40  ;;  %v6155_v16 = vld [vmem:[%s10738_s3 + $0x388] sm:$0xff] }
 0x3db   : > { %v8226_v50 = vmax.f32 %v2278_v36, 0.0  ;;  %v1495_v25 = vadd.f32 %v10929_v45, %v10928_v2  ;;  %v6183_v44 = vld [vmem:[%s10738_s3 + $0x168] sm:$0xff] }
 0x3dc   : > { %v2376_v47 = vld [vmem:[#allocation3 + $0x140] sm:$0xff]  ;;  %3195 = vmatpush.msrb.mxu2 %v6157_v12 }
 0x3dd   : > { %2343 = vst [vmem:[#allocation3 + $0x151] sm:$0xff] %v8226_v50  ;;  %2509 = vmatmul.f32.gmra.mxu1 %v2376_v47  ;;  %2628 = vmatmul.f32.gmra.mxu2 %v2376_v47 }
 0x3de   : > { %2746 = vmatmul.f32.gmra.mxu3 %v2376_v47  ;;  %v2201_v33 = vpop.f32.mrf.mxu0  ;;  %v1651_v47 = vadd.f32 %v7962_v13, %v1495_v25  ;;  %3196 = vmatpush.msrb.mxu2 %v6156_v19  ;;  %v6182_v25 = vld [vmem:[%s10738_s3 + $0x160] sm:$0xff] }
 0x3df   : > { %v2243_v14 = vadd.f32 %v2201_v33, %v2087_v27  ;;  %v6185_v27 = vld [vmem:[%s10738_s3 + $0x178] sm:$0xff] }
 0x3e0   : > { %v8241_v55 = vpop.f32.mrf.mxu2  ;;  %3381 = vmatpush.msrb.mxu3 %v6185_v27  ;;  %v1933_v24 = vadd.f32 %v7920_v32, %v1651_v47  ;;  %3197 = vmatpush.msrb.mxu2 %v6155_v16  ;;  %v10931_v32 = vld [vmem:[#allocation20_spill] sm:$0xff] }
 0x3e1   : > { %v2279_v17 = vadd.f32 %v8247_v23, %v2243_v14  ;;  %v2699_v42 = vpop.f32.mrf.mxu3  ;;  %2908 = vmatmul.f32.gmra.mxu0 %v10927_v48 }
 0x3e2   : > { %v8255_v15 = vadd.f32 %v2699_v42, %v2570_v54  ;;  %v8257_v34 = vpop.f32.mrf.mxu1  ;;  %v6154_v54 = vld [vmem:[%s10738_s3 + $0x380] sm:$0xff]  ;;  %v1496_v42 = vadd.f32 %v10932_v10, %v10931_v32  ;;  %3382 = vmatpush.msrb.mxu3 %v6184_v5  ;;  %v2089_v2 = vadd.f32 %v8018_v41, %v1933_v24  ;;  %v6181_v41 = vld [vmem:[%s10738_s3 + $0x158] sm:$0xff] }
 0x3e3   : > { %v8261_v36 = vmax.f32 %v2279_v17, 0.0  ;;  %3198 = vmatpush.msrb.mxu2 %v6154_v54  ;;  %v6217_v54 = vld [vmem:[%s10738_s3 + $0x478] sm:$0xff] }
 0x3e4   : > { %v2377_v63 = vld [vmem:[#allocation3 + $0x150] sm:$0xff]  ;;  %3383 = vmatpush.msrb.mxu3 %v6183_v44  ;;  %3705 = vmatpush.msra.mxu1 %v6217_v54 }
 0x3e5   : > { %2344 = vst [vmem:[#allocation3 + $0x159] sm:$0xff] %v8261_v36  ;;  %2512 = vmatmul.f32.gmra.mxu1 %v2377_v63  ;;  %2631 = vmatmul.f32.gmra.mxu2 %v2377_v63 }
 0x3e6   : > { %2749 = vmatmul.f32.gmra.mxu3 %v2377_v63  ;;  %v2204_v46 = vpop.f32.mrf.mxu0  ;;  %v1652_v63 = vadd.f32 %v7984_v21, %v1496_v42  ;;  %v6178_v42 = vld [vmem:[%s10738_s3 + $0x140] sm:$0xff] }
 0x3e7   : > { %v2244_v35 = vadd.f32 %v2204_v46, %v2088_v43  ;;  %v2576_v43 = vadd.f32 %v8184_v3, %v8222_v49  ;;  %3384 = vmatpush.msrb.mxu3 %v6182_v25  ;;  %v10934_v3 = vld [vmem:[#allocation21_spill] sm:$0xff] }
 0x3e8   : > { %v8283_v33 = vpop.f32.mrf.mxu2  ;;  %v1934_v46 = vadd.f32 %v7954_v0, %v1652_v63  ;;  %v10935_v49 = vld [vmem:[#allocation49_spill] sm:$0xff]  ;;  %v6201_v0 = vld [vmem:[%s10738_s3 + $0x2f8] sm:$0xff] }
 0x3e9   : > { %v2280_v13 = vadd.f32 %v8247_v23, %v2244_v35  ;;  %v2702_v14 = vpop.f32.mrf.mxu3  ;;  %2911 = vmatmul.f32.gmra.mxu0 %v10930_v20  ;;  %v10933_v35 = vmax.f32 %v7893_v61, 0.0  ;;  %v1497_v27 = vadd.f32 %v10935_v49, %v10934_v3  ;;  %3385 = vmatpush.msrb.mxu3 %v6181_v41  ;;  %v6180_v61 = vld [vmem:[%s10738_s3 + $0x150] sm:$0xff]  ;;  %v6179_v20 = vld [vmem:[%s10738_s3 + $0x148] sm:$0xff] }
 0x3ea   : > { %v8292_v40 = vadd.f32 %v2702_v14, %v2573_v58  ;;  %v8294_v17 = vpop.f32.mrf.mxu1  ;;  %3543 = vmatpush.msra.mxu0 %v6201_v0 }
 0x3eb   : > { %v8301_v48 = vmax.f32 %v2280_v13, 0.0  ;;  %v2090_v13 = vadd.f32 %v8044_v52, %v1934_v46  ;;  %v1653_v5 = vadd.f32 %v8012_v9, %v1497_v27  ;;  %3386 = vmatpush.msrb.mxu3 %v6180_v61  ;;  %v2579_v52 = vadd.f32 %v8214_v57, %v8257_v34  ;;  %v6177_v34 = vld [vmem:[%s10738_s3 + $0x138] sm:$0xff]  ;;  %v6216_v61 = vld [vmem:[%s10738_s3 + $0x470] sm:$0xff] }
 0x3ec   : > { %v2378_v1 = vld [vmem:[#allocation3 + $0x158] sm:$0xff]  ;;  %v2582_v41 = vadd.f32 %v8241_v55, %v8294_v17  ;;  %v6200_v55 = vld [vmem:[%s10738_s3 + $0x2f0] sm:$0xff]  ;;  %3706 = vmatpush.msra.mxu1 %v6216_v61 }
 0x3ed   : > { %2345 = vst [vmem:[#allocation3 + $0x169] sm:$0xff] %v8301_v48  ;;  %2515 = vmatmul.f32.gmra.mxu1 %v2378_v1  ;;  %2634 = vmatmul.f32.gmra.mxu2 %v2378_v1  ;;  %v6370_v61 = vld [vmem:[#allocation3 + $0x51] sm:$0xff] }
 0x3ee   : > { %2752 = vmatmul.f32.gmra.mxu3 %v2378_v1  ;;  %v2207_v45 = vpop.f32.mrf.mxu0  ;;  %v1935_v1 = vadd.f32 %v7978_v28, %v1653_v5  ;;  %3544 = vmatpush.msra.mxu0 %v6200_v55  ;;  %v10938_v5 = vmax.f32 %v7972_v60, 0.0  ;;  %v6170_v60 = vld [vmem:[%s10738_s3 + $0x100] sm:$0xff]  ;;  %v10943_v55 = vmax.f32 %v8010_v38, 0.0 }
 0x3ef   : > { %v2245_v12 = vadd.f32 %v2207_v45, %v2089_v2  ;;  %v10936_v45 = vmax.f32 %v7924_v31, 0.0  ;;  %3387 = vmatpush.msrb.mxu3 %v6179_v20  ;;  %v6172_v20 = vld [vmem:[%s10738_s3 + $0x110] sm:$0xff] }
 0x3f0   : > { %v8314_v19 = vpop.f32.mrf.mxu2  ;;  %v2091_v28 = vadd.f32 %v8064_v8, %v1935_v1  ;;  %v6175_v8 = vld [vmem:[%s10738_s3 + $0x128] sm:$0xff] }
 0x3f1   : > { %v2281_v56 = vadd.f32 %v8247_v23, %v2245_v12  ;;  %v2705_v47 = vpop.f32.mrf.mxu3  ;;  %2914 = vmatmul.f32.gmra.mxu0 %v10933_v35  ;;  %3388 = vmatpush.msrb.mxu3 %v6178_v42  ;;  %v6176_v12 = vld [vmem:[%s10738_s3 + $0x130] sm:$0xff]  ;;  %v10937_v35 = vmax.f32 %v7950_v11, 0.0  ;;  %v8390_v11 = vld [vmem:[#allocation3 + $0x31] sm:$0xff] }
 0x3f2   : > { %v8323_v21 = vadd.f32 %v2705_v47, %v2576_v43  ;;  %v8325_v16 = vpop.f32.mrf.mxu1 }
 0x3f3   : > { %v8329_v58 = vmax.f32 %v2281_v56, 0.0  ;;  %3389 = vmatpush.msrb.mxu3 %v6177_v34 }
 0x3f4   : > { %v2379_v24 = vld [vmem:[#allocation3 + $0x168] sm:$0xff] }
 0x3f5   : > { %2346 = vst [vmem:[#allocation3 + $0x171] sm:$0xff] %v8329_v58  ;;  %2518 = vmatmul.f32.gmra.mxu1 %v2379_v24  ;;  %2637 = vmatmul.f32.gmra.mxu2 %v2379_v24 }
 0x3f6   : > { %2755 = vmatmul.f32.gmra.mxu3 %v2379_v24  ;;  %v2210_v14 = vpop.f32.mrf.mxu0  ;;  %v6173_v24 = vld [vmem:[%s10738_s3 + $0x118] sm:$0xff] }
 0x3f7   : > { %v2246_v32 = vadd.f32 %v2210_v14, %v2090_v13  ;;  %3390 = vmatpush.msrb.mxu3 %v6176_v12  ;;  %v2585_v13 = vadd.f32 %v8283_v33, %v8325_v16  ;;  %v6171_v33 = vld [vmem:[%s10738_s3 + $0x108] sm:$0xff] }
 0x3f8   : > { %v8348_v10 = vpop.f32.mrf.mxu2  ;;  %v6366_v16 = vld [vmem:[#allocation3 + $0x39] sm:$0xff] }
 0x3f9   : > { %v2282_v44 = vadd.f32 %v8247_v23, %v2246_v32  ;;  %v2708_v2 = vpop.f32.mrf.mxu3  ;;  %2917 = vmatmul.f32.gmra.mxu0 %v10936_v45  ;;  %3391 = vmatpush.msrb.mxu3 %v6175_v8  ;;  %v2383_v12 = vld [vmem:[#allocation3 + $0x198] sm:$0xff]  ;;  %v6368_v8 = vld [vmem:[#allocation3 + $0x49] sm:$0xff] }
 0x3fa   : > { %v8357_v9 = vadd.f32 %v2708_v2, %v2579_v52  ;;  %v2474_v25 = vpop.f32.mrf.mxu1 }
 0x3fb   : > { %v8359_v63 = vmax.f32 %v2282_v44, 0.0  ;;  %v2588_v44 = vadd.f32 %v8314_v19, %v2474_v25  ;;  %v6215_v25 = vld [vmem:[%s10738_s3 + $0x468] sm:$0xff] }
 0x3fc   : > { %v2380_v57 = vld [vmem:[#allocation3 + $0x170] sm:$0xff]  ;;  %3707 = vmatpush.msra.mxu1 %v6215_v25 }
 0x3fd   : > { %2347 = vst [vmem:[#allocation3 + $0x181] sm:$0xff] %v8359_v63  ;;  %2521 = vmatmul.f32.gmra.mxu1 %v2380_v57  ;;  %2640 = vmatmul.f32.gmra.mxu2 %v2380_v57  ;;  %v6373_v25 = vld [vmem:[#allocation3 + $0x69] sm:$0xff] }
 0x3fe   : > { %2758 = vmatmul.f32.gmra.mxu3 %v2380_v57  ;;  %v2213_v31 = vpop.f32.mrf.mxu0  ;;  %v10940_v57 = vld [vmem:[#allocation38_spill] sm:$0xff] }
 0x3ff   : > { %v2247_v43 = vadd.f32 %v2213_v31, %v2091_v28  ;;  %v10941_v34 = vmax.f32 %v10940_v57, 0.0 }
 0x400   : > { %v8371_v46 = vpop.f32.mrf.mxu2 }
 0x401   : > { %v2283_v56 = vadd.f32 %v8247_v23, %v2247_v43  ;;  %v2711_v47 = vpop.f32.mrf.mxu3  ;;  %2920 = vmatmul.f32.gmra.mxu0 %v10937_v35  ;;  %v6174_v23 = vld [vmem:[%s10738_s3 + $0x120] sm:$0xff]  ;;  %v6199_v43 = vld [vmem:[%s10738_s3 + $0x2e8] sm:$0xff] }
 0x402   : > { %v8379_v3 = vadd.f32 %v2711_v47, %v2582_v41  ;;  %v2477_v49 = vpop.f32.mrf.mxu1  ;;  %3392 = vmatpush.msrb.mxu3 %v6174_v23  ;;  %3545 = vmatpush.msra.mxu0 %v6199_v43  ;;  %v6367_v41 = vld [vmem:[#allocation3 + $0x19] sm:$0xff] }
 0x403   : > { %v8381_v27 = vmax.f32 %v2283_v56, 0.0  ;;  %v2591_v56 = vadd.f32 %v8348_v10, %v2477_v49  ;;  %v10945_v49 = vmax.f32 %v8027_v62, 0.0  ;;  %v6214_v62 = vld [vmem:[%s10738_s3 + $0x460] sm:$0xff] }
 0x404   : > { %v2381_v17 = vld [vmem:[#allocation3 + $0x180] sm:$0xff]  ;;  %3393 = vmatpush.msrb.mxu3 %v6173_v24  ;;  %3708 = vmatpush.msra.mxu1 %v6214_v62 }
 0x405   : > { %2348 = vst [vmem:[#allocation3 + $0x189] sm:$0xff] %v8381_v27  ;;  %2524 = vmatmul.f32.gmra.mxu1 %v2381_v17  ;;  %3199 = vmatmul.f32.vlgmr.msrb.gmra.mxu2 %v8390_v11  ;;  %v6369_v24 = vld [vmem:[#allocation3 + $0x21] sm:$0xff] }
 0x406   : > { %2761 = vmatmul.f32.gmra.mxu3 %v2381_v17  ;;  %v8393_v0 = vpop.f32.mrf.mxu0 }
 0x407   : > { %3394 = vmatpush.msrb.mxu3 %v6172_v20 }
 0x408   : > { %v8403_v14 = vpop.f32.mrf.mxu2 }
 0x409   : > { %v2714_v54 = vpop.f32.mrf.mxu3  ;;  %2923 = vmatmul.f32.gmra.mxu0 %v10938_v5  ;;  %3395 = vmatpush.msrb.mxu3 %v6171_v33  ;;  %v3328_v33 = vld [vmem:[#allocation3 + $0x2] sm:$0xff] }
 0x40a   : > { %v8410_v32 = vadd.f32 %v2714_v54, %v2585_v13  ;;  %v2480_v52 = vpop.f32.mrf.mxu1  ;;  %v6371_v13 = vld [vmem:[#allocation3 + $0x8] sm:$0xff] }
 0x40b   : > { %3396 = vmatpush.msrb.mxu3 %v6170_v60  ;;  %v2594_v54 = vadd.f32 %v8371_v46, %v2480_v52  ;;  %v6198_v60 = vld [vmem:[%s10738_s3 + $0x2e0] sm:$0xff] }
 0x40c   : > { %10939 = vst [vmem:[#allocation41_spill] sm:$0xff] %v8410_v32  ;;  %v2382_v42 = vld [vmem:[#allocation3 + $0x188] sm:$0xff]  ;;  %3546 = vmatpush.msra.mxu0 %v6198_v60  ;;  %v8649_v32 = vld [vmem:[#allocation3 + $0xf9] sm:$0xff] }
 0x40d   : > { %2527 = vmatmul.f32.gmra.mxu1 %v2382_v42  ;;  %3202 = vmatmul.f32.gmra.mxu2 %v6366_v16 }
 0x40e   : > { %2764 = vmatmul.f32.gmra.mxu3 %v2382_v42  ;;  %v8415_v1 = vpop.f32.mrf.mxu0 }
 0x410   : > { %v2599_v2 = vpop.f32.mrf.mxu2 }
 0x411   : > { %v2717_v45 = vpop.f32.mrf.mxu3  ;;  %2926 = vmatmul.f32.gmra.mxu0 %v10941_v34  ;;  %v10947_v34 = vld [vmem:[#allocation5_spill] sm:$0xff] }
 0x412   : > { %v8423_v28 = vadd.f32 %v2717_v45, %v2588_v44  ;;  %v2483_v31 = vpop.f32.mrf.mxu1  ;;  %v6372_v44 = vld [vmem:[#allocation3 + $0x61] sm:$0xff] }
 0x413   : > { %v2597_v52 = vadd.f32 %v8403_v14, %v2483_v31 }
 0x414   : > { %10942 = vst [vmem:[#allocation36_spill] sm:$0xff] %v8423_v28  ;;  %v10974_v28 = vld [vmem:[#allocation34_spill] sm:$0xff] }
 0x415   : > { %3037 = vmatmul.f32.vlgmr.msrb.gmra.mxu1 %v6367_v41  ;;  %3205 = vmatmul.f32.gmra.mxu2 %v6368_v8  ;;  %v3329_v41 = vld [vmem:[#allocation3 + $0xa] sm:$0xff] }
 0x416   : > { %2767 = vmatmul.f32.gmra.mxu3 %v2383_v12  ;;  %v8428_v19 = vpop.f32.mrf.mxu0  ;;  %v10948_v12 = vmax.f32 %v10947_v34, 0.0  ;;  %v6375_v34 = vld [vmem:[#allocation3 + $0x81] sm:$0xff] }
 0x418   : > { %v2602_v47 = vpop.f32.mrf.mxu2 }
 0x419   : > { %v2720_v35 = vpop.f32.mrf.mxu3  ;;  %2929 = vmatmul.f32.gmra.mxu0 %v10943_v55 }
 0x41a   : > { %v8436_v17 = vadd.f32 %v2720_v35, %v2591_v56  ;;  %v2486_v23 = vpop.f32.mrf.mxu1 }
 0x41b   : > { %v2600_v35 = vadd.f32 %v2599_v2, %v2486_v23  ;;  %v6213_v23 = vld [vmem:[%s10738_s3 + $0x458] sm:$0xff] }
 0x41c   : > { %10944 = vst [vmem:[#allocation6_spill] sm:$0xff] %v8436_v17  ;;  %3709 = vmatpush.msra.mxu1 %v6213_v23  ;;  %v8619_v17 = vld [vmem:[#allocation3 + $0x82] sm:$0xff] }
 0x41d   : > { %3040 = vmatmul.f32.gmra.mxu1 %v6369_v24  ;;  %3208 = vmatmul.f32.gmra.mxu2 %v6370_v61 }
 0x41e   : > { %2770 = vmatmul.f32.gmra.mxu3 %v6371_v13  ;;  %v8438_v20 = vpop.f32.mrf.mxu0  ;;  %v10950_v13 = vld [vmem:[#allocation22_spill] sm:$0xff] }
 0x41f   : > { %v10951_v14 = vmax.f32 %v10950_v13, 0.0 }
 0x420   : > { %v2605_v5 = vpop.f32.mrf.mxu2 }
 0x421   : > { %v2723_v10 = vpop.f32.mrf.mxu3  ;;  %2932 = vmatmul.f32.gmra.mxu0 %v10945_v49  ;;  %v8468_v49 = vld [vmem:[#allocation3 + $0x1a] sm:$0xff] }
 0x422   : > { %v8443_v38 = vadd.f32 %v2723_v10, %v2594_v54  ;;  %v2489_v42 = vpop.f32.mrf.mxu1  ;;  %v6197_v10 = vld [vmem:[%s10738_s3 + $0x2d8] sm:$0xff] }
 0x423   : > { %3547 = vmatpush.msra.mxu0 %v6197_v10  ;;  %v8495_v10 = vld [vmem:[#allocation3 + $0x32] sm:$0xff] }
 0x424   : > { %10946 = vst [vmem:[#allocation24_spill] sm:$0xff] %v8443_v38  ;;  %v6383_v38 = vld [vmem:[#allocation3 + $0xe1] sm:$0xff] }
 0x425   : > { %3043 = vmatmul.f32.gmra.mxu1 %v8390_v11  ;;  %3211 = vmatmul.f32.gmra.mxu2 %v6372_v44 }
 0x426   : > { %3397 = vmatmul.f32.vlgmr.msrb.gmra.mxu3 %v3328_v33  ;;  %v8449_v46 = vpop.f32.mrf.mxu0  ;;  %v2603_v33 = vadd.f32 %v2602_v47, %v2489_v42  ;;  %v10955_v42 = vmax.f32 %v8106_v53, 0.0  ;;  %v6212_v53 = vld [vmem:[%s10738_s3 + $0x450] sm:$0xff] }
 0x427   : > { %3710 = vmatpush.msra.mxu1 %v6212_v53  ;;  %v6195_v53 = vld [vmem:[%s10738_s3 + $0x2c8] sm:$0xff] }
 0x428   : > { %v2608_v45 = vpop.f32.mrf.mxu2 }
 0x429   : > { %v2726_v57 = vpop.f32.mrf.mxu3  ;;  %2935 = vmatmul.f32.gmra.mxu0 %v10948_v12  ;;  %v8480_v12 = vld [vmem:[#allocation3 + $0x22] sm:$0xff]  ;;  %3711 = vmatpush.msra.mxu1 %v6211_v7  ;;  %v8548_v7 = vld [vmem:[#allocation3 + $0xb1] sm:$0xff] }
 0x42a   : > { %v8457_v43 = vadd.f32 %v2726_v57, %v2597_v52  ;;  %v2492_v11 = vpop.f32.mrf.mxu1  ;;  %v10953_v52 = vmax.f32 %v8088_v59, 0.0 }
 0x42c   : > { %10949 = vst [vmem:[#allocation50_spill] sm:$0xff] %v8457_v43  ;;  %v8596_v43 = vld [vmem:[#allocation3 + $0x6a] sm:$0xff] }
 0x42d   : > { %3046 = vmatmul.f32.gmra.mxu1 %v6366_v16  ;;  %3214 = vmatmul.f32.gmra.mxu2 %v6373_v25  ;;  %v6374_v16 = vld [vmem:[#allocation3 + $0x79] sm:$0xff] }
 0x42e   : > { %3400 = vmatmul.f32.gmra.mxu3 %v3329_v41  ;;  %v8459_v56 = vpop.f32.mrf.mxu0 }
 0x430   : > { %v2611_v55 = vpop.f32.mrf.mxu2 }
 0x431   : > { %v2729_v24 = vpop.f32.mrf.mxu3  ;;  %2938 = vmatmul.f32.gmra.mxu0 %v10951_v14  ;;  %v8492_v14 = vld [vmem:[#allocation3 + $0x91] sm:$0xff] }
 0x432   : > { %v8463_v31 = vadd.f32 %v2729_v24, %v2600_v35  ;;  %v2495_v54 = vpop.f32.mrf.mxu1  ;;  %v2606_v35 = vadd.f32 %v2605_v5, %v2492_v11 }
 0x433   : > { %v2609_v11 = vadd.f32 %v2608_v45, %v2495_v54 }
 0x434   : > { %10952 = vst [vmem:[#allocation44_spill] sm:$0xff] %v8463_v31 }
 0x435   : > { %3049 = vmatmul.f32.gmra.mxu1 %v6368_v8  ;;  %3217 = vmatmul.f32.gmra.mxu2 %v6374_v16 }
 0x436   : > { %3403 = vmatmul.f32.gmra.mxu3 %v8468_v49  ;;  %v8471_v2 = vpop.f32.mrf.mxu0 }
 0x438   : > { %v2614_v60 = vpop.f32.mrf.mxu2 }
 0x439   : > { %v2732_v62 = vpop.f32.mrf.mxu3  ;;  %2941 = vmatmul.f32.gmra.mxu0 %v10953_v52 }
 0x43a   : > { %v8478_v8 = vadd.f32 %v2732_v62, %v2603_v33  ;;  %v2498_v57 = vpop.f32.mrf.mxu1 }
 0x43b   : > { %v2612_v45 = vadd.f32 %v2611_v55, %v2498_v57  ;;  %v8529_v55 = vld [vmem:[#allocation3 + $0x4a] sm:$0xff] }
 0x43c   : > { %10954 = vst [vmem:[#allocation39_spill] sm:$0xff] %v8478_v8 }
 0x43d   : > { %3052 = vmatmul.f32.gmra.mxu1 %v6370_v61  ;;  %3220 = vmatmul.f32.gmra.mxu2 %v6375_v34  ;;  %v6196_v61 = vld [vmem:[%s10738_s3 + $0x2d0] sm:$0xff] }
 0x43e   : > { %3406 = vmatmul.f32.gmra.mxu3 %v8480_v12  ;;  %v8483_v41 = vpop.f32.mrf.mxu0  ;;  %3548 = vmatpush.msra.mxu0 %v6196_v61 }
 0x440   : > { %v2617_v24 = vpop.f32.mrf.mxu2  ;;  %3549 = vmatpush.msra.mxu0 %v6195_v53  ;;  %v6193_v53 = vld [vmem:[%s10738_s3 + $0x2b8] sm:$0xff] }
 0x441   : > { %v2735_v47 = vpop.f32.mrf.mxu3  ;;  %2944 = vmatmul.f32.gmra.mxu0 %v10955_v42 }
 0x442   : > { %v8487_v59 = vadd.f32 %v2735_v47, %v2606_v35  ;;  %v2501_v13 = vpop.f32.mrf.mxu1  ;;  %v8509_v35 = vld [vmem:[#allocation3 + $0x99] sm:$0xff] }
 0x443   : > { %v8512_v47 = vld [vmem:[#allocation3 + $0x3a] sm:$0xff] }
 0x444   : > { %10956 = vst [vmem:[#allocation7_spill] sm:$0xff] %v8487_v59  ;;  %v6190_v59 = vld [vmem:[%s10738_s3 + $0x2a0] sm:$0xff] }
 0x445   : > { %3055 = vmatmul.f32.gmra.mxu1 %v6372_v44  ;;  %3223 = vmatmul.f32.gmra.mxu2 %v8492_v14  ;;  %v10957_v44 = vmax.f32 %v8130_v18, 0.0 }
 0x446   : > { %3409 = vmatmul.f32.gmra.mxu3 %v8495_v10  ;;  %v8498_v5 = vpop.f32.mrf.mxu0 }
 0x448   : > { %v8503_v23 = vpop.f32.mrf.mxu2 }
 0x449   : > { %v2738_v33 = vpop.f32.mrf.mxu3  ;;  %2947 = vmatmul.f32.gmra.mxu0 %v10957_v44 }
 0x44a   : > { %v8507_v62 = vadd.f32 %v2738_v33, %v2609_v11  ;;  %v2504_v52 = vpop.f32.mrf.mxu1  ;;  %v8526_v11 = vld [vmem:[#allocation3 + $0xa9] sm:$0xff] }
 0x44c   : > { %10958 = vst [vmem:[#allocation25_spill] sm:$0xff] %v8507_v62 }
 0x44d   : > { %3058 = vmatmul.f32.gmra.mxu1 %v6373_v25  ;;  %3226 = vmatmul.f32.gmra.mxu2 %v8509_v35 }
 0x44e   : > { %3412 = vmatmul.f32.gmra.mxu3 %v8512_v47  ;;  %v8515_v42 = vpop.f32.mrf.mxu0 }
 0x450   : > { %v8517_v54 = vpop.f32.mrf.mxu2 }
 0x451   : > { %v2741_v61 = vpop.f32.mrf.mxu3  ;;  %2950 = vmatmul.f32.gmra.mxu0 %v2307_v39  ;;  %v2615_v39 = vadd.f32 %v2614_v60, %v2501_v13  ;;  %v8551_v60 = vld [vmem:[#allocation3 + $0x52] sm:$0xff]  ;;  %v6192_v13 = vld [vmem:[%s10738_s3 + $0x2b0] sm:$0xff] }
 0x452   : > { %v8521_v18 = vadd.f32 %v2741_v61, %v2612_v45  ;;  %v2507_v25 = vpop.f32.mrf.mxu1  ;;  %v6194_v61 = vld [vmem:[%s10738_s3 + $0x2c0] sm:$0xff] }
 0x453   : > { %3550 = vmatpush.msra.mxu0 %v6194_v61 }
 0x454   : > { %10959 = vst [vmem:[#allocation48_spill] sm:$0xff] %v8521_v18 }
 0x455   : > { %3061 = vmatmul.f32.gmra.mxu1 %v6374_v16  ;;  %3229 = vmatmul.f32.gmra.mxu2 %v8526_v11 }
 0x456   : > { %3415 = vmatmul.f32.gmra.mxu3 %v8529_v55  ;;  %v8532_v57 = vpop.f32.mrf.mxu0  ;;  %3551 = vmatpush.msra.mxu0 %v6193_v53  ;;  %v6189_v53 = vld [vmem:[%s10738_s3 + $0x298] sm:$0xff] }
 0x458   : > { %v8537_v33 = vpop.f32.mrf.mxu2  ;;  %3552 = vmatpush.msra.mxu0 %v6192_v13 }
 0x459   : > { %v2744_v44 = vpop.f32.mrf.mxu3  ;;  %2953 = vmatmul.f32.gmra.mxu0 %v8178_v37 }
 0x45a   : > { %v8540_v16 = vadd.f32 %v2744_v44, %v2615_v39  ;;  %v2510_v45 = vpop.f32.mrf.mxu1  ;;  %v6191_v44 = vld [vmem:[%s10738_s3 + $0x2a8] sm:$0xff] }
 0x45b   : > { %3553 = vmatpush.msra.mxu0 %v6191_v44  ;;  %v6210_v44 = vld [vmem:[%s10738_s3 + $0x440] sm:$0xff] }
 0x45c   : > { %10960 = vst [vmem:[#allocation43_spill] sm:$0xff] %v8540_v16  ;;  %3712 = vmatpush.msra.mxu1 %v6210_v44  ;;  %v6381_v44 = vld [vmem:[#allocation3 + $0xc9] sm:$0xff] }
 0x45d   : > { %3064 = vmatmul.f32.gmra.mxu1 %v6375_v34  ;;  %3232 = vmatmul.f32.gmra.mxu2 %v8548_v7  ;;  %v2618_v34 = vadd.f32 %v2617_v24, %v2504_v52  ;;  %v6380_v24 = vld [vmem:[#allocation3 + $0xc1] sm:$0xff] }
 0x45e   : > { %3418 = vmatmul.f32.gmra.mxu3 %v8551_v60  ;;  %v8557_v39 = vpop.f32.mrf.mxu0  ;;  %3554 = vmatpush.msra.mxu0 %v6190_v59  ;;  %v8574_v52 = vld [vmem:[#allocation3 + $0x62] sm:$0xff]  ;;  %v6187_v59 = vld [vmem:[%s10738_s3 + $0x288] sm:$0xff] }
 0x45f   : > { %10961 = vst [vmem:[#allocation8_spill] sm:$0xff] %v8557_v39 }
 0x460   : > { %v8562_v61 = vpop.f32.mrf.mxu2  ;;  %3555 = vmatpush.msra.mxu0 %v6189_v53  ;;  %v6186_v53 = vld [vmem:[%s10738_s3 + $0x280] sm:$0xff] }
 0x461   : > { %v2747_v16 = vpop.f32.mrf.mxu3  ;;  %2956 = vmatmul.f32.gmra.mxu0 %v8196_v6 }
 0x462   : > { %v8565_v18 = vadd.f32 %v2747_v16, %v2618_v34  ;;  %v2513_v62 = vpop.f32.mrf.mxu1  ;;  %v6188_v16 = vld [vmem:[%s10738_s3 + $0x290] sm:$0xff] }
 0x463   : > { %3556 = vmatpush.msra.mxu0 %v6188_v16 }
 0x464   : > { %10962 = vst [vmem:[#allocation26_spill] sm:$0xff] %v8565_v18 }
 0x465   : > { %3067 = vmatmul.f32.gmra.mxu1 %v8492_v14  ;;  %3235 = vmatmul.f32.gmra.mxu2 %v6380_v24  ;;  %v2621_v14 = vadd.f32 %v8503_v23, %v2507_v25 }
 0x466   : > { %3421 = vmatmul.f32.gmra.mxu3 %v8574_v52  ;;  %v8580_v13 = vpop.f32.mrf.mxu0  ;;  %3557 = vmatpush.msra.mxu0 %v6187_v59 }
 0x467   : > { %10963 = vst [vmem:[#allocation47_spill] sm:$0xff] %v8580_v13 }
 0x468   : > { %v2632_v34 = vpop.f32.mrf.mxu2  ;;  %3558 = vmatpush.msra.mxu0 %v6186_v53  ;;  %v8606_v53 = vld [vmem:[#allocation3 + $0x7a] sm:$0xff] }
 0x469   : > { %v2750_v18 = vpop.f32.mrf.mxu3  ;;  %2959 = vmatmul.f32.gmra.mxu0 %v8226_v50 }
 0x46a   : > { %v8590_v8 = vadd.f32 %v2750_v18, %v2621_v14  ;;  %v2516_v31 = vpop.f32.mrf.mxu1  ;;  %v2624_v18 = vadd.f32 %v8517_v54, %v2510_v45  ;;  %v6209_v54 = vld [vmem:[%s10738_s3 + $0x438] sm:$0xff]  ;;  %v2627_v45 = vadd.f32 %v8537_v33, %v2513_v62 }
 0x46b   : > { %3713 = vmatpush.msra.mxu1 %v6209_v54  ;;  %v2630_v54 = vadd.f32 %v8562_v61, %v2516_v31  ;;  %v6208_v61 = vld [vmem:[%s10738_s3 + $0x430] sm:$0xff] }
 0x46c   : > { %10964 = vst [vmem:[#allocation9_spill] sm:$0xff] %v8590_v8 }
 0x46d   : > { %3070 = vmatmul.f32.gmra.mxu1 %v8509_v35  ;;  %3238 = vmatmul.f32.gmra.mxu2 %v6381_v44  ;;  %v6382_v35 = vld [vmem:[#allocation3 + $0xd9] sm:$0xff] }
 0x46e   : > { %3424 = vmatmul.f32.gmra.mxu3 %v8596_v43  ;;  %v8599_v23 = vpop.f32.mrf.mxu0  ;;  %3714 = vmatpush.msra.mxu1 %v6208_v61 }
 0x46f   : > { %10965 = vst [vmem:[#allocation27_spill] sm:$0xff] %v8599_v23  ;;  %v10973_v23 = vld [vmem:[#allocation23_spill] sm:$0xff] }
 0x470   : > { %v2635_v25 = vpop.f32.mrf.mxu2  ;;  %v2549_v13 = vadd.f32 %v10974_v28, %v10973_v23  ;;  %v6232_v23 = vld [vmem:[%s10740_s5 + $0x1f0] sm:$0xff] }
 0x471   : > { %v2753_v16 = vpop.f32.mrf.mxu3  ;;  %2962 = vmatmul.f32.gmra.mxu0 %v8261_v36 }
 0x472   : > { %v8603_v59 = vadd.f32 %v2753_v16, %v2624_v18  ;;  %v2519_v14 = vpop.f32.mrf.mxu1 }
 0x474   : > { %10966 = vst [vmem:[#allocation51_spill] sm:$0xff] %v8603_v59 }
 0x475   : > { %3073 = vmatmul.f32.gmra.mxu1 %v8526_v11  ;;  %3241 = vmatmul.f32.gmra.mxu2 %v6382_v35 }
 0x476   : > { %3427 = vmatmul.f32.gmra.mxu3 %v8606_v53  ;;  %v8609_v8 = vpop.f32.mrf.mxu0 }
 0x477   : > { %10967 = vst [vmem:[#allocation10_spill] sm:$0xff] %v8609_v8 }
 0x478   : > { %v2638_v18 = vpop.f32.mrf.mxu2 }
 0x479   : > { %v2756_v16 = vpop.f32.mrf.mxu3  ;;  %2965 = vmatmul.f32.gmra.mxu0 %v8301_v48 }
 0x47a   : > { %v8616_v11 = vadd.f32 %v2756_v16, %v2627_v45  ;;  %v2522_v59 = vpop.f32.mrf.mxu1 }
 0x47c   : > { %10968 = vst [vmem:[#allocation28_spill] sm:$0xff] %v8616_v11  ;;  %v8633_v11 = vld [vmem:[#allocation3 + $0xf1] sm:$0xff] }
 0x47d   : > { %3076 = vmatmul.f32.gmra.mxu1 %v8548_v7  ;;  %3244 = vmatmul.f32.gmra.mxu2 %v6383_v38  ;;  %v6233_v7 = vld [vmem:[%s10740_s5 + $0x1f8] sm:$0xff] }
 0x47e   : > { %3430 = vmatmul.f32.gmra.mxu3 %v8619_v17  ;;  %v8622_v8 = vpop.f32.mrf.mxu0  ;;  %4020 = vmatpush.msra.mxu2 %v6233_v7 }
 0x47f   : > { %10969 = vst [vmem:[#allocation52_spill] sm:$0xff] %v8622_v8  ;;  %v8636_v8 = vld [vmem:[#allocation3 + $0x92] sm:$0xff] }
 0x480   : > { %v8625_v62 = vpop.f32.mrf.mxu2  ;;  %4021 = vmatpush.msra.mxu2 %v6232_v23 }
 0x481   : > { %v2759_v33 = vpop.f32.mrf.mxu3  ;;  %2968 = vmatmul.f32.gmra.mxu0 %v8329_v58 }
 0x482   : > { %v8628_v45 = vadd.f32 %v2759_v33, %v2630_v54  ;;  %v2525_v16 = vpop.f32.mrf.mxu1  ;;  %v2633_v54 = vadd.f32 %v2632_v34, %v2519_v14  ;;  %v10976_v14 = vld [vmem:[#allocation46_spill] sm:$0xff] }
 0x483   : > { %v2774_v61 = vadd.f32 %v10976_v14, %v2549_v13  ;;  %v8668_v13 = vld [vmem:[#allocation3 + $0xaa] sm:$0xff] }
 0x484   : > { %10970 = vst [vmem:[#allocation53_spill] sm:$0xff] %v8628_v45 }
 0x485   : > { %3079 = vmatmul.f32.gmra.mxu1 %v6380_v24  ;;  %3247 = vmatmul.f32.gmra.mxu2 %v8633_v11 }
 0x486   : > { %3433 = vmatmul.f32.gmra.mxu3 %v8636_v8  ;;  %v8639_v31 = vpop.f32.mrf.mxu0 }
 0x487   : > { %10971 = vst [vmem:[#allocation11_spill] sm:$0xff] %v8639_v31  ;;  %v8652_v31 = vld [vmem:[#allocation3 + $0x9a] sm:$0xff] }
 0x488   : > { %v3200_v33 = vpop.f32.mrf.mxu2 }
 0x489   : > { %v2762_v45 = vpop.f32.mrf.mxu3  ;;  %3559 = vmatmul.f32.vlgmr.msra.gmra.mxu0 %v8468_v49  ;;  %v2636_v49 = vadd.f32 %v2635_v25, %v2522_v59  ;;  %v6207_v25 = vld [vmem:[%s10738_s3 + $0x428] sm:$0xff]  ;;  %v2639_v59 = vadd.f32 %v2638_v18, %v2525_v16 }
 0x48a   : > { %v8645_v24 = vadd.f32 %v2762_v45, %v2633_v54  ;;  %v2528_v7 = vpop.f32.mrf.mxu1  ;;  %v2972_v54 = vadd.f32 %v8393_v0, %v2774_v61  ;;  %3715 = vmatpush.msra.mxu1 %v6207_v25  ;;  %v6231_v25 = vld [vmem:[%s10740_s5 + $0x1e8] sm:$0xff] }
 0x48b   : > { %4022 = vmatpush.msra.mxu2 %v6231_v25 }
 0x48c   : > { %10972 = vst [vmem:[#allocation29_spill] sm:$0xff] %v8645_v24 }
 0x48d   : > { %3082 = vmatmul.f32.gmra.mxu1 %v6381_v44  ;;  %3250 = vmatmul.f32.gmra.mxu2 %v8649_v32 }
 0x48e   : > { %3436 = vmatmul.f32.gmra.mxu3 %v8652_v31  ;;  %v8655_v34 = vpop.f32.mrf.mxu0 }
 0x48f   : > { %10975 = vst [vmem:[#allocation54_spill] sm:$0xff] %v8655_v34  ;;  %v8665_v34 = vld [vmem:[#allocation3 + $0x109] sm:$0xff] }
 0x490   : > { %v3203_v45 = vpop.f32.mrf.mxu2 }
 0x491   : > { %v2765_v24 = vpop.f32.mrf.mxu3  ;;  %3562 = vmatmul.f32.gmra.mxu0 %v8480_v12 }
 0x492   : > { %v8660_v28 = vadd.f32 %v2765_v24, %v2636_v49  ;;  %v3038_v44 = vpop.f32.mrf.mxu1  ;;  %v6387_v49 = vld [vmem:[#allocation3 + $0x111] sm:$0xff] }
 0x493   : > { %v3134_v39 = vadd.f32 %v3038_v44, %v2972_v54  ;;  %v8681_v54 = vld [vmem:[#allocation3 + $0xb2] sm:$0xff] }
 0x494   : > { %10977 = vst [vmem:[#allocation12_spill] sm:$0xff] %v8660_v28  ;;  %v8842_v28 = vld [vmem:[#allocation3 + $0x142] sm:$0xff] }
 0x495   : > { %3085 = vmatmul.f32.gmra.mxu1 %v6382_v35  ;;  %3253 = vmatmul.f32.gmra.mxu2 %v8665_v34  ;;  %v3296_v0 = vadd.f32 %v3200_v33, %v3134_v39  ;;  %v2973_v35 = vadd.f32 %v8415_v1, %v8110_v30  ;;  %v2642_v30 = vadd.f32 %v8625_v62, %v2528_v7  ;;  %v8696_v62 = vld [vmem:[#allocation3 + $0xc2] sm:$0xff]  ;;  %v6206_v7 = vld [vmem:[%s10738_s3 + $0x420] sm:$0xff] }
 0x496   : > { %3439 = vmatmul.f32.gmra.mxu3 %v8668_v13  ;;  %v8671_v12 = vpop.f32.mrf.mxu0  ;;  %v2974_v1 = vadd.f32 %v8428_v19, %v8134_v26  ;;  %3716 = vmatpush.msra.mxu1 %v6206_v7 }
 0x497   : > { %10978 = vst [vmem:[#allocation30_spill] sm:$0xff] %v8671_v12 }
 0x498   : > { %v3206_v61 = vpop.f32.mrf.mxu2 }
 0x499   : > { %v2768_v24 = vpop.f32.mrf.mxu3  ;;  %3565 = vmatmul.f32.gmra.mxu0 %v8495_v10 }
 0x49a   : > { %v8679_v14 = vadd.f32 %v2768_v24, %v2639_v59  ;;  %v3041_v39 = vpop.f32.mrf.mxu1  ;;  %v2975_v24 = vadd.f32 %v8438_v20, %v8152_v29  ;;  %v2976_v29 = vadd.f32 %v8449_v46, %v8174_v4  ;;  %v6205_v46 = vld [vmem:[%s10738_s3 + $0x418] sm:$0xff] }
 0x49b   : > { %v3135_v33 = vadd.f32 %v3041_v39, %v2973_v35  ;;  %v6388_v35 = vld [vmem:[#allocation3 + $0x121] sm:$0xff]  ;;  %3717 = vmatpush.msra.mxu1 %v6205_v46 }
 0x49c   : > { %10979 = vst [vmem:[#allocation55_spill] sm:$0xff] %v8679_v14 }
 0x49d   : > { %3088 = vmatmul.f32.gmra.mxu1 %v6383_v38  ;;  %3256 = vmatmul.f32.gmra.mxu2 %v6387_v49  ;;  %v3297_v44 = vadd.f32 %v3203_v45, %v3135_v33 }
 0x49e   : > { %3442 = vmatmul.f32.gmra.mxu3 %v8681_v54  ;;  %v8684_v18 = vpop.f32.mrf.mxu0 }
 0x49f   : > { %10980 = vst [vmem:[#allocation13_spill] sm:$0xff] %v8684_v18 }
 0x4a0   : > { %v3209_v59 = vpop.f32.mrf.mxu2 }
 0x4a1   : > { %v2771_v16 = vpop.f32.mrf.mxu3  ;;  %3568 = vmatmul.f32.gmra.mxu0 %v8512_v47 }
 0x4a2   : > { %v8690_v23 = vadd.f32 %v2771_v16, %v2642_v30  ;;  %v3044_v38 = vpop.f32.mrf.mxu1 }
 0x4a3   : > { %v3136_v45 = vadd.f32 %v3044_v38, %v2974_v1  ;;  %v8710_v1 = vld [vmem:[#allocation3 + $0xca] sm:$0xff] }
 0x4a4   : > { %10981 = vst [vmem:[#allocation31_spill] sm:$0xff] %v8690_v23 }
 0x4a5   : > { %3091 = vmatmul.f32.gmra.mxu1 %v8633_v11  ;;  %3259 = vmatmul.f32.gmra.mxu2 %v6388_v35  ;;  %v3298_v26 = vadd.f32 %v3206_v61, %v3136_v45  ;;  %v6389_v61 = vld [vmem:[#allocation3 + $0x129] sm:$0xff] }
 0x4a6   : > { %3445 = vmatmul.f32.gmra.mxu3 %v8696_v62  ;;  %v8699_v19 = vpop.f32.mrf.mxu0 }
 0x4a7   : > { %10982 = vst [vmem:[#allocation57_spill] sm:$0xff] %v8699_v19 }
 0x4a8   : > { %v3212_v38 = vpop.f32.mrf.mxu2 }
 0x4a9   : > { %v3398_v39 = vpop.f32.mrf.mxu3  ;;  %3571 = vmatmul.f32.gmra.mxu0 %v8529_v55 }
 0x4aa   : > { %v8707_v11 = vadd.f32 %v3398_v39, %v3296_v0  ;;  %v3047_v33 = vpop.f32.mrf.mxu1  ;;  %v2977_v39 = vadd.f32 %v8459_v56, %v8190_v51  ;;  %v2978_v51 = vadd.f32 %v8471_v2, %v8220_v22  ;;  %v6204_v2 = vld [vmem:[%s10738_s3 + $0x410] sm:$0xff] }
 0x4ab   : > { %v3137_v30 = vadd.f32 %v3047_v33, %v2975_v24  ;;  %3718 = vmatpush.msra.mxu1 %v6204_v2  ;;  %v6391_v2 = vld [vmem:[#allocation3 + $0x141] sm:$0xff] }
 0x4ad   : > { %3094 = vmatmul.f32.gmra.mxu1 %v8649_v32  ;;  %3262 = vmatmul.f32.gmra.mxu2 %v6389_v61  ;;  %v3299_v16 = vadd.f32 %v3209_v59, %v3137_v30  ;;  %v6230_v32 = vld [vmem:[%s10740_s5 + $0x1e0] sm:$0xff]  ;;  %v8725_v59 = vld [vmem:[#allocation3 + $0xda] sm:$0xff] }
 0x4ae   : > { %3448 = vmatmul.f32.gmra.mxu3 %v8710_v1  ;;  %v8713_v25 = vpop.f32.mrf.mxu0  ;;  %4023 = vmatpush.msra.mxu2 %v6230_v32 }
 0x4af   : > { %10983 = vst [vmem:[#allocation56_spill] sm:$0xff] %v8713_v25  ;;  %v4000_v25 = vld [vmem:[%s10740_s5 + $0x68] sm:$0xff] }
 0x4b1   : > { %v3401_v20 = vpop.f32.mrf.mxu3  ;;  %3574 = vmatmul.f32.gmra.mxu0 %v8551_v60 }
 0x4b2   : > { %v8718_v0 = vadd.f32 %v3401_v20, %v3297_v44  ;;  %v3050_v45 = vpop.f32.mrf.mxu1  ;;  %v3215_v44 = vpop.f32.mrf.mxu2 }
 0x4b3   : > { %v3138_v7 = vadd.f32 %v3050_v45, %v2976_v29 }
 0x4b5   : > { %3097 = vmatmul.f32.gmra.mxu1 %v8665_v34  ;;  %3265 = vmatmul.f32.gmra.mxu2 %v8178_v37  ;;  %v3300_v24 = vadd.f32 %v3212_v38, %v3138_v7  ;;  %v8739_v38 = vld [vmem:[#allocation3 + $0xe2] sm:$0xff]  ;;  %v8753_v7 = vld [vmem:[#allocation3 + $0xf2] sm:$0xff] }
 0x4b6   : > { %3451 = vmatmul.f32.gmra.mxu3 %v8725_v59  ;;  %v8728_v4 = vpop.f32.mrf.mxu0 }
 0x4b7   : > { %10984 = vst [vmem:[#allocation14_spill] sm:$0xff] %v8728_v4  ;;  %v6223_v4 = vld [vmem:[%s10740_s5 + $0x1a8] sm:$0xff] }
 0x4b9   : > { %v3404_v33 = vpop.f32.mrf.mxu3  ;;  %3577 = vmatmul.f32.gmra.mxu0 %v8574_v52 }
 0x4ba   : > { %v8736_v37 = vadd.f32 %v3404_v33, %v3298_v26  ;;  %v3053_v34 = vpop.f32.mrf.mxu1  ;;  %v3218_v26 = vpop.f32.mrf.mxu2 }
 0x4bb   : > { %v3139_v30 = vadd.f32 %v3053_v34, %v2977_v39  ;;  %v8767_v34 = vld [vmem:[#allocation3 + $0xfa] sm:$0xff] }
 0x4bd   : > { %3100 = vmatmul.f32.gmra.mxu1 %v6387_v49  ;;  %3268 = vmatmul.f32.gmra.mxu2 %v8196_v6  ;;  %v3301_v29 = vadd.f32 %v3215_v44, %v3139_v30  ;;  %v6229_v6 = vld [vmem:[%s10740_s5 + $0x1d8] sm:$0xff] }
 0x4be   : > { %3454 = vmatmul.f32.gmra.mxu3 %v8739_v38  ;;  %v8742_v20 = vpop.f32.mrf.mxu0  ;;  %4024 = vmatpush.msra.mxu2 %v6229_v6 }
 0x4bf   : > { %10985 = vst [vmem:[#allocation32_spill] sm:$0xff] %v8742_v20 }
 0x4c1   : > { %v3407_v56 = vpop.f32.mrf.mxu3  ;;  %3580 = vmatmul.f32.gmra.mxu0 %v8596_v43 }
 0x4c2   : > { %v8747_v45 = vadd.f32 %v3407_v56, %v3299_v16  ;;  %v3056_v32 = vpop.f32.mrf.mxu1  ;;  %v2979_v16 = vadd.f32 %v8483_v41, %v8255_v15  ;;  %v3221_v33 = vpop.f32.mrf.mxu2 }
 0x4c3   : > { %v3140_v49 = vadd.f32 %v3056_v32, %v2978_v51 }
 0x4c5   : > { %3103 = vmatmul.f32.gmra.mxu1 %v6388_v35  ;;  %3271 = vmatmul.f32.gmra.mxu2 %v8226_v50  ;;  %v3302_v46 = vadd.f32 %v3218_v26, %v3140_v49 }
 0x4c6   : > { %3457 = vmatmul.f32.gmra.mxu3 %v8753_v7  ;;  %v8756_v22 = vpop.f32.mrf.mxu0 }
 0x4c7   : > { %10986 = vst [vmem:[#allocation59_spill] sm:$0xff] %v8756_v22  ;;  %v8889_v22 = vld [vmem:[#allocation3 + $0x172] sm:$0xff] }
 0x4c9   : > { %v3410_v44 = vpop.f32.mrf.mxu3  ;;  %3583 = vmatmul.f32.gmra.mxu0 %v8606_v53 }
 0x4ca   : > { %v8764_v35 = vadd.f32 %v3410_v44, %v3300_v24  ;;  %v3059_v50 = vpop.f32.mrf.mxu1  ;;  %v8781_v24 = vld [vmem:[#allocation3 + $0x10a] sm:$0xff] }
 0x4cb   : > { %v3141_v39 = vadd.f32 %v3059_v50, %v2979_v16  ;;  %v8795_v16 = vld [vmem:[#allocation3 + $0x112] sm:$0xff] }
 0x4cd   : > { %3106 = vmatmul.f32.gmra.mxu1 %v6389_v61  ;;  %3274 = vmatmul.f32.gmra.mxu2 %v8261_v36  ;;  %v3303_v30 = vadd.f32 %v3221_v33, %v3141_v39  ;;  %v6228_v61 = vld [vmem:[%s10740_s5 + $0x1d0] sm:$0xff] }
 0x4ce   : > { %3460 = vmatmul.f32.gmra.mxu3 %v8767_v34  ;;  %v8770_v51 = vpop.f32.mrf.mxu0  ;;  %4025 = vmatpush.msra.mxu2 %v6228_v61  ;;  %v6390_v36 = vld [vmem:[#allocation3 + $0x139] sm:$0xff]  ;;  %v8809_v61 = vld [vmem:[#allocation3 + $0x122] sm:$0xff] }
 0x4cf   : > { %10987 = vst [vmem:[#allocation58_spill] sm:$0xff] %v8770_v51  ;;  %v4001_v51 = vld [vmem:[%s10740_s5 + $0x70] sm:$0xff] }
 0x4d1   : > { %v3413_v56 = vpop.f32.mrf.mxu3  ;;  %3586 = vmatmul.f32.gmra.mxu0 %v8619_v17 }
 0x4d2   : > { %v8773_v15 = vadd.f32 %v3413_v56, %v3301_v29  ;;  %v8775_v41 = vpop.f32.mrf.mxu1  ;;  %v6203_v29 = vld [vmem:[%s10738_s3 + $0x408] sm:$0xff] }
 0x4d3   : > { %3719 = vmatpush.msra.mxu1 %v6203_v29  ;;  %v6392_v56 = vld [vmem:[#allocation3 + $0x151] sm:$0xff] }
 0x4d5   : > { %3109 = vmatmul.f32.gmra.mxu1 %v6390_v36  ;;  %3277 = vmatmul.f32.gmra.mxu2 %v8301_v48 }
 0x4d6   : > { %3463 = vmatmul.f32.gmra.mxu3 %v8781_v24  ;;  %v8784_v26 = vpop.f32.mrf.mxu0 }
 0x4d7   : > { %10988 = vst [vmem:[#allocation15_spill] sm:$0xff] %v8784_v26  ;;  %v8877_v26 = vld [vmem:[#allocation3 + $0x16a] sm:$0xff] }
 0x4d9   : > { %v3416_v32 = vpop.f32.mrf.mxu3  ;;  %3589 = vmatmul.f32.gmra.mxu0 %v8636_v8 }
 0x4da   : > { %v8790_v6 = vadd.f32 %v3416_v32, %v3302_v46  ;;  %v8792_v49 = vpop.f32.mrf.mxu1  ;;  %v6227_v46 = vld [vmem:[%s10740_s5 + $0x1c8] sm:$0xff] }
 0x4db   : > { %4026 = vmatpush.msra.mxu2 %v6227_v46  ;;  %v6393_v32 = vld [vmem:[#allocation3 + $0x159] sm:$0xff] }
 0x4dd   : > { %3112 = vmatmul.f32.gmra.mxu1 %v6391_v2  ;;  %3280 = vmatmul.f32.gmra.mxu2 %v8329_v58  ;;  %v8821_v2 = vld [vmem:[#allocation3 + $0x12a] sm:$0xff] }
 0x4de   : > { %3466 = vmatmul.f32.gmra.mxu3 %v8795_v16  ;;  %v8798_v44 = vpop.f32.mrf.mxu0 }
 0x4df   : > { %10989 = vst [vmem:[#allocation33_spill] sm:$0xff] %v8798_v44  ;;  %v6224_v44 = vld [vmem:[%s10740_s5 + $0x1b0] sm:$0xff] }
 0x4e1   : > { %v3419_v50 = vpop.f32.mrf.mxu3  ;;  %3592 = vmatmul.f32.gmra.mxu0 %v8652_v31 }
 0x4e2   : > { %v8801_v39 = vadd.f32 %v3419_v50, %v3303_v30  ;;  %v8803_v33 = vpop.f32.mrf.mxu1  ;;  %v6202_v30 = vld [vmem:[%s10738_s3 + $0x400] sm:$0xff] }
 0x4e3   : > { %3720 = vmatpush.msra.mxu1 %v6202_v30  ;;  %v6226_v30 = vld [vmem:[%s10740_s5 + $0x1c0] sm:$0xff] }
 0x4e4   : > { %4027 = vmatpush.msra.mxu2 %v6226_v30  ;;  %v6225_v30 = vld [vmem:[%s10740_s5 + $0x1b8] sm:$0xff] }
 0x4e5   : > { %3115 = vmatmul.f32.gmra.mxu1 %v6392_v56  ;;  %3283 = vmatmul.f32.gmra.mxu2 %v8359_v63  ;;  %v2840_v56 = vld [vmem:[#allocation3 + $0x199] sm:$0xff] }
 0x4e6   : > { %3469 = vmatmul.f32.gmra.mxu3 %v8809_v61  ;;  %v8812_v36 = vpop.f32.mrf.mxu0  ;;  %4028 = vmatpush.msra.mxu2 %v6225_v30  ;;  %v8866_v30 = vld [vmem:[#allocation3 + $0x15a] sm:$0xff] }
 0x4e7   : > { %10990 = vst [vmem:[#allocation16_spill] sm:$0xff] %v8812_v36 }
 0x4e8   : > { %4029 = vmatpush.msra.mxu2 %v6224_v44 }
 0x4e9   : > { %3595 = vmatmul.f32.gmra.mxu0 %v8668_v13  ;;  %v8896_v44 = vpop.f32.mrf.mxu3 }
 0x4ea   : > { %v8818_v29 = vpop.f32.mrf.mxu1  ;;  %4030 = vmatpush.msra.mxu2 %v6223_v4  ;;  %v6222_v4 = vld [vmem:[%s10740_s5 + $0x1a0] sm:$0xff] }
 0x4ec   : > { %4031 = vmatpush.msra.mxu2 %v6222_v4 }
 0x4ed   : > { %3118 = vmatmul.f32.gmra.mxu1 %v6393_v32  ;;  %3286 = vmatmul.f32.gmra.mxu2 %v8381_v27  ;;  %v8833_v32 = vld [vmem:[#allocation3 + $0x13a] sm:$0xff] }
 0x4ee   : > { %3472 = vmatmul.f32.gmra.mxu3 %v8821_v2  ;;  %v8824_v50 = vpop.f32.mrf.mxu0 }
 0x4ef   : > { %10991 = vst [vmem:[#allocation35_spill] sm:$0xff] %v8824_v50  ;;  %v2841_v50 = vld [vmem:[#allocation3 + $0x1a1] sm:$0xff] }
 0x4f1   : > { %3598 = vmatmul.f32.gmra.mxu0 %v8681_v54  ;;  %v8912_v19 = vpop.f32.mrf.mxu3 }
 0x4f2   : > { %v8827_v46 = vpop.f32.mrf.mxu1 }
 0x4f5   : > { %3121 = vmatmul.f32.gmra.mxu1 %v8301_v48  ;;  %3289 = vmatmul.f32.gmra.mxu2 %v2840_v56 }
 0x4f6   : > { %3475 = vmatmul.f32.gmra.mxu3 %v8833_v32  ;;  %v8836_v23 = vpop.f32.mrf.mxu0 }
 0x4f7   : > { %10992 = vst [vmem:[#allocation17_spill] sm:$0xff] %v8836_v23  ;;  %v8854_v23 = vld [vmem:[#allocation3 + $0x152] sm:$0xff] }
 0x4f9   : > { %3601 = vmatmul.f32.gmra.mxu0 %v8696_v62 }
 0x4fa   : > { %v8839_v14 = vpop.f32.mrf.mxu1 }
 0x4fb   : > { %10993 = vst [vmem:[#allocation37_spill] sm:$0xff] %v8839_v14 }
 0x4fd   : > { %3124 = vmatmul.f32.gmra.mxu1 %v8329_v58  ;;  %3292 = vmatmul.f32.gmra.mxu2 %v2841_v50 }
 0x4fe   : > { %3478 = vmatmul.f32.gmra.mxu3 %v8842_v28  ;;  %v8845_v48 = vpop.f32.mrf.mxu0 }
 0x4ff   : > { %10994 = vst [vmem:[#allocation18_spill] sm:$0xff] %v8845_v48  ;;  %v4002_v48 = vld [vmem:[%s10740_s5 + $0x78] sm:$0xff] }
 0x500   : > { %4133 = vmatpush.msra.mxu3 %v4002_v48 }
 0x501   : > { %3604 = vmatmul.f32.gmra.mxu0 %v8710_v1 }
 0x502   : > { %v8848_v56 = vpop.f32.mrf.mxu1  ;;  %4134 = vmatpush.msra.mxu3 %v4001_v51 }
 0x503   : > { %10995 = vst [vmem:[#allocation40_spill] sm:$0xff] %v8848_v56  ;;  %v6220_v56 = vld [vmem:[%s10740_s5 + $0x190] sm:$0xff] }
 0x504   : > { %4135 = vmatpush.msra.mxu3 %v4000_v25  ;;  %v8928_v25 = vpop.f32.mrf.mxu2 }
 0x505   : > { %3127 = vmatmul.f32.gmra.mxu1 %v8359_v63 }
 0x506   : > { %3481 = vmatmul.f32.gmra.mxu3 %v8854_v23  ;;  %v8857_v58 = vpop.f32.mrf.mxu0 }
 0x509   : > { %3607 = vmatmul.f32.gmra.mxu0 %v8725_v59 }
 0x50a   : > { %v8860_v50 = vpop.f32.mrf.mxu1 }
 0x50b   : > { %10996 = vst [vmem:[#allocation19_spill] sm:$0xff] %v8860_v50  ;;  %v3998_v50 = vld [vmem:[%s10740_s5 + $0x58] sm:$0xff] }
 0x50c   : > { %v8942_v12 = vpop.f32.mrf.mxu2 }
 0x50d   : > { %3130 = vmatmul.f32.gmra.mxu1 %v8381_v27 }
 0x50e   : > { %3484 = vmatmul.f32.gmra.mxu3 %v8866_v30  ;;  %v8869_v63 = vpop.f32.mrf.mxu0 }
 0x511   : > { %3610 = vmatmul.f32.gmra.mxu0 %v8739_v38 }
 0x512   : > { %v8872_v36 = vpop.f32.mrf.mxu1 }
 0x513   : > { %10997 = vst [vmem:[#allocation42_spill] sm:$0xff] %v8872_v36 }
 0x515   : > { %3721 = vmatmul.f32.vlgmr.msra.gmra.mxu1 %v8495_v10 }
 0x516   : > { %3487 = vmatmul.f32.gmra.mxu3 %v8877_v26  ;;  %v8881_v27 = vpop.f32.mrf.mxu0 }
 0x519   : > { %3613 = vmatmul.f32.gmra.mxu0 %v8753_v7 }
 0x51a   : > { %v8884_v48 = vpop.f32.mrf.mxu1 }
 0x51b   : > { %10998 = vst [vmem:[#allocation20_spill] sm:$0xff] %v8884_v48 }
 0x51d   : > { %3724 = vmatmul.f32.gmra.mxu1 %v8512_v47 }
 0x51e   : > { %3490 = vmatmul.f32.gmra.mxu3 %v8889_v22  ;;  %v8893_v10 = vpop.f32.mrf.mxu0 }
 0x521   : > { %3616 = vmatmul.f32.gmra.mxu0 %v8767_v34 }
 0x522   : > { %v8898_v20 = vpop.f32.mrf.mxu1 }
 0x523   : > { %10999 = vst [vmem:[#allocation45_spill] sm:$0xff] %v8898_v20 }
 0x525   : > { %3727 = vmatmul.f32.gmra.mxu1 %v8529_v55 }
 0x526   : > { %v8904_v51 = vpop.f32.mrf.mxu0 }
 0x529   : > { %3619 = vmatmul.f32.gmra.mxu0 %v8781_v24 }
 0x52a   : > { %v8907_v47 = vpop.f32.mrf.mxu1 }
 0x52b   : > { %11000 = vst [vmem:[#allocation21_spill] sm:$0xff] %v8907_v47  ;;  %v8924_v47 = vpop.f32.mrf.mxu3 }
 0x52d   : > { %3730 = vmatmul.f32.gmra.mxu1 %v8551_v60 }
 0x52e   : > { %v8915_v18 = vpop.f32.mrf.mxu0 }
 0x531   : > { %3622 = vmatmul.f32.gmra.mxu0 %v8795_v16 }
 0x532   : > { %v8918_v55 = vpop.f32.mrf.mxu1 }
 0x533   : > { %11001 = vst [vmem:[#allocation49_spill] sm:$0xff] %v8918_v55  ;;  %v3999_v55 = vld [vmem:[%s10740_s5 + $0x60] sm:$0xff] }
 0x534   : > { %4136 = vmatpush.msra.mxu3 %v3999_v55 }
 0x535   : > { %3733 = vmatmul.f32.gmra.mxu1 %v8574_v52  ;;  %v8939_v52 = vpop.f32.mrf.mxu3 }
 0x536   : > { %v8926_v20 = vpop.f32.mrf.mxu0  ;;  %4137 = vmatpush.msra.mxu3 %v3998_v50 }
 0x539   : > { %3625 = vmatmul.f32.gmra.mxu0 %v8809_v61 }
 0x53a   : > { %v8931_v60 = vpop.f32.mrf.mxu1 }
 0x53b   : > { %11002 = vst [vmem:[#allocation38_spill] sm:$0xff] %v8931_v60  ;;  %v6221_v60 = vld [vmem:[%s10740_s5 + $0x198] sm:$0xff] }
 0x53c   : > { %4032 = vmatpush.msra.mxu2 %v6221_v60 }
 0x53d   : > { %3736 = vmatmul.f32.gmra.mxu1 %v8596_v43  ;;  %v8953_v43 = vpop.f32.mrf.mxu3 }
 0x53e   : > { %v8937_v4 = vpop.f32.mrf.mxu0  ;;  %11004 = vst [vmem:[#allocation22_spill] sm:$0xff] %v8953_v43  ;;  %4033 = vmatpush.msra.mxu2 %v6220_v56 }
 0x541   : > { %3628 = vmatmul.f32.gmra.mxu0 %v8821_v2 }
 0x542   : > { %v8944_v48 = vpop.f32.mrf.mxu1 }
 0x543   : > { %11003 = vst [vmem:[#allocation5_spill] sm:$0xff] %v8944_v48  ;;  %v8960_v48 = vpop.f32.mrf.mxu2 }
 0x545   : > { %3739 = vmatmul.f32.gmra.mxu1 %v8606_v53 }
 0x546   : > { %v8950_v55 = vpop.f32.mrf.mxu0 }
 0x549   : > { %3631 = vmatmul.f32.gmra.mxu0 %v8833_v32 }
 0x54a   : > { %v8955_v36 = vpop.f32.mrf.mxu1 }
 0x54b   : > { %11005 = vst [vmem:[#allocation23_spill] sm:$0xff] %v8955_v36  ;;  %v8971_v36 = vpop.f32.mrf.mxu3  ;;  %v8974_v14 = vpop.f32.mrf.mxu2 }
 0x54c   : > { %11007 = vst [vmem:[#allocation46_spill] sm:$0xff] %v8971_v36 }
 0x54d   : > { %3742 = vmatmul.f32.gmra.mxu1 %v8619_v17 }
 0x54e   : > { %v8963_v60 = vpop.f32.mrf.mxu0 }
 0x551   : > { %3634 = vmatmul.f32.gmra.mxu0 %v8842_v28 }
 0x552   : > { %v8966_v53 = vpop.f32.mrf.mxu1 }
 0x553   : > { %11006 = vst [vmem:[#allocation34_spill] sm:$0xff] %v8966_v53  ;;  %v3997_v53 = vld [vmem:[%s10740_s5 + $0x50] sm:$0xff]  ;;  %v8985_v56 = vpop.f32.mrf.mxu3  ;;  %v8992_v43 = vpop.f32.mrf.mxu2 }
 0x554   : > { %4138 = vmatpush.msra.mxu3 %v3997_v53  ;;  %11009 = vst [vmem:[#allocation61_spill] sm:$0xff] %v8985_v56  ;;  %v3995_v53 = vld [vmem:[%s10740_s5 + $0x40] sm:$0xff]  ;;  %v3994_v56 = vld [vmem:[%s10740_s5 + $0x38] sm:$0xff] }
 0x555   : > { %3745 = vmatmul.f32.gmra.mxu1 %v8636_v8  ;;  %v3996_v8 = vld [vmem:[%s10740_s5 + $0x48] sm:$0xff]  ;;  %11010 = vst [vmem:[#allocation62_spill] sm:$0xff] %v8992_v43 }
 0x556   : > { %v8976_v50 = vpop.f32.mrf.mxu0  ;;  %4139 = vmatpush.msra.mxu3 %v3996_v8  ;;  %v3993_v8 = vld [vmem:[%s10740_s5 + $0x30] sm:$0xff] }
 0x558   : > { %4140 = vmatpush.msra.mxu3 %v3995_v53 }
 0x559   : > { %3637 = vmatmul.f32.gmra.mxu0 %v8854_v23 }
 0x55a   : > { %v8979_v17 = vpop.f32.mrf.mxu1  ;;  %4141 = vmatpush.msra.mxu3 %v3994_v56  ;;  %v3991_v56 = vld [vmem:[%s10740_s5 + $0x20] sm:$0xff] }
 0x55b   : > { %11008 = vst [vmem:[#allocation60_spill] sm:$0xff] %v8979_v17  ;;  %v9013_v43 = vpop.f32.mrf.mxu3 }
 0x55c   : > { %4142 = vmatpush.msra.mxu3 %v3993_v8  ;;  %11012 = vst [vmem:[#allocation64_spill] sm:$0xff] %v9013_v43  ;;  %v3990_v8 = vld [vmem:[%s10740_s5 + $0x18] sm:$0xff] }
 0x55d   : > { %3748 = vmatmul.f32.gmra.mxu1 %v8652_v31  ;;  %v6219_v31 = vld [vmem:[%s10740_s5 + $0x188] sm:$0xff] }
 0x55e   : > { %v8987_v36 = vpop.f32.mrf.mxu0  ;;  %4034 = vmatpush.msra.mxu2 %v6219_v31  ;;  %v9018_v31 = vpop.f32.mrf.mxu2 }
 0x55f   : > { %11014 = vst [vmem:[#allocation66_spill] sm:$0xff] %v9018_v31 }
 0x561   : > { %3640 = vmatmul.f32.gmra.mxu0 %v8866_v30 }
 0x562   : > { %v8995_v17 = vpop.f32.mrf.mxu1 }
 0x563   : > { %11011 = vst [vmem:[#allocation63_spill] sm:$0xff] %v8995_v17  ;;  %v3992_v17 = vld [vmem:[%s10740_s5 + $0x28] sm:$0xff] }
 0x564   : > { %4143 = vmatpush.msra.mxu3 %v3992_v17  ;;  %v3989_v17 = vld [vmem:[%s10740_s5 + $0x10] sm:$0xff] }
 0x565   : > { %3751 = vmatmul.f32.gmra.mxu1 %v8668_v13 }
 0x566   : > { %v9015_v53 = vpop.f32.mrf.mxu0  ;;  %4144 = vmatpush.msra.mxu3 %v3991_v56  ;;  %v9036_v56 = vpop.f32.mrf.mxu3 }
 0x567   : > { %11013 = vst [vmem:[#allocation65_spill] sm:$0xff] %v9015_v53  ;;  %v9048_v53 = vpop.f32.mrf.mxu2 }
 0x568   : > { %4145 = vmatpush.msra.mxu3 %v3990_v8  ;;  %11016 = vst [vmem:[#allocation68_spill] sm:$0xff] %v9036_v56  ;;  %v6218_v8 = vld [vmem:[%s10740_s5 + $0x180] sm:$0xff]  ;;  %v6248_v56 = vld [vmem:[%s10740_s5 + $0x370] sm:$0xff] }
 0x569   : > { %3643 = vmatmul.f32.gmra.mxu0 %v8877_v26  ;;  %4035 = vmatpush.msra.mxu2 %v6218_v8  ;;  %11019 = vst [vmem:[#allocation71_spill] sm:$0xff] %v9048_v53  ;;  %v6394_v8 = vld [vmem:[#allocation3 + $0x8] sm:$0xff]  ;;  %v6246_v53 = vld [vmem:[%s10740_s5 + $0x360] sm:$0xff] }
 0x56a   : > { %v9020_v13 = vpop.f32.mrf.mxu1  ;;  %4146 = vmatpush.msra.mxu3 %v3989_v17  ;;  %v3951_v17 = vld [vmem:[#allocation4] sm:$0xff] }
 0x56b   : > { %11015 = vst [vmem:[#allocation67_spill] sm:$0xff] %v9020_v13  ;;  %v3988_v13 = vld [vmem:[%s10740_s5 + $0x8] sm:$0xff] }
 0x56c   : > { %4147 = vmatpush.msra.mxu3 %v3988_v13  ;;  %v9051_v13 = vld [vmem:[#allocation3 + $0x182] sm:$0xff] }
 0x56d   : > { %3754 = vmatmul.f32.gmra.mxu1 %v8681_v54  ;;  %v3987_v54 = vld [vmem:[%s10740_s5] sm:$0xff]  ;;  %11020 = vst [vmem:[#allocation72_spill] sm:$0xff] %v9051_v13 }
 0x56e   : > { %v9046_v31 = vpop.f32.mrf.mxu0  ;;  %4148 = vmatpush.msra.mxu3 %v3987_v54  ;;  %v6247_v54 = vld [vmem:[%s10740_s5 + $0x368] sm:$0xff] }
 0x56f   : > { %11018 = vst [vmem:[#allocation70_spill] sm:$0xff] %v9046_v31  ;;  %4149 = vmatmul.f32.vlgmr.msra.gmra.mxu3 %v3951_v17 }
 0x571   : > { %3646 = vmatmul.f32.gmra.mxu0 %v8889_v22 }
 0x572   : > { %v9038_v43 = vpop.f32.mrf.mxu1 }
 0x573   : > { %11017 = vst [vmem:[#allocation69_spill] sm:$0xff] %v9038_v43  ;;  %v6249_v43 = vld [vmem:[%s10740_s5 + $0x378] sm:$0xff] }
 0x574   : > { %4263 = vmatpush.msrb.mxu0 %v6249_v43  ;;  %v9075_v43 = vld [vmem:[#allocation3 + $0x18a] sm:$0xff] }
 0x575   : > { %3757 = vmatmul.f32.gmra.mxu1 %v8696_v62  ;;  %v9065_v62 = vpop.f32.mrf.mxu3 }
 0x576   : > { %11022 = vst [vmem:[#allocation74_spill] sm:$0xff] %v9065_v62  ;;  %4264 = vmatpush.msrb.mxu0 %v6248_v56  ;;  %v9067_v17 = vpop.f32.mrf.mxu0  ;;  %v6245_v56 = vld [vmem:[%s10740_s5 + $0x358] sm:$0xff] }
 0x577   : > { %4152 = vmatmul.f32.gmra.mxu3 %v6394_v8 }
 0x578   : > { %4265 = vmatpush.msrb.mxu0 %v6247_v54  ;;  %v6281_v54 = vld [vmem:[%s10740_s5 + $0x278] sm:$0xff] }
 0x579   : > { %3649 = vmatmul.f32.gmra.mxu0 %v9051_v13  ;;  %v9073_v13 = vpop.f32.mrf.mxu2  ;;  %4623 = vmatpush.msrb.mxu2 %v6281_v54 }
 0x57a   : > { %v9060_v31 = vpop.f32.mrf.mxu1  ;;  %11023 = vst [vmem:[#allocation75_spill] sm:$0xff] %v9073_v13  ;;  %4266 = vmatpush.msrb.mxu0 %v6246_v53  ;;  %v6243_v53 = vld [vmem:[%s10740_s5 + $0x348] sm:$0xff]  ;;  %v6241_v13 = vld [vmem:[%s10740_s5 + $0x338] sm:$0xff] }
 0x57b   : > { %11021 = vst [vmem:[#allocation73_spill] sm:$0xff] %v9060_v31  ;;  %v6242_v31 = vld [vmem:[%s10740_s5 + $0x340] sm:$0xff] }
 0x57c   : > { %4267 = vmatpush.msrb.mxu0 %v6245_v56 }
 0x57d   : > { %3760 = vmatmul.f32.gmra.mxu1 %v8710_v1  ;;  %v6244_v1 = vld [vmem:[%s10740_s5 + $0x350] sm:$0xff]  ;;  %v9096_v62 = vpop.f32.mrf.mxu3 }
 0x57e   : > { %4268 = vmatpush.msrb.mxu0 %v6244_v1  ;;  %11025 = vst [vmem:[#allocation77_spill] sm:$0xff] %v9096_v62  ;;  %v9098_v56 = vpop.f32.mrf.mxu0  ;;  %v6265_v1 = vld [vmem:[%s10740_s5 + $0xf8] sm:$0xff] }
 0x57f   : > { %4461 = vmatpush.msrb.mxu1 %v6265_v1  ;;  %v3656_v1 = vadd.f32 %v8857_v58, %v8707_v11  ;;  %v6235_v58 = vld [vmem:[%s10740_s5 + $0x308] sm:$0xff] }
 0x580   : > { %4269 = vmatpush.msrb.mxu0 %v6243_v53  ;;  %v6238_v53 = vld [vmem:[%s10740_s5 + $0x320] sm:$0xff] }
 0x581   : > { %3652 = vmatmul.f32.gmra.mxu0 %v9075_v43 }
 0x582   : > { %v9084_v8 = vpop.f32.mrf.mxu1  ;;  %4270 = vmatpush.msrb.mxu0 %v6242_v31  ;;  %v6239_v31 = vld [vmem:[%s10740_s5 + $0x328] sm:$0xff] }
 0x583   : > { %11024 = vst [vmem:[#allocation76_spill] sm:$0xff] %v9084_v8  ;;  %v9100_v8 = vpop.f32.mrf.mxu2 }
 0x584   : > { %4271 = vmatpush.msrb.mxu0 %v6241_v13  ;;  %v6237_v13 = vld [vmem:[%s10740_s5 + $0x318] sm:$0xff] }
 0x585   : > { %3763 = vmatmul.f32.gmra.mxu1 %v8725_v59  ;;  %v6240_v59 = vld [vmem:[%s10740_s5 + $0x330] sm:$0xff]  ;;  %v9120_v62 = vpop.f32.mrf.mxu3 }
 0x586   : > { %4272 = vmatpush.msrb.mxu0 %v6240_v59  ;;  %11027 = vst [vmem:[#allocation79_spill] sm:$0xff] %v9120_v62  ;;  %v6236_v59 = vld [vmem:[%s10740_s5 + $0x310] sm:$0xff] }
 0x587   : > { %v6280_v62 = vld [vmem:[%s10740_s5 + $0x270] sm:$0xff] }
 0x588   : > { %4273 = vmatpush.msrb.mxu0 %v6239_v31  ;;  %4624 = vmatpush.msrb.mxu2 %v6280_v62  ;;  %v6264_v62 = vld [vmem:[%s10740_s5 + $0xf0] sm:$0xff] }
 0x589   : > { %4462 = vmatpush.msrb.mxu1 %v6264_v62 }
 0x58a   : > { %v9111_v54 = vpop.f32.mrf.mxu1  ;;  %4274 = vmatpush.msrb.mxu0 %v6238_v53 }
 0x58b   : > { %11026 = vst [vmem:[#allocation78_spill] sm:$0xff] %v9111_v54  ;;  %v9127_v54 = vpop.f32.mrf.mxu0  ;;  %v9137_v31 = vpop.f32.mrf.mxu2 }
 0x58c   : > { %11028 = vst [vmem:[#allocation80_spill] sm:$0xff] %v9127_v54  ;;  %4275 = vmatpush.msrb.mxu0 %v6237_v13  ;;  %v6234_v13 = vld [vmem:[%s10740_s5 + $0x300] sm:$0xff] }
 0x58d   : > { %3766 = vmatmul.f32.gmra.mxu1 %v8739_v38  ;;  %v9132_v38 = vld [vmem:[%s10739_s4] ss:$0 sm:$0xff]  ;;  %11029 = vst [vmem:[#allocation81_spill] sm:$0xff] %v9137_v31 }
 0x58e   : > { %4276 = vmatpush.msrb.mxu0 %v6236_v59  ;;  %v9160_v59 = vpop.f32.mrf.mxu3 }
 0x58f   : > { %11030 = vst [vmem:[#allocation82_spill] sm:$0xff] %v9160_v59 }
 0x590   : > { %4277 = vmatpush.msrb.mxu0 %v6235_v58 }
 0x592   : > { %v3722_v53 = vpop.f32.mrf.mxu1  ;;  %4278 = vmatpush.msrb.mxu0 %v6234_v13 }
 0x593   : > { %v3818_v11 = vadd.f32 %v3722_v53, %v3656_v1  ;;  %v3657_v1 = vadd.f32 %v8869_v63, %v8718_v0  ;;  %v9162_v53 = vpop.f32.mrf.mxu0  ;;  %v9164_v58 = vpop.f32.mrf.mxu2 }
 0x595   : > { %v9146_v54 = vadd.f32 %v9132_v38, %v3818_v11  ;;  %3769 = vmatmul.f32.gmra.mxu1 %v8753_v7 }
 0x597   : > { %v10777_v31 = vmax.f32 %v9146_v54, 0.0 }
 0x599   : > { %3919 = vst [vmem:[#allocation4 + $0x19] sm:$0xff] %v10777_v31  ;;  %v3658_v31 = vadd.f32 %v8881_v27, %v8736_v37 }
 0x59a   : > { %v3725_v7 = vpop.f32.mrf.mxu1 }
 0x59b   : > { %v3819_v11 = vadd.f32 %v3725_v7, %v3657_v1  ;;  %v6279_v1 = vld [vmem:[%s10740_s5 + $0x268] sm:$0xff]  ;;  %v9186_v37 = vpop.f32.mrf.mxu2 }
 0x59c   : > { %4625 = vmatpush.msrb.mxu2 %v6279_v1 }
 0x59d   : > { %v9167_v13 = vadd.f32 %v9132_v38, %v3819_v11  ;;  %3772 = vmatmul.f32.gmra.mxu1 %v8767_v34  ;;  %v9178_v11 = vpop.f32.mrf.mxu3  ;;  %v9180_v34 = vpop.f32.mrf.mxu0 }
 0x59e   : > { %11031 = vst [vmem:[#allocation83_spill] sm:$0xff] %v9178_v11  ;;  %v3660_v11 = vadd.f32 %v8904_v51, %v8764_v35 }
 0x59f   : > { %v10778_v0 = vmax.f32 %v9167_v13, 0.0 }
 0x5a0   : > { %v3953_v63 = vld [vmem:[#allocation4 + $0x18] sm:$0xff] }
 0x5a1   : > { %3920 = vst [vmem:[#allocation4 + $0x21] sm:$0xff] %v10778_v0  ;;  %4036 = vmatmul.f32.vlgmr.msra.gmra.mxu2 %v3953_v63  ;;  %4155 = vmatmul.f32.gmra.mxu3 %v3953_v63  ;;  %v3659_v0 = vadd.f32 %v8893_v10, %v8747_v45 }
 0x5a2   : > { %v3728_v62 = vpop.f32.mrf.mxu1 }
 0x5a3   : > { %v3820_v7 = vadd.f32 %v3728_v62, %v3658_v31  ;;  %v6263_v31 = vld [vmem:[%s10740_s5 + $0xe8] sm:$0xff] }
 0x5a4   : > { %4463 = vmatpush.msrb.mxu1 %v6263_v31 }
 0x5a5   : > { %v9183_v59 = vadd.f32 %v9132_v38, %v3820_v7  ;;  %3775 = vmatmul.f32.gmra.mxu1 %v8781_v24  ;;  %v9200_v7 = vpop.f32.mrf.mxu3  ;;  %v9202_v45 = vpop.f32.mrf.mxu0 }
 0x5a7   : > { %v10779_v27 = vmax.f32 %v9183_v59, 0.0 }
 0x5a8   : > { %v3954_v63 = vld [vmem:[#allocation4 + $0x20] sm:$0xff] }
 0x5a9   : > { %3921 = vst [vmem:[#allocation4 + $0x31] sm:$0xff] %v10779_v27  ;;  %4039 = vmatmul.f32.gmra.mxu2 %v3954_v63  ;;  %4158 = vmatmul.f32.gmra.mxu3 %v3954_v63  ;;  %v9205_v27 = vpop.f32.mrf.mxu2 }
 0x5aa   : > { %v3731_v62 = vpop.f32.mrf.mxu1 }
 0x5ab   : > { %v3821_v24 = vadd.f32 %v3731_v62, %v3659_v0 }
 0x5ad   : > { %v9197_v1 = vadd.f32 %v9132_v38, %v3821_v24  ;;  %3778 = vmatmul.f32.gmra.mxu1 %v8795_v16  ;;  %v6278_v16 = vld [vmem:[%s10740_s5 + $0x260] sm:$0xff]  ;;  %v9219_v51 = vpop.f32.mrf.mxu3 }
 0x5ae   : > { %4626 = vmatpush.msrb.mxu2 %v6278_v16 }
 0x5af   : > { %v10780_v10 = vmax.f32 %v9197_v1, 0.0 }
 0x5b0   : > { %v3955_v63 = vld [vmem:[#allocation4 + $0x30] sm:$0xff] }
 0x5b1   : > { %3922 = vst [vmem:[#allocation4 + $0x39] sm:$0xff] %v10780_v10  ;;  %4042 = vmatmul.f32.gmra.mxu2 %v3955_v63  ;;  %4161 = vmatmul.f32.gmra.mxu3 %v3955_v63  ;;  %v9223_v10 = vpop.f32.mrf.mxu0 }
 0x5b2   : > { %4279 = vmatmul.f32.vlgmr.msrb.gmra.mxu0 %v3955_v63  ;;  %v3734_v0 = vpop.f32.mrf.mxu1  ;;  %v3661_v63 = vadd.f32 %v8915_v18, %v8773_v15 }
 0x5b3   : > { %v3822_v31 = vadd.f32 %v3734_v0, %v3660_v11  ;;  %v6262_v11 = vld [vmem:[%s10740_s5 + $0xe0] sm:$0xff] }
 0x5b4   : > { %4464 = vmatpush.msrb.mxu1 %v6262_v11  ;;  %v6277_v11 = vld [vmem:[%s10740_s5 + $0x258] sm:$0xff] }
 0x5b5   : > { %v9215_v62 = vadd.f32 %v9132_v38, %v3822_v31  ;;  %3781 = vmatmul.f32.gmra.mxu1 %v8809_v61  ;;  %v9230_v61 = vpop.f32.mrf.mxu2  ;;  %4627 = vmatpush.msrb.mxu2 %v6277_v11  ;;  %v2981_v11 = vadd.f32 %v8515_v42, %v8323_v21  ;;  %v6276_v21 = vld [vmem:[%s10740_s5 + $0x250] sm:$0xff] }
 0x5b7   : > { %v10781_v35 = vmax.f32 %v9215_v62, 0.0  ;;  %4628 = vmatpush.msrb.mxu2 %v6276_v21 }
 0x5b8   : > { %v3956_v24 = vld [vmem:[#allocation4 + $0x38] sm:$0xff] }
 0x5b9   : > { %3923 = vst [vmem:[#allocation4 + $0x49] sm:$0xff] %v10781_v35  ;;  %4045 = vmatmul.f32.gmra.mxu2 %v3956_v24  ;;  %4164 = vmatmul.f32.gmra.mxu3 %v3956_v24  ;;  %v3662_v35 = vadd.f32 %v8926_v20, %v8790_v6  ;;  %v2980_v6 = vadd.f32 %v8498_v5, %v8292_v40 }
 0x5ba   : > { %4282 = vmatmul.f32.gmra.mxu0 %v3956_v24  ;;  %v3737_v0 = vpop.f32.mrf.mxu1  ;;  %v9241_v24 = vpop.f32.mrf.mxu3 }
 0x5bb   : > { %v3823_v16 = vadd.f32 %v3737_v0, %v3661_v63  ;;  %11033 = vst [vmem:[#allocation85_spill] sm:$0xff] %v9241_v24  ;;  %v3142_v24 = vadd.f32 %v8775_v41, %v2980_v6  ;;  %v3143_v6 = vadd.f32 %v8792_v49, %v2981_v11 }
 0x5bd   : > { %v9233_v31 = vadd.f32 %v9132_v38, %v3823_v16  ;;  %3784 = vmatmul.f32.gmra.mxu1 %v8821_v2  ;;  %v9246_v2 = vpop.f32.mrf.mxu0  ;;  %v9248_v16 = vpop.f32.mrf.mxu2  ;;  %v3304_v41 = vadd.f32 %v8928_v25, %v3142_v24 }
 0x5bf   : > { %11032 = vst [vmem:[#allocation84_spill] sm:$0xff] %v9233_v31  ;;  %v10782_v18 = vmax.f32 %v9233_v31, 0.0  ;;  %v3663_v31 = vadd.f32 %v8937_v4, %v8801_v39 }
 0x5c0   : > { %v3957_v15 = vld [vmem:[#allocation4 + $0x48] sm:$0xff] }
 0x5c1   : > { %3924 = vst [vmem:[#allocation4 + $0x51] sm:$0xff] %v10782_v18  ;;  %4048 = vmatmul.f32.gmra.mxu2 %v3957_v15  ;;  %4167 = vmatmul.f32.gmra.mxu3 %v3957_v15 }
 0x5c2   : > { %4285 = vmatmul.f32.gmra.mxu0 %v3957_v15  ;;  %v3740_v63 = vpop.f32.mrf.mxu1  ;;  %v9265_v5 = vpop.f32.mrf.mxu3 }
 0x5c3   : > { %v3824_v0 = vadd.f32 %v3740_v63, %v3662_v35 }
 0x5c5   : > { %v9251_v20 = vadd.f32 %v9132_v38, %v3824_v0  ;;  %3787 = vmatmul.f32.gmra.mxu1 %v8833_v32  ;;  %v6261_v32 = vld [vmem:[%s10740_s5 + $0xd8] sm:$0xff]  ;;  %v9268_v63 = vpop.f32.mrf.mxu0  ;;  %v9274_v4 = vpop.f32.mrf.mxu2 }
 0x5c6   : > { %4465 = vmatpush.msrb.mxu1 %v6261_v32 }
 0x5c7   : > { %v10791_v15 = vmax.f32 %v9251_v20, 0.0 }
 0x5c8   : > { %v3958_v18 = vld [vmem:[#allocation4 + $0x50] sm:$0xff] }
 0x5c9   : > { %3925 = vst [vmem:[#allocation4 + $0x61] sm:$0xff] %v10791_v15  ;;  %4051 = vmatmul.f32.gmra.mxu2 %v3958_v18  ;;  %4170 = vmatmul.f32.gmra.mxu3 %v3958_v18  ;;  %v11064_v15 = vld [vmem:[#allocation42_spill] sm:$0xff] }
 0x5ca   : > { %4288 = vmatmul.f32.gmra.mxu0 %v3958_v18  ;;  %v3743_v35 = vpop.f32.mrf.mxu1  ;;  %v3502_v18 = vadd.f32 %v8896_v44, %v3304_v41  ;;  %v3305_v44 = vadd.f32 %v8942_v12, %v3143_v6  ;;  %v9292_v49 = vpop.f32.mrf.mxu3 }
 0x5cb   : > { %v3825_v40 = vadd.f32 %v3743_v35, %v3663_v31 }
 0x5cc   : > { %v3664_v25 = vadd.f32 %v8950_v55, %v3502_v18  ;;  %v2982_v55 = vadd.f32 %v8532_v57, %v8357_v9  ;;  %v3503_v32 = vadd.f32 %v8912_v19, %v3305_v44  ;;  %v6260_v9 = vld [vmem:[%s10740_s5 + $0xd0] sm:$0xff] }
 0x5cd   : > { %v9271_v39 = vadd.f32 %v9132_v38, %v3825_v40  ;;  %3790 = vmatmul.f32.gmra.mxu1 %v8842_v28  ;;  %v9297_v35 = vpop.f32.mrf.mxu0  ;;  %v9300_v41 = vpop.f32.mrf.mxu2 }
 0x5ce   : > { %v3144_v12 = vadd.f32 %v8803_v33, %v2982_v55  ;;  %v3665_v18 = vadd.f32 %v8963_v60, %v3503_v32  ;;  %4466 = vmatpush.msrb.mxu1 %v6260_v9  ;;  %v11034_v33 = vld [vmem:[#allocation8_spill] sm:$0xff]  ;;  %v11035_v32 = vld [vmem:[#allocation41_spill] sm:$0xff] }
 0x5cf   : > { %v10790_v31 = vmax.f32 %v9271_v39, 0.0  ;;  %v2983_v60 = vadd.f32 %v11034_v33, %v8379_v3 }
 0x5d0   : > { %v3959_v0 = vld [vmem:[#allocation4 + $0x60] sm:$0xff]  ;;  %v3306_v19 = vadd.f32 %v8960_v48, %v3144_v12 }
 0x5d1   : > { %3926 = vst [vmem:[#allocation4 + $0x69] sm:$0xff] %v10790_v31  ;;  %4054 = vmatmul.f32.gmra.mxu2 %v3959_v0  ;;  %4173 = vmatmul.f32.gmra.mxu3 %v3959_v0 }
 0x5d2   : > { %4291 = vmatmul.f32.gmra.mxu0 %v3959_v0  ;;  %v3746_v28 = vpop.f32.mrf.mxu1  ;;  %v3504_v6 = vadd.f32 %v8924_v47, %v3306_v19  ;;  %v6275_v47 = vld [vmem:[%s10740_s5 + $0x248] sm:$0xff] }
 0x5d3   : > { %v3826_v42 = vadd.f32 %v3746_v28, %v3664_v25  ;;  %v9318_v28 = vpop.f32.mrf.mxu3  ;;  %4629 = vmatpush.msrb.mxu2 %v6275_v47  ;;  %v11038_v47 = vld [vmem:[#allocation36_spill] sm:$0xff] }
 0x5d4   : > { %v3666_v44 = vadd.f32 %v8976_v50, %v3504_v6 }
 0x5d5   : > { %v9289_v24 = vadd.f32 %v9132_v38, %v3826_v42  ;;  %3793 = vmatmul.f32.gmra.mxu1 %v8854_v23  ;;  %v3145_v42 = vadd.f32 %v8818_v29, %v2983_v60  ;;  %v9322_v48 = vpop.f32.mrf.mxu0 }
 0x5d7   : > { %v10789_v40 = vmax.f32 %v9289_v24, 0.0  ;;  %v3307_v29 = vadd.f32 %v8974_v14, %v3145_v42 }
 0x5d8   : > { %v3960_v11 = vld [vmem:[#allocation4 + $0x68] sm:$0xff] }
 0x5d9   : > { %3927 = vst [vmem:[#allocation4 + $0x79] sm:$0xff] %v10789_v40  ;;  %4057 = vmatmul.f32.gmra.mxu2 %v3960_v11  ;;  %4176 = vmatmul.f32.gmra.mxu3 %v3960_v11 }
 0x5da   : > { %4294 = vmatmul.f32.gmra.mxu0 %v3960_v11  ;;  %v3749_v57 = vpop.f32.mrf.mxu1  ;;  %v11036_v11 = vld [vmem:[#allocation47_spill] sm:$0xff] }
 0x5db   : > { %v3827_v23 = vadd.f32 %v3749_v57, %v3665_v18  ;;  %v2984_v12 = vadd.f32 %v11036_v11, %v11035_v32  ;;  %v3505_v18 = vadd.f32 %v8939_v52, %v3307_v29  ;;  %v9350_v52 = vpop.f32.mrf.mxu3  ;;  %v11040_v32 = vld [vmem:[#allocation22_spill] sm:$0xff] }
 0x5dd   : > { %v9311_v0 = vadd.f32 %v9132_v38, %v3827_v23  ;;  %3796 = vmatmul.f32.gmra.mxu1 %v8866_v30  ;;  %v9326_v30 = vpop.f32.mrf.mxu2  ;;  %v6259_v23 = vld [vmem:[%s10740_s5 + $0xc8] sm:$0xff]  ;;  %v3146_v19 = vadd.f32 %v8827_v46, %v2984_v12  ;;  %v3667_v14 = vadd.f32 %v8987_v36, %v3505_v18  ;;  %v9352_v60 = vpop.f32.mrf.mxu0  ;;  %v6257_v36 = vld [vmem:[%s10740_s5 + $0xb8] sm:$0xff] }
 0x5de   : > { %4467 = vmatpush.msrb.mxu1 %v6259_v23  ;;  %v11041_v23 = vld [vmem:[#allocation37_spill] sm:$0xff] }
 0x5df   : > { %v10787_v25 = vmax.f32 %v9311_v0, 0.0 }
 0x5e0   : > { %v3961_v21 = vld [vmem:[#allocation4 + $0x78] sm:$0xff] }
 0x5e1   : > { %3928 = vst [vmem:[#allocation4 + $0x81] sm:$0xff] %v10787_v25  ;;  %4060 = vmatmul.f32.gmra.mxu2 %v3961_v21  ;;  %4179 = vmatmul.f32.gmra.mxu3 %v3961_v21 }
 0x5e2   : > { %4297 = vmatmul.f32.gmra.mxu0 %v3961_v21  ;;  %v3752_v3 = vpop.f32.mrf.mxu1  ;;  %v11037_v21 = vld [vmem:[#allocation62_spill] sm:$0xff] }
 0x5e3   : > { %v3828_v55 = vadd.f32 %v3752_v3, %v3666_v44  ;;  %v3308_v42 = vadd.f32 %v11037_v21, %v3146_v19  ;;  %v6256_v3 = vld [vmem:[%s10740_s5 + $0xb0] sm:$0xff]  ;;  %v6253_v21 = vld [vmem:[%s10740_s5 + $0x98] sm:$0xff] }
 0x5e4   : > { %v11042_v19 = vld [vmem:[#allocation65_spill] sm:$0xff] }
 0x5e5   : > { %v9333_v50 = vadd.f32 %v9132_v38, %v3828_v55  ;;  %3799 = vmatmul.f32.gmra.mxu1 %v8877_v26  ;;  %v6258_v26 = vld [vmem:[%s10740_s5 + $0xc0] sm:$0xff]  ;;  %v9357_v46 = vpop.f32.mrf.mxu2  ;;  %v3506_v11 = vadd.f32 %v11040_v32, %v3308_v42  ;;  %v9387_v42 = vpop.f32.mrf.mxu3  ;;  %v11045_v32 = vld [vmem:[#allocation72_spill] sm:$0xff] }
 0x5e6   : > { %4468 = vmatpush.msrb.mxu1 %v6258_v26  ;;  %v11039_v55 = vld [vmem:[#allocation27_spill] sm:$0xff] }
 0x5e7   : > { %v10786_v9 = vmax.f32 %v9333_v50, 0.0  ;;  %v2985_v29 = vadd.f32 %v11039_v55, %v11038_v47  ;;  %v6254_v26 = vld [vmem:[%s10740_s5 + $0xa0] sm:$0xff]  ;;  %v9390_v55 = vpop.f32.mrf.mxu0 }
 0x5e8   : > { %v3962_v57 = vld [vmem:[#allocation4 + $0x80] sm:$0xff]  ;;  %4469 = vmatpush.msrb.mxu1 %v6257_v36 }
 0x5e9   : > { %3929 = vst [vmem:[#allocation4 + $0x91] sm:$0xff] %v10786_v9  ;;  %4063 = vmatmul.f32.gmra.mxu2 %v3962_v57  ;;  %4182 = vmatmul.f32.gmra.mxu3 %v3962_v57 }
 0x5ea   : > { %4300 = vmatmul.f32.gmra.mxu0 %v3962_v57  ;;  %v3755_v33 = vpop.f32.mrf.mxu1  ;;  %4470 = vmatpush.msrb.mxu1 %v6256_v3  ;;  %v6255_v57 = vld [vmem:[%s10740_s5 + $0xa8] sm:$0xff]  ;;  %v11043_v3 = vld [vmem:[#allocation66_spill] sm:$0xff] }
 0x5eb   : > { %v3829_v6 = vadd.f32 %v3755_v33, %v3667_v14  ;;  %v3668_v14 = vadd.f32 %v11042_v19, %v3506_v11  ;;  %v6252_v11 = vld [vmem:[%s10740_s5 + $0x90] sm:$0xff] }
 0x5ec   : > { %4471 = vmatpush.msrb.mxu1 %v6255_v57  ;;  %v11046_v57 = vld [vmem:[#allocation6_spill] sm:$0xff] }
 0x5ed   : > { %v9361_v44 = vadd.f32 %v9132_v38, %v3829_v6  ;;  %3802 = vmatmul.f32.gmra.mxu1 %v8889_v22  ;;  %v3147_v22 = vadd.f32 %v11041_v23, %v2985_v29  ;;  %v6274_v6 = vld [vmem:[%s10740_s5 + $0x240] sm:$0xff]  ;;  %v11047_v23 = vld [vmem:[#allocation10_spill] sm:$0xff] }
 0x5ee   : > { %4630 = vmatpush.msrb.mxu2 %v6274_v6  ;;  %4472 = vmatpush.msrb.mxu1 %v6254_v26  ;;  %v2986_v19 = vadd.f32 %v11047_v23, %v11046_v57  ;;  %v6251_v6 = vld [vmem:[%s10740_s5 + $0x88] sm:$0xff]  ;;  %v11051_v57 = vld [vmem:[#allocation71_spill] sm:$0xff] }
 0x5ef   : > { %v10784_v12 = vmax.f32 %v9361_v44, 0.0  ;;  %v3309_v47 = vadd.f32 %v11043_v3, %v3147_v22  ;;  %v9425_v25 = vpop.f32.mrf.mxu0 }
 0x5f0   : > { %v3963_v18 = vld [vmem:[#allocation4 + $0x90] sm:$0xff]  ;;  %4473 = vmatpush.msrb.mxu1 %v6253_v21  ;;  %v6250_v21 = vld [vmem:[%s10740_s5 + $0x80] sm:$0xff] }
 0x5f1   : > { %3930 = vst [vmem:[#allocation4 + $0x99] sm:$0xff] %v10784_v12  ;;  %4066 = vmatmul.f32.gmra.mxu2 %v3963_v18  ;;  %4185 = vmatmul.f32.gmra.mxu3 %v3963_v18 }
 0x5f2   : > { %4303 = vmatmul.f32.gmra.mxu0 %v3963_v18  ;;  %v3758_v33 = vpop.f32.mrf.mxu1  ;;  %v9399_v18 = vpop.f32.mrf.mxu2  ;;  %4474 = vmatpush.msrb.mxu1 %v6252_v11 }
 0x5f3   : > { %v3830_v36 = vadd.f32 %v3758_v33, %v3668_v14  ;;  %v11048_v14 = vld [vmem:[#allocation46_spill] sm:$0xff] }
 0x5f4   : > { %v3507_v26 = vadd.f32 %v11048_v14, %v3309_v47  ;;  %4475 = vmatpush.msrb.mxu1 %v6251_v6  ;;  %v9420_v14 = vpop.f32.mrf.mxu3 }
 0x5f5   : > { %v9393_v29 = vadd.f32 %v9132_v38, %v3830_v36  ;;  %3805 = vmatmul.f32.gmra.mxu1 %v11045_v32  ;;  %v11049_v36 = vld [vmem:[#allocation40_spill] sm:$0xff]  ;;  %v11050_v32 = vld [vmem:[#allocation70_spill] sm:$0xff]  ;;  %11053 = vst [vmem:[#allocation47_spill] sm:$0xff] %v9420_v14 }
 0x5f6   : > { %v3148_v3 = vadd.f32 %v11049_v36, %v2986_v19  ;;  %v3669_v12 = vadd.f32 %v11050_v32, %v3507_v26  ;;  %4476 = vmatpush.msrb.mxu1 %v6250_v21  ;;  %v11054_v26 = vld [vmem:[#allocation24_spill] sm:$0xff] }
 0x5f7   : > { %11044 = vst [vmem:[#allocation8_spill] sm:$0xff] %v9393_v29  ;;  %v10785_v22 = vmax.f32 %v9393_v29, 0.0  ;;  %v11055_v36 = vld [vmem:[#allocation52_spill] sm:$0xff] }
 0x5f8   : > { %v3964_v33 = vld [vmem:[#allocation4 + $0x98] sm:$0xff]  ;;  %v3310_v23 = vadd.f32 %v11051_v57, %v3148_v3  ;;  %v2987_v32 = vadd.f32 %v11055_v36, %v11054_v26  ;;  %v11057_v3 = vld [vmem:[#allocation19_spill] sm:$0xff] }
 0x5f9   : > { %3931 = vst [vmem:[#allocation4 + $0xa9] sm:$0xff] %v10785_v22  ;;  %4069 = vmatmul.f32.gmra.mxu2 %v3964_v33  ;;  %4188 = vmatmul.f32.gmra.mxu3 %v3964_v33  ;;  %v11056_v22 = vld [vmem:[#allocation61_spill] sm:$0xff] }
 0x5fa   : > { %4306 = vmatmul.f32.gmra.mxu0 %v3964_v33  ;;  %v3761_v47 = vpop.f32.mrf.mxu1  ;;  %v3508_v9 = vadd.f32 %v11056_v22, %v3310_v23  ;;  %v3149_v21 = vadd.f32 %v11057_v3, %v2987_v32  ;;  %v6273_v22 = vld [vmem:[%s10740_s5 + $0x238] sm:$0xff]  ;;  %v11058_v23 = vld [vmem:[#allocation75_spill] sm:$0xff]  ;;  %v11062_v3 = vld [vmem:[#allocation64_spill] sm:$0xff] }
 0x5fb   : > { %v3831_v11 = vadd.f32 %v3761_v47, %v3669_v12  ;;  %v9428_v12 = vpop.f32.mrf.mxu2  ;;  %4631 = vmatpush.msrb.mxu2 %v6273_v22  ;;  %v3363_v22 = vld [vmem:[#allocation3 + $0x1a2] sm:$0xff] }
 0x5fc   : > { %v3670_v47 = vadd.f32 %v9067_v17, %v3508_v9  ;;  %v3311_v26 = vadd.f32 %v11058_v23, %v3149_v21  ;;  %v11060_v17 = vld [vmem:[#allocation50_spill] sm:$0xff]  ;;  %v11061_v9 = vld [vmem:[#allocation11_spill] sm:$0xff]  ;;  %v9445_v40 = vpop.f32.mrf.mxu3 }
 0x5fd   : > { %v9417_v19 = vadd.f32 %v9132_v38, %v3831_v11  ;;  %3808 = vmatmul.f32.gmra.mxu1 %v9075_v43  ;;  %v3362_v11 = vld [vmem:[#allocation3 + $0x19a] sm:$0xff]  ;;  %v2988_v32 = vadd.f32 %v11061_v9, %v11060_v17  ;;  %11063 = vst [vmem:[#allocation36_spill] sm:$0xff] %v9445_v40 }
 0x5fe   : > { %v11068_v17 = vld [vmem:[#allocation68_spill] sm:$0xff] }
 0x5ff   : > { %11052 = vst [vmem:[#allocation41_spill] sm:$0xff] %v9417_v19  ;;  %v10788_v33 = vmax.f32 %v9417_v19, 0.0  ;;  %v3150_v19 = vadd.f32 %v11064_v15, %v2988_v32  ;;  %v11067_v15 = vld [vmem:[#allocation54_spill] sm:$0xff]  ;;  %v11071_v40 = vld [vmem:[#allocation80_spill] sm:$0xff] }
 0x600   : > { %v3965_v6 = vld [vmem:[#allocation4 + $0xa8] sm:$0xff] }
 0x601   : > { %3932 = vst [vmem:[#allocation4 + $0xb1] sm:$0xff] %v10788_v33  ;;  %4072 = vmatmul.f32.gmra.mxu2 %v3965_v6  ;;  %4191 = vmatmul.f32.gmra.mxu3 %v3965_v6  ;;  %v3509_v33 = vadd.f32 %v11062_v3, %v3311_v26  ;;  %v3312_v23 = vadd.f32 %v9100_v8, %v3150_v19  ;;  %v6297_v8 = vld [vmem:[%s10740_s5 + $0x3f8] sm:$0xff] }
 0x602   : > { %4309 = vmatmul.f32.gmra.mxu0 %v3965_v6  ;;  %v3764_v43 = vpop.f32.mrf.mxu1  ;;  %4785 = vmatpush.msrb.mxu3 %v6297_v8 }
 0x603   : > { %v3832_v57 = vadd.f32 %v3764_v43, %v3670_v47  ;;  %v3671_v47 = vadd.f32 %v9098_v56, %v3509_v33  ;;  %v9449_v43 = vpop.f32.mrf.mxu0  ;;  %v9453_v21 = vpop.f32.mrf.mxu2  ;;  %v11066_v56 = vld [vmem:[#allocation44_spill] sm:$0xff]  ;;  %v3510_v9 = vadd.f32 %v11068_v17, %v3312_v23  ;;  %v11073_v17 = vld [vmem:[#allocation39_spill] sm:$0xff] }
 0x604   : > { %v2989_v33 = vadd.f32 %v11067_v15, %v11066_v56  ;;  %v11072_v56 = vld [vmem:[#allocation81_spill] sm:$0xff] }
 0x605   : > { %v9439_v36 = vadd.f32 %v9132_v38, %v3832_v57  ;;  %3811 = vmatmul.f32.gmra.mxu1 %v3362_v11 }
 0x607   : > { %11059 = vst [vmem:[#allocation62_spill] sm:$0xff] %v9439_v36  ;;  %v10793_v6 = vmax.f32 %v9439_v36, 0.0 }
 0x608   : > { %v3966_v31 = vld [vmem:[#allocation4 + $0xb0] sm:$0xff] }
 0x609   : > { %3933 = vst [vmem:[#allocation4 + $0xc1] sm:$0xff] %v10793_v6  ;;  %4075 = vmatmul.f32.gmra.mxu2 %v3966_v31  ;;  %4194 = vmatmul.f32.gmra.mxu3 %v3966_v31  ;;  %v9463_v6 = vpop.f32.mrf.mxu3 }
 0x60a   : > { %4312 = vmatmul.f32.gmra.mxu0 %v3966_v31  ;;  %v3767_v11 = vpop.f32.mrf.mxu1  ;;  %11069 = vst [vmem:[#allocation22_spill] sm:$0xff] %v9463_v6  ;;  %v11070_v31 = vld [vmem:[#allocation20_spill] sm:$0xff] }
 0x60b   : > { %v3833_v57 = vadd.f32 %v3767_v11, %v3671_v47  ;;  %v3151_v36 = vadd.f32 %v11070_v31, %v2989_v33  ;;  %v3672_v47 = vadd.f32 %v11071_v40, %v3510_v9  ;;  %v9472_v19 = vpop.f32.mrf.mxu2  ;;  %v9477_v40 = vpop.f32.mrf.mxu0  ;;  %v11074_v9 = vld [vmem:[#allocation30_spill] sm:$0xff] }
 0x60c   : > { %v11075_v31 = vld [vmem:[#allocation74_spill] sm:$0xff] }
 0x60d   : > { %v9457_v26 = vadd.f32 %v9132_v38, %v3833_v57  ;;  %3814 = vmatmul.f32.gmra.mxu1 %v3363_v22  ;;  %v4408_v22 = vld [vmem:[#allocation4 + $0x1] sm:$0xff]  ;;  %v6272_v57 = vld [vmem:[%s10740_s5 + $0x230] sm:$0xff]  ;;  %v3313_v15 = vadd.f32 %v11072_v56, %v3151_v36 }
 0x60e   : > { %4632 = vmatpush.msrb.mxu2 %v6272_v57 }
 0x60f   : > { %11065 = vst [vmem:[#allocation27_spill] sm:$0xff] %v9457_v26  ;;  %v10795_v32 = vmax.f32 %v9457_v26, 0.0  ;;  %v11076_v26 = vld [vmem:[#allocation45_spill] sm:$0xff] }
 0x610   : > { %v3967_v3 = vld [vmem:[#allocation4 + $0xc0] sm:$0xff] }
 0x611   : > { %3934 = vst [vmem:[#allocation4 + $0xc9] sm:$0xff] %v10795_v32  ;;  %4078 = vmatmul.f32.gmra.mxu2 %v3967_v3  ;;  %4197 = vmatmul.f32.gmra.mxu3 %v3967_v3  ;;  %v3511_v32 = vadd.f32 %v11075_v31, %v3313_v15  ;;  %v11080_v31 = vld [vmem:[#allocation21_spill] sm:$0xff] }
 0x612   : > { %4315 = vmatmul.f32.gmra.mxu0 %v3967_v3  ;;  %v3770_v11 = vpop.f32.mrf.mxu1  ;;  %v2990_v3 = vadd.f32 %v11074_v9, %v11073_v17  ;;  %v11079_v17 = vld [vmem:[#allocation77_spill] sm:$0xff] }
 0x613   : > { %v3834_v23 = vadd.f32 %v3770_v11, %v3672_v47  ;;  %v3673_v14 = vadd.f32 %v9162_v53, %v3511_v32  ;;  %v4153_v47 = vpop.f32.mrf.mxu3  ;;  %v4409_v11 = vld [vmem:[#allocation4 + $0x9] sm:$0xff]  ;;  %v9491_v57 = vpop.f32.mrf.mxu2  ;;  %v11077_v53 = vld [vmem:[#allocation7_spill] sm:$0xff] }
 0x614   : > { %v3152_v29 = vadd.f32 %v11076_v26, %v2990_v3  ;;  %v9494_v56 = vpop.f32.mrf.mxu0  ;;  %v11078_v32 = vld [vmem:[#allocation13_spill] sm:$0xff] }
 0x615   : > { %v9481_v33 = vadd.f32 %v9132_v38, %v3834_v23  ;;  %4477 = vmatmul.f32.vlgmr.msrb.gmra.mxu1 %v4408_v22  ;;  %v2991_v15 = vadd.f32 %v11078_v32, %v11077_v53 }
 0x616   : > { %v3314_v23 = vadd.f32 %v9164_v58, %v3152_v29  ;;  %v6296_v58 = vld [vmem:[%s10740_s5 + $0x3f0] sm:$0xff] }
 0x617   : > { %v10799_v8 = vmax.f32 %v9481_v33, 0.0  ;;  %4786 = vmatpush.msrb.mxu3 %v6296_v58 }
 0x618   : > { %v3968_v6 = vld [vmem:[#allocation4 + $0xc8] sm:$0xff]  ;;  %v3512_v9 = vadd.f32 %v11079_v17, %v3314_v23  ;;  %v11084_v17 = vld [vmem:[#allocation25_spill] sm:$0xff] }
 0x619   : > { %3935 = vst [vmem:[#allocation4 + $0xd9] sm:$0xff] %v10799_v8  ;;  %4081 = vmatmul.f32.gmra.mxu2 %v3968_v6  ;;  %4200 = vmatmul.f32.gmra.mxu3 %v3968_v6 }
 0x61a   : > { %4318 = vmatmul.f32.gmra.mxu0 %v3968_v6  ;;  %v3773_v36 = vpop.f32.mrf.mxu1 }
 0x61b   : > { %v3835_v22 = vadd.f32 %v3773_v36, %v3673_v14  ;;  %v3153_v14 = vadd.f32 %v11080_v31, %v2991_v15  ;;  %v3674_v36 = vadd.f32 %v9180_v34, %v3512_v9  ;;  %v11083_v15 = vmax.f32 %v9146_v54, 0.0  ;;  %v11085_v9 = vld [vmem:[#allocation57_spill] sm:$0xff]  ;;  %v11086_v31 = vld [vmem:[#allocation79_spill] sm:$0xff] }
 0x61d   : > { %v9497_v26 = vadd.f32 %v9132_v38, %v3835_v22  ;;  %4480 = vmatmul.f32.gmra.mxu1 %v4409_v11  ;;  %v6271_v11 = vld [vmem:[%s10740_s5 + $0x228] sm:$0xff]  ;;  %v3315_v53 = vadd.f32 %v9186_v37, %v3153_v14 }
 0x61e   : > { %4633 = vmatpush.msrb.mxu2 %v6271_v11  ;;  %v11087_v11 = vld [vmem:[#allocation49_spill] sm:$0xff] }
 0x61f   : > { %v10798_v6 = vmax.f32 %v9497_v26, 0.0  ;;  %v3513_v58 = vadd.f32 %v11086_v31, %v3315_v53  ;;  %v11090_v31 = vld [vmem:[#allocation56_spill] sm:$0xff] }
 0x620   : > { %v3969_v3 = vld [vmem:[#allocation4 + $0xd8] sm:$0xff] }
 0x621   : > { %3936 = vst [vmem:[#allocation4 + $0xe1] sm:$0xff] %v10798_v6  ;;  %4084 = vmatmul.f32.gmra.mxu2 %v3969_v3  ;;  %4203 = vmatmul.f32.gmra.mxu3 %v3969_v3  ;;  %v9524_v6 = vpop.f32.mrf.mxu0  ;;  %v3675_v37 = vadd.f32 %v9202_v45, %v3513_v58  ;;  %v11089_v45 = vld [vmem:[#allocation48_spill] sm:$0xff] }
 0x622   : > { %4321 = vmatmul.f32.gmra.mxu0 %v3969_v3  ;;  %v3776_v29 = vpop.f32.mrf.mxu1  ;;  %v2992_v3 = vadd.f32 %v11085_v9, %v11084_v17  ;;  %v2993_v58 = vadd.f32 %v11090_v31, %v11089_v45  ;;  %v11094_v45 = vld [vmem:[#allocation43_spill] sm:$0xff]  ;;  %v11095_v31 = vld [vmem:[#allocation14_spill] sm:$0xff] }
 0x623   : > { %v3836_v22 = vadd.f32 %v3776_v29, %v3674_v36 }
 0x624   : > { %v9513_v23 = vpop.f32.mrf.mxu2  ;;  %v4156_v34 = vpop.f32.mrf.mxu3  ;;  %v3154_v8 = vadd.f32 %v11087_v11, %v2992_v3  ;;  %v11088_v3 = vmax.f32 %v9167_v13, 0.0  ;;  %v11091_v11 = vld [vmem:[#allocation82_spill] sm:$0xff]  ;;  %v6295_v13 = vld [vmem:[%s10740_s5 + $0x3e8] sm:$0xff] }
 0x625   : > { %11081 = vst [vmem:[#allocation37_spill] sm:$0xff] %v9513_v23  ;;  %v9517_v32 = vadd.f32 %v9132_v38, %v3836_v22  ;;  %4483 = vmatmul.f32.gmra.mxu1 %v11083_v15  ;;  %4787 = vmatpush.msrb.mxu3 %v6295_v13 }
 0x626   : > { %v3316_v53 = vadd.f32 %v9205_v27, %v3154_v8 }
 0x627   : > { %11082 = vst [vmem:[#allocation65_spill] sm:$0xff] %v9517_v32  ;;  %v10800_v36 = vmax.f32 %v9517_v32, 0.0 }
 0x628   : > { %v3970_v29 = vld [vmem:[#allocation4 + $0xe0] sm:$0xff] }
 0x629   : > { %3937 = vst [vmem:[#allocation4 + $0xf1] sm:$0xff] %v10800_v36  ;;  %4087 = vmatmul.f32.gmra.mxu2 %v3970_v29  ;;  %4206 = vmatmul.f32.gmra.mxu3 %v3970_v29  ;;  %v3514_v36 = vadd.f32 %v11091_v11, %v3316_v53  ;;  %v11096_v11 = vld [vmem:[#allocation83_spill] sm:$0xff] }
 0x62a   : > { %4324 = vmatmul.f32.gmra.mxu0 %v3970_v29  ;;  %v3779_v54 = vpop.f32.mrf.mxu1 }
 0x62b   : > { %v3837_v14 = vadd.f32 %v3779_v54, %v3675_v37  ;;  %v11092_v54 = vld [vmem:[#allocation38_spill] sm:$0xff]  ;;  %v3676_v27 = vadd.f32 %v9223_v10, %v3514_v36 }
 0x62c   : > { %v4040_v22 = vpop.f32.mrf.mxu2  ;;  %v4159_v15 = vpop.f32.mrf.mxu3  ;;  %v3155_v32 = vadd.f32 %v11092_v54, %v2993_v58  ;;  %v2994_v58 = vadd.f32 %v11095_v31, %v11094_v45  ;;  %v11099_v45 = vld [vmem:[#allocation26_spill] sm:$0xff] }
 0x62d   : > { %v3873_v17 = vadd.f32 %v9132_v38, %v3837_v14  ;;  %v9533_v9 = vadd.f32 %v4153_v47, %v4040_v22  ;;  %4486 = vmatmul.f32.gmra.mxu1 %v11088_v3  ;;  %v6270_v47 = vld [vmem:[%s10740_s5 + $0x220] sm:$0xff]  ;;  %v11093_v3 = vmax.f32 %v9183_v59, 0.0 }
 0x62e   : > { %4634 = vmatpush.msrb.mxu2 %v6270_v47  ;;  %v3317_v10 = vadd.f32 %v9230_v61, %v3155_v32 }
 0x62f   : > { %v9540_v23 = vmax.f32 %v3873_v17, 0.0  ;;  %v9542_v29 = vpop.f32.mrf.mxu0 }
 0x630   : > { %v3971_v37 = vld [vmem:[#allocation4 + $0xf0] sm:$0xff] }
 0x631   : > { %3938 = vst [vmem:[#allocation4 + $0xf9] sm:$0xff] %v9540_v23  ;;  %4090 = vmatmul.f32.gmra.mxu2 %v3971_v37  ;;  %4209 = vmatmul.f32.gmra.mxu3 %v3971_v37 }
 0x632   : > { %4327 = vmatmul.f32.gmra.mxu0 %v3971_v37  ;;  %v3782_v8 = vpop.f32.mrf.mxu1  ;;  %v3515_v37 = vadd.f32 %v11096_v11, %v3317_v10 }
 0x633   : > { %v3838_v14 = vadd.f32 %v3782_v8, %v3676_v27  ;;  %v11097_v8 = vld [vmem:[#allocation5_spill] sm:$0xff] }
 0x634   : > { %v4043_v22 = vpop.f32.mrf.mxu2  ;;  %v4162_v53 = vpop.f32.mrf.mxu3  ;;  %v3156_v47 = vadd.f32 %v11097_v8, %v2994_v58  ;;  %v3677_v61 = vadd.f32 %v9246_v2, %v3515_v37  ;;  %v11100_v2 = vld [vmem:[#allocation32_spill] sm:$0xff]  ;;  %v11101_v8 = vld [vmem:[#allocation23_spill] sm:$0xff] }
 0x635   : > { %v3874_v36 = vadd.f32 %v9132_v38, %v3838_v14  ;;  %v9555_v17 = vadd.f32 %v4156_v34, %v4043_v22  ;;  %4489 = vmatmul.f32.gmra.mxu1 %v11093_v3  ;;  %v11098_v3 = vmax.f32 %v9197_v1, 0.0  ;;  %v2995_v31 = vadd.f32 %v11100_v2, %v11099_v45  ;;  %v6294_v1 = vld [vmem:[%s10740_s5 + $0x3e0] sm:$0xff] }
 0x636   : > { %v3318_v22 = vadd.f32 %v9248_v16, %v3156_v47  ;;  %4788 = vmatpush.msrb.mxu3 %v6294_v1  ;;  %v11104_v45 = vld [vmem:[#allocation59_spill] sm:$0xff] }
 0x637   : > { %v9562_v54 = vmax.f32 %v3874_v36, 0.0  ;;  %v9564_v27 = vpop.f32.mrf.mxu0 }
 0x638   : > { %v3972_v13 = vld [vmem:[#allocation4 + $0xf8] sm:$0xff]  ;;  %v3516_v58 = vadd.f32 %v9200_v7, %v3318_v22 }
 0x639   : > { %3939 = vst [vmem:[#allocation4 + $0x109] sm:$0xff] %v9562_v54  ;;  %4093 = vmatmul.f32.gmra.mxu2 %v3972_v13  ;;  %4212 = vmatmul.f32.gmra.mxu3 %v3972_v13  ;;  %v6269_v7 = vld [vmem:[%s10740_s5 + $0x218] sm:$0xff] }
 0x63a   : > { %4330 = vmatmul.f32.gmra.mxu0 %v3972_v13  ;;  %v3785_v59 = vpop.f32.mrf.mxu1  ;;  %v3678_v16 = vadd.f32 %v9268_v63, %v3516_v58  ;;  %4635 = vmatpush.msrb.mxu2 %v6269_v7 }
 0x63b   : > { %v3839_v34 = vadd.f32 %v3785_v59, %v3677_v61  ;;  %v3157_v61 = vadd.f32 %v11101_v8, %v2995_v31 }
 0x63c   : > { %v4046_v32 = vpop.f32.mrf.mxu2  ;;  %v4165_v14 = vpop.f32.mrf.mxu3 }
 0x63d   : > { %v3875_v10 = vadd.f32 %v9132_v38, %v3839_v34  ;;  %v9571_v36 = vadd.f32 %v4159_v15, %v4046_v32  ;;  %4492 = vmatmul.f32.gmra.mxu1 %v11098_v3  ;;  %v3319_v63 = vadd.f32 %v9274_v4, %v3157_v61  ;;  %v11103_v3 = vld [vmem:[#allocation9_spill] sm:$0xff] }
 0x63e   : > { %v2996_v2 = vadd.f32 %v11104_v45, %v11103_v3  ;;  %v11110_v3 = vld [vmem:[#allocation85_spill] sm:$0xff] }
 0x63f   : > { %v9578_v11 = vmax.f32 %v3875_v10, 0.0  ;;  %v9580_v37 = vpop.f32.mrf.mxu0  ;;  %v11102_v10 = vmax.f32 %v9215_v62, 0.0  ;;  %v3517_v31 = vadd.f32 %v9219_v51, %v3319_v63 }
 0x640   : > { %v3973_v13 = vld [vmem:[#allocation4 + $0x108] sm:$0xff] }
 0x641   : > { %3940 = vst [vmem:[#allocation4 + $0x111] sm:$0xff] %v9578_v11  ;;  %4096 = vmatmul.f32.gmra.mxu2 %v3973_v13  ;;  %4215 = vmatmul.f32.gmra.mxu3 %v3973_v13  ;;  %v3679_v4 = vadd.f32 %v9297_v35, %v3517_v31  ;;  %v11109_v35 = vld [vmem:[#allocation58_spill] sm:$0xff] }
 0x642   : > { %4333 = vmatmul.f32.gmra.mxu0 %v3973_v13  ;;  %v3788_v15 = vpop.f32.mrf.mxu1 }
 0x643   : > { %v3840_v47 = vadd.f32 %v3788_v15, %v3678_v16  ;;  %v11105_v16 = vld [vmem:[#allocation34_spill] sm:$0xff] }
 0x644   : > { %v4049_v59 = vpop.f32.mrf.mxu2  ;;  %v4168_v34 = vpop.f32.mrf.mxu3  ;;  %v3158_v1 = vadd.f32 %v11105_v16, %v2996_v2  ;;  %v11111_v16 = vld [vmem:[#allocation60_spill] sm:$0xff] }
 0x645   : > { %v3876_v32 = vadd.f32 %v9132_v38, %v3840_v47  ;;  %v9593_v22 = vadd.f32 %v4162_v53, %v4049_v59  ;;  %4495 = vmatmul.f32.gmra.mxu1 %v11102_v10  ;;  %v11106_v59 = vld [vmem:[#allocation84_spill] sm:$0xff] }
 0x646   : > { %v3320_v51 = vadd.f32 %v9300_v41, %v3158_v1  ;;  %v11107_v63 = vmax.f32 %v11106_v59, 0.0 }
 0x647   : > { %v9600_v58 = vmax.f32 %v3876_v32, 0.0  ;;  %v9602_v13 = vpop.f32.mrf.mxu0  ;;  %v11108_v32 = vld [vmem:[#allocation51_spill] sm:$0xff] }
 0x648   : > { %v3974_v8 = vld [vmem:[#allocation4 + $0x110] sm:$0xff]  ;;  %v2997_v10 = vadd.f32 %v11109_v35, %v11108_v32  ;;  %v3518_v45 = vadd.f32 %v11110_v3, %v3320_v51  ;;  %v11113_v32 = vld [vmem:[#allocation28_spill] sm:$0xff]  ;;  %v11114_v35 = vld [vmem:[#allocation15_spill] sm:$0xff] }
 0x649   : > { %3941 = vst [vmem:[#allocation4 + $0x121] sm:$0xff] %v9600_v58  ;;  %4099 = vmatmul.f32.gmra.mxu2 %v3974_v8  ;;  %4218 = vmatmul.f32.gmra.mxu3 %v3974_v8 }
 0x64a   : > { %4336 = vmatmul.f32.gmra.mxu0 %v3974_v8  ;;  %v3791_v62 = vpop.f32.mrf.mxu1  ;;  %v3680_v41 = vadd.f32 %v9322_v48, %v3518_v45 }
 0x64b   : > { %v3841_v53 = vadd.f32 %v3791_v62, %v3679_v4  ;;  %v3159_v4 = vadd.f32 %v11111_v16, %v2997_v10  ;;  %v6268_v62 = vld [vmem:[%s10740_s5 + $0x210] sm:$0xff]  ;;  %v2998_v10 = vadd.f32 %v11114_v35, %v11113_v32 }
 0x64c   : > { %v4052_v61 = vpop.f32.mrf.mxu2  ;;  %v4171_v15 = vpop.f32.mrf.mxu3  ;;  %4636 = vmatpush.msrb.mxu2 %v6268_v62 }
 0x64d   : > { %v3877_v7 = vadd.f32 %v9132_v38, %v3841_v53  ;;  %v9609_v47 = vadd.f32 %v4165_v14, %v4052_v61  ;;  %4498 = vmatmul.f32.gmra.mxu1 %v11107_v63  ;;  %v6293_v14 = vld [vmem:[%s10740_s5 + $0x3d8] sm:$0xff]  ;;  %v3321_v48 = vadd.f32 %v9326_v30, %v3159_v4  ;;  %v11112_v63 = vmax.f32 %v9251_v20, 0.0 }
 0x64e   : > { %4789 = vmatpush.msrb.mxu3 %v6293_v14 }
 0x64f   : > { %v9616_v2 = vmax.f32 %v3877_v7, 0.0  ;;  %v9618_v31 = vpop.f32.mrf.mxu0  ;;  %v3519_v3 = vadd.f32 %v9265_v5, %v3321_v48  ;;  %v11117_v48 = vld [vmem:[#allocation53_spill] sm:$0xff] }
 0x650   : > { %v3975_v8 = vld [vmem:[#allocation4 + $0x120] sm:$0xff] }
 0x651   : > { %3942 = vst [vmem:[#allocation4 + $0x129] sm:$0xff] %v9616_v2  ;;  %4102 = vmatmul.f32.gmra.mxu2 %v3975_v8  ;;  %4221 = vmatmul.f32.gmra.mxu3 %v3975_v8  ;;  %v3681_v30 = vadd.f32 %v9352_v60, %v3519_v3  ;;  %v11118_v60 = vld [vmem:[#allocation33_spill] sm:$0xff]  ;;  %v11119_v3 = vld [vmem:[#allocation67_spill] sm:$0xff] }
 0x652   : > { %4339 = vmatmul.f32.gmra.mxu0 %v3975_v8  ;;  %v3794_v1 = vpop.f32.mrf.mxu1 }
 0x653   : > { %v3842_v53 = vadd.f32 %v3794_v1, %v3680_v41  ;;  %v11115_v41 = vld [vmem:[#allocation63_spill] sm:$0xff] }
 0x654   : > { %v4055_v61 = vpop.f32.mrf.mxu2  ;;  %v4174_v51 = vpop.f32.mrf.mxu3  ;;  %v3160_v14 = vadd.f32 %v11115_v41, %v2998_v10  ;;  %v6290_v41 = vld [vmem:[%s10740_s5 + $0x3c0] sm:$0xff] }
 0x655   : > { %v3878_v7 = vadd.f32 %v9132_v38, %v3842_v53  ;;  %v9631_v59 = vadd.f32 %v4168_v34, %v4055_v61  ;;  %4501 = vmatmul.f32.gmra.mxu1 %v11112_v63  ;;  %v11116_v61 = vmax.f32 %v9271_v39, 0.0  ;;  %v6291_v39 = vld [vmem:[%s10740_s5 + $0x3c8] sm:$0xff] }
 0x656   : > { %v3322_v5 = vadd.f32 %v9357_v46, %v3160_v14 }
 0x657   : > { %v9638_v45 = vmax.f32 %v3878_v7, 0.0  ;;  %v9640_v8 = vpop.f32.mrf.mxu0  ;;  %v2999_v7 = vadd.f32 %v11118_v60, %v11117_v48  ;;  %v11122_v48 = vld [vmem:[#allocation16_spill] sm:$0xff] }
 0x658   : > { %v3976_v16 = vld [vmem:[#allocation4 + $0x128] sm:$0xff]  ;;  %v3520_v63 = vadd.f32 %v9292_v49, %v3322_v5 }
 0x659   : > { %3943 = vst [vmem:[#allocation4 + $0x139] sm:$0xff] %v9638_v45  ;;  %4105 = vmatmul.f32.gmra.mxu2 %v3976_v16  ;;  %4224 = vmatmul.f32.gmra.mxu3 %v3976_v16 }
 0x65a   : > { %4342 = vmatmul.f32.gmra.mxu0 %v3976_v16  ;;  %v3797_v20 = vpop.f32.mrf.mxu1  ;;  %v3161_v16 = vadd.f32 %v11119_v3, %v2999_v7  ;;  %v3682_v46 = vadd.f32 %v9390_v55, %v3520_v63  ;;  %v11123_v3 = vld [vmem:[#allocation69_spill] sm:$0xff] }
 0x65b   : > { %v3843_v34 = vadd.f32 %v3797_v20, %v3681_v30 }
 0x65c   : > { %v4058_v4 = vpop.f32.mrf.mxu2  ;;  %v4177_v1 = vpop.f32.mrf.mxu3  ;;  %v3323_v20 = vadd.f32 %v9399_v18, %v3161_v16 }
 0x65d   : > { %v3879_v62 = vadd.f32 %v9132_v38, %v3843_v34  ;;  %v9647_v53 = vadd.f32 %v4171_v15, %v4058_v4  ;;  %4504 = vmatmul.f32.gmra.mxu1 %v11116_v61  ;;  %v6292_v38 = vld [vmem:[%s10740_s5 + $0x3d0] sm:$0xff]  ;;  %v6267_v15 = vld [vmem:[%s10740_s5 + $0x208] sm:$0xff]  ;;  %v9677_v34 = vld [vmem:[%s10739_s4] ss:$0 sm:$0xff] }
 0x65e   : > { %4790 = vmatpush.msrb.mxu3 %v6292_v38  ;;  %4637 = vmatpush.msrb.mxu2 %v6267_v15  ;;  %v11121_v61 = vld [vmem:[#allocation29_spill] sm:$0xff]  ;;  %v3521_v7 = vadd.f32 %v9318_v28, %v3323_v20  ;;  %v6286_v20 = vld [vmem:[%s10740_s5 + $0x3a0] sm:$0xff] }
 0x65f   : > { %v9654_v32 = vmax.f32 %v3879_v62, 0.0  ;;  %v9656_v35 = vpop.f32.mrf.mxu0  ;;  %v11120_v62 = vmax.f32 %v9289_v24, 0.0  ;;  %v3000_v60 = vadd.f32 %v11122_v48, %v11121_v61  ;;  %v6288_v28 = vld [vmem:[%s10740_s5 + $0x3b0] sm:$0xff] }
 0x660   : > { %v3977_v10 = vld [vmem:[#allocation4 + $0x138] sm:$0xff]  ;;  %4791 = vmatpush.msrb.mxu3 %v6291_v39  ;;  %v6287_v39 = vld [vmem:[%s10740_s5 + $0x3a8] sm:$0xff] }
 0x661   : > { %3944 = vst [vmem:[#allocation4 + $0x141] sm:$0xff] %v9654_v32  ;;  %4108 = vmatmul.f32.gmra.mxu2 %v3977_v10  ;;  %4227 = vmatmul.f32.gmra.mxu3 %v3977_v10  ;;  %v3162_v16 = vadd.f32 %v11123_v3, %v3000_v60  ;;  %v6266_v3 = vld [vmem:[%s10740_s5 + $0x200] sm:$0xff] }
 0x662   : > { %4345 = vmatmul.f32.gmra.mxu0 %v3977_v10  ;;  %v3800_v49 = vpop.f32.mrf.mxu1  ;;  %4792 = vmatpush.msrb.mxu3 %v6290_v41  ;;  %v6289_v10 = vld [vmem:[%s10740_s5 + $0x3b8] sm:$0xff] }
 0x663   : > { %v3844_v55 = vadd.f32 %v3800_v49, %v3682_v46  ;;  %v3324_v15 = vadd.f32 %v9428_v12, %v3162_v16  ;;  %4638 = vmatpush.msrb.mxu2 %v6266_v3  ;;  %v6309_v3 = vld [vmem:[%s10740_s5 + $0x158] sm:$0xff] }
 0x664   : > { %v4061_v14 = vpop.f32.mrf.mxu2  ;;  %v4180_v30 = vpop.f32.mrf.mxu3  ;;  %4793 = vmatpush.msrb.mxu3 %v6289_v10 }
 0x665   : > { %v3880_v4 = vadd.f32 %v9677_v34, %v3844_v55  ;;  %v9680_v5 = vadd.f32 %v4174_v51, %v4061_v14  ;;  %4507 = vmatmul.f32.gmra.mxu1 %v11120_v62  ;;  %v3683_v51 = vadd.f32 %v9425_v25, %v3521_v7  ;;  %v11124_v14 = vmax.f32 %v9311_v0, 0.0  ;;  %v11126_v62 = vld [vmem:[#allocation35_spill] sm:$0xff]  ;;  %v11127_v0 = vld [vmem:[#allocation73_spill] sm:$0xff] }
 0x666   : > { %4794 = vmatpush.msrb.mxu3 %v6288_v28  ;;  %v3522_v48 = vadd.f32 %v9350_v52, %v3324_v15  ;;  %v6284_v52 = vld [vmem:[%s10740_s5 + $0x390] sm:$0xff]  ;;  %v6313_v28 = vld [vmem:[%s10740_s5 + $0x178] sm:$0xff] }
 0x667   : > { %v9687_v63 = vmax.f32 %v3880_v4, 0.0  ;;  %v9695_v24 = vpop.f32.mrf.mxu0  ;;  %v11125_v4 = vld [vmem:[#allocation12_spill] sm:$0xff]  ;;  %4983 = vmatpush.msra.mxu0 %v6313_v28 }
 0x668   : > { %v3978_v18 = vld [vmem:[#allocation4 + $0x140] sm:$0xff]  ;;  %4795 = vmatpush.msrb.mxu3 %v6287_v39  ;;  %v3001_v61 = vadd.f32 %v11126_v62, %v11125_v4  ;;  %v11131_v62 = vld [vmem:[#allocation17_spill] sm:$0xff] }
 0x669   : > { %3945 = vst [vmem:[#allocation4 + $0x151] sm:$0xff] %v9687_v63  ;;  %4111 = vmatmul.f32.gmra.mxu2 %v3978_v18  ;;  %4230 = vmatmul.f32.gmra.mxu3 %v3978_v18  ;;  %v11130_v4 = vld [vmem:[#allocation55_spill] sm:$0xff] }
 0x66a   : > { %4348 = vmatmul.f32.gmra.mxu0 %v3978_v18  ;;  %v3803_v46 = vpop.f32.mrf.mxu1  ;;  %4796 = vmatpush.msrb.mxu3 %v6286_v20  ;;  %v3163_v7 = vadd.f32 %v11127_v0, %v3001_v61  ;;  %v3684_v18 = vadd.f32 %v9449_v43, %v3522_v48  ;;  %v6283_v43 = vld [vmem:[%s10740_s5 + $0x388] sm:$0xff]  ;;  %v6312_v20 = vld [vmem:[%s10740_s5 + $0x170] sm:$0xff] }
 0x66b   : > { %v3845_v38 = vadd.f32 %v3803_v46, %v3683_v51  ;;  %4984 = vmatpush.msra.mxu0 %v6312_v20 }
 0x66c   : > { %v4064_v49 = vpop.f32.mrf.mxu2  ;;  %v9703_v25 = vpop.f32.mrf.mxu3  ;;  %v3325_v39 = vadd.f32 %v9453_v21, %v3163_v7  ;;  %v3002_v21 = vadd.f32 %v11131_v62, %v11130_v4  ;;  %v6308_v62 = vld [vmem:[%s10740_s5 + $0x150] sm:$0xff] }
 0x66d   : > { %v3881_v55 = vadd.f32 %v9677_v34, %v3845_v38  ;;  %v9707_v41 = vadd.f32 %v4177_v1, %v4064_v49  ;;  %4510 = vmatmul.f32.gmra.mxu1 %v11124_v14  ;;  %v6285_v1 = vld [vmem:[%s10740_s5 + $0x398] sm:$0xff]  ;;  %v6282_v14 = vld [vmem:[%s10740_s5 + $0x380] sm:$0xff] }
 0x66e   : > { %4797 = vmatpush.msrb.mxu3 %v6285_v1  ;;  %v3523_v61 = vadd.f32 %v9387_v42, %v3325_v39  ;;  %v6310_v42 = vld [vmem:[%s10740_s5 + $0x160] sm:$0xff] }
 0x66f   : > { %v9717_v60 = vmax.f32 %v3881_v55, 0.0  ;;  %v9731_v16 = vpop.f32.mrf.mxu0  ;;  %v11129_v55 = vmax.f32 %v9333_v50, 0.0  ;;  %v6311_v50 = vld [vmem:[%s10740_s5 + $0x168] sm:$0xff]  ;;  %v11135_v39 = vld [vmem:[#allocation31_spill] sm:$0xff] }
 0x670   : > { %v3979_v12 = vld [vmem:[#allocation4 + $0x150] sm:$0xff]  ;;  %4798 = vmatpush.msrb.mxu3 %v6284_v52  ;;  %v3685_v0 = vadd.f32 %v9477_v40, %v3523_v61  ;;  %4985 = vmatpush.msra.mxu0 %v6311_v50  ;;  %v6345_v50 = vld [vmem:[%s10740_s5 + $0x478] sm:$0xff] }
 0x671   : > { %3946 = vst [vmem:[#allocation4 + $0x159] sm:$0xff] %v9717_v60  ;;  %4114 = vmatmul.f32.gmra.mxu2 %v3979_v12  ;;  %4233 = vmatmul.f32.gmra.mxu3 %v3979_v12 }
 0x672   : > { %4351 = vmatmul.f32.gmra.mxu0 %v3979_v12  ;;  %v3806_v10 = vpop.f32.mrf.mxu1  ;;  %4799 = vmatpush.msrb.mxu3 %v6283_v43  ;;  %v11132_v12 = vld [vmem:[#allocation76_spill] sm:$0xff] }
 0x673   : > { %v3846_v51 = vadd.f32 %v3806_v10, %v3684_v18  ;;  %v3164_v1 = vadd.f32 %v11132_v12, %v3002_v21  ;;  %4986 = vmatpush.msra.mxu0 %v6310_v42  ;;  %v11138_v21 = vld [vmem:[#allocation78_spill] sm:$0xff]  ;;  %5307 = vmatpush.msra.mxu2 %v6345_v50 }
 0x674   : > { %v4067_v46 = vpop.f32.mrf.mxu2  ;;  %v4186_v38 = vpop.f32.mrf.mxu3  ;;  %4800 = vmatpush.msrb.mxu3 %v6282_v14  ;;  %v11137_v14 = vld [vmem:[#allocation47_spill] sm:$0xff] }
 0x675   : > { %v3882_v49 = vadd.f32 %v9677_v34, %v3846_v51  ;;  %v9741_v15 = vadd.f32 %v4180_v30, %v4067_v46  ;;  %4513 = vmatmul.f32.gmra.mxu1 %v11129_v55  ;;  %v3326_v40 = vadd.f32 %v9472_v19, %v3164_v1  ;;  %v11134_v46 = vmax.f32 %v9361_v44, 0.0  ;;  %4987 = vmatpush.msra.mxu0 %v6309_v3 }
 0x677   : > { %11128 = vst [vmem:[#allocation66_spill] sm:$0xff] %v9741_v15  ;;  %v9754_v30 = vmax.f32 %v3882_v49, 0.0  ;;  %v9769_v51 = vpop.f32.mrf.mxu0  ;;  %v11136_v49 = vld [vmem:[#allocation18_spill] sm:$0xff]  ;;  %v3524_v20 = vadd.f32 %v11137_v14, %v3326_v40  ;;  %4988 = vmatpush.msra.mxu0 %v6308_v62 }
 0x678   : > { %v3980_v48 = vld [vmem:[#allocation4 + $0x158] sm:$0xff]  ;;  %v3003_v55 = vadd.f32 %v11136_v49, %v11135_v39 }
 0x679   : > { %3947 = vst [vmem:[#allocation4 + $0x169] sm:$0xff] %v9754_v30  ;;  %4117 = vmatmul.f32.gmra.mxu2 %v3980_v48  ;;  %4236 = vmatmul.f32.gmra.mxu3 %v3980_v48  ;;  %v3686_v61 = vadd.f32 %v9494_v56, %v3524_v20  ;;  %v6306_v56 = vld [vmem:[%s10740_s5 + $0x140] sm:$0xff]  ;;  %v6329_v40 = vld [vmem:[%s10740_s5 + $0x2f8] sm:$0xff]  ;;  %v6304_v20 = vld [vmem:[%s10740_s5 + $0x130] sm:$0xff] }
 0x67a   : > { %4354 = vmatmul.f32.gmra.mxu0 %v3980_v48  ;;  %v3809_v7 = vpop.f32.mrf.mxu1  ;;  %v6307_v48 = vld [vmem:[%s10740_s5 + $0x148] sm:$0xff]  ;;  %5145 = vmatpush.msra.mxu1 %v6329_v40  ;;  %v6300_v40 = vld [vmem:[%s10740_s5 + $0x110] sm:$0xff] }
 0x67b   : > { %v3847_v18 = vadd.f32 %v3809_v7, %v3685_v0  ;;  %4989 = vmatpush.msra.mxu0 %v6307_v48 }
 0x67c   : > { %v4070_v52 = vpop.f32.mrf.mxu2  ;;  %v4189_v10 = vpop.f32.mrf.mxu3 }
 0x67d   : > { %v3883_v43 = vadd.f32 %v9677_v34, %v3847_v18  ;;  %v9773_v28 = vadd.f32 %v9703_v25, %v4070_v52  ;;  %4516 = vmatmul.f32.gmra.mxu1 %v11134_v46  ;;  %v3165_v25 = vadd.f32 %v11138_v21, %v3003_v55  ;;  %v11140_v52 = vld [vmem:[#allocation8_spill] sm:$0xff]  ;;  %4990 = vmatpush.msra.mxu0 %v6306_v56 }
 0x67e   : > { %v11141_v3 = vmax.f32 %v11140_v52, 0.0 }
 0x67f   : > { %11133 = vst [vmem:[#allocation72_spill] sm:$0xff] %v9773_v28  ;;  %v9780_v4 = vmax.f32 %v3883_v43, 0.0  ;;  %v3327_v7 = vadd.f32 %v9491_v57, %v3165_v25  ;;  %v11142_v43 = vld [vmem:[#allocation36_spill] sm:$0xff]  ;;  %v9807_v39 = vpop.f32.mrf.mxu0  ;;  %v6318_v28 = vld [vmem:[%s10740_s5 + $0x2a0] sm:$0xff] }
 0x680   : > { %v3981_v19 = vld [vmem:[#allocation4 + $0x168] sm:$0xff]  ;;  %11143 = vst [vmem:[#allocation10_spill] sm:$0xff] %v9807_v39 }
 0x681   : > { %3948 = vst [vmem:[#allocation4 + $0x171] sm:$0xff] %v9780_v4  ;;  %4120 = vmatmul.f32.gmra.mxu2 %v3981_v19  ;;  %4239 = vmatmul.f32.gmra.mxu3 %v3981_v19  ;;  %v3525_v46 = vadd.f32 %v11142_v43, %v3327_v7  ;;  %v6303_v25 = vld [vmem:[%s10740_s5 + $0x128] sm:$0xff]  ;;  %v6301_v7 = vld [vmem:[%s10740_s5 + $0x118] sm:$0xff] }
 0x682   : > { %4357 = vmatmul.f32.gmra.mxu0 %v3981_v19  ;;  %v3812_v44 = vpop.f32.mrf.mxu1  ;;  %v10029_v39 = vld [vmem:[#allocation4 + $0x6a] sm:$0xff] }
 0x683   : > { %v3848_v12 = vadd.f32 %v3812_v44, %v3686_v61  ;;  %v3687_v55 = vadd.f32 %v9524_v6, %v3525_v46  ;;  %v11146_v44 = vld [vmem:[#allocation41_spill] sm:$0xff]  ;;  %v11151_v46 = vld [vmem:[#allocation62_spill] sm:$0xff] }
 0x684   : > { %v4073_v1 = vpop.f32.mrf.mxu2  ;;  %v4192_v0 = vpop.f32.mrf.mxu3  ;;  %v11147_v48 = vmax.f32 %v11146_v44, 0.0 }
 0x685   : > { %v3884_v42 = vadd.f32 %v9677_v34, %v3848_v12  ;;  %v9799_v18 = vadd.f32 %v4186_v38, %v4073_v1  ;;  %4519 = vmatmul.f32.gmra.mxu1 %v11141_v3  ;;  %v6305_v38 = vld [vmem:[%s10740_s5 + $0x138] sm:$0xff]  ;;  %v6302_v1 = vld [vmem:[%s10740_s5 + $0x120] sm:$0xff] }
 0x686   : > { %4991 = vmatpush.msra.mxu0 %v6305_v38  ;;  %v6328_v38 = vld [vmem:[%s10740_s5 + $0x2f0] sm:$0xff] }
 0x687   : > { %11139 = vst [vmem:[#allocation6_spill] sm:$0xff] %v9799_v18  ;;  %v9809_v49 = vmax.f32 %v3884_v42, 0.0  ;;  %v9832_v56 = vpop.f32.mrf.mxu0  ;;  %v6344_v42 = vld [vmem:[%s10740_s5 + $0x470] sm:$0xff]  ;;  %5146 = vmatpush.msra.mxu1 %v6328_v38 }
 0x688   : > { %v3982_v57 = vld [vmem:[#allocation4 + $0x170] sm:$0xff]  ;;  %4992 = vmatpush.msra.mxu0 %v6304_v20  ;;  %11149 = vst [vmem:[#allocation71_spill] sm:$0xff] %v9832_v56  ;;  %5308 = vmatpush.msra.mxu2 %v6344_v42  ;;  %v6397_v20 = vld [vmem:[#allocation4 + $0x39] sm:$0xff] }
 0x689   : > { %11144 = vst [vmem:[#allocation46_spill] sm:$0xff] %v9809_v49  ;;  %4123 = vmatmul.f32.gmra.mxu2 %v3982_v57  ;;  %4242 = vmatmul.f32.gmra.mxu3 %v3982_v57  ;;  %v6399_v42 = vld [vmem:[#allocation4 + $0x49] sm:$0xff]  ;;  %v6410_v18 = vld [vmem:[#allocation4 + $0xb1] sm:$0xff] }
 0x68a   : > { %3949 = vst [vmem:[#allocation4 + $0x181] sm:$0xff] %v9809_v49  ;;  %4360 = vmatmul.f32.gmra.mxu0 %v3982_v57  ;;  %v3815_v14 = vpop.f32.mrf.mxu1  ;;  %v11152_v57 = vmax.f32 %v11151_v46, 0.0 }
 0x68b   : > { %v3849_v19 = vadd.f32 %v3815_v14, %v3687_v55  ;;  %4993 = vmatpush.msra.mxu0 %v6303_v25  ;;  %v6299_v14 = vld [vmem:[%s10740_s5 + $0x108] sm:$0xff] }
 0x68c   : > { %v4076_v62 = vpop.f32.mrf.mxu2  ;;  %v4195_v21 = vpop.f32.mrf.mxu3 }
 0x68d   : > { %v3885_v6 = vadd.f32 %v9677_v34, %v3849_v19  ;;  %v9823_v61 = vadd.f32 %v4189_v10, %v4076_v62  ;;  %4522 = vmatmul.f32.gmra.mxu1 %v11147_v48  ;;  %v6396_v34 = vld [vmem:[#allocation4 + $0x31] sm:$0xff]  ;;  %4994 = vmatpush.msra.mxu0 %v6302_v1  ;;  %v6298_v19 = vld [vmem:[%s10740_s5 + $0x100] sm:$0xff] }
 0x68e   : > { %v11155_v48 = vld [vmem:[#allocation27_spill] sm:$0xff]  ;;  %v3985_v1 = vld [vmem:[#allocation4 + $0x198] sm:$0xff] }
 0x68f   : > { %11145 = vst [vmem:[#allocation40_spill] sm:$0xff] %v9823_v61  ;;  %v9827_v50 = vmax.f32 %v3885_v6, 0.0  ;;  %4995 = vmatpush.msra.mxu0 %v6301_v7  ;;  %v9861_v62 = vpop.f32.mrf.mxu0  ;;  %v6398_v7 = vld [vmem:[#allocation4 + $0x19] sm:$0xff]  ;;  %v9966_v61 = vld [vmem:[#allocation4 + $0x4a] sm:$0xff] }
 0x690   : > { %11153 = vst [vmem:[#allocation52_spill] sm:$0xff] %v9861_v62  ;;  %v6322_v62 = vld [vmem:[%s10740_s5 + $0x2c0] sm:$0xff] }
 0x691   : > { %11148 = vst [vmem:[#allocation70_spill] sm:$0xff] %v9827_v50  ;;  %v3983_v12 = vld [vmem:[#allocation4 + $0x180] sm:$0xff]  ;;  %4801 = vmatmul.f32.vlgmr.msrb.gmra.mxu3 %v6396_v34  ;;  %4996 = vmatpush.msra.mxu0 %v6300_v40  ;;  %v6343_v40 = vld [vmem:[%s10740_s5 + $0x468] sm:$0xff] }
 0x692   : > { %3950 = vst [vmem:[#allocation4 + $0x189] sm:$0xff] %v9827_v50  ;;  %4126 = vmatmul.f32.gmra.mxu2 %v3983_v12  ;;  %4363 = vmatmul.f32.gmra.mxu0 %v3983_v12  ;;  %v9835_v10 = vpop.f32.mrf.mxu1  ;;  %v11156_v12 = vmax.f32 %v11155_v48, 0.0  ;;  %v6402_v48 = vld [vmem:[#allocation3 + $0x8] sm:$0xff] }
 0x693   : > { %4997 = vmatpush.msra.mxu0 %v6299_v14  ;;  %5309 = vmatpush.msra.mxu2 %v6343_v40  ;;  %v6327_v14 = vld [vmem:[%s10740_s5 + $0x2e8] sm:$0xff]  ;;  %v9984_v50 = vld [vmem:[#allocation4 + $0x52] sm:$0xff] }
 0x694   : > { %v4079_v52 = vpop.f32.mrf.mxu2  ;;  %v4198_v3 = vpop.f32.mrf.mxu3  ;;  %5147 = vmatpush.msra.mxu1 %v6327_v14 }
 0x695   : > { %v9846_v43 = vadd.f32 %v4192_v0, %v4079_v52  ;;  %4525 = vmatmul.f32.gmra.mxu1 %v11152_v57  ;;  %4998 = vmatpush.msra.mxu0 %v6298_v19  ;;  %v6400_v19 = vld [vmem:[#allocation4 + $0x21] sm:$0xff] }
 0x697   : > { %11150 = vst [vmem:[#allocation24_spill] sm:$0xff] %v9846_v43  ;;  %v9872_v57 = vpop.f32.mrf.mxu0 }
 0x698   : > { %11157 = vst [vmem:[#allocation19_spill] sm:$0xff] %v9872_v57 }
 0x699   : > { %v3984_v55 = vld [vmem:[#allocation4 + $0x188] sm:$0xff]  ;;  %4804 = vmatmul.f32.gmra.mxu3 %v6397_v20 }
 0x69a   : > { %4129 = vmatmul.f32.gmra.mxu2 %v3984_v55  ;;  %4366 = vmatmul.f32.gmra.mxu0 %v3984_v55  ;;  %v9856_v0 = vpop.f32.mrf.mxu1  ;;  %v11159_v55 = vmax.f32 %v9481_v33, 0.0  ;;  %v11161_v33 = vmax.f32 %v9497_v26, 0.0  ;;  %v11164_v26 = vld [vmem:[#allocation65_spill] sm:$0xff] }
 0x69c   : > { %v4082_v25 = vpop.f32.mrf.mxu2  ;;  %v4201_v6 = vpop.f32.mrf.mxu3 }
 0x69d   : > { %v9863_v44 = vadd.f32 %v4195_v21, %v4082_v25  ;;  %4528 = vmatmul.f32.gmra.mxu1 %v11156_v12  ;;  %v6401_v25 = vld [vmem:[#allocation4 + $0x51] sm:$0xff] }
 0x69f   : > { %11154 = vst [vmem:[#allocation61_spill] sm:$0xff] %v9863_v44  ;;  %v9887_v40 = vpop.f32.mrf.mxu0 }
 0x6a0   : > { %11162 = vst [vmem:[#allocation11_spill] sm:$0xff] %v9887_v40 }
 0x6a1   : > { %4807 = vmatmul.f32.gmra.mxu3 %v6399_v42 }
 0x6a2   : > { %4639 = vmatmul.f32.vlgmr.msrb.gmra.mxu2 %v6398_v7  ;;  %4369 = vmatmul.f32.gmra.mxu0 %v3985_v1  ;;  %v9867_v52 = vpop.f32.mrf.mxu1 }
 0x6a4   : > { %v4085_v46 = vpop.f32.mrf.mxu2  ;;  %v4204_v21 = vpop.f32.mrf.mxu3 }
 0x6a5   : > { %v9874_v38 = vadd.f32 %v4198_v3, %v4085_v46  ;;  %4531 = vmatmul.f32.gmra.mxu1 %v11159_v55  ;;  %v4930_v46 = vld [vmem:[#allocation4 + $0x2] sm:$0xff] }
 0x6a6   : > { %v6403_v55 = vld [vmem:[#allocation4 + $0x61] sm:$0xff] }
 0x6a7   : > { %11158 = vst [vmem:[#allocation75_spill] sm:$0xff] %v9874_v38  ;;  %v6404_v38 = vld [vmem:[#allocation4 + $0x69] sm:$0xff] }
 0x6a9   : > { %4810 = vmatmul.f32.gmra.mxu3 %v6401_v25 }
 0x6aa   : > { %4642 = vmatmul.f32.gmra.mxu2 %v6400_v19  ;;  %4372 = vmatmul.f32.gmra.mxu0 %v6402_v48  ;;  %v9881_v12 = vpop.f32.mrf.mxu1  ;;  %v6342_v19 = vld [vmem:[%s10740_s5 + $0x460] sm:$0xff] }
 0x6ab   : > { %5310 = vmatpush.msra.mxu2 %v6342_v19 }
 0x6ac   : > { %v4088_v1 = vpop.f32.mrf.mxu2  ;;  %v4207_v7 = vpop.f32.mrf.mxu3 }
 0x6ad   : > { %v9883_v3 = vadd.f32 %v4201_v6, %v4088_v1  ;;  %4534 = vmatmul.f32.gmra.mxu1 %v11161_v33  ;;  %v11165_v33 = vmax.f32 %v11164_v26, 0.0  ;;  %v6405_v26 = vld [vmem:[#allocation4 + $0x79] sm:$0xff] }
 0x6af   : > { %11160 = vst [vmem:[#allocation50_spill] sm:$0xff] %v9883_v3  ;;  %v9901_v3 = vpop.f32.mrf.mxu0 }
 0x6b0   : > { %11166 = vst [vmem:[#allocation42_spill] sm:$0xff] %v9901_v3  ;;  %v9924_v3 = vld [vmem:[#allocation4 + $0x22] sm:$0xff] }
 0x6b1   : > { %4813 = vmatmul.f32.gmra.mxu3 %v6403_v55 }
 0x6b2   : > { %4645 = vmatmul.f32.gmra.mxu2 %v6396_v34  ;;  %4999 = vmatmul.f32.vlgmr.msra.gmra.mxu0 %v4930_v46  ;;  %v9889_v14 = vpop.f32.mrf.mxu1  ;;  %v6326_v34 = vld [vmem:[%s10740_s5 + $0x2e0] sm:$0xff]  ;;  %v4931_v46 = vld [vmem:[#allocation4 + $0xa] sm:$0xff] }
 0x6b3   : > { %5148 = vmatpush.msra.mxu1 %v6326_v34 }
 0x6b4   : > { %v4091_v48 = vpop.f32.mrf.mxu2  ;;  %v4210_v6 = vpop.f32.mrf.mxu3 }
 0x6b5   : > { %v9894_v1 = vadd.f32 %v4204_v21, %v4091_v48  ;;  %4537 = vmatmul.f32.gmra.mxu1 %v11165_v33  ;;  %v9908_v33 = vld [vmem:[#allocation4 + $0x1a] sm:$0xff] }
 0x6b7   : > { %11163 = vst [vmem:[#allocation64_spill] sm:$0xff] %v9894_v1  ;;  %v9914_v34 = vpop.f32.mrf.mxu0  ;;  %v6406_v1 = vld [vmem:[#allocation4 + $0x81] sm:$0xff] }
 0x6b8   : > { %11168 = vst [vmem:[#allocation54_spill] sm:$0xff] %v9914_v34 }
 0x6b9   : > { %4816 = vmatmul.f32.gmra.mxu3 %v6404_v38 }
 0x6ba   : > { %4648 = vmatmul.f32.gmra.mxu2 %v6397_v20  ;;  %5002 = vmatmul.f32.gmra.mxu0 %v4931_v46  ;;  %v9903_v19 = vpop.f32.mrf.mxu1  ;;  %v6341_v20 = vld [vmem:[%s10740_s5 + $0x458] sm:$0xff] }
 0x6bb   : > { %5311 = vmatpush.msra.mxu2 %v6341_v20 }
 0x6bc   : > { %v4094_v44 = vpop.f32.mrf.mxu2  ;;  %v4213_v21 = vpop.f32.mrf.mxu3 }
 0x6bd   : > { %v9905_v48 = vadd.f32 %v4207_v7, %v4094_v44  ;;  %4540 = vmatmul.f32.gmra.mxu1 %v9540_v23 }
 0x6bf   : > { %11167 = vst [vmem:[#allocation44_spill] sm:$0xff] %v9905_v48  ;;  %v9927_v40 = vpop.f32.mrf.mxu0 }
 0x6c0   : > { %11170 = vst [vmem:[#allocation20_spill] sm:$0xff] %v9927_v40 }
 0x6c1   : > { %4819 = vmatmul.f32.gmra.mxu3 %v6405_v26 }
 0x6c2   : > { %4651 = vmatmul.f32.gmra.mxu2 %v6399_v42  ;;  %5005 = vmatmul.f32.gmra.mxu0 %v9908_v33  ;;  %v9916_v46 = vpop.f32.mrf.mxu1  ;;  %v6325_v42 = vld [vmem:[%s10740_s5 + $0x2d8] sm:$0xff] }
 0x6c3   : > { %5149 = vmatpush.msra.mxu1 %v6325_v42  ;;  %v6340_v42 = vld [vmem:[%s10740_s5 + $0x450] sm:$0xff] }
 0x6c4   : > { %v4097_v44 = vpop.f32.mrf.mxu2  ;;  %v4216_v7 = vpop.f32.mrf.mxu3  ;;  %5312 = vmatpush.msra.mxu2 %v6340_v42  ;;  %v9953_v42 = vld [vmem:[#allocation4 + $0x3a] sm:$0xff] }
 0x6c5   : > { %v9918_v48 = vadd.f32 %v4210_v6, %v4097_v44  ;;  %4543 = vmatmul.f32.gmra.mxu1 %v9562_v54 }
 0x6c7   : > { %11169 = vst [vmem:[#allocation68_spill] sm:$0xff] %v9918_v48  ;;  %v6407_v48 = vld [vmem:[#allocation4 + $0x91] sm:$0xff] }
 0x6c9   : > { %4822 = vmatmul.f32.gmra.mxu3 %v6406_v1 }
 0x6ca   : > { %4654 = vmatmul.f32.gmra.mxu2 %v6401_v25  ;;  %5008 = vmatmul.f32.gmra.mxu0 %v9924_v3  ;;  %v9929_v6 = vpop.f32.mrf.mxu1  ;;  %v9934_v25 = vld [vmem:[#allocation4 + $0x32] sm:$0xff] }
 0x6cc   : > { %v4100_v34 = vpop.f32.mrf.mxu2  ;;  %v4219_v20 = vpop.f32.mrf.mxu3 }
 0x6cd   : > { %v9931_v44 = vadd.f32 %v4213_v21, %v4100_v34  ;;  %4546 = vmatmul.f32.gmra.mxu1 %v9578_v11  ;;  %v9946_v21 = vpop.f32.mrf.mxu0 }
 0x6ce   : > { %11173 = vst [vmem:[#allocation39_spill] sm:$0xff] %v9946_v21 }
 0x6cf   : > { %11171 = vst [vmem:[#allocation80_spill] sm:$0xff] %v9931_v44  ;;  %v9950_v44 = vld [vmem:[#allocation4 + $0x99] sm:$0xff] }
 0x6d1   : > { %4825 = vmatmul.f32.gmra.mxu3 %v6407_v48 }
 0x6d2   : > { %4657 = vmatmul.f32.gmra.mxu2 %v6403_v55  ;;  %5011 = vmatmul.f32.gmra.mxu0 %v9934_v25  ;;  %v6324_v55 = vld [vmem:[%s10740_s5 + $0x2d0] sm:$0xff]  ;;  %v9948_v34 = vpop.f32.mrf.mxu1 }
 0x6d3   : > { %5150 = vmatpush.msra.mxu1 %v6324_v55 }
 0x6d4   : > { %v4103_v43 = vpop.f32.mrf.mxu2  ;;  %v4222_v40 = vpop.f32.mrf.mxu3 }
 0x6d5   : > { %v9940_v57 = vadd.f32 %v4216_v7, %v4103_v43  ;;  %4549 = vmatmul.f32.gmra.mxu1 %v9600_v58  ;;  %v9959_v55 = vpop.f32.mrf.mxu0 }
 0x6d6   : > { %11175 = vst [vmem:[#allocation74_spill] sm:$0xff] %v9959_v55 }
 0x6d7   : > { %11172 = vst [vmem:[#allocation81_spill] sm:$0xff] %v9940_v57 }
 0x6d9   : > { %4828 = vmatmul.f32.gmra.mxu3 %v9950_v44 }
 0x6da   : > { %4660 = vmatmul.f32.gmra.mxu2 %v6404_v38  ;;  %5014 = vmatmul.f32.gmra.mxu0 %v9953_v42  ;;  %v9961_v21 = vpop.f32.mrf.mxu1  ;;  %v9963_v38 = vld [vmem:[#allocation4 + $0xa9] sm:$0xff] }
 0x6db   : > { %11176 = vst [vmem:[#allocation45_spill] sm:$0xff] %v9961_v21 }
 0x6dc   : > { %v4106_v43 = vpop.f32.mrf.mxu2  ;;  %v4225_v7 = vpop.f32.mrf.mxu3 }
 0x6dd   : > { %v9956_v57 = vadd.f32 %v4219_v20, %v4106_v43  ;;  %4552 = vmatmul.f32.gmra.mxu1 %v9616_v2  ;;  %v6339_v20 = vld [vmem:[%s10740_s5 + $0x448] sm:$0xff] }
 0x6de   : > { %5313 = vmatpush.msra.mxu2 %v6339_v20  ;;  %v6323_v43 = vld [vmem:[%s10740_s5 + $0x2c8] sm:$0xff]  ;;  %v6321_v20 = vld [vmem:[%s10740_s5 + $0x2b8] sm:$0xff] }
 0x6df   : > { %11174 = vst [vmem:[#allocation30_spill] sm:$0xff] %v9956_v57  ;;  %5151 = vmatpush.msra.mxu1 %v6323_v43 }
 0x6e1   : > { %4831 = vmatmul.f32.gmra.mxu3 %v9963_v38  ;;  %5152 = vmatpush.msra.mxu1 %v6322_v62  ;;  %v6319_v62 = vld [vmem:[%s10740_s5 + $0x2a8] sm:$0xff] }
 0x6e2   : > { %4663 = vmatmul.f32.gmra.mxu2 %v6405_v26  ;;  %5017 = vmatmul.f32.gmra.mxu0 %v9966_v61  ;;  %v9992_v43 = vpop.f32.mrf.mxu1 }
 0x6e3   : > { %5153 = vmatpush.msra.mxu1 %v6321_v20  ;;  %11179 = vst [vmem:[#allocation77_spill] sm:$0xff] %v9992_v43  ;;  %v6317_v20 = vld [vmem:[%s10740_s5 + $0x298] sm:$0xff]  ;;  %v10006_v43 = vld [vmem:[#allocation4 + $0x62] sm:$0xff] }
 0x6e4   : > { %v4109_v57 = vpop.f32.mrf.mxu2  ;;  %v4228_v55 = vpop.f32.mrf.mxu3 }
 0x6e5   : > { %v9975_v26 = vadd.f32 %v4222_v40, %v4109_v57  ;;  %4555 = vmatmul.f32.gmra.mxu1 %v9638_v45  ;;  %v6320_v57 = vld [vmem:[%s10740_s5 + $0x2b0] sm:$0xff]  ;;  %v9990_v40 = vpop.f32.mrf.mxu0 }
 0x6e6   : > { %11178 = vst [vmem:[#allocation13_spill] sm:$0xff] %v9990_v40  ;;  %5154 = vmatpush.msra.mxu1 %v6320_v57  ;;  %v6411_v40 = vld [vmem:[#allocation4 + $0xc1] sm:$0xff] }
 0x6e7   : > { %11177 = vst [vmem:[#allocation7_spill] sm:$0xff] %v9975_v26 }
 0x6e8   : > { %5155 = vmatpush.msra.mxu1 %v6319_v62 }
 0x6e9   : > { %4834 = vmatmul.f32.gmra.mxu3 %v6410_v18 }
 0x6ea   : > { %4666 = vmatmul.f32.gmra.mxu2 %v6406_v1  ;;  %5020 = vmatmul.f32.gmra.mxu0 %v9984_v50 }
 0x6eb   : > { %5156 = vmatpush.msra.mxu1 %v6318_v28  ;;  %v6338_v28 = vld [vmem:[%s10740_s5 + $0x440] sm:$0xff] }
 0x6ec   : > { %v4112_v1 = vpop.f32.mrf.mxu2  ;;  %v4231_v26 = vpop.f32.mrf.mxu3  ;;  %5314 = vmatpush.msra.mxu2 %v6338_v28  ;;  %v6412_v28 = vld [vmem:[#allocation4 + $0xc9] sm:$0xff] }
 0x6ed   : > { %v9997_v56 = vadd.f32 %v4225_v7, %v4112_v1  ;;  %4558 = vmatmul.f32.gmra.mxu1 %v9654_v32  ;;  %v6316_v7 = vld [vmem:[%s10740_s5 + $0x290] sm:$0xff]  ;;  %v10018_v1 = vpop.f32.mrf.mxu1  ;;  %v10026_v49 = vpop.f32.mrf.mxu0 }
 0x6ee   : > { %5157 = vmatpush.msra.mxu1 %v6317_v20  ;;  %11181 = vst [vmem:[#allocation25_spill] sm:$0xff] %v10018_v1  ;;  %v6314_v20 = vld [vmem:[%s10740_s5 + $0x280] sm:$0xff] }
 0x6ef   : > { %11180 = vst [vmem:[#allocation21_spill] sm:$0xff] %v9997_v56 }
 0x6f0   : > { %5158 = vmatpush.msra.mxu1 %v6316_v7  ;;  %11183 = vst [vmem:[#allocation79_spill] sm:$0xff] %v10026_v49  ;;  %v10051_v49 = vld [vmem:[#allocation4 + $0x82] sm:$0xff] }
 0x6f1   : > { %4837 = vmatmul.f32.gmra.mxu3 %v6411_v40 }
 0x6f2   : > { %4669 = vmatmul.f32.gmra.mxu2 %v6407_v48  ;;  %5023 = vmatmul.f32.gmra.mxu0 %v10006_v43  ;;  %v6315_v48 = vld [vmem:[%s10740_s5 + $0x288] sm:$0xff] }
 0x6f3   : > { %5159 = vmatpush.msra.mxu1 %v6315_v48  ;;  %v6413_v48 = vld [vmem:[#allocation4 + $0xd9] sm:$0xff] }
 0x6f4   : > { %v4115_v57 = vpop.f32.mrf.mxu2  ;;  %v4234_v62 = vpop.f32.mrf.mxu3 }
 0x6f5   : > { %v10020_v56 = vadd.f32 %v4228_v55, %v4115_v57  ;;  %4561 = vmatmul.f32.gmra.mxu1 %v9687_v63  ;;  %v10037_v1 = vpop.f32.mrf.mxu0 }
 0x6f6   : > { %5160 = vmatpush.msra.mxu1 %v6314_v20  ;;  %11186 = vst [vmem:[#allocation56_spill] sm:$0xff] %v10037_v1  ;;  %v6337_v20 = vld [vmem:[%s10740_s5 + $0x438] sm:$0xff] }
 0x6f7   : > { %11182 = vst [vmem:[#allocation57_spill] sm:$0xff] %v10020_v56  ;;  %v10035_v56 = vpop.f32.mrf.mxu1  ;;  %5315 = vmatpush.msra.mxu2 %v6337_v20  ;;  %v5535_v20 = vld [vmem:[%s10742_s7 + $0x78] sm:$0xff] }
 0x6f8   : > { %11185 = vst [vmem:[#allocation48_spill] sm:$0xff] %v10035_v56  ;;  %5540 = vmatpush.msra.mxu3 %v5535_v20 }
 0x6f9   : > { %4840 = vmatmul.f32.gmra.mxu3 %v6412_v28 }
 0x6fa   : > { %4672 = vmatmul.f32.gmra.mxu2 %v9950_v44  ;;  %5026 = vmatmul.f32.gmra.mxu0 %v10029_v39  ;;  %v10040_v44 = vld [vmem:[#allocation4 + $0x7a] sm:$0xff] }
 0x6fc   : > { %v4118_v55 = vpop.f32.mrf.mxu2  ;;  %v4237_v7 = vpop.f32.mrf.mxu3 }
 0x6fd   : > { %v10032_v57 = vadd.f32 %v4231_v26, %v4118_v55  ;;  %4564 = vmatmul.f32.gmra.mxu1 %v9717_v60  ;;  %v10053_v56 = vpop.f32.mrf.mxu0 }
 0x6fe   : > { %11189 = vst [vmem:[#allocation43_spill] sm:$0xff] %v10053_v56  ;;  %v6336_v56 = vld [vmem:[%s10740_s5 + $0x430] sm:$0xff] }
 0x6ff   : > { %11184 = vst [vmem:[#allocation49_spill] sm:$0xff] %v10032_v57  ;;  %v10049_v1 = vpop.f32.mrf.mxu1  ;;  %5316 = vmatpush.msra.mxu2 %v6336_v56 }
 0x700   : > { %11188 = vst [vmem:[#allocation38_spill] sm:$0xff] %v10049_v1 }
 0x701   : > { %4843 = vmatmul.f32.gmra.mxu3 %v6413_v48 }
 0x702   : > { %4675 = vmatmul.f32.gmra.mxu2 %v9963_v38  ;;  %5029 = vmatmul.f32.gmra.mxu0 %v10040_v44  ;;  %v6414_v38 = vld [vmem:[#allocation4 + $0xe1] sm:$0xff] }
 0x704   : > { %v4121_v26 = vpop.f32.mrf.mxu2  ;;  %v4240_v55 = vpop.f32.mrf.mxu3 }
 0x705   : > { %v10046_v57 = vadd.f32 %v4234_v62, %v4121_v26  ;;  %4567 = vmatmul.f32.gmra.mxu1 %v9754_v30  ;;  %v10070_v20 = vpop.f32.mrf.mxu0 }
 0x706   : > { %11192 = vst [vmem:[#allocation5_spill] sm:$0xff] %v10070_v20 }
 0x707   : > { %11187 = vst [vmem:[#allocation82_spill] sm:$0xff] %v10046_v57  ;;  %v10062_v57 = vld [vmem:[#allocation4 + $0x92] sm:$0xff]  ;;  %v10068_v1 = vpop.f32.mrf.mxu1 }
 0x708   : > { %11191 = vst [vmem:[#allocation83_spill] sm:$0xff] %v10068_v1  ;;  %v5534_v1 = vld [vmem:[%s10742_s7 + $0x70] sm:$0xff] }
 0x709   : > { %4846 = vmatmul.f32.gmra.mxu3 %v6414_v38 }
 0x70a   : > { %4678 = vmatmul.f32.gmra.mxu2 %v6410_v18  ;;  %5032 = vmatmul.f32.gmra.mxu0 %v10051_v49  ;;  %v6415_v18 = vld [vmem:[#allocation4 + $0xf1] sm:$0xff] }
 0x70b   : > { %5541 = vmatpush.msra.mxu3 %v5534_v1  ;;  %v6335_v1 = vld [vmem:[%s10740_s5 + $0x428] sm:$0xff] }
 0x70c   : > { %v4124_v15 = vpop.f32.mrf.mxu2  ;;  %v4243_v26 = vpop.f32.mrf.mxu3  ;;  %5317 = vmatpush.msra.mxu2 %v6335_v1 }
 0x70d   : > { %v10059_v62 = vadd.f32 %v4237_v7, %v4124_v15  ;;  %4570 = vmatmul.f32.gmra.mxu1 %v9780_v4 }
 0x70f   : > { %11190 = vst [vmem:[#allocation14_spill] sm:$0xff] %v10059_v62  ;;  %v10076_v62 = vld [vmem:[#allocation4 + $0x9a] sm:$0xff]  ;;  %v10082_v20 = vpop.f32.mrf.mxu1 }
 0x710   : > { %11194 = vst [vmem:[#allocation32_spill] sm:$0xff] %v10076_v62 }
 0x711   : > { %4849 = vmatmul.f32.gmra.mxu3 %v6415_v18 }
 0x712   : > { %4681 = vmatmul.f32.gmra.mxu2 %v6411_v40  ;;  %5035 = vmatmul.f32.gmra.mxu0 %v10062_v57 }
 0x714   : > { %v4802_v40 = vpop.f32.mrf.mxu3 }
 0x715   : > { %v4127_v15 = vpop.f32.mrf.mxu2  ;;  %5161 = vmatmul.f32.vlgmr.msra.gmra.mxu1 %v9908_v33  ;;  %v10087_v33 = vpop.f32.mrf.mxu0 }
 0x716   : > { %v10072_v7 = vadd.f32 %v4240_v55, %v4127_v15 }
 0x718   : > { %11193 = vst [vmem:[#allocation26_spill] sm:$0xff] %v10072_v7 }
 0x719   : > { %4852 = vmatmul.f32.gmra.mxu3 %v9540_v23  ;;  %v11196_v23 = vld [vmem:[#allocation22_spill] sm:$0xff] }
 0x71a   : > { %4684 = vmatmul.f32.gmra.mxu2 %v6412_v28  ;;  %5038 = vmatmul.f32.gmra.mxu0 %v10076_v62  ;;  %v11195_v28 = vld [vmem:[#allocation37_spill] sm:$0xff] }
 0x71b   : > { %v4151_v15 = vadd.f32 %v11196_v23, %v11195_v28  ;;  %v10093_v62 = vld [vmem:[#allocation4 + $0xaa] sm:$0xff]  ;;  %v4377_v28 = vadd.f32 %v9564_v27, %v9533_v9  ;;  %v10110_v23 = vld [vmem:[#allocation4 + $0xb2] sm:$0xff]  ;;  %v4378_v27 = vadd.f32 %v9580_v37, %v9555_v17 }
 0x71c   : > { %v4805_v21 = vpop.f32.mrf.mxu3 }
 0x71d   : > { %v4130_v56 = vpop.f32.mrf.mxu2  ;;  %5164 = vmatmul.f32.gmra.mxu1 %v9924_v3  ;;  %v4376_v7 = vadd.f32 %v9542_v29, %v4151_v15  ;;  %v10101_v29 = vpop.f32.mrf.mxu1 }
 0x71e   : > { %v10084_v55 = vadd.f32 %v4243_v26, %v4130_v56 }
 0x71f   : > { %v4574_v3 = vadd.f32 %v9835_v10, %v4376_v7  ;;  %v4575_v10 = vadd.f32 %v9856_v0, %v4377_v28  ;;  %v5533_v7 = vld [vmem:[%s10742_s7 + $0x68] sm:$0xff] }
 0x720   : > { %5542 = vmatpush.msra.mxu3 %v5533_v7  ;;  %v10125_v0 = vld [vmem:[#allocation4 + $0xc2] sm:$0xff]  ;;  %v10140_v28 = vld [vmem:[#allocation4 + $0xca] sm:$0xff] }
 0x721   : > { %4855 = vmatmul.f32.gmra.mxu3 %v9562_v54  ;;  %v10105_v54 = vpop.f32.mrf.mxu0  ;;  %v5532_v7 = vld [vmem:[%s10742_s7 + $0x60] sm:$0xff] }
 0x722   : > { %4687 = vmatmul.f32.gmra.mxu2 %v6413_v48  ;;  %5041 = vmatmul.f32.gmra.mxu0 %v10093_v62 }
 0x723   : > { %5543 = vmatpush.msra.mxu3 %v5532_v7  ;;  %v5531_v7 = vld [vmem:[%s10742_s7 + $0x58] sm:$0xff] }
 0x725   : > { %v4640_v26 = vpop.f32.mrf.mxu2  ;;  %5167 = vmatmul.f32.gmra.mxu1 %v9934_v25  ;;  %5544 = vmatpush.msra.mxu3 %v5531_v7  ;;  %v5530_v7 = vld [vmem:[%s10742_s7 + $0x50] sm:$0xff] }
 0x726   : > { %v4736_v56 = vadd.f32 %v4640_v26, %v4574_v3  ;;  %v6334_v3 = vld [vmem:[%s10740_s5 + $0x420] sm:$0xff] }
 0x727   : > { %5318 = vmatpush.msra.mxu2 %v6334_v3  ;;  %v6333_v3 = vld [vmem:[%s10740_s5 + $0x418] sm:$0xff]  ;;  %5545 = vmatpush.msra.mxu3 %v5530_v7  ;;  %v5529_v7 = vld [vmem:[%s10742_s7 + $0x48] sm:$0xff] }
 0x728   : > { %v10103_v48 = vadd.f32 %v4802_v40, %v4736_v56  ;;  %v4808_v40 = vpop.f32.mrf.mxu3  ;;  %v6416_v56 = vld [vmem:[#allocation4 + $0xf9] sm:$0xff] }
 0x729   : > { %4858 = vmatmul.f32.gmra.mxu3 %v9578_v11  ;;  %v10122_v11 = vpop.f32.mrf.mxu1  ;;  %5319 = vmatpush.msra.mxu2 %v6333_v3 }
 0x72a   : > { %4690 = vmatmul.f32.gmra.mxu2 %v6414_v38  ;;  %5044 = vmatmul.f32.gmra.mxu0 %v10110_v23  ;;  %v10127_v38 = vpop.f32.mrf.mxu0 }
 0x72b   : > { %5546 = vmatpush.msra.mxu3 %v5529_v7 }
 0x72d   : > { %v4643_v15 = vpop.f32.mrf.mxu2  ;;  %5170 = vmatmul.f32.gmra.mxu1 %v9953_v42 }
 0x72e   : > { %v4737_v1 = vadd.f32 %v4643_v15, %v4575_v10 }
 0x730   : > { %v10118_v9 = vadd.f32 %v4805_v21, %v4737_v1  ;;  %v4576_v21 = vadd.f32 %v9867_v52, %v4378_v27  ;;  %v4811_v37 = vpop.f32.mrf.mxu3  ;;  %v4380_v1 = vadd.f32 %v9618_v31, %v9593_v22  ;;  %v10157_v27 = vld [vmem:[#allocation4 + $0xda] sm:$0xff] }
 0x731   : > { %4861 = vmatmul.f32.gmra.mxu3 %v9600_v58  ;;  %v4379_v58 = vadd.f32 %v9602_v13, %v9571_v36  ;;  %v10144_v10 = vpop.f32.mrf.mxu1 }
 0x732   : > { %4693 = vmatmul.f32.gmra.mxu2 %v6415_v18  ;;  %5047 = vmatmul.f32.gmra.mxu0 %v10125_v0 }
 0x733   : > { %v4577_v52 = vadd.f32 %v9881_v12, %v4379_v58  ;;  %v6417_v12 = vld [vmem:[#allocation4 + $0x109] sm:$0xff]  ;;  %v6418_v58 = vld [vmem:[#allocation4 + $0x111] sm:$0xff] }
 0x735   : > { %v4646_v26 = vpop.f32.mrf.mxu2  ;;  %5173 = vmatmul.f32.gmra.mxu1 %v9966_v61 }
 0x736   : > { %v4738_v17 = vadd.f32 %v4646_v26, %v4576_v21  ;;  %v4578_v21 = vadd.f32 %v9889_v14, %v4380_v1  ;;  %v6419_v1 = vld [vmem:[#allocation4 + $0x121] sm:$0xff] }
 0x738   : > { %v10135_v18 = vadd.f32 %v4808_v40, %v4738_v17  ;;  %v10149_v40 = vpop.f32.mrf.mxu0 }
 0x739   : > { %4864 = vmatmul.f32.gmra.mxu3 %v9616_v2  ;;  %v4814_v2 = vpop.f32.mrf.mxu3  ;;  %v10164_v17 = vpop.f32.mrf.mxu1 }
 0x73a   : > { %4696 = vmatmul.f32.gmra.mxu2 %v6416_v56  ;;  %5050 = vmatmul.f32.gmra.mxu0 %v10140_v28  ;;  %v10174_v56 = vld [vmem:[#allocation4 + $0xe2] sm:$0xff] }
 0x73d   : > { %v4649_v15 = vpop.f32.mrf.mxu2  ;;  %5176 = vmatmul.f32.gmra.mxu1 %v9984_v50 }
 0x73e   : > { %v4739_v36 = vadd.f32 %v4649_v15, %v4577_v52 }
 0x740   : > { %v10152_v13 = vadd.f32 %v4811_v37, %v4739_v36  ;;  %v10167_v22 = vpop.f32.mrf.mxu0 }
 0x741   : > { %4867 = vmatmul.f32.gmra.mxu3 %v9638_v45  ;;  %v4381_v45 = vadd.f32 %v9640_v8, %v9609_v47  ;;  %v4817_v14 = vpop.f32.mrf.mxu3  ;;  %v10182_v47 = vpop.f32.mrf.mxu1 }
 0x742   : > { %11197 = vst [vmem:[#allocation23_spill] sm:$0xff] %v10152_v13  ;;  %4699 = vmatmul.f32.gmra.mxu2 %v6417_v12  ;;  %5053 = vmatmul.f32.gmra.mxu0 %v10157_v27  ;;  %v6332_v12 = vld [vmem:[%s10740_s5 + $0x410] sm:$0xff] }
 0x743   : > { %v4579_v52 = vadd.f32 %v9903_v19, %v4381_v45  ;;  %v10191_v19 = vld [vmem:[#allocation4 + $0xf2] sm:$0xff]  ;;  %5320 = vmatpush.msra.mxu2 %v6332_v12  ;;  %v6331_v12 = vld [vmem:[%s10740_s5 + $0x408] sm:$0xff] }
 0x745   : > { %v4652_v26 = vpop.f32.mrf.mxu2  ;;  %5179 = vmatmul.f32.gmra.mxu1 %v10006_v43  ;;  %5321 = vmatpush.msra.mxu2 %v6331_v12 }
 0x746   : > { %v4740_v37 = vadd.f32 %v4652_v26, %v4578_v21 }
 0x748   : > { %v10169_v31 = vadd.f32 %v4814_v2, %v4740_v37  ;;  %v4382_v2 = vadd.f32 %v9656_v35, %v9631_v59  ;;  %v4383_v35 = vadd.f32 %v9695_v24, %v9647_v53 }
 0x749   : > { %4870 = vmatmul.f32.gmra.mxu3 %v9654_v32  ;;  %v10186_v32 = vpop.f32.mrf.mxu0  ;;  %v4820_v21 = vpop.f32.mrf.mxu3 }
 0x74a   : > { %11198 = vst [vmem:[#allocation9_spill] sm:$0xff] %v10169_v31  ;;  %4702 = vmatmul.f32.gmra.mxu2 %v6418_v58  ;;  %5056 = vmatmul.f32.gmra.mxu0 %v10174_v56  ;;  %v4580_v3 = vadd.f32 %v9916_v46, %v4382_v2  ;;  %v10203_v45 = vpop.f32.mrf.mxu1  ;;  %v6420_v58 = vld [vmem:[#allocation4 + $0x129] sm:$0xff]  ;;  %v4384_v2 = vadd.f32 %v9731_v16, %v9680_v5 }
 0x74d   : > { %v4655_v15 = vpop.f32.mrf.mxu2  ;;  %5182 = vmatmul.f32.gmra.mxu1 %v10029_v39 }
 0x74e   : > { %v4741_v36 = vadd.f32 %v4655_v15, %v4579_v52  ;;  %v4581_v52 = vadd.f32 %v9929_v6, %v4383_v35  ;;  %v10221_v6 = vld [vmem:[#allocation4 + $0x10a] sm:$0xff]  ;;  %v6422_v35 = vld [vmem:[#allocation4 + $0x141] sm:$0xff] }
 0x750   : > { %v10184_v8 = vadd.f32 %v4817_v14, %v4741_v36  ;;  %v10206_v14 = vld [vmem:[#allocation4 + $0xfa] sm:$0xff] }
 0x751   : > { %4873 = vmatmul.f32.gmra.mxu3 %v9687_v63  ;;  %v10208_v46 = vpop.f32.mrf.mxu0  ;;  %v4823_v24 = vpop.f32.mrf.mxu3 }
 0x752   : > { %11199 = vst [vmem:[#allocation59_spill] sm:$0xff] %v10184_v8  ;;  %4705 = vmatmul.f32.gmra.mxu2 %v6419_v1  ;;  %5059 = vmatmul.f32.gmra.mxu0 %v10191_v19  ;;  %v6421_v1 = vld [vmem:[#allocation4 + $0x139] sm:$0xff] }
 0x753   : > { %v10289_v8 = vld [vmem:[#allocation4 + $0x13a] sm:$0xff] }
 0x755   : > { %v4658_v26 = vpop.f32.mrf.mxu2  ;;  %5185 = vmatmul.f32.gmra.mxu1 %v10040_v44 }
 0x756   : > { %v4742_v37 = vadd.f32 %v4658_v26, %v4580_v3  ;;  %v4582_v3 = vadd.f32 %v9948_v34, %v4384_v2  ;;  %v11203_v34 = vld [vmem:[#allocation45_spill] sm:$0xff]  ;;  %v11206_v2 = vld [vmem:[#allocation66_spill] sm:$0xff] }
 0x758   : > { %v10199_v59 = vadd.f32 %v4820_v21, %v4742_v37  ;;  %v10228_v21 = vpop.f32.mrf.mxu1  ;;  %v4385_v37 = vadd.f32 %v9769_v51, %v9707_v41  ;;  %v11205_v41 = vld [vmem:[#allocation32_spill] sm:$0xff] }
 0x759   : > { %4876 = vmatmul.f32.gmra.mxu3 %v9717_v60  ;;  %v10230_v26 = vpop.f32.mrf.mxu0 }
 0x75a   : > { %11200 = vst [vmem:[#allocation34_spill] sm:$0xff] %v10199_v59  ;;  %4708 = vmatmul.f32.gmra.mxu2 %v6420_v58  ;;  %5062 = vmatmul.f32.gmra.mxu0 %v10206_v14  ;;  %v10238_v58 = vld [vmem:[#allocation4 + $0x112] sm:$0xff] }
 0x75d   : > { %v4661_v15 = vpop.f32.mrf.mxu2  ;;  %5188 = vmatmul.f32.gmra.mxu1 %v10051_v49 }
 0x75e   : > { %v4743_v53 = vadd.f32 %v4661_v15, %v4581_v52  ;;  %v4583_v52 = vadd.f32 %v11203_v34, %v4385_v37  ;;  %v6330_v37 = vld [vmem:[%s10740_s5 + $0x400] sm:$0xff] }
 0x75f   : > { %5322 = vmatpush.msra.mxu2 %v6330_v37 }
 0x760   : > { %v10216_v36 = vadd.f32 %v4823_v24, %v4743_v53  ;;  %v10245_v53 = vpop.f32.mrf.mxu1 }
 0x761   : > { %4879 = vmatmul.f32.gmra.mxu3 %v9754_v30  ;;  %v10250_v51 = vpop.f32.mrf.mxu0 }
 0x762   : > { %11201 = vst [vmem:[#allocation84_spill] sm:$0xff] %v10216_v36  ;;  %4711 = vmatmul.f32.gmra.mxu2 %v6421_v1  ;;  %5065 = vmatmul.f32.gmra.mxu0 %v10221_v6  ;;  %v11207_v1 = vld [vmem:[#allocation10_spill] sm:$0xff]  ;;  %v10274_v36 = vld [vmem:[#allocation4 + $0x12a] sm:$0xff] }
 0x763   : > { %v4386_v12 = vadd.f32 %v11207_v1, %v11206_v2  ;;  %v11212_v2 = vld [vmem:[#allocation72_spill] sm:$0xff]  ;;  %v11213_v1 = vld [vmem:[#allocation71_spill] sm:$0xff] }
 0x765   : > { %v4664_v5 = vpop.f32.mrf.mxu2  ;;  %5191 = vmatmul.f32.gmra.mxu1 %v10062_v57 }
 0x766   : > { %v10232_v16 = vadd.f32 %v4664_v5, %v4582_v3  ;;  %v11208_v3 = vld [vmem:[#allocation46_spill] sm:$0xff]  ;;  %v10256_v5 = vld [vmem:[#allocation4 + $0x122] sm:$0xff] }
 0x768   : > { %11202 = vst [vmem:[#allocation51_spill] sm:$0xff] %v10232_v16  ;;  %v11214_v16 = vld [vmem:[#allocation70_spill] sm:$0xff] }
 0x769   : > { %4882 = vmatmul.f32.gmra.mxu3 %v9780_v4 }
 0x76a   : > { %4714 = vmatmul.f32.gmra.mxu2 %v6422_v35  ;;  %5068 = vmatmul.f32.gmra.mxu0 %v10238_v58  ;;  %v11209_v35 = vld [vmem:[#allocation77_spill] sm:$0xff] }
 0x76b   : > { %v4584_v34 = vadd.f32 %v11209_v35, %v4386_v12  ;;  %v11215_v12 = vld [vmem:[#allocation25_spill] sm:$0xff]  ;;  %v5528_v35 = vld [vmem:[%s10742_s7 + $0x40] sm:$0xff] }
 0x76c   : > { %5547 = vmatpush.msra.mxu3 %v5528_v35 }
 0x76d   : > { %v4667_v15 = vpop.f32.mrf.mxu2  ;;  %5194 = vmatmul.f32.gmra.mxu1 %v11205_v41 }
 0x76e   : > { %v10247_v24 = vadd.f32 %v4667_v15, %v4583_v52  ;;  %v10266_v15 = vpop.f32.mrf.mxu1 }
 0x770   : > { %11204 = vst [vmem:[#allocation58_spill] sm:$0xff] %v10247_v24  ;;  %v4387_v24 = vadd.f32 %v11213_v1, %v11212_v2  ;;  %v4442_v2 = vld [vmem:[#allocation4 + $0x199] sm:$0xff]  ;;  %v11218_v1 = vld [vmem:[#allocation52_spill] sm:$0xff] }
 0x771   : > { %4885 = vmatmul.f32.gmra.mxu3 %v11208_v3 }
 0x772   : > { %4717 = vmatmul.f32.gmra.mxu2 %v9687_v63  ;;  %5071 = vmatmul.f32.gmra.mxu0 %v10256_v5  ;;  %v10268_v63 = vpop.f32.mrf.mxu0  ;;  %v4585_v37 = vadd.f32 %v11215_v12, %v4387_v24  ;;  %v11220_v12 = vld [vmem:[#allocation48_spill] sm:$0xff] }
 0x773   : > { %11211 = vst [vmem:[#allocation60_spill] sm:$0xff] %v10268_v63 }
 0x775   : > { %v4670_v52 = vpop.f32.mrf.mxu2  ;;  %5197 = vmatmul.f32.gmra.mxu1 %v10093_v62 }
 0x776   : > { %v10263_v7 = vadd.f32 %v4670_v52, %v4584_v34  ;;  %v10286_v59 = vpop.f32.mrf.mxu1 }
 0x778   : > { %11210 = vst [vmem:[#allocation85_spill] sm:$0xff] %v10263_v7 }
 0x779   : > { %4888 = vmatmul.f32.gmra.mxu3 %v11214_v16 }
 0x77a   : > { %4720 = vmatmul.f32.gmra.mxu2 %v9717_v60  ;;  %5074 = vmatmul.f32.gmra.mxu0 %v10274_v36  ;;  %v11217_v60 = vld [vmem:[#allocation6_spill] sm:$0xff]  ;;  %v10291_v24 = vpop.f32.mrf.mxu0 }
 0x77b   : > { %v4388_v7 = vadd.f32 %v11218_v1, %v11217_v60  ;;  %11219 = vst [vmem:[#allocation15_spill] sm:$0xff] %v10291_v24  ;;  %v11222_v60 = vld [vmem:[#allocation40_spill] sm:$0xff]  ;;  %v11223_v1 = vld [vmem:[#allocation19_spill] sm:$0xff] }
 0x77c   : > { %v4389_v31 = vadd.f32 %v11223_v1, %v11222_v60  ;;  %v11229_v1 = vld [vmem:[#allocation83_spill] sm:$0xff] }
 0x77d   : > { %v4673_v34 = vpop.f32.mrf.mxu2  ;;  %5200 = vmatmul.f32.gmra.mxu1 %v10110_v23 }
 0x77e   : > { %v10281_v52 = vadd.f32 %v4673_v34, %v4585_v37  ;;  %v4586_v37 = vadd.f32 %v11220_v12, %v4388_v7  ;;  %v10305_v13 = vpop.f32.mrf.mxu1  ;;  %v5527_v7 = vld [vmem:[%s10742_s7 + $0x38] sm:$0xff] }
 0x77f   : > { %5548 = vmatpush.msra.mxu3 %v5527_v7  ;;  %v11232_v7 = vld [vmem:[#allocation61_spill] sm:$0xff] }
 0x780   : > { %11216 = vst [vmem:[#allocation28_spill] sm:$0xff] %v10281_v52  ;;  %v4443_v52 = vld [vmem:[#allocation4 + $0x1a1] sm:$0xff] }
 0x781   : > { %4891 = vmatmul.f32.gmra.mxu3 %v4442_v2  ;;  %v11224_v2 = vld [vmem:[#allocation38_spill] sm:$0xff] }
 0x782   : > { %4723 = vmatmul.f32.gmra.mxu2 %v9754_v30  ;;  %5077 = vmatmul.f32.gmra.mxu0 %v10289_v8  ;;  %v10301_v30 = vld [vmem:[#allocation4 + $0x142] sm:$0xff]  ;;  %v4587_v24 = vadd.f32 %v11224_v2, %v4389_v31  ;;  %v10310_v12 = vpop.f32.mrf.mxu0  ;;  %v10318_v31 = vld [vmem:[#allocation4 + $0x152] sm:$0xff] }
 0x783   : > { %11225 = vst [vmem:[#allocation53_spill] sm:$0xff] %v10310_v12 }
 0x785   : > { %v4676_v35 = vpop.f32.mrf.mxu2  ;;  %5203 = vmatmul.f32.gmra.mxu1 %v10125_v0 }
 0x786   : > { %v10295_v34 = vadd.f32 %v4676_v35, %v4586_v37  ;;  %v10322_v63 = vpop.f32.mrf.mxu1 }
 0x788   : > { %11221 = vst [vmem:[#allocation63_spill] sm:$0xff] %v10295_v34 }
 0x789   : > { %4894 = vmatmul.f32.gmra.mxu3 %v4443_v52  ;;  %v11228_v52 = vld [vmem:[#allocation11_spill] sm:$0xff] }
 0x78a   : > { %4726 = vmatmul.f32.gmra.mxu2 %v9780_v4  ;;  %5080 = vmatmul.f32.gmra.mxu0 %v10301_v30  ;;  %v11227_v4 = vld [vmem:[#allocation24_spill] sm:$0xff] }
 0x78b   : > { %v4390_v60 = vadd.f32 %v11228_v52, %v11227_v4 }
 0x78d   : > { %v4679_v37 = vpop.f32.mrf.mxu2  ;;  %5206 = vmatmul.f32.gmra.mxu1 %v10140_v28  ;;  %v4588_v2 = vadd.f32 %v11229_v1, %v4390_v60 }
 0x78e   : > { %v10312_v35 = vadd.f32 %v4679_v37, %v4587_v24  ;;  %v10327_v24 = vpop.f32.mrf.mxu0  ;;  %v11233_v37 = vld [vmem:[#allocation42_spill] sm:$0xff] }
 0x78f   : > { %11231 = vst [vmem:[#allocation29_spill] sm:$0xff] %v10327_v24  ;;  %v4391_v4 = vadd.f32 %v11233_v37, %v11232_v7  ;;  %v11237_v37 = vld [vmem:[#allocation54_spill] sm:$0xff] }
 0x790   : > { %11226 = vst [vmem:[#allocation33_spill] sm:$0xff] %v10312_v35  ;;  %v10348_v35 = vld [vmem:[#allocation4 + $0x16a] sm:$0xff]  ;;  %v10360_v24 = vld [vmem:[#allocation4 + $0x172] sm:$0xff] }
 0x791   : > { %v4589_v52 = vadd.f32 %v10082_v20, %v4391_v4 }
 0x792   : > { %4729 = vmatmul.f32.gmra.mxu2 %v11208_v3  ;;  %5083 = vmatmul.f32.gmra.mxu0 %v10318_v31  ;;  %v10332_v3 = vld [vmem:[#allocation4 + $0x15a] sm:$0xff] }
 0x795   : > { %v4682_v34 = vpop.f32.mrf.mxu2  ;;  %5209 = vmatmul.f32.gmra.mxu1 %v10157_v27 }
 0x796   : > { %v10324_v12 = vadd.f32 %v4682_v34, %v4588_v2  ;;  %v5526_v34 = vld [vmem:[%s10742_s7 + $0x30] sm:$0xff]  ;;  %v10342_v2 = vpop.f32.mrf.mxu1  ;;  %v10344_v7 = vpop.f32.mrf.mxu0 }
 0x797   : > { %5549 = vmatpush.msra.mxu3 %v5526_v34  ;;  %11235 = vst [vmem:[#allocation69_spill] sm:$0xff] %v10344_v7  ;;  %v11239_v34 = vld [vmem:[#allocation50_spill] sm:$0xff] }
 0x798   : > { %11230 = vst [vmem:[#allocation67_spill] sm:$0xff] %v10324_v12 }
 0x79a   : > { %4732 = vmatmul.f32.gmra.mxu2 %v11214_v16  ;;  %5086 = vmatmul.f32.gmra.mxu0 %v10332_v3  ;;  %v11236_v16 = vld [vmem:[#allocation75_spill] sm:$0xff] }
 0x79b   : > { %v4392_v12 = vadd.f32 %v11237_v37, %v11236_v16 }
 0x79d   : > { %v4685_v60 = vpop.f32.mrf.mxu2  ;;  %5212 = vmatmul.f32.gmra.mxu1 %v10174_v56  ;;  %v4590_v20 = vadd.f32 %v10101_v29, %v4392_v12  ;;  %v5525_v29 = vld [vmem:[%s10742_s7 + $0x28] sm:$0xff] }
 0x79e   : > { %v10339_v1 = vadd.f32 %v4685_v60, %v4589_v52  ;;  %v11240_v60 = vld [vmem:[#allocation20_spill] sm:$0xff]  ;;  %v10358_v7 = vpop.f32.mrf.mxu1  ;;  %v10363_v16 = vpop.f32.mrf.mxu0  ;;  %5550 = vmatpush.msra.mxu3 %v5525_v29  ;;  %v11244_v29 = vld [vmem:[#allocation74_spill] sm:$0xff] }
 0x7a0   : > { %11234 = vst [vmem:[#allocation16_spill] sm:$0xff] %v10339_v1  ;;  %v4393_v1 = vadd.f32 %v11240_v60, %v11239_v34 }
 0x7a2   : > { %5323 = vmatmul.f32.vlgmr.msra.gmra.mxu2 %v9934_v25  ;;  %5089 = vmatmul.f32.gmra.mxu0 %v10348_v35  ;;  %v4591_v25 = vadd.f32 %v10122_v11, %v4393_v1 }
 0x7a5   : > { %v4688_v4 = vpop.f32.mrf.mxu2  ;;  %5215 = vmatmul.f32.gmra.mxu1 %v10191_v19 }
 0x7a6   : > { %v10353_v52 = vadd.f32 %v4688_v4, %v4590_v20  ;;  %v11241_v20 = vld [vmem:[#allocation64_spill] sm:$0xff]  ;;  %v11242_v4 = vld [vmem:[#allocation39_spill] sm:$0xff]  ;;  %v10377_v60 = vpop.f32.mrf.mxu1 }
 0x7a7   : > { %v4394_v34 = vadd.f32 %v11242_v4, %v11241_v20 }
 0x7a8   : > { %11238 = vst [vmem:[#allocation12_spill] sm:$0xff] %v10353_v52  ;;  %v11243_v52 = vld [vmem:[#allocation44_spill] sm:$0xff] }
 0x7aa   : > { %5326 = vmatmul.f32.gmra.mxu2 %v9953_v42  ;;  %5092 = vmatmul.f32.gmra.mxu0 %v10360_v24  ;;  %v4592_v42 = vadd.f32 %v10144_v10, %v4394_v34  ;;  %v11245_v34 = vld [vmem:[#allocation68_spill] sm:$0xff] }
 0x7ad   : > { %v4691_v12 = vpop.f32.mrf.mxu2  ;;  %5218 = vmatmul.f32.gmra.mxu1 %v10206_v14 }
 0x7ae   : > { %v10370_v37 = vadd.f32 %v4691_v12, %v4591_v25  ;;  %v4395_v25 = vadd.f32 %v11244_v29, %v11243_v52  ;;  %v10389_v10 = vpop.f32.mrf.mxu1 }
 0x7b0   : > { %v4593_v12 = vadd.f32 %v10164_v17, %v4395_v25 }
 0x7b2   : > { %5329 = vmatmul.f32.gmra.mxu2 %v9966_v61  ;;  %v5524_v61 = vld [vmem:[%s10742_s7 + $0x20] sm:$0xff] }
 0x7b3   : > { %5551 = vmatpush.msra.mxu3 %v5524_v61  ;;  %v11249_v61 = vld [vmem:[#allocation79_spill] sm:$0xff] }
 0x7b5   : > { %v4694_v11 = vpop.f32.mrf.mxu2  ;;  %5221 = vmatmul.f32.gmra.mxu1 %v10221_v6 }
 0x7b6   : > { %v10379_v1 = vadd.f32 %v4694_v11, %v4592_v42  ;;  %v11246_v42 = vld [vmem:[#allocation13_spill] sm:$0xff]  ;;  %v10403_v25 = vpop.f32.mrf.mxu1 }
 0x7b7   : > { %v4396_v11 = vadd.f32 %v11246_v42, %v11245_v34 }
 0x7b9   : > { %v4594_v17 = vadd.f32 %v10182_v47, %v4396_v11 }
 0x7ba   : > { %5332 = vmatmul.f32.gmra.mxu2 %v9984_v50  ;;  %v10397_v50 = vpop.f32.mrf.mxu3 }
 0x7bd   : > { %v4697_v20 = vpop.f32.mrf.mxu2  ;;  %5224 = vmatmul.f32.gmra.mxu1 %v10238_v58 }
 0x7be   : > { %v10391_v4 = vadd.f32 %v4697_v20, %v4593_v12  ;;  %v11248_v12 = vld [vmem:[#allocation80_spill] sm:$0xff] }
 0x7bf   : > { %v4397_v20 = vadd.f32 %v11249_v61, %v11248_v12  ;;  %v10419_v12 = vpop.f32.mrf.mxu1 }
 0x7c1   : > { %v4595_v34 = vadd.f32 %v10203_v45, %v4397_v20 }
 0x7c2   : > { %5335 = vmatmul.f32.gmra.mxu2 %v10006_v43  ;;  %v5523_v43 = vld [vmem:[%s10742_s7 + $0x18] sm:$0xff]  ;;  %v10412_v42 = vpop.f32.mrf.mxu3 }
 0x7c3   : > { %5552 = vmatpush.msra.mxu3 %v5523_v43  ;;  %v11254_v43 = vld [vmem:[#allocation43_spill] sm:$0xff] }
 0x7c5   : > { %v4700_v52 = vpop.f32.mrf.mxu2  ;;  %5227 = vmatmul.f32.gmra.mxu1 %v10256_v5 }
 0x7c6   : > { %v10400_v29 = vadd.f32 %v4700_v52, %v4594_v17  ;;  %v11250_v17 = vld [vmem:[#allocation81_spill] sm:$0xff]  ;;  %v11251_v52 = vld [vmem:[#allocation56_spill] sm:$0xff] }
 0x7c8   : > { %11247 = vst [vmem:[#allocation35_spill] sm:$0xff] %v10400_v29  ;;  %v4398_v29 = vadd.f32 %v11251_v52, %v11250_v17  ;;  %v10432_v52 = vpop.f32.mrf.mxu1 }
 0x7ca   : > { %5338 = vmatmul.f32.gmra.mxu2 %v10029_v39  ;;  %v4596_v39 = vadd.f32 %v10228_v21, %v4398_v29  ;;  %v10426_v20 = vpop.f32.mrf.mxu3 }
 0x7cd   : > { %v4703_v47 = vpop.f32.mrf.mxu2  ;;  %5230 = vmatmul.f32.gmra.mxu1 %v10274_v36 }
 0x7ce   : > { %v10414_v11 = vadd.f32 %v4703_v47, %v4595_v34  ;;  %v11253_v34 = vld [vmem:[#allocation30_spill] sm:$0xff] }
 0x7cf   : > { %v4399_v47 = vadd.f32 %v11254_v43, %v11253_v34  ;;  %v11256_v34 = vld [vmem:[#allocation5_spill] sm:$0xff] }
 0x7d1   : > { %v4597_v17 = vadd.f32 %v10245_v53, %v4399_v47  ;;  %v10446_v47 = vpop.f32.mrf.mxu1 }
 0x7d2   : > { %5341 = vmatmul.f32.gmra.mxu2 %v10040_v44  ;;  %v5522_v44 = vld [vmem:[%s10742_s7 + $0x10] sm:$0xff] }
 0x7d3   : > { %5553 = vmatpush.msra.mxu3 %v5522_v44 }
 0x7d5   : > { %v4706_v45 = vpop.f32.mrf.mxu2  ;;  %5233 = vmatmul.f32.gmra.mxu1 %v10289_v8 }
 0x7d6   : > { %v10423_v61 = vadd.f32 %v4706_v45, %v4596_v39  ;;  %v10440_v39 = vpop.f32.mrf.mxu3  ;;  %v11255_v45 = vld [vmem:[#allocation7_spill] sm:$0xff] }
 0x7d7   : > { %v4400_v43 = vadd.f32 %v11256_v34, %v11255_v45 }
 0x7d8   : > { %11252 = vst [vmem:[#allocation73_spill] sm:$0xff] %v10423_v61 }
 0x7da   : > { %5344 = vmatmul.f32.gmra.mxu2 %v10051_v49  ;;  %v4598_v49 = vadd.f32 %v10266_v15, %v4400_v43  ;;  %v10463_v43 = vpop.f32.mrf.mxu1 }
 0x7dd   : > { %v4709_v21 = vpop.f32.mrf.mxu2  ;;  %5236 = vmatmul.f32.gmra.mxu1 %v10301_v30 }
 0x7de   : > { %v10437_v29 = vadd.f32 %v4709_v21, %v4597_v17  ;;  %v11257_v17 = vld [vmem:[#allocation21_spill] sm:$0xff]  ;;  %v10454_v21 = vpop.f32.mrf.mxu3 }
 0x7df   : > { %v4401_v44 = vadd.f32 %v10087_v33, %v11257_v17 }
 0x7e1   : > { %v4599_v45 = vadd.f32 %v10286_v59, %v4401_v44  ;;  %v11259_v44 = vld [vmem:[#allocation49_spill] sm:$0xff] }
 0x7e2   : > { %5347 = vmatmul.f32.gmra.mxu2 %v10062_v57  ;;  %v5521_v57 = vld [vmem:[%s10742_s7 + $0x8] sm:$0xff] }
 0x7e3   : > { %5554 = vmatpush.msra.mxu3 %v5521_v57  ;;  %v10476_v57 = vpop.f32.mrf.mxu1 }
 0x7e5   : > { %v4712_v53 = vpop.f32.mrf.mxu2  ;;  %5239 = vmatmul.f32.gmra.mxu1 %v10318_v31 }
 0x7e6   : > { %v10448_v61 = vadd.f32 %v4712_v53, %v4598_v49  ;;  %v11258_v49 = vld [vmem:[#allocation57_spill] sm:$0xff]  ;;  %v10469_v59 = vpop.f32.mrf.mxu3 }
 0x7e7   : > { %v4402_v33 = vadd.f32 %v10105_v54, %v11258_v49 }
 0x7ea   : > { %5350 = vmatmul.f32.gmra.mxu2 %v11205_v41  ;;  %v4600_v41 = vadd.f32 %v10305_v13, %v4402_v33  ;;  %v11260_v33 = vld [vmem:[#allocation82_spill] sm:$0xff] }
 0x7ed   : > { %v4715_v15 = vpop.f32.mrf.mxu2  ;;  %5242 = vmatmul.f32.gmra.mxu1 %v10332_v3 }
 0x7ee   : > { %v10460_v34 = vadd.f32 %v4715_v15, %v4599_v45  ;;  %v4403_v45 = vadd.f32 %v10127_v38, %v11259_v44  ;;  %v10486_v49 = vpop.f32.mrf.mxu3  ;;  %v4404_v38 = vadd.f32 %v10149_v40, %v11260_v33 }
 0x7f0   : > { %v4601_v54 = vadd.f32 %v10322_v63, %v4403_v45  ;;  %v10492_v63 = vpop.f32.mrf.mxu1 }
 0x7f2   : > { %5353 = vmatmul.f32.gmra.mxu2 %v10093_v62  ;;  %v5520_v62 = vld [vmem:[%s10742_s7] sm:$0xff] }
 0x7f3   : > { %5555 = vmatpush.msra.mxu3 %v5520_v62 }
 0x7f5   : > { %v4718_v53 = vpop.f32.mrf.mxu2  ;;  %5245 = vmatmul.f32.gmra.mxu1 %v10348_v35 }
 0x7f6   : > { %v10471_v17 = vadd.f32 %v4718_v53, %v4600_v41  ;;  %v10494_v53 = vld [vmem:[#allocation4 + $0x182] sm:$0xff]  ;;  %v10499_v45 = vpop.f32.mrf.mxu3 }
 0x7fa   : > { %5356 = vmatmul.f32.gmra.mxu2 %v10110_v23  ;;  %v4602_v23 = vadd.f32 %v10342_v2, %v4404_v38  ;;  %v10505_v2 = vld [vmem:[#allocation4 + $0x18a] sm:$0xff]  ;;  %v11262_v38 = vld [vmem:[#allocation26_spill] sm:$0xff] }
 0x7fd   : > { %v4721_v13 = vpop.f32.mrf.mxu2  ;;  %5248 = vmatmul.f32.gmra.mxu1 %v10360_v24 }
 0x7fe   : > { %v10483_v15 = vadd.f32 %v4721_v13, %v4601_v54  ;;  %v11261_v54 = vld [vmem:[#allocation14_spill] sm:$0xff]  ;;  %v10507_v13 = vpop.f32.mrf.mxu1 }
 0x7ff   : > { %v4405_v62 = vadd.f32 %v10167_v22, %v11261_v54  ;;  %v4407_v54 = vadd.f32 %v10208_v46, %v10084_v55  ;;  %v10535_v55 = vld [vmem:[%s10741_s6] ss:$0 sm:$0xff] }
 0x802   : > { %5359 = vmatmul.f32.gmra.mxu2 %v10125_v0  ;;  %v4603_v0 = vadd.f32 %v10358_v7, %v4405_v62  ;;  %v4605_v62 = vadd.f32 %v10389_v10, %v4407_v54 }
 0x805   : > { %v4724_v41 = vpop.f32.mrf.mxu2  ;;  %5251 = vmatmul.f32.gmra.mxu1 %v10494_v53 }
 0x806   : > { %v10496_v44 = vadd.f32 %v4724_v41, %v4602_v23  ;;  %v4406_v23 = vadd.f32 %v10186_v32, %v11262_v38  ;;  %v10515_v41 = vpop.f32.mrf.mxu3 }
 0x80a   : > { %5362 = vmatmul.f32.gmra.mxu2 %v10140_v28  ;;  %v4604_v28 = vadd.f32 %v10377_v60, %v4406_v23  ;;  %v5097_v23 = vadd.f32 %v10250_v51, %v10118_v9  ;;  %v10552_v51 = vpop.f32.mrf.mxu1 }
 0x80d   : > { %v4727_v40 = vpop.f32.mrf.mxu2  ;;  %5254 = vmatmul.f32.gmra.mxu1 %v10505_v2 }
 0x80e   : > { %v10509_v33 = vadd.f32 %v4727_v40, %v4603_v0  ;;  %v10524_v0 = vpop.f32.mrf.mxu3 }
 0x812   : > { %5365 = vmatmul.f32.gmra.mxu2 %v10157_v27  ;;  %v5096_v27 = vadd.f32 %v10230_v26, %v10103_v48  ;;  %v5259_v48 = vadd.f32 %v10419_v12, %v5097_v23 }
 0x814   : > { %v5258_v60 = vadd.f32 %v10403_v25, %v5096_v27  ;;  %v10544_v25 = vpop.f32.mrf.mxu0 }
 0x815   : > { %v4730_v22 = vpop.f32.mrf.mxu2 }
 0x816   : > { %v10518_v7 = vadd.f32 %v4730_v22, %v4604_v28  ;;  %v10537_v10 = vpop.f32.mrf.mxu3 }
 0x81a   : > { %5368 = vmatmul.f32.gmra.mxu2 %v10174_v56 }
 0x81c   : > { %v10558_v23 = vpop.f32.mrf.mxu0 }
 0x81d   : > { %v4733_v40 = vpop.f32.mrf.mxu2 }
 0x81e   : > { %v10526_v32 = vadd.f32 %v4733_v40, %v4605_v62  ;;  %v10547_v54 = vpop.f32.mrf.mxu3  ;;  %v11263_v62 = vld [vmem:[#allocation60_spill] sm:$0xff] }
 0x81f   : > { %v5098_v40 = vadd.f32 %v11263_v62, %v10135_v18  ;;  %v11267_v62 = vld [vmem:[#allocation53_spill] sm:$0xff] }
 0x822   : > { %5371 = vmatmul.f32.gmra.mxu2 %v10191_v19 }
 0x825   : > { %v5324_v56 = vpop.f32.mrf.mxu2 }
 0x826   : > { %v5420_v46 = vadd.f32 %v5324_v56, %v5258_v60  ;;  %v11264_v56 = vld [vmem:[#allocation23_spill] sm:$0xff] }
 0x828   : > { %v5456_v38 = vadd.f32 %v10535_v55, %v5420_v46  ;;  %v11265_v46 = vld [vmem:[#allocation15_spill] sm:$0xff] }
 0x82a   : > { %v5488_v28 = vmax.f32 %v5456_v38, 0.0  ;;  %5374 = vmatmul.f32.gmra.mxu2 %v10206_v14  ;;  %v5260_v14 = vadd.f32 %v10432_v52, %v5098_v40  ;;  %v5099_v38 = vadd.f32 %v11265_v46, %v11264_v56  ;;  %v11268_v46 = vld [vmem:[#allocation59_spill] sm:$0xff] }
 0x82c   : > { %5556 = vmatmul.f32.vlgmr.msra.gmra.mxu3 %v5488_v28  ;;  %v10561_v28 = vpop.f32.mrf.mxu3 }
 0x82d   : > { %v5327_v19 = vpop.f32.mrf.mxu2 }
 0x82e   : > { %v5421_v26 = vadd.f32 %v5327_v19, %v5259_v48  ;;  %v5189_v48 = vpop.f32.mrf.mxu1 }
 0x830   : > { %v5457_v22 = vadd.f32 %v10535_v55, %v5421_v26 }
 0x832   : > { %5377 = vmatmul.f32.gmra.mxu2 %v10221_v6  ;;  %v5489_v9 = vmax.f32 %v5457_v22, 0.0  ;;  %v5261_v6 = vadd.f32 %v10446_v47, %v5099_v38  ;;  %v11266_v22 = vld [vmem:[#allocation9_spill] sm:$0xff] }
 0x833   : > { %v5100_v40 = vadd.f32 %v11267_v62, %v11266_v22  ;;  %v11269_v38 = vld [vmem:[#allocation29_spill] sm:$0xff] }
 0x834   : > { %5559 = vmatmul.f32.gmra.mxu3 %v5489_v9 }
 0x835   : > { %v5330_v12 = vpop.f32.mrf.mxu2 }
 0x836   : > { %v5422_v27 = vadd.f32 %v5330_v12, %v5260_v14  ;;  %v10568_v14 = vpop.f32.mrf.mxu0  ;;  %v10571_v12 = vpop.f32.mrf.mxu3 }
 0x838   : > { %v5458_v60 = vadd.f32 %v10535_v55, %v5422_v27 }
 0x83a   : > { %5380 = vmatmul.f32.gmra.mxu2 %v10238_v58  ;;  %v5490_v18 = vmax.f32 %v5458_v60, 0.0  ;;  %v5262_v58 = vadd.f32 %v10463_v43, %v5100_v40  ;;  %v5192_v60 = vpop.f32.mrf.mxu1  ;;  %v11270_v40 = vld [vmem:[#allocation34_spill] sm:$0xff] }
 0x83c   : > { %5562 = vmatmul.f32.gmra.mxu3 %v5490_v18  ;;  %v5101_v18 = vadd.f32 %v11269_v38, %v11268_v46 }
 0x83d   : > { %v5333_v52 = vpop.f32.mrf.mxu2 }
 0x83e   : > { %v5423_v19 = vadd.f32 %v5333_v52, %v5261_v6 }
 0x840   : > { %v5459_v26 = vadd.f32 %v10535_v55, %v5423_v19  ;;  %v5033_v19 = vpop.f32.mrf.mxu0 }
 0x842   : > { %5383 = vmatmul.f32.gmra.mxu2 %v10256_v5  ;;  %v5491_v9 = vmax.f32 %v5459_v26, 0.0  ;;  %v5263_v5 = vadd.f32 %v10476_v57, %v5101_v18  ;;  %v10578_v26 = vpop.f32.mrf.mxu3  ;;  %v5195_v62 = vpop.f32.mrf.mxu1  ;;  %v11272_v18 = vld [vmem:[#allocation84_spill] sm:$0xff] }
 0x844   : > { %5565 = vmatmul.f32.gmra.mxu3 %v5491_v9  ;;  %v11271_v9 = vld [vmem:[#allocation69_spill] sm:$0xff] }
 0x845   : > { %v5336_v47 = vpop.f32.mrf.mxu2 }
 0x846   : > { %v5424_v27 = vadd.f32 %v5336_v47, %v5262_v58  ;;  %v5102_v58 = vadd.f32 %v11271_v9, %v11270_v40 }
 0x848   : > { %v5460_v56 = vadd.f32 %v10535_v55, %v5424_v27 }
 0x84a   : > { %5386 = vmatmul.f32.gmra.mxu2 %v10274_v36  ;;  %v5492_v6 = vmax.f32 %v5460_v56, 0.0  ;;  %v5264_v36 = vadd.f32 %v10492_v63, %v5102_v58  ;;  %v5036_v56 = vpop.f32.mrf.mxu0  ;;  %v10586_v38 = vpop.f32.mrf.mxu3 }
 0x84c   : > { %5568 = vmatmul.f32.gmra.mxu3 %v5492_v6  ;;  %v5103_v6 = vadd.f32 %v10363_v16, %v11272_v18 }
 0x84d   : > { %v5339_v52 = vpop.f32.mrf.mxu2 }
 0x84e   : > { %v5425_v43 = vadd.f32 %v5339_v52, %v5263_v5  ;;  %v5198_v52 = vpop.f32.mrf.mxu1 }
 0x850   : > { %v5461_v22 = vadd.f32 %v10535_v55, %v5425_v43 }
 0x852   : > { %5389 = vmatmul.f32.gmra.mxu2 %v10289_v8  ;;  %v5493_v47 = vmax.f32 %v5461_v22, 0.0  ;;  %v5265_v8 = vadd.f32 %v10507_v13, %v5103_v6  ;;  %v11273_v22 = vld [vmem:[#allocation51_spill] sm:$0xff] }
 0x853   : > { %v4906_v40 = vadd.f32 %v10397_v50, %v11273_v22  ;;  %v11275_v22 = vld [vmem:[#allocation85_spill] sm:$0xff] }
 0x854   : > { %5571 = vmatmul.f32.gmra.mxu3 %v5493_v47  ;;  %v5039_v47 = vpop.f32.mrf.mxu0 }
 0x855   : > { %v5342_v27 = vpop.f32.mrf.mxu2  ;;  %v5104_v58 = vadd.f32 %v10544_v25, %v4906_v40  ;;  %v4908_v40 = vadd.f32 %v10426_v20, %v11275_v22 }
 0x856   : > { %v5426_v57 = vadd.f32 %v5342_v27, %v5264_v36  ;;  %v10597_v36 = vpop.f32.mrf.mxu3  ;;  %v5201_v13 = vpop.f32.mrf.mxu1 }
 0x858   : > { %v5462_v46 = vadd.f32 %v10535_v55, %v5426_v57 }
 0x85a   : > { %5392 = vmatmul.f32.gmra.mxu2 %v10301_v30  ;;  %v5494_v5 = vmax.f32 %v5462_v46, 0.0  ;;  %v5266_v30 = vadd.f32 %v10552_v51, %v5104_v58  ;;  %v11274_v46 = vld [vmem:[#allocation58_spill] sm:$0xff] }
 0x85b   : > { %v4907_v18 = vadd.f32 %v10412_v42, %v11274_v46 }
 0x85c   : > { %5574 = vmatmul.f32.gmra.mxu3 %v5494_v5 }
 0x85d   : > { %v5345_v43 = vpop.f32.mrf.mxu2  ;;  %v5105_v6 = vadd.f32 %v10558_v23, %v4907_v18 }
 0x85e   : > { %v5427_v63 = vadd.f32 %v5345_v43, %v5265_v8  ;;  %v10605_v8 = vpop.f32.mrf.mxu3 }
 0x85f   : > { %v5267_v5 = vadd.f32 %v5189_v48, %v5105_v6  ;;  %v11277_v6 = vld [vmem:[#allocation63_spill] sm:$0xff] }
 0x860   : > { %v5463_v9 = vadd.f32 %v10535_v55, %v5427_v63  ;;  %v5204_v63 = vpop.f32.mrf.mxu1 }
 0x862   : > { %5395 = vmatmul.f32.gmra.mxu2 %v10318_v31  ;;  %v5495_v16 = vmax.f32 %v5463_v9, 0.0  ;;  %v5042_v31 = vpop.f32.mrf.mxu0  ;;  %v5106_v9 = vadd.f32 %v10568_v14, %v4908_v40 }
 0x864   : > { %5577 = vmatmul.f32.gmra.mxu3 %v5495_v16  ;;  %v5268_v23 = vadd.f32 %v5192_v60, %v5106_v9 }
 0x865   : > { %v5348_v27 = vpop.f32.mrf.mxu2 }
 0x866   : > { %v5428_v57 = vadd.f32 %v5348_v27, %v5266_v30  ;;  %v10612_v30 = vpop.f32.mrf.mxu3  ;;  %v11276_v27 = vld [vmem:[#allocation28_spill] sm:$0xff] }
 0x868   : > { %v5464_v50 = vadd.f32 %v10535_v55, %v5428_v57  ;;  %v4909_v57 = vadd.f32 %v10440_v39, %v11276_v27  ;;  %v5207_v20 = vpop.f32.mrf.mxu1 }
 0x86a   : > { %v5496_v25 = vmax.f32 %v5464_v50, 0.0  ;;  %5398 = vmatmul.f32.gmra.mxu2 %v10332_v3  ;;  %v5045_v48 = vpop.f32.mrf.mxu0  ;;  %v5107_v18 = vadd.f32 %v5033_v19, %v4909_v57  ;;  %v4964_v57 = vld [vmem:[#allocation4 + $0x19a] sm:$0xff] }
 0x86c   : > { %5580 = vmatmul.f32.gmra.mxu3 %v5496_v25  ;;  %v5269_v14 = vadd.f32 %v5195_v62, %v5107_v18  ;;  %v4910_v25 = vadd.f32 %v10454_v21, %v11277_v6 }
 0x86d   : > { %v5351_v51 = vpop.f32.mrf.mxu2 }
 0x86e   : > { %v5429_v43 = vadd.f32 %v5351_v51, %v5267_v5  ;;  %v5108_v39 = vadd.f32 %v5036_v56, %v4910_v25  ;;  %v4965_v25 = vld [vmem:[#allocation4 + $0x1a2] sm:$0xff] }
 0x870   : > { %v5465_v42 = vadd.f32 %v10535_v55, %v5429_v43  ;;  %v10621_v43 = vpop.f32.mrf.mxu3  ;;  %v5210_v19 = vpop.f32.mrf.mxu1  ;;  %v5270_v40 = vadd.f32 %v5198_v52, %v5108_v39 }
 0x872   : > { %v5497_v58 = vmax.f32 %v5465_v42, 0.0  ;;  %5401 = vmatmul.f32.gmra.mxu2 %v10348_v35  ;;  %v5048_v5 = vpop.f32.mrf.mxu0  ;;  %v11278_v42 = vld [vmem:[#allocation33_spill] sm:$0xff] }
 0x873   : > { %v4911_v9 = vadd.f32 %v10469_v59, %v11278_v42 }
 0x874   : > { %5583 = vmatmul.f32.gmra.mxu3 %v5497_v58 }
 0x875   : > { %v5354_v3 = vpop.f32.mrf.mxu2  ;;  %v5109_v21 = vadd.f32 %v5039_v47, %v4911_v9  ;;  %v11281_v9 = vld [vmem:[#allocation12_spill] sm:$0xff] }
 0x876   : > { %v5430_v16 = vadd.f32 %v5354_v3, %v5268_v23 }
 0x877   : > { %v5271_v56 = vadd.f32 %v5201_v13, %v5109_v21 }
 0x878   : > { %v5466_v46 = vadd.f32 %v10535_v55, %v5430_v16  ;;  %v10628_v16 = vpop.f32.mrf.mxu3 }
 0x87a   : > { %v5498_v50 = vmax.f32 %v5466_v46, 0.0  ;;  %5404 = vmatmul.f32.gmra.mxu2 %v10360_v24  ;;  %v5051_v23 = vpop.f32.mrf.mxu0  ;;  %v11279_v46 = vld [vmem:[#allocation67_spill] sm:$0xff] }
 0x87b   : > { %v4912_v18 = vadd.f32 %v10486_v49, %v11279_v46 }
 0x87c   : > { %5586 = vmatmul.f32.gmra.mxu3 %v5498_v50 }
 0x87d   : > { %v5357_v35 = vpop.f32.mrf.mxu2  ;;  %v5110_v50 = vadd.f32 %v5042_v31, %v4912_v18 }
 0x87e   : > { %v5431_v60 = vadd.f32 %v5357_v35, %v5269_v14 }
 0x87f   : > { %v5272_v35 = vadd.f32 %v5204_v63, %v5110_v50 }
 0x880   : > { %v5467_v51 = vadd.f32 %v10535_v55, %v5431_v60 }
 0x882   : > { %v5499_v22 = vmax.f32 %v5467_v51, 0.0  ;;  %5407 = vmatmul.f32.gmra.mxu2 %v10494_v53  ;;  %v5213_v53 = vpop.f32.mrf.mxu1  ;;  %v5054_v47 = vpop.f32.mrf.mxu0  ;;  %v11280_v51 = vld [vmem:[#allocation16_spill] sm:$0xff] }
 0x883   : > { %v4913_v39 = vadd.f32 %v10499_v45, %v11280_v51 }
 0x884   : > { %5589 = vmatmul.f32.gmra.mxu3 %v5499_v22 }
 0x885   : > { %v5360_v24 = vpop.f32.mrf.mxu2  ;;  %v5111_v49 = vadd.f32 %v5045_v48, %v4913_v39 }
 0x886   : > { %v5432_v62 = vadd.f32 %v5360_v24, %v5270_v40 }
 0x887   : > { %v5273_v31 = vadd.f32 %v5207_v20, %v5111_v49  ;;  %v4915_v20 = vadd.f32 %v10524_v0, %v10370_v37 }
 0x888   : > { %v5468_v58 = vadd.f32 %v10535_v55, %v5432_v62 }
 0x88a   : > { %v5500_v3 = vmax.f32 %v5468_v58, 0.0  ;;  %5410 = vmatmul.f32.gmra.mxu2 %v10505_v2  ;;  %v10633_v2 = vpop.f32.mrf.mxu3  ;;  %v5216_v6 = vpop.f32.mrf.mxu1  ;;  %v4914_v58 = vadd.f32 %v10515_v41, %v11281_v9 }
 0x88b   : > { %v5057_v42 = vpop.f32.mrf.mxu0 }
 0x88c   : > { %5592 = vmatmul.f32.gmra.mxu3 %v5500_v3 }
 0x88d   : > { %v5363_v27 = vpop.f32.mrf.mxu2 }
 0x88e   : > { %v5433_v52 = vadd.f32 %v5363_v27, %v5271_v56  ;;  %v5112_v56 = vadd.f32 %v5048_v5, %v4914_v58  ;;  %v10651_v5 = vld [vmem:[%s10743_s8] ss:$0 sm:$0xff] }
 0x890   : > { %v5469_v59 = vadd.f32 %v10535_v55, %v5433_v52  ;;  %v5274_v27 = vadd.f32 %v5210_v19, %v5112_v56 }
 0x892   : > { %v5501_v14 = vmax.f32 %v5469_v59, 0.0  ;;  %5413 = vmatmul.f32.gmra.mxu2 %v4964_v57  ;;  %v10638_v24 = vpop.f32.mrf.mxu3  ;;  %v5219_v3 = vpop.f32.mrf.mxu1  ;;  %v5113_v59 = vadd.f32 %v5051_v23, %v4915_v20 }
 0x893   : > { %v5060_v18 = vpop.f32.mrf.mxu0 }
 0x894   : > { %5595 = vmatmul.f32.gmra.mxu3 %v5501_v14  ;;  %v5275_v14 = vadd.f32 %v5213_v53, %v5113_v59 }
 0x895   : > { %v5366_v60 = vpop.f32.mrf.mxu2 }
 0x896   : > { %v5434_v13 = vadd.f32 %v5366_v60, %v5272_v35 }
 0x898   : > { %v5470_v22 = vadd.f32 %v10535_v55, %v5434_v13  ;;  %v4916_v13 = vadd.f32 %v10537_v10, %v10379_v1 }
 0x89a   : > { %v5502_v40 = vmax.f32 %v5470_v22, 0.0  ;;  %5416 = vmatmul.f32.gmra.mxu2 %v4965_v25  ;;  %v10643_v57 = vpop.f32.mrf.mxu3  ;;  %v5222_v41 = vpop.f32.mrf.mxu1  ;;  %v5114_v23 = vadd.f32 %v5054_v47, %v4916_v13 }
 0x89b   : > { %v5063_v53 = vpop.f32.mrf.mxu0 }
 0x89c   : > { %5598 = vmatmul.f32.gmra.mxu3 %v5502_v40  ;;  %v5276_v51 = vadd.f32 %v5216_v6, %v5114_v23 }
 0x89d   : > { %v5369_v63 = vpop.f32.mrf.mxu2 }
 0x89e   : > { %v5435_v62 = vadd.f32 %v5369_v63, %v5273_v31  ;;  %v4917_v31 = vadd.f32 %v10547_v54, %v10391_v4 }
 0x8a0   : > { %v5471_v21 = vadd.f32 %v10535_v55, %v5435_v62  ;;  %v5115_v10 = vadd.f32 %v5057_v42, %v4917_v31 }
 0x8a2   : > { %v5503_v45 = vmax.f32 %v5471_v21, 0.0  ;;  %v5225_v39 = vpop.f32.mrf.mxu1  ;;  %v5277_v47 = vadd.f32 %v5219_v3, %v5115_v10 }
 0x8a3   : > { %v5066_v9 = vpop.f32.mrf.mxu0 }
 0x8a4   : > { %5601 = vmatmul.f32.gmra.mxu3 %v5503_v45  ;;  %v11282_v45 = vld [vmem:[#allocation35_spill] sm:$0xff] }
 0x8a5   : > { %v5372_v48 = vpop.f32.mrf.mxu2 }
 0x8a6   : > { %v5436_v52 = vadd.f32 %v5372_v48, %v5274_v27  ;;  %v4918_v27 = vadd.f32 %v10561_v28, %v11282_v45  ;;  %v4922_v45 = vadd.f32 %v10597_v36, %v10448_v61 }
 0x8a8   : > { %v5472_v46 = vadd.f32 %v10535_v55, %v5436_v52  ;;  %v5116_v54 = vadd.f32 %v5060_v18, %v4918_v27 }
 0x8aa   : > { %v5504_v50 = vmax.f32 %v5472_v46, 0.0  ;;  %v5228_v21 = vpop.f32.mrf.mxu1  ;;  %v5278_v42 = vadd.f32 %v5222_v41, %v5116_v54 }
 0x8ab   : > { %v5069_v46 = vpop.f32.mrf.mxu0 }
 0x8ac   : > { %5604 = vmatmul.f32.gmra.mxu3 %v5504_v50  ;;  %v4919_v50 = vadd.f32 %v10571_v12, %v10414_v11 }
 0x8ad   : > { %v5375_v19 = vpop.f32.mrf.mxu2 }
 0x8ae   : > { %v5437_v35 = vadd.f32 %v5375_v19, %v5275_v14 }
 0x8af   : > { %v5557_v60 = vpop.f32.mrf.mxu3 }
 0x8b0   : > { %v5473_v37 = vadd.f32 %v10535_v55, %v5437_v35  ;;  %v5558_v0 = vadd.f32 %v10651_v5, %v5557_v60  ;;  %v5117_v35 = vadd.f32 %v5063_v53, %v4919_v50 }
 0x8b2   : > { %v5505_v25 = vmax.f32 %v5473_v37, 0.0  ;;  %5653 = vxpose.xlu0.b32.start [1/16] (narrow) %v5558_v0, 16  ;;  %v5231_v19 = vpop.f32.mrf.mxu1  ;;  %v5279_v18 = vadd.f32 %v5225_v39, %v5117_v35  ;;  %v11283_v0 = vld [vmem:[#allocation73_spill] sm:$0xff] }
 0x8b3   : > { %v4920_v23 = vadd.f32 %v10578_v26, %v11283_v0  ;;  %v5072_v12 = vpop.f32.mrf.mxu0 }
 0x8b4   : > { %5607 = vmatmul.f32.gmra.mxu3 %v5505_v25 }
 0x8b5   : > { %v5378_v22 = vpop.f32.mrf.mxu2 }
 0x8b6   : > { %v5438_v49 = vadd.f32 %v5378_v22, %v5276_v51  ;;  %v5118_v51 = vadd.f32 %v5066_v9, %v4920_v23 }
 0x8b7   : > { %v5560_v40 = vpop.f32.mrf.mxu3 }
 0x8b8   : > { %v5474_v63 = vadd.f32 %v10535_v55, %v5438_v49  ;;  %v5561_v1 = vadd.f32 %v10651_v5, %v5560_v40  ;;  %v5280_v53 = vadd.f32 %v5228_v21, %v5118_v51 }
 0x8ba   : > { %v5506_v62 = vmax.f32 %v5474_v63, 0.0  ;;  %5654 = vxpose.xlu0.b32.cont [2/16] (narrow) %v5561_v1, 16  ;;  %v5234_v49 = vpop.f32.mrf.mxu1  ;;  %v4921_v63 = vadd.f32 %v10586_v38, %v10437_v29  ;;  %v5120_v38 = vadd.f32 %v5072_v12, %v4922_v45  ;;  %v4925_v12 = vadd.f32 %v10621_v43, %v10483_v15 }
 0x8bc   : > { %5610 = vmatmul.f32.gmra.mxu3 %v5506_v62  ;;  %v5119_v10 = vadd.f32 %v5069_v46, %v4921_v63  ;;  %v4923_v46 = vadd.f32 %v10605_v8, %v10460_v34 }
 0x8bd   : > { %v5381_v58 = vpop.f32.mrf.mxu2 }
 0x8be   : > { %v5439_v6 = vadd.f32 %v5381_v58, %v5277_v47  ;;  %v5075_v47 = vpop.f32.mrf.mxu0  ;;  %v5281_v9 = vadd.f32 %v5231_v19, %v5119_v10 }
 0x8bf   : > { %v5563_v56 = vpop.f32.mrf.mxu3  ;;  %v5121_v36 = vadd.f32 %v5075_v47, %v4923_v46 }
 0x8c0   : > { %v5475_v48 = vadd.f32 %v10535_v55, %v5439_v6  ;;  %v5564_v4 = vadd.f32 %v10651_v5, %v5563_v56 }
 0x8c2   : > { %v5507_v52 = vmax.f32 %v5475_v48, 0.0  ;;  %5655 = vxpose.xlu0.b32.cont [3/16] (narrow) %v5564_v4, 16  ;;  %v5237_v58 = vpop.f32.mrf.mxu1  ;;  %v5282_v4 = vadd.f32 %v5234_v49, %v5120_v38 }
 0x8c4   : > { %5613 = vmatmul.f32.gmra.mxu3 %v5507_v52 }
 0x8c5   : > { %v5384_v20 = vpop.f32.mrf.mxu2 }
 0x8c6   : > { %v5440_v3 = vadd.f32 %v5384_v20, %v5278_v42  ;;  %v5078_v54 = vpop.f32.mrf.mxu0 }
 0x8c7   : > { %v5566_v59 = vpop.f32.mrf.mxu3 }
 0x8c8   : > { %v5476_v14 = vadd.f32 %v10535_v55, %v5440_v3  ;;  %v5567_v28 = vadd.f32 %v10651_v5, %v5566_v59 }
 0x8ca   : > { %v5508_v60 = vmax.f32 %v5476_v14, 0.0  ;;  %5656 = vxpose.xlu0.b32.cont [4/16] (narrow) %v5567_v28, 16  ;;  %v5240_v20 = vpop.f32.mrf.mxu1  ;;  %v5283_v14 = vadd.f32 %v5237_v58, %v5121_v36 }
 0x8cc   : > { %5616 = vmatmul.f32.gmra.mxu3 %v5508_v60 }
 0x8cd   : > { %v5387_v13 = vpop.f32.mrf.mxu2 }
 0x8ce   : > { %v5441_v41 = vadd.f32 %v5387_v13, %v5279_v18  ;;  %v5081_v35 = vpop.f32.mrf.mxu0  ;;  %v4924_v18 = vadd.f32 %v10612_v30, %v10471_v17 }
 0x8cf   : > { %v5569_v37 = vpop.f32.mrf.mxu3 }
 0x8d0   : > { %v5477_v25 = vadd.f32 %v10535_v55, %v5441_v41  ;;  %v5570_v11 = vadd.f32 %v10651_v5, %v5569_v37  ;;  %v5122_v41 = vadd.f32 %v5078_v54, %v4924_v18 }
 0x8d2   : > { %v5509_v22 = vmax.f32 %v5477_v25, 0.0  ;;  %5657 = vxpose.xlu0.b32.cont [5/16] (narrow) %v5570_v11, 16  ;;  %v5243_v8 = vpop.f32.mrf.mxu1  ;;  %v5284_v0 = vadd.f32 %v5240_v20, %v5122_v41 }
 0x8d4   : > { %5619 = vmatmul.f32.gmra.mxu3 %v5509_v22  ;;  %v5123_v22 = vadd.f32 %v5081_v35, %v4925_v12 }
 0x8d5   : > { %v5390_v40 = vpop.f32.mrf.mxu2 }
 0x8d6   : > { %v5442_v39 = vadd.f32 %v5390_v40, %v5280_v53  ;;  %v5084_v30 = vpop.f32.mrf.mxu0  ;;  %v5285_v40 = vadd.f32 %v5243_v8, %v5123_v22 }
 0x8d7   : > { %v5572_v31 = vpop.f32.mrf.mxu3 }
 0x8d8   : > { %v5478_v1 = vadd.f32 %v10535_v55, %v5442_v39  ;;  %v5573_v26 = vadd.f32 %v10651_v5, %v5572_v31 }
 0x8da   : > { %v5510_v62 = vmax.f32 %v5478_v1, 0.0  ;;  %5658 = vxpose.xlu0.b32.cont [6/16] (narrow) %v5573_v26, 16  ;;  %v5246_v53 = vpop.f32.mrf.mxu1  ;;  %v4926_v1 = vadd.f32 %v10628_v16, %v10496_v44 }
 0x8dc   : > { %5622 = vmatmul.f32.gmra.mxu3 %v5510_v62  ;;  %v5124_v43 = vadd.f32 %v5084_v30, %v4926_v1 }
 0x8dd   : > { %v5393_v6 = vpop.f32.mrf.mxu2 }
 0x8de   : > { %v5443_v21 = vadd.f32 %v5393_v6, %v5281_v9  ;;  %v5087_v62 = vpop.f32.mrf.mxu0  ;;  %v5286_v47 = vadd.f32 %v5246_v53, %v5124_v43 }
 0x8df   : > { %v5575_v56 = vpop.f32.mrf.mxu3 }
 0x8e0   : > { %v5479_v27 = vadd.f32 %v10535_v55, %v5443_v21  ;;  %v5576_v29 = vadd.f32 %v10651_v5, %v5575_v56  ;;  %v4927_v56 = vadd.f32 %v10633_v2, %v10509_v33 }
 0x8e2   : > { %v5511_v48 = vmax.f32 %v5479_v27, 0.0  ;;  %5659 = vxpose.xlu0.b32.cont [7/16] (narrow) %v5576_v29, 16  ;;  %v5249_v9 = vpop.f32.mrf.mxu1  ;;  %v5125_v16 = vadd.f32 %v5087_v62, %v4927_v56 }
 0x8e4   : > { %5625 = vmatmul.f32.gmra.mxu3 %v5511_v48  ;;  %v5287_v29 = vadd.f32 %v5249_v9, %v5125_v16 }
 0x8e5   : > { %v5396_v52 = vpop.f32.mrf.mxu2 }
 0x8e6   : > { %v5444_v42 = vadd.f32 %v5396_v52, %v5282_v4  ;;  %v5090_v38 = vpop.f32.mrf.mxu0 }
 0x8e7   : > { %v5578_v3 = vpop.f32.mrf.mxu3 }
 0x8e8   : > { %v5480_v59 = vadd.f32 %v10535_v55, %v5444_v42  ;;  %v5579_v61 = vadd.f32 %v10651_v5, %v5578_v3  ;;  %v4928_v42 = vadd.f32 %v10638_v24, %v10518_v7 }
 0x8ea   : > { %v5512_v50 = vmax.f32 %v5480_v59, 0.0  ;;  %5660 = vxpose.xlu0.b32.cont [8/16] (narrow) %v5579_v61, 16  ;;  %v5252_v54 = vpop.f32.mrf.mxu1  ;;  %v5126_v2 = vadd.f32 %v5090_v38, %v4928_v42 }
 0x8ec   : > { %5628 = vmatmul.f32.gmra.mxu3 %v5512_v50  ;;  %v5288_v46 = vadd.f32 %v5252_v54, %v5126_v2 }
 0x8ed   : > { %v5399_v28 = vpop.f32.mrf.mxu2 }
 0x8ee   : > { %v5445_v19 = vadd.f32 %v5399_v28, %v5283_v14  ;;  %v5093_v36 = vpop.f32.mrf.mxu0  ;;  %v4929_v14 = vadd.f32 %v10643_v57, %v10526_v32 }
 0x8ef   : > { %v5581_v60 = vpop.f32.mrf.mxu3 }
 0x8f0   : > { %v5481_v13 = vadd.f32 %v10535_v55, %v5445_v19  ;;  %v5582_v34 = vadd.f32 %v10651_v5, %v5581_v60  ;;  %v5127_v19 = vadd.f32 %v5093_v36, %v4929_v14 }
 0x8f2   : > { %v5513_v37 = vmax.f32 %v5481_v13, 0.0  ;;  %5661 = vxpose.xlu0.b32.cont [9/16] (narrow) %v5582_v34, 16  ;;  %v5255_v24 = vpop.f32.mrf.mxu1 }
 0x8f3   : > { %v5289_v60 = vadd.f32 %v5255_v24, %v5127_v19 }
 0x8f4   : > { %5631 = vmatmul.f32.gmra.mxu3 %v5513_v37 }
 0x8f5   : > { %v5402_v23 = vpop.f32.mrf.mxu2 }
 0x8f6   : > { %v5446_v25 = vadd.f32 %v5402_v23, %v5284_v0 }
 0x8f7   : > { %v5584_v11 = vpop.f32.mrf.mxu3 }
 0x8f8   : > { %v5482_v51 = vadd.f32 %v10535_v55, %v5446_v25  ;;  %v5585_v17 = vadd.f32 %v10651_v5, %v5584_v11 }
 0x8fa   : > { %v5514_v49 = vmax.f32 %v5482_v51, 0.0  ;;  %5662 = vxpose.xlu0.b32.cont [10/16] (narrow) %v5585_v17, 16 }
 0x8fc   : > { %5634 = vmatmul.f32.gmra.mxu3 %v5514_v49 }
 0x8fd   : > { %v5405_v39 = vpop.f32.mrf.mxu2 }
 0x8fe   : > { %v5447_v31 = vadd.f32 %v5405_v39, %v5285_v40 }
 0x8ff   : > { %v5587_v63 = vpop.f32.mrf.mxu3 }
 0x900   : > { %v5483_v26 = vadd.f32 %v10535_v55, %v5447_v31  ;;  %v5588_v15 = vadd.f32 %v10651_v5, %v5587_v63 }
 0x902   : > { %v5515_v10 = vmax.f32 %v5483_v26, 0.0  ;;  %5663 = vxpose.xlu0.b32.cont [11/16] (narrow) %v5588_v15, 16 }
 0x904   : > { %5637 = vmatmul.f32.gmra.mxu3 %v5515_v10 }
 0x905   : > { %v5408_v58 = vpop.f32.mrf.mxu2 }
 0x906   : > { %v5448_v6 = vadd.f32 %v5408_v58, %v5286_v47 }
 0x907   : > { %v5590_v21 = vpop.f32.mrf.mxu3 }
 0x908   : > { %v5484_v45 = vadd.f32 %v10535_v55, %v5448_v6  ;;  %v5591_v44 = vadd.f32 %v10651_v5, %v5590_v21 }
 0x90a   : > { %v5516_v27 = vmax.f32 %v5484_v45, 0.0  ;;  %5664 = vxpose.xlu0.b32.cont [12/16] (narrow) %v5591_v44, 16 }
 0x90c   : > { %5640 = vmatmul.f32.gmra.mxu3 %v5516_v27 }
 0x90d   : > { %v5411_v48 = vpop.f32.mrf.mxu2 }
 0x90e   : > { %v5449_v4 = vadd.f32 %v5411_v48, %v5287_v29 }
 0x90f   : > { %v5593_v52 = vpop.f32.mrf.mxu3 }
 0x910   : > { %v5485_v20 = vadd.f32 %v10535_v55, %v5449_v4  ;;  %v5594_v33 = vadd.f32 %v10651_v5, %v5593_v52 }
 0x912   : > { %v5517_v3 = vmax.f32 %v5485_v20, 0.0  ;;  %5665 = vxpose.xlu0.b32.cont [13/16] (narrow) %v5594_v33, 16 }
 0x914   : > { %5643 = vmatmul.f32.gmra.mxu3 %v5517_v3 }
 0x915   : > { %v5414_v59 = vpop.f32.mrf.mxu2 }
 0x916   : > { %v5450_v61 = vadd.f32 %v5414_v59, %v5288_v46 }
 0x917   : > { %v5596_v50 = vpop.f32.mrf.mxu3 }
 0x918   : > { %v5486_v28 = vadd.f32 %v10535_v55, %v5450_v61  ;;  %v5597_v7 = vadd.f32 %v10651_v5, %v5596_v50 }
 0x91a   : > { %v5518_v35 = vmax.f32 %v5486_v28, 0.0  ;;  %5666 = vxpose.xlu0.b32.cont [14/16] (narrow) %v5597_v7, 16 }
 0x91c   : > { %5646 = vmatmul.f32.gmra.mxu3 %v5518_v35 }
 0x91d   : > { %v5417_v18 = vpop.f32.mrf.mxu2 }
 0x91e   : > { %v5451_v13 = vadd.f32 %v5417_v18, %v5289_v60 }
 0x91f   : > { %v5599_v34 = vpop.f32.mrf.mxu3 }
 0x920   : > { %v5487_v8 = vadd.f32 %v10535_v55, %v5451_v13  ;;  %v5600_v41 = vadd.f32 %v10651_v5, %v5599_v34 }
 0x922   : > { %v5519_v37 = vmax.f32 %v5487_v8, 0.0  ;;  %5667 = vxpose.xlu0.b32.cont [15/16] (narrow) %v5600_v41, 16 }
 0x924   : > { %5649 = vmatmul.f32.gmra.mxu3 %v5519_v37 }
 0x927   : > { %v5602_v32 = vpop.f32.mrf.mxu3 }
 0x928   : > { %v5603_v57 = vadd.f32 %v10651_v5, %v5602_v32 }
 0x92a   : > { %5668 = vxpose.xlu0.b32.end [16/16] (narrow) %v5603_v57, 16 }
 0x92f   : > { %v5605_v0 = vpop.f32.mrf.mxu3 }
 0x930   : > { %v5606_v23 = vadd.f32 %v10651_v5, %v5605_v0 }
 0x932   : > { %5685 = vxpose.xlu1.b32.start [1/16] (narrow) %v5606_v23, 16 }
 0x937   : > { %v5608_v25 = vpop.f32.mrf.mxu3 }
 0x938   : > { %v5609_v11 = vadd.f32 %v10651_v5, %v5608_v25 }
 0x93a   : > { %5686 = vxpose.xlu1.b32.cont [2/16] (narrow) %v5609_v11, 16 }
 0x93f   : > { %v5611_v12 = vpop.f32.mrf.mxu3 }
 0x940   : > { %v5612_v55 = vadd.f32 %v10651_v5, %v5611_v12 }
 0x942   : > { %5687 = vxpose.xlu1.b32.cont [3/16] (narrow) %v5612_v55, 16 }
 0x947   : > { %v5614_v51 = vpop.f32.mrf.mxu3 }
 0x948   : > { %v5615_v17 = vadd.f32 %v10651_v5, %v5614_v51 }
 0x94a   : > { %5688 = vxpose.xlu1.b32.cont [4/16] (narrow) %v5615_v17, 16 }
 0x94f   : > { %v5617_v30 = vpop.f32.mrf.mxu3 }
 0x950   : > { %v5618_v22 = vadd.f32 %v10651_v5, %v5617_v30 }
 0x952   : > { %5689 = vxpose.xlu1.b32.cont [5/16] (narrow) %v5618_v22, 16 }
 0x956   : > { %v5669_v58 = vpop.trf.xlu0 }
 0x957   : > { %v5620_v49 = vpop.f32.mrf.mxu3  ;;  %5717 = vst [vmem:[%s332_s29] sm:$0xff] %v5669_v58 }
 0x958   : > { %v5621_v53 = vadd.f32 %v10651_v5, %v5620_v49 }
 0x95a   : > { %5690 = vxpose.xlu1.b32.cont [6/16] (narrow) %v5621_v53, 16 }
 0x95e   : > { %v5670_v38 = vpop.trf.xlu0 }
 0x95f   : > { %v5623_v40 = vpop.f32.mrf.mxu3  ;;  %5719 = vst [vmem:[%s332_s29 + $0x10] sm:$0xff] %v5670_v38 }
 0x960   : > { %v5624_v39 = vadd.f32 %v10651_v5, %v5623_v40 }
 0x962   : > { %5691 = vxpose.xlu1.b32.cont [7/16] (narrow) %v5624_v39, 16 }
 0x967   : > { %v5626_v31 = vpop.f32.mrf.mxu3 }
 0x968   : > { %v5627_v63 = vadd.f32 %v10651_v5, %v5626_v31 }
 0x96a   : > { %5692 = vxpose.xlu1.b32.cont [8/16] (narrow) %v5627_v63, 16 }
 0x96f   : > { %v5629_v1 = vpop.f32.mrf.mxu3 }
 0x970   : > { %v5630_v26 = vadd.f32 %v10651_v5, %v5629_v1 }
 0x972   : > { %5693 = vxpose.xlu1.b32.cont [9/16] (narrow) %v5630_v26, 16 }
 0x977   : > { %v5632_v15 = vpop.f32.mrf.mxu3 }
 0x978   : > { %v5633_v43 = vadd.f32 %v10651_v5, %v5632_v15 }
 0x97a   : > { %5694 = vxpose.xlu1.b32.cont [10/16] (narrow) %v5633_v43, 16 }
 0x97f   : > { %v5635_v10 = vpop.f32.mrf.mxu3 }
 0x980   : > { %v5636_v62 = vadd.f32 %v10651_v5, %v5635_v10 }
 0x982   : > { %5695 = vxpose.xlu1.b32.cont [11/16] (narrow) %v5636_v62, 16 }
 0x987   : > { %v5638_v47 = vpop.f32.mrf.mxu3 }
 0x988   : > { %v5639_v9 = vadd.f32 %v10651_v5, %v5638_v47 }
 0x98a   : > { %5696 = vxpose.xlu1.b32.cont [12/16] (narrow) %v5639_v9, 16 }
 0x98f   : > { %v5641_v6 = vpop.f32.mrf.mxu3 }
 0x990   : > { %v5642_v21 = vadd.f32 %v10651_v5, %v5641_v6 }
 0x992   : > { %5697 = vxpose.xlu1.b32.cont [13/16] (narrow) %v5642_v21, 16 }
 0x997   : > { %v5644_v56 = vpop.f32.mrf.mxu3 }
 0x998   : > { %v5645_v45 = vadd.f32 %v10651_v5, %v5644_v56 }
 0x99a   : > { %5698 = vxpose.xlu1.b32.cont [14/16] (narrow) %v5645_v45, 16 }
 0x99f   : > { %v5647_v44 = vpop.f32.mrf.mxu3 }
 0x9a0   : > { %v5648_v16 = vadd.f32 %v10651_v5, %v5647_v44 }
 0x9a2   : > { %5699 = vxpose.xlu1.b32.cont [15/16] (narrow) %v5648_v16, 16 }
 0x9a7   : > { %v5650_v27 = vpop.f32.mrf.mxu3 }
 0x9a8   : > { %v5651_v29 = vadd.f32 %v10651_v5, %v5650_v27 }
 0x9aa   : > { %5700 = vxpose.xlu1.b32.end [16/16] (narrow) %v5651_v29, 16 }
 0x9d6   : > { %v5701_v48 = vpop.trf.xlu1 }
 0x9d7   : > { %5718 = vst [vmem:[%s332_s29 + $0x8] sm:$0xff] %v5701_v48 }
 0x9de   : > { %v5702_v4 = vpop.trf.xlu1 }
 0x9df   : > { %5720 = vst [vmem:[%s332_s29 + $0x18] sm:$0xff] %v5702_v4 }
 0x9e0 PF: > { %s19_s30 = sadd.s32 1, %s6429_s30  }
 0x9e1   : > { %p16_p4 = scmp.ge.s32.totalorder %s19_s30, 4  }
 0x9e3   :  { %18 = sbr.rel (!%p16_p4) target bundleno = 1 (0x1), region = 116 }

</bundles_post_ra>
